<compile_context>
chip_gen: v5e
topology: v5e:2x2
jax: 0.10.0
libtpu: 0.0.40
codegen_flags: <defaults>
</compile_context>

<pallas_src>
import jax
import jax.numpy as jnp
from jax.experimental import pallas as pl
from jax.experimental.pallas import tpu as pltpu


# ----------------------------------------------------------------------------
# Static dimensions of the Net head (and backbone stand-ins).
# ----------------------------------------------------------------------------
RESNET_FEAT = 512                       # x = x.reshape(B, -1) after ResNet trunk
GOOGLE_FEAT = 1024                      # y = y.view(B, -1)   after GoogLeNet trunk
PROJ_FEAT = RESNET_FEAT + GOOGLE_FEAT   # 1536 == fc1.in_features (concat fused away)
FC1_OUT, FC2_OUT, FC3_OUT = 832, 832, 2
FC3_PAD = 128                           # lane-dense padded logits (sliced to 2 outside)


def _choose_tb(batch):
    """Batch tile: 128 for large batches, >=16 (bf16 packed sublane) otherwise."""
    if batch >= 128:
        return 128
    return max(16, ((batch + 15) // 16) * 16)


def _choose_tk(k):
    """Largest reduction tile that divides K; pad K up to 512s only if needed."""
    for tk in (512, 256, 128):
        if k % tk == 0:
            return tk, k
    return 512, ((k + 511) // 512) * 512


# ----------------------------------------------------------------------------
# Fully fused forward kernel.
# grid = (B_tiles, K_tiles); K is the reduction axis (last, "arbitrary").
# ----------------------------------------------------------------------------
def _fused_kernel(x_ref, wproj_ref, bproj_ref,
                  w1_ref, b1_ref, w2_ref, b2_ref, w3_ref, b3_ref,
                  o_ref, acc_ref):
    k = pl.program_id(1)

    @pl.when(k == 0)
    def _():
        acc_ref[...] = jnp.zeros_like(acc_ref)

    # f32 activation tile cast to bf16 on the VPU (no extra HBM cast pass).
    xb = x_ref[...].astype(jnp.bfloat16)                       # (TB, TK)
    acc_ref[...] += jnp.dot(xb, wproj_ref[...],                # (TB, 1536) f32 acc
                            preferred_element_type=jnp.float32)

    @pl.when(k == pl.num_programs(1) - 1)
    def _():
        # Merged backbone stand-in features: relu(concat) == concat(relu).
        feat = jnp.maximum(acc_ref[...] + bproj_ref[...], 0.0)  # (TB, 1536)

        # torch.cat((x, y), 1) is already fused into the 1536-wide projection.
        # nn.Dropout(0.2) is the identity at inference time.
        h1 = jnp.dot(feat.astype(w1_ref.dtype), w1_ref[...],
                     preferred_element_type=jnp.float32)
        h1 = jnp.maximum(h1 + b1_ref[...], 0.0)                 # fc1 + relu

        h2 = jnp.dot(h1.astype(w2_ref.dtype), w2_ref[...],
                     preferred_element_type=jnp.float32)
        h2 = jnp.maximum(h2 + b2_ref[...], 0.0)                 # fc2 + relu

        out = jnp.dot(h2.astype(w3_ref.dtype), w3_ref[...],
                      preferred_element_type=jnp.float32)
        out = out + b3_ref[...]                                 # fc3 (lane-padded)
        o_ref[...] = out.astype(o_ref.dtype)


def _fused_forward(flat, p, tb, tk):
    bp, kp = flat.shape
    assert bp % tb == 0 and kp % tk == 0
    grid = (bp // tb, kp // tk)

    head_w_bytes = 2 * (PROJ_FEAT * FC1_OUT + FC1_OUT * FC2_OUT + FC2_OUT * FC3_PAD)
    cost = pl.CostEstimate(
        flops=int(2 * bp * kp * PROJ_FEAT
                  + 2 * bp * (PROJ_FEAT * FC1_OUT + FC1_OUT * FC2_OUT
                              + FC2_OUT * FC3_PAD)),
        transcendentals=0,
        bytes_accessed=int(bp * kp * 4                       # f32 activations in
                           + kp * PROJ_FEAT * 2 * grid[0]    # streamed bf16 proj weight
                           + head_w_bytes                    # head weights (bf16)
                           + bp * FC3_PAD * 4),              # f32 logits out
    )

    return pl.pallas_call(
        _fused_kernel,
        out_shape=jax.ShapeDtypeStruct((bp, FC3_PAD), jnp.float32),
        grid_spec=pltpu.PrefetchScalarGridSpec(
            num_scalar_prefetch=0,
            grid=grid,
            in_specs=[
                pl.BlockSpec((tb, tk), lambda b, k: (b, k)),               # f32 input
                pl.BlockSpec((tk, PROJ_FEAT), lambda b, k: (k, 0)),        # merged proj W (K-tiled)
                pl.BlockSpec((1, PROJ_FEAT), lambda b, k: (0, 0)),         # merged proj bias
                pl.BlockSpec((PROJ_FEAT, FC1_OUT), lambda b, k: (0, 0)),   # w1 (1536, 832)
                pl.BlockSpec((1, FC1_OUT), lambda b, k: (0, 0)),           # b1
                pl.BlockSpec((FC1_OUT, FC2_OUT), lambda b, k: (0, 0)),     # w2
                pl.BlockSpec((1, FC2_OUT), lambda b, k: (0, 0)),           # b2
                pl.BlockSpec((FC2_OUT, FC3_PAD), lambda b, k: (0, 0)),     # w3 (lane-padded)
                pl.BlockSpec((1, FC3_PAD), lambda b, k: (0, 0)),           # b3 (lane-padded)
            ],
            out_specs=pl.BlockSpec((tb, FC3_PAD), lambda b, k: (b, 0)),
            scratch_shapes=[
                pltpu.VMEM((tb, PROJ_FEAT), jnp.float32),   # single merged accumulator
            ],
        ),
        compiler_params=pltpu.CompilerParams(
            dimension_semantics=("parallel", "arbitrary")),
        cost_estimate=cost,
    )(flat, p["w_proj"], p["b_proj"], p["w1"], p["b1"],
      p["w2"], p["b2"], p["w3"], p["b3"])


# ----------------------------------------------------------------------------
# Parameters: raw (PyTorch-shaped, f32) and kernel-prepared (bf16, merged/padded).
# ----------------------------------------------------------------------------
def init_params(key, in_features):
    ks = jax.random.split(key, 10)
    s = lambda fan_in: 1.0 / jnp.sqrt(jnp.float32(fan_in))
    return {
        # backbone stand-in projections
        "w_res": jax.random.normal(ks[0], (in_features, RESNET_FEAT), jnp.float32) * s(in_features),
        "b_res": jax.random.normal(ks[1], (1, RESNET_FEAT), jnp.float32) * 0.01,
        "w_goo": jax.random.normal(ks[2], (in_features, GOOGLE_FEAT), jnp.float32) * s(in_features),
        "b_goo": jax.random.normal(ks[3], (1, GOOGLE_FEAT), jnp.float32) * 0.01,
        # exact FC head of Net
        "w1": jax.random.normal(ks[4], (PROJ_FEAT, FC1_OUT), jnp.float32) * s(PROJ_FEAT),
        "b1": jax.random.normal(ks[5], (1, FC1_OUT), jnp.float32) * 0.01,
        "w2": jax.random.normal(ks[6], (FC1_OUT, FC2_OUT), jnp.float32) * s(FC1_OUT),
        "b2": jax.random.normal(ks[7], (1, FC2_OUT), jnp.float32) * 0.01,
        "w3": jax.random.normal(ks[8], (FC2_OUT, FC3_OUT), jnp.float32) * s(FC2_OUT),
        "b3": jax.random.normal(ks[9], (1, FC3_OUT), jnp.float32) * 0.01,
    }


def prepare_params(raw):
    """One-time prep: merge proj weights/biases (1536-wide), bf16 matmul
    weights, lane-pad fc3 to 128, pad K only if no tile divides it."""
    K = raw["w_res"].shape[0]
    _, Kp = _choose_tk(K)
    w_proj = jnp.concatenate([raw["w_res"], raw["w_goo"]], axis=1)   # (K, 1536)
    if Kp != K:
        w_proj = jnp.pad(w_proj, ((0, Kp - K), (0, 0)))
    b_proj = jnp.concatenate([raw["b_res"], raw["b_goo"]], axis=1)   # (1, 1536)
    w3 = jnp.pad(raw["w3"], ((0, 0), (0, FC3_PAD - FC3_OUT)))
    b3 = jnp.pad(raw["b3"], ((0, 0), (0, FC3_PAD - FC3_OUT)))
    return {
        "w_proj": w_proj.astype(jnp.bfloat16),
        "b_proj": b_proj.astype(jnp.float32),
        "w1": raw["w1"].astype(jnp.bfloat16),
        "b1": raw["b1"].astype(jnp.float32),
        "w2": raw["w2"].astype(jnp.bfloat16),
        "b2": raw["b2"].astype(jnp.float32),
        "w3": w3.astype(jnp.bfloat16),
        "b3": b3.astype(jnp.float32),
    }


# ----------------------------------------------------------------------------
# Full forward (Net.forward equivalent, inference mode) — single pallas_call.
# ----------------------------------------------------------------------------
@jax.jit
def net_forward(x_nchw, p):
    B = x_nchw.shape[0]
    flat = x_nchw.reshape(B, -1)                    # stays f32; cast in-kernel
    K = flat.shape[1]
    Kp = p["w_proj"].shape[0]
    tk = 512 if Kp % 512 == 0 else (256 if Kp % 256 == 0 else 128)
    tb = _choose_tb(B)
    Bp = ((B + tb - 1) // tb) * tb
    if (Bp, Kp) != (B, K):
        flat = jnp.pad(flat, ((0, Bp - B), (0, Kp - K)))
    out = _fused_forward(flat, p, tb, tk)           # [Bp, FC3_PAD]
    return out[:B, :FC3_OUT]


def net_forward_ref(x_nchw, p):
    """Pure-JAX reference with the same bf16 weights (numerics check)."""
    B = x_nchw.shape[0]
    flat = x_nchw.reshape(B, -1).astype(jnp.bfloat16)
    K = flat.shape[1]
    Kp = p["w_proj"].shape[0]
    if Kp != K:
        flat = jnp.pad(flat, ((0, 0), (0, Kp - K)))
    feat = jnp.maximum(jnp.dot(flat, p["w_proj"],
                               preferred_element_type=jnp.float32) + p["b_proj"], 0.0)
    h1 = jnp.maximum(jnp.dot(feat.astype(jnp.bfloat16), p["w1"],
                             preferred_element_type=jnp.float32) + p["b1"], 0.0)
    h2 = jnp.maximum(jnp.dot(h1.astype(jnp.bfloat16), p["w2"],
                             preferred_element_type=jnp.float32) + p["b2"], 0.0)
    out = jnp.dot(h2.astype(jnp.bfloat16), p["w3"],
                  preferred_element_type=jnp.float32) + p["b3"]
    return out[:, :FC3_OUT]


if __name__ == "__main__":
    key = jax.random.PRNGKey(0)
    k_in, k_par = jax.random.split(key)

    B, C, H, W = 2, 4, 16, 16                     # small NCHW image batch
    x = jax.random.normal(k_in, (B, C, H, W), jnp.float32)

    params = prepare_params(init_params(k_par, C * H * W))

    out = jax.block_until_ready(net_forward(x, params))

    assert out.shape == (B, FC3_OUT), out.shape
    assert bool(jnp.all(jnp.isfinite(out)))

    ref = net_forward_ref(x, params)
    assert bool(jnp.allclose(out, ref, rtol=2e-2, atol=2e-2)), (out, ref)
    print("KERNEL_OK")
</pallas_src>

<mosaic_0001>
module attributes {stable_mosaic.version = 11 : i64} {
  func.func @_fused_kernel(%arg0: i32, %arg1: i32, %arg2: memref<16x512xf32, #tpu.memory_space<vmem>>, %arg3: memref<512x1536xbf16, #tpu.memory_space<vmem>>, %arg4: memref<1x1536xf32, #tpu.memory_space<vmem>>, %arg5: memref<1536x832xbf16, #tpu.memory_space<vmem>>, %arg6: memref<1x832xf32, #tpu.memory_space<vmem>>, %arg7: memref<832x832xbf16, #tpu.memory_space<vmem>>, %arg8: memref<1x832xf32, #tpu.memory_space<vmem>>, %arg9: memref<832x128xbf16, #tpu.memory_space<vmem>>, %arg10: memref<1x128xf32, #tpu.memory_space<vmem>>, %arg11: memref<16x128xf32, #tpu.memory_space<vmem>>, %arg12: memref<16x1536xf32, #tpu.memory_space<vmem>>) attributes {dimension_semantics = [#tpu.dimension_semantics<parallel>, #tpu.dimension_semantics<arbitrary>], iteration_bounds = array<i64: 1, 2>, scalar_prefetch = 0 : i64, scratch_operands = 1 : i64, tpu.core_type = #tpu.core_type<tc>, window_params = [{transform_indices = @transform_0, window_bounds = array<i64: 16, 512>}, {transform_indices = @transform_1, window_bounds = array<i64: 512, 1536>}, {pipeline_mode = #tpu.pipeline_mode<synchronous>, transform_indices = @transform_2, window_bounds = array<i64: 1, 1536>}, {pipeline_mode = #tpu.pipeline_mode<synchronous>, transform_indices = @transform_3, window_bounds = array<i64: 1536, 832>}, {pipeline_mode = #tpu.pipeline_mode<synchronous>, transform_indices = @transform_4, window_bounds = array<i64: 1, 832>}, {pipeline_mode = #tpu.pipeline_mode<synchronous>, transform_indices = @transform_5, window_bounds = array<i64: 832, 832>}, {pipeline_mode = #tpu.pipeline_mode<synchronous>, transform_indices = @transform_6, window_bounds = array<i64: 1, 832>}, {pipeline_mode = #tpu.pipeline_mode<synchronous>, transform_indices = @transform_7, window_bounds = array<i64: 832, 128>}, {pipeline_mode = #tpu.pipeline_mode<synchronous>, transform_indices = @transform_8, window_bounds = array<i64: 1, 128>}, {transform_indices = @transform_9, window_bounds = array<i64: 16, 128>}]} {
    %c0_i32 = arith.constant 0 : i32
    %0 = arith.cmpi eq, %arg1, %c0_i32 : i32
    %1 = arith.extui %0 : i1 to i32
    %c0_i32_0 = arith.constant 0 : i32
    %2 = arith.cmpi ne, %1, %c0_i32_0 : i32
    scf.if %2 {
      %cst_9 = arith.constant 0.000000e+00 : f32
      %13 = vector.broadcast %cst_9 : f32 to vector<16x1536xf32>
      %c0_10 = arith.constant 0 : index
      %c0_11 = arith.constant 0 : index
      %14 = vector.load %arg12[%c0_10, %c0_11] : memref<16x1536xf32, #tpu.memory_space<vmem>>, vector<16x1536xf32>
      tpu.vector_store %arg12[%c0_10, %c0_11], %13 {strides = array<i32>} : memref<16x1536xf32, #tpu.memory_space<vmem>>, vector<16x1536xf32>,
    } else {
    }
    %c0 = arith.constant 0 : index
    %c0_1 = arith.constant 0 : index
    %3 = vector.load %arg2[%c0, %c0_1] : memref<16x512xf32, #tpu.memory_space<vmem>>, vector<16x512xf32>
    %4 = arith.truncf %3 : vector<16x512xf32> to vector<16x512xbf16>
    %c0_2 = arith.constant 0 : index
    %c0_3 = arith.constant 0 : index
    %5 = vector.load %arg12[%c0_2, %c0_3] : memref<16x1536xf32, #tpu.memory_space<vmem>>, vector<16x1536xf32>
    %c0_4 = arith.constant 0 : index
    %c0_5 = arith.constant 0 : index
    %6 = vector.load %arg3[%c0_4, %c0_5] : memref<512x1536xbf16, #tpu.memory_space<vmem>>, vector<512x1536xbf16>
    %cst = arith.constant dense<0.000000e+00> : vector<16x1536xf32>
    %7 = tpu.matmul %4, %6, %cst {dimension_numbers = #tpu.dot_dimension_numbers<[1], [0], [0], [1], [0, 0, 1, 1], [], []>} : vector<16x512xbf16>, vector<512x1536xbf16>, vector<16x1536xf32> -> vector<16x1536xf32>
    %8 = arith.addf %5, %7 : vector<16x1536xf32>
    %c0_6 = arith.constant 0 : index
    %c0_7 = arith.constant 0 : index
    %9 = vector.load %arg12[%c0_6, %c0_7] : memref<16x1536xf32, #tpu.memory_space<vmem>>, vector<16x1536xf32>
    tpu.vector_store %arg12[%c0_6, %c0_7], %8 {strides = array<i32>} : memref<16x1536xf32, #tpu.memory_space<vmem>>, vector<16x1536xf32>,
    %c1_i32 = arith.constant 1 : i32
    %10 = arith.cmpi eq, %arg1, %c1_i32 : i32
    %11 = arith.extui %10 : i1 to i32
    %c0_i32_8 = arith.constant 0 : i32
    %12 = arith.cmpi ne, %11, %c0_i32_8 : i32
    scf.if %12 {
      %c0_9 = arith.constant 0 : index
      %c0_10 = arith.constant 0 : index
      %13 = vector.load %arg12[%c0_9, %c0_10] : memref<16x1536xf32, #tpu.memory_space<vmem>>, vector<16x1536xf32>
      %c0_11 = arith.constant 0 : index
      %c0_12 = arith.constant 0 : index
      %14 = vector.load %arg4[%c0_11, %c0_12] : memref<1x1536xf32, #tpu.memory_space<vmem>>, vector<1x1536xf32>
      %15 = vector.broadcast %14 : vector<1x1536xf32> to vector<16x1536xf32>
      %16 = arith.addf %13, %15 : vector<16x1536xf32>
      %cst_13 = arith.constant 0.000000e+00 : f32
      %17 = vector.broadcast %cst_13 : f32 to vector<16x1536xf32>
      %18 = arith.maximumf %16, %17 : vector<16x1536xf32>
      %19 = arith.truncf %18 : vector<16x1536xf32> to vector<16x1536xbf16>
      %c0_14 = arith.constant 0 : index
      %c0_15 = arith.constant 0 : index
      %20 = vector.load %arg5[%c0_14, %c0_15] : memref<1536x832xbf16, #tpu.memory_space<vmem>>, vector<1536x832xbf16>
      %cst_16 = arith.constant dense<0.000000e+00> : vector<16x832xf32>
      %21 = tpu.matmul %19, %20, %cst_16 {dimension_numbers = #tpu.dot_dimension_numbers<[1], [0], [0], [1], [0, 0, 1, 1], [], []>} : vector<16x1536xbf16>, vector<1536x832xbf16>, vector<16x832xf32> -> vector<16x832xf32>
      %c0_17 = arith.constant 0 : index
      %c0_18 = arith.constant 0 : index
      %22 = vector.load %arg6[%c0_17, %c0_18] : memref<1x832xf32, #tpu.memory_space<vmem>>, vector<1x832xf32>
      %23 = vector.broadcast %22 : vector<1x832xf32> to vector<16x832xf32>
      %24 = arith.addf %21, %23 : vector<16x832xf32>
      %cst_19 = arith.constant 0.000000e+00 : f32
      %25 = vector.broadcast %cst_19 : f32 to vector<16x832xf32>
      %26 = arith.maximumf %24, %25 : vector<16x832xf32>
      %27 = arith.truncf %26 : vector<16x832xf32> to vector<16x832xbf16>
      %c0_20 = arith.constant 0 : index
      %c0_21 = arith.constant 0 : index
      %28 = vector.load %arg7[%c0_20, %c0_21] : memref<832x832xbf16, #tpu.memory_space<vmem>>, vector<832x832xbf16>
      %cst_22 = arith.constant dense<0.000000e+00> : vector<16x832xf32>
      %29 = tpu.matmul %27, %28, %cst_22 {dimension_numbers = #tpu.dot_dimension_numbers<[1], [0], [0], [1], [0, 0, 1, 1], [], []>} : vector<16x832xbf16>, vector<832x832xbf16>, vector<16x832xf32> -> vector<16x832xf32>
      %c0_23 = arith.constant 0 : index
      %c0_24 = arith.constant 0 : index
      %30 = vector.load %arg8[%c0_23, %c0_24] : memref<1x832xf32, #tpu.memory_space<vmem>>, vector<1x832xf32>
      %31 = vector.broadcast %30 : vector<1x832xf32> to vector<16x832xf32>
      %32 = arith.addf %29, %31 : vector<16x832xf32>
      %cst_25 = arith.constant 0.000000e+00 : f32
      %33 = vector.broadcast %cst_25 : f32 to vector<16x832xf32>
      %34 = arith.maximumf %32, %33 : vector<16x832xf32>
      %35 = arith.truncf %34 : vector<16x832xf32> to vector<16x832xbf16>
      %c0_26 = arith.constant 0 : index
      %c0_27 = arith.constant 0 : index
      %36 = vector.load %arg9[%c0_26, %c0_27] : memref<832x128xbf16, #tpu.memory_space<vmem>>, vector<832x128xbf16>
      %cst_28 = arith.constant dense<0.000000e+00> : vector<16x128xf32>
      %37 = tpu.matmul %35, %36, %cst_28 {dimension_numbers = #tpu.dot_dimension_numbers<[1], [0], [0], [1], [0, 0, 1, 1], [], []>} : vector<16x832xbf16>, vector<832x128xbf16>, vector<16x128xf32> -> vector<16x128xf32>
      %c0_29 = arith.constant 0 : index
      %c0_30 = arith.constant 0 : index
      %38 = vector.load %arg10[%c0_29, %c0_30] : memref<1x128xf32, #tpu.memory_space<vmem>>, vector<1x128xf32>
      %39 = vector.broadcast %38 : vector<1x128xf32> to vector<16x128xf32>
      %40 = arith.addf %37, %39 : vector<16x128xf32>
      %c0_31 = arith.constant 0 : index
      %c0_32 = arith.constant 0 : index
      %41 = vector.load %arg11[%c0_31, %c0_32] : memref<16x128xf32, #tpu.memory_space<vmem>>, vector<16x128xf32>
      tpu.vector_store %arg11[%c0_31, %c0_32], %40 {strides = array<i32>} : memref<16x128xf32, #tpu.memory_space<vmem>>, vector<16x128xf32>,
    } else {
    }
    return
  }
  func.func @transform_0(%arg0: i32, %arg1: i32) -> (i32, i32) {
    %c0_i32 = arith.constant 0 : i32
    return %arg0, %arg1 : i32, i32
  }
  func.func @transform_1(%arg0: i32, %arg1: i32) -> (i32, i32) {
    %c0_i32 = arith.constant 0 : i32
    %c0_i32_0 = arith.constant 0 : i32
    return %arg1, %c0_i32 : i32, i32
  }
  func.func @transform_2(%arg0: i32, %arg1: i32) -> (i32, i32) {
    %c0_i32 = arith.constant 0 : i32
    %c0_i32_0 = arith.constant 0 : i32
    %c0_i32_1 = arith.constant 0 : i32
    return %c0_i32, %c0_i32_0 : i32, i32
  }
  func.func @transform_3(%arg0: i32, %arg1: i32) -> (i32, i32) {
    %c0_i32 = arith.constant 0 : i32
    %c0_i32_0 = arith.constant 0 : i32
    %c0_i32_1 = arith.constant 0 : i32
    return %c0_i32, %c0_i32_0 : i32, i32
  }
  func.func @transform_4(%arg0: i32, %arg1: i32) -> (i32, i32) {
    %c0_i32 = arith.constant 0 : i32
    %c0_i32_0 = arith.constant 0 : i32
    %c0_i32_1 = arith.constant 0 : i32
    return %c0_i32, %c0_i32_0 : i32, i32
  }
  func.func @transform_5(%arg0: i32, %arg1: i32) -> (i32, i32) {
    %c0_i32 = arith.constant 0 : i32
    %c0_i32_0 = arith.constant 0 : i32
    %c0_i32_1 = arith.constant 0 : i32
    return %c0_i32, %c0_i32_0 : i32, i32
  }
  func.func @transform_6(%arg0: i32, %arg1: i32) -> (i32, i32) {
    %c0_i32 = arith.constant 0 : i32
    %c0_i32_0 = arith.constant 0 : i32
    %c0_i32_1 = arith.constant 0 : i32
    return %c0_i32, %c0_i32_0 : i32, i32
  }
  func.func @transform_7(%arg0: i32, %arg1: i32) -> (i32, i32) {
    %c0_i32 = arith.constant 0 : i32
    %c0_i32_0 = arith.constant 0 : i32
    %c0_i32_1 = arith.constant 0 : i32
    return %c0_i32, %c0_i32_0 : i32, i32
  }
  func.func @transform_8(%arg0: i32, %arg1: i32) -> (i32, i32) {
    %c0_i32 = arith.constant 0 : i32
    %c0_i32_0 = arith.constant 0 : i32
    %c0_i32_1 = arith.constant 0 : i32
    return %c0_i32, %c0_i32_0 : i32, i32
  }
  func.func @transform_9(%arg0: i32, %arg1: i32) -> (i32, i32) {
    %c0_i32 = arith.constant 0 : i32
    %c0_i32_0 = arith.constant 0 : i32
    return %arg0, %c0_i32 : i32, i32
  }
}

</mosaic_0001>

<bundles_post_ra>
// kernel: net_forward.1
= control target key start
LH: loop header
LB: loop body
LE: loop exit
PB: predicated region body
PF: predicated region fallthrough
CT: control target
= control target key end

     0   :  { %s20198_s30 = smov 0   ;;  %s20200_s10 = smov 0   ;;  %s28143_s0 = inlined_call_operand.vmem [shape: f32[16,1024], index: 0, kind: input, shape index: {}]   ;;  %s28144_s1 = inlined_call_operand.vmem [shape: bf16[1024,1536], index: 1, kind: input, shape index: {}]   ;;  %s28145_s2 = inlined_call_operand.vmem [shape: f32[1,1536], index: 2, kind: input, shape index: {}]   ;;  %s28146_s3 = inlined_call_operand.vmem [shape: bf16[1536,832], index: 3, kind: input, shape index: {}]   ;;  %s28147_s4 = inlined_call_operand.vmem [shape: f32[1,832], index: 4, kind: input, shape index: {}]   ;;  %s28148_s5 = inlined_call_operand.vmem [shape: bf16[832,832], index: 5, kind: input, shape index: {}]   ;;  %s28149_s6 = inlined_call_operand.vmem [shape: f32[1,832], index: 6, kind: input, shape index: {}]   ;;  %s28150_s7 = inlined_call_operand.vmem [shape: bf16[832,128], index: 7, kind: input, shape index: {}]   ;;  %s28151_s8 = inlined_call_operand.vmem [shape: f32[1,128], index: 8, kind: input, shape index: {}]   ;;  %s28152_s9 = inlined_call_operand.vmem [shape: f32[16,128], index: 9, kind: output, shape index: {}]  }
   0x1   :  { %s20202_s11 = smov 0   ;;  %s20204_s12 = smov 0  }
   0x2   :  { %s20206_s13 = smov 0  }
   0x3 LB: > { %s28_s14 = sadd.s32 1, %s20141_s12  ;;  %p47_p1 = scmp.ne.s32.totalorder %s20133_s10, %s20129_s30  ;;  %s20145_s13 = sphi %s20206_s13, %s19_s13   ;;  %s20141_s12 = sphi %s20204_s12, %s28230_s12   ;;  %s20137_s11 = sphi %s20202_s11, %s28229_s11   ;;  %s20133_s10 = sphi %s20200_s10, %s28228_s10   ;;  %s20129_s30 = sphi %s20198_s30, %s28227_s30  }
   0x4   : > { %p29_p0 = scmp.ge.s32.totalorder %s28_s14, 2  ;;  %p48_p2 = scmp.eq.s32.totalorder %s20145_s13, 0 }
   0x5   : > { %s40_s16 = sadd.s32 1, %s20133_s10  ;;  %p12677_p5 = scmp.ge.s32.totalorder %s20145_s13, 2 }
   0x6   : > { %s28232_s14 = smov (%p29_p0, %s28_s14), 0  ;;  %p49_p3 = por %p48_p2, %p47_p1 }
   0x7   : > { %s36_s15 = ssub.s32 %s20141_s12, %s28232_s14  ;;  %293 = sbr.rel (%p12677_p5) target bundleno = 24 (0x18), region = 44 }
   0x8   : > { %p38_p4 = scmp.eq.s32.totalorder %s36_s15, 0 }
   0xa   : > { %s20233_s17 = scalar_select %p38_p4, %s20133_s10, %s40_s16  }
   0xc   : > { %296 = sbr.rel (!%p49_p3) target bundleno = 24 (0x18), region = 48  ;;  %s298_s18 = sand.u32 (%p49_p3), 1, %s20133_s10  }
   0xd   : > { %s18587_s19 = sshll.u32 (%p49_p3), %s20141_s12, 5  ;;  %s12678_s20 = sshll.u32 (%p49_p3), %s298_s18, 6 }
   0xe   : > { %s306_s23 = scalar_lea.vmem (%p49_p3), %s28143_s0, %s18587_s19  ;;  %s300_s24 = scalar_lea.vmem (%p49_p3), [#allocation3], %s12678_s20 }
   0xf   : > { %v319_v0 = vld [vmem:[%s306_s23] sm:$0xff] (%p49_p3)  ;;  %v321_v1 = vld [vmem:[%s306_s23 + $0x8] sm:$0xff] (%p49_p3)  ;;  %v323_v2 = vld [vmem:[%s306_s23 + $0x10] sm:$0xff] (%p49_p3) }
  0x10   : > { %320 = vst [vmem:[%s300_s24] sm:$0xff] (%p49_p3), %v319_v0  ;;  %v325_v3 = vld [vmem:[%s306_s23 + $0x18] sm:$0xff] (%p49_p3)  ;;  %v327_v4 = vld [vmem:[%s306_s23 + $0x40] sm:$0xff] (%p49_p3)  ;;  %v329_v5 = vld [vmem:[%s306_s23 + $0x48] sm:$0xff] (%p49_p3) }
  0x11   : > { %322 = vst [vmem:[%s300_s24 + $0x8] sm:$0xff] %v321_v1  ;;  %v331_v6 = vld [vmem:[%s306_s23 + $0x50] sm:$0xff]  ;;  %v333_v7 = vld [vmem:[%s306_s23 + $0x58] sm:$0xff] }
  0x12   : > { %324 = vst [vmem:[%s300_s24 + $0x10] sm:$0xff] %v323_v2 }
  0x13   : > { %326 = vst [vmem:[%s300_s24 + $0x18] sm:$0xff] %v325_v3 }
  0x14   : > { %328 = vst [vmem:[%s300_s24 + $0x20] sm:$0xff] %v327_v4 }
  0x15   : > { %330 = vst [vmem:[%s300_s24 + $0x28] sm:$0xff] %v329_v5 }
  0x16   : > { %332 = vst [vmem:[%s300_s24 + $0x30] sm:$0xff] %v331_v6 }
  0x17   : > { %334 = vst [vmem:[%s300_s24 + $0x38] sm:$0xff] %v333_v7 }
  0x18 PF: > { %p12681_p6 = scmp.ge.s32.totalorder %s20145_s13, 1  ;;  %p349_p7 = scmp.lt.s32.totalorder %s20145_s13, 3 }
  0x1a   : > { %p350_p8 = pnand %p12681_p6, %p349_p7 }
  0x1b   : > { %s356_s25 = sand.u32 (!%p350_p8), 1, %s20129_s30   ;;  %s12683_s26 = sshll.u32 (!%p350_p8), %s20137_s11, 6 }
  0x1c   : > { %353 = sbr.rel (%p350_p8) target bundleno = 1989 (0x7c5), region = 75  ;;  %s12682_s27 = sshll.u32 (!%p350_p8), %s356_s25, 6 }
  0x1d   : > { %p400_p9 = scmp.lt.s32.totalorder (!%p350_p8), %s12683_s26, 127  ;;  %s20250_s18 = scalar_lea.vmem (!%p350_p8), [#allocation3], %s12682_s27 }
  0x1e   : > { %p12685_p10 = scmp.ne.s32.totalorder (!%p350_p8), %s20137_s11, 0 }
  0x21   : > { %s28234_s26 = smov (!%p400_p9, %s12683_s26), 127  ;;  %416 = sbr.rel (%p12685_p10) target bundleno = 63 (0x3f), region = 83 }
  0x22   : > { %s20060_s28 = smul.u32 48, %s28234_s26 }
  0x24   : > { %s20248_s16 = scalar_lea.vmem %s28144_s1, %s20060_s28 }
  0x26   : > { %v20147_v8 = vmov 0.0  }
  0x27   : > { %417 = vst [vmem:[#allocation2 + $0xb0] sm:$0xff] %v20147_v8 }
  0x28   : > { %418 = vst [vmem:[#allocation2] sm:$0xff] %v20147_v8 }
  0x29   : > { %419 = vst [vmem:[#allocation2 + $0x10] sm:$0xff] %v20147_v8 }
  0x2a   : > { %420 = vst [vmem:[#allocation2 + $0x48] sm:$0xff] %v20147_v8 }
  0x2b   : > { %421 = vst [vmem:[#allocation2 + $0x60] sm:$0xff] %v20147_v8 }
  0x2c   : > { %422 = vst [vmem:[#allocation2 + $0x28] sm:$0xff] %v20147_v8 }
  0x2d   : > { %423 = vst [vmem:[#allocation2 + $0x40] sm:$0xff] %v20147_v8 }
  0x2e   : > { %424 = vst [vmem:[#allocation2 + $0x78] sm:$0xff] %v20147_v8 }
  0x2f   : > { %425 = vst [vmem:[#allocation2 + $0x88] sm:$0xff] %v20147_v8 }
  0x30   : > { %426 = vst [vmem:[#allocation2 + $0x90] sm:$0xff] %v20147_v8 }
  0x31   : > { %427 = vst [vmem:[#allocation2 + $0x18] sm:$0xff] %v20147_v8 }
  0x32   : > { %428 = vst [vmem:[#allocation2 + $0x98] sm:$0xff] %v20147_v8 }
  0x33   : > { %429 = vst [vmem:[#allocation2 + $0x38] sm:$0xff] %v20147_v8 }
  0x34   : > { %430 = vst [vmem:[#allocation2 + $0x50] sm:$0xff] %v20147_v8 }
  0x35   : > { %431 = vst [vmem:[#allocation2 + $0x70] sm:$0xff] %v20147_v8 }
  0x36   : > { %432 = vst [vmem:[#allocation2 + $0xa0] sm:$0xff] %v20147_v8 }
  0x37   : > { %433 = vst [vmem:[#allocation2 + $0xa8] sm:$0xff] %v20147_v8 }
  0x38   : > { %434 = vst [vmem:[#allocation2 + $0x68] sm:$0xff] %v20147_v8 }
  0x39   : > { %435 = vst [vmem:[#allocation2 + $0x30] sm:$0xff] %v20147_v8 }
  0x3a   : > { %436 = vst [vmem:[#allocation2 + $0x58] sm:$0xff] %v20147_v8 }
  0x3b   : > { %437 = vst [vmem:[#allocation2 + $0x80] sm:$0xff] %v20147_v8 }
  0x3c   : > { %438 = vst [vmem:[#allocation2 + $0xb8] sm:$0xff] %v20147_v8 }
  0x3d   : > { %439 = vst [vmem:[#allocation2 + $0x20] sm:$0xff] %v20147_v8 }
  0x3e   : > { %440 = vst [vmem:[#allocation2 + $0x8] sm:$0xff] %v20147_v8 }
  0x3f PF: > { %v13024_v9 = vld [vmem:[%s20248_s16 + $0x2a0] sm:$0xf]  ;;  %v18678_v10 = vld [vmem:[%s20248_s16 + $0x2cc] sm:$0xf0]  ;;  %p14222_p11 = scmp.ne.s32.totalorder %s20137_s11, 1 }
  0x40   : > { %v13408_v11 = vld [vmem:[%s20248_s16 + $0x5a0] sm:$0xf]  ;;  %v13025_v12 = vor.u32 %v18678_v10, %v13024_v9  ;;  %v18774_v13 = vld [vmem:[%s20248_s16 + $0x5cc] sm:$0xf0] }
  0x41   : > { %v13792_v14 = vld [vmem:[%s20248_s16 + $0x8a0] sm:$0xf]  ;;  %v18870_v15 = vld [vmem:[%s20248_s16 + $0x8cc] sm:$0xf0]  ;;  %v13409_v16 = vor.u32 %v18774_v13, %v13408_v11 }
  0x42   : > { %v13793_v17 = vor.u32 %v18870_v15, %v13792_v14  ;;  %v14176_v18 = vld [vmem:[%s20248_s16 + $0xba0] sm:$0xf]  ;;  %v18966_v19 = vld [vmem:[%s20248_s16 + $0xbcc] sm:$0xf0]  ;;  %2781 = vmatpush.bf16.msra.mxu0 %v13025_v12 }
  0x43   : > { %v12976_v20 = vld [vmem:[%s20248_s16 + $0x240] sm:$0xf]  ;;  %v14177_v21 = vor.u32 %v18966_v19, %v14176_v18  ;;  %v18666_v22 = vld [vmem:[%s20248_s16 + $0x26c] sm:$0xf0]  ;;  %2795 = vmatpush.bf16.msra.mxu1 %v13409_v16 }
  0x44   : > { %v13360_v23 = vld [vmem:[%s20248_s16 + $0x540] sm:$0xf]  ;;  %v18762_v24 = vld [vmem:[%s20248_s16 + $0x56c] sm:$0xf0]  ;;  %2809 = vmatpush.bf16.msra.mxu2 %v13793_v17  ;;  %v12977_v25 = vor.u32 %v18666_v22, %v12976_v20 }
  0x45   : > { %v13361_v26 = vor.u32 %v18762_v24, %v13360_v23  ;;  %v13744_v27 = vld [vmem:[%s20248_s16 + $0x840] sm:$0xf]  ;;  %v18858_v28 = vld [vmem:[%s20248_s16 + $0x86c] sm:$0xf0]  ;;  %2823 = vmatpush.bf16.msra.mxu3 %v14177_v21 }
  0x46   : > { %v14128_v29 = vld [vmem:[%s20248_s16 + $0xb40] sm:$0xf]  ;;  %v13745_v30 = vor.u32 %v18858_v28, %v13744_v27  ;;  %v18954_v31 = vld [vmem:[%s20248_s16 + $0xb6c] sm:$0xf0]  ;;  %2782 = vmatpush.bf16.msra.mxu0 %v12977_v25 }
  0x47   : > { %v12928_v32 = vld [vmem:[%s20248_s16 + $0x1e0] sm:$0xf]  ;;  %v18654_v33 = vld [vmem:[%s20248_s16 + $0x20c] sm:$0xf0]  ;;  %v14129_v34 = vor.u32 %v18954_v31, %v14128_v29  ;;  %2796 = vmatpush.bf16.msra.mxu1 %v13361_v26 }
  0x48   : > { %v13312_v35 = vld [vmem:[%s20248_s16 + $0x4e0] sm:$0xf]  ;;  %v18750_v36 = vld [vmem:[%s20248_s16 + $0x50c] sm:$0xf0]  ;;  %v12929_v38 = vor.u32 %v18654_v33, %v12928_v32  ;;  %2810 = vmatpush.bf16.msra.mxu2 %v13745_v30 }
  0x49   : > { %v13696_v37 = vld [vmem:[%s20248_s16 + $0x7e0] sm:$0xf]  ;;  %v18846_v39 = vld [vmem:[%s20248_s16 + $0x80c] sm:$0xf0]  ;;  %v13313_v42 = vor.u32 %v18750_v36, %v13312_v35  ;;  %2824 = vmatpush.bf16.msra.mxu3 %v14129_v34 }
  0x4a   : > { %v14080_v40 = vld [vmem:[%s20248_s16 + $0xae0] sm:$0xf]  ;;  %v18942_v41 = vld [vmem:[%s20248_s16 + $0xb0c] sm:$0xf0]  ;;  %v13697_v43 = vor.u32 %v18846_v39, %v13696_v37  ;;  %2783 = vmatpush.bf16.msra.mxu0 %v12929_v38  ;;  %v18672_v37 = vld [vmem:[%s20248_s16 + $0x2a4] sm:$0xf] }
  0x4b   : > { %v12880_v44 = vld [vmem:[%s20248_s16 + $0x180] sm:$0xf]  ;;  %v18642_v45 = vld [vmem:[%s20248_s16 + $0x1ac] sm:$0xf0]  ;;  %v14081_v47 = vor.u32 %v18942_v41, %v14080_v40  ;;  %2797 = vmatpush.bf16.msra.mxu1 %v13313_v42  ;;  %v13026_v38 = vld [vmem:[%s20248_s16 + $0x2d0] sm:$0xf0] }
  0x4c   : > { %v13264_v46 = vld [vmem:[%s20248_s16 + $0x480] sm:$0xf]  ;;  %v18738_v48 = vld [vmem:[%s20248_s16 + $0x4ac] sm:$0xf0]  ;;  %v12881_v53 = vor.u32 %v18642_v45, %v12880_v44  ;;  %2811 = vmatpush.bf16.msra.mxu2 %v13697_v43  ;;  %v18768_v39 = vld [vmem:[%s20248_s16 + $0x5a4] sm:$0xf] }
  0x4d   : > { %v13648_v49 = vld [vmem:[%s20248_s16 + $0x780] sm:$0xf]  ;;  %v18834_v50 = vld [vmem:[%s20248_s16 + $0x7ac] sm:$0xf0]  ;;  %v13265_v54 = vor.u32 %v18738_v48, %v13264_v46  ;;  %2825 = vmatpush.bf16.msra.mxu3 %v14081_v47  ;;  %v13410_v41 = vld [vmem:[%s20248_s16 + $0x5d0] sm:$0xf0] }
  0x4e   : > { %v14032_v51 = vld [vmem:[%s20248_s16 + $0xa80] sm:$0xf]  ;;  %v18930_v52 = vld [vmem:[%s20248_s16 + $0xaac] sm:$0xf0]  ;;  %v13649_v55 = vor.u32 %v18834_v50, %v13648_v49  ;;  %2784 = vmatpush.bf16.msra.mxu0 %v12881_v53  ;;  %v18864_v42 = vld [vmem:[%s20248_s16 + $0x8a4] sm:$0xf]  ;;  %v13029_v49 = vor.u32 %v18672_v37, %v13026_v38  ;;  %v13413_v50 = vor.u32 %v18768_v39, %v13410_v41 }
  0x4f   : > { %v12832_v56 = vld [vmem:[%s20248_s16 + $0x120] sm:$0xf]  ;;  %v18630_v57 = vld [vmem:[%s20248_s16 + $0x14c] sm:$0xf0]  ;;  %v14033_v59 = vor.u32 %v18930_v52, %v14032_v51  ;;  %2798 = vmatpush.bf16.msra.mxu1 %v13265_v54  ;;  %v13794_v43 = vld [vmem:[%s20248_s16 + $0x8d0] sm:$0xf0] }
  0x50   : > { %v13216_v58 = vld [vmem:[%s20248_s16 + $0x420] sm:$0xf]  ;;  %v18726_v60 = vld [vmem:[%s20248_s16 + $0x44c] sm:$0xf0]  ;;  %v12833_v1 = vor.u32 %v18630_v57, %v12832_v56  ;;  %2812 = vmatpush.bf16.msra.mxu2 %v13649_v55  ;;  %v18960_v46 = vld [vmem:[%s20248_s16 + $0xba4] sm:$0xf]  ;;  %v13797_v51 = vor.u32 %v18864_v42, %v13794_v43 }
  0x51   : > { %v13600_v61 = vld [vmem:[%s20248_s16 + $0x720] sm:$0xf]  ;;  %v18822_v62 = vld [vmem:[%s20248_s16 + $0x74c] sm:$0xf0]  ;;  %v13217_v2 = vor.u32 %v18726_v60, %v13216_v58  ;;  %2826 = vmatpush.bf16.msra.mxu3 %v14033_v59  ;;  %v14178_v47 = vld [vmem:[%s20248_s16 + $0xbd0] sm:$0xf0] }
  0x52   : > { %v13984_v63 = vld [vmem:[%s20248_s16 + $0xa20] sm:$0xf]  ;;  %v18918_v0 = vld [vmem:[%s20248_s16 + $0xa4c] sm:$0xf0]  ;;  %v13601_v3 = vor.u32 %v18822_v62, %v13600_v61  ;;  %2785 = vmatpush.bf16.msra.mxu0 %v12833_v1  ;;  %v18660_v52 = vld [vmem:[%s20248_s16 + $0x244] sm:$0xf]  ;;  %v14181_v55 = vor.u32 %v18960_v46, %v14178_v47 }
  0x53   : > { %v12784_v4 = vld [vmem:[%s20248_s16 + $0xc0] sm:$0xf]  ;;  %v18618_v5 = vld [vmem:[%s20248_s16 + $0xec] sm:$0xf0]  ;;  %v13985_v7 = vor.u32 %v18918_v0, %v13984_v63  ;;  %2799 = vmatpush.bf16.msra.mxu1 %v13217_v2  ;;  %v12978_v53 = vld [vmem:[%s20248_s16 + $0x270] sm:$0xf0] }
  0x54   : > { %v13168_v6 = vld [vmem:[%s20248_s16 + $0x3c0] sm:$0xf]  ;;  %v18714_v8 = vld [vmem:[%s20248_s16 + $0x3ec] sm:$0xf0]  ;;  %v12785_v13 = vor.u32 %v18618_v5, %v12784_v4  ;;  %2813 = vmatpush.bf16.msra.mxu2 %v13601_v3  ;;  %v18756_v54 = vld [vmem:[%s20248_s16 + $0x544] sm:$0xf]  ;;  %v12981_v61 = vor.u32 %v18660_v52, %v12978_v53 }
  0x55   : > { %v13552_v9 = vld [vmem:[%s20248_s16 + $0x6c0] sm:$0xf]  ;;  %v18810_v10 = vld [vmem:[%s20248_s16 + $0x6ec] sm:$0xf0]  ;;  %v13169_v14 = vor.u32 %v18714_v8, %v13168_v6  ;;  %2827 = vmatpush.bf16.msra.mxu3 %v13985_v7  ;;  %v13362_v56 = vld [vmem:[%s20248_s16 + $0x570] sm:$0xf0] }
  0x56   : > { %v13936_v11 = vld [vmem:[%s20248_s16 + $0x9c0] sm:$0xf]  ;;  %v18906_v12 = vld [vmem:[%s20248_s16 + $0x9ec] sm:$0xf0]  ;;  %v13553_v15 = vor.u32 %v18810_v10, %v13552_v9  ;;  %2786 = vmatpush.bf16.msra.mxu0 %v12785_v13  ;;  %v18852_v57 = vld [vmem:[%s20248_s16 + $0x844] sm:$0xf]  ;;  %v13365_v62 = vor.u32 %v18756_v54, %v13362_v56 }
  0x57   : > { %v12736_v16 = vld [vmem:[%s20248_s16 + $0x60] sm:$0xf]  ;;  %v18606_v17 = vld [vmem:[%s20248_s16 + $0x8c] sm:$0xf0]  ;;  %v13937_v19 = vor.u32 %v18906_v12, %v13936_v11  ;;  %2800 = vmatpush.bf16.msra.mxu1 %v13169_v14  ;;  %v13746_v58 = vld [vmem:[%s20248_s16 + $0x870] sm:$0xf0] }
  0x58   : > { %v13120_v18 = vld [vmem:[%s20248_s16 + $0x360] sm:$0xf]  ;;  %v18702_v20 = vld [vmem:[%s20248_s16 + $0x38c] sm:$0xf0]  ;;  %v12737_v25 = vor.u32 %v18606_v17, %v12736_v16  ;;  %2814 = vmatpush.bf16.msra.mxu2 %v13553_v15  ;;  %v18948_v59 = vld [vmem:[%s20248_s16 + $0xb44] sm:$0xf]  ;;  %v13749_v63 = vor.u32 %v18852_v57, %v13746_v58 }
  0x59   : > { %v13504_v21 = vld [vmem:[%s20248_s16 + $0x660] sm:$0xf]  ;;  %v18798_v22 = vld [vmem:[%s20248_s16 + $0x68c] sm:$0xf0]  ;;  %v13121_v28 = vor.u32 %v18702_v20, %v13120_v18  ;;  %2828 = vmatpush.bf16.msra.mxu3 %v13937_v19  ;;  %v14130_v60 = vld [vmem:[%s20248_s16 + $0xb70] sm:$0xf0] }
  0x5a   : > { %v13888_v23 = vld [vmem:[%s20248_s16 + $0x960] sm:$0xf]  ;;  %v18894_v24 = vld [vmem:[%s20248_s16 + $0x98c] sm:$0xf0]  ;;  %v13505_v29 = vor.u32 %v18798_v22, %v13504_v21  ;;  %2787 = vmatpush.bf16.msra.mxu0 %v12737_v25  ;;  %v18648_v0 = vld [vmem:[%s20248_s16 + $0x1e4] sm:$0xf]  ;;  %v14133_v3 = vor.u32 %v18948_v59, %v14130_v60 }
  0x5b   : > { %v12688_v26 = vld [vmem:[%s20248_s16] sm:$0xf]  ;;  %v18594_v27 = vld [vmem:[%s20248_s16 + $0x2c] sm:$0xf0]  ;;  %v13889_v33 = vor.u32 %v18894_v24, %v13888_v23  ;;  %2801 = vmatpush.bf16.msra.mxu1 %v13121_v28  ;;  %v12930_v1 = vld [vmem:[%s20248_s16 + $0x210] sm:$0xf0] }
  0x5c   : > { %v13072_v30 = vld [vmem:[%s20248_s16 + $0x300] sm:$0xf]  ;;  %v18690_v31 = vld [vmem:[%s20248_s16 + $0x32c] sm:$0xf0]  ;;  %v12689_v40 = vor.u32 %v18594_v27, %v12688_v26  ;;  %2815 = vmatpush.bf16.msra.mxu2 %v13505_v29  ;;  %v18744_v2 = vld [vmem:[%s20248_s16 + $0x4e4] sm:$0xf]  ;;  %v12933_v10 = vor.u32 %v18648_v0, %v12930_v1 }
  0x5d   : > { %v13456_v32 = vld [vmem:[%s20248_s16 + $0x600] sm:$0xf]  ;;  %v18786_v34 = vld [vmem:[%s20248_s16 + $0x62c] sm:$0xf0]  ;;  %v13073_v44 = vor.u32 %v18690_v31, %v13072_v30  ;;  %2829 = vmatpush.bf16.msra.mxu3 %v13889_v33  ;;  %v13314_v4 = vld [vmem:[%s20248_s16 + $0x510] sm:$0xf0] }
  0x5e   : > { %v13840_v35 = vld [vmem:[%s20248_s16 + $0x900] sm:$0xf]  ;;  %v18882_v36 = vld [vmem:[%s20248_s16 + $0x92c] sm:$0xf0]  ;;  %v13457_v45 = vor.u32 %v18786_v34, %v13456_v32  ;;  %2788 = vmatpush.bf16.msra.mxu0 %v12689_v40  ;;  %v18840_v5 = vld [vmem:[%s20248_s16 + $0x7e4] sm:$0xf]  ;;  %v13317_v14 = vor.u32 %v18744_v2, %v13314_v4 }
  0x5f   : > { %v13841_v48 = vor.u32 %v18882_v36, %v13840_v35  ;;  %2802 = vmatpush.bf16.msra.mxu1 %v13073_v44  ;;  %v13698_v6 = vld [vmem:[%s20248_s16 + $0x810] sm:$0xf0]  ;;  %v18936_v7 = vld [vmem:[%s20248_s16 + $0xae4] sm:$0xf]  ;;  %v444_v18 = vld [vmem:[%s20250_s18 + $0x18] sm:$0xff] }
  0x60   : > { %2816 = vmatpush.bf16.msra.mxu2 %v13457_v45  ;;  %v14082_v8 = vld [vmem:[%s20248_s16 + $0xb10] sm:$0xf0]  ;;  %v18636_v9 = vld [vmem:[%s20248_s16 + $0x184] sm:$0xf]  ;;  %v13701_v15 = vor.u32 %v18840_v5, %v13698_v6  ;;  %v448_v19 = vld [vmem:[%s20250_s18 + $0x38] sm:$0xff] }
  0x61   : > { %2830 = vmatpush.bf16.msra.mxu3 %v13841_v48  ;;  %v12882_v11 = vld [vmem:[%s20248_s16 + $0x1b0] sm:$0xf0]  ;;  %v18732_v16 = vld [vmem:[%s20248_s16 + $0x484] sm:$0xf]  ;;  %v14085_v20 = vor.u32 %v18936_v7, %v14082_v8  ;;  %v20353_v24 = vpack.c.bf16 %v448_v19, %v444_v18  ;;  %v442_v36 = vld [vmem:[%s20250_s18 + $0x8] sm:$0xff] }
  0x62   : > { %2837 = vmatpush.bf16.msrb.mxu0 %v13029_v49  ;;  %v443_v12 = vld [vmem:[%s20250_s18 + $0x10] sm:$0xff]  ;;  %v18828_v22 = vld [vmem:[%s20248_s16 + $0x784] sm:$0xf]  ;;  %v12885_v28 = vor.u32 %v18636_v9, %v12882_v11  ;;  %v446_v37 = vld [vmem:[%s20250_s18 + $0x28] sm:$0xff] }
  0x63   : > { %2851 = vmatpush.bf16.msrb.mxu1 %v13413_v50  ;;  %v447_v13 = vld [vmem:[%s20250_s18 + $0x30] sm:$0xff]  ;;  %v18924_v25 = vld [vmem:[%s20248_s16 + $0xa84] sm:$0xf]  ;;  %v20371_v42 = vpack.c.bf16 %v446_v37, %v442_v36  ;;  %v13032_v18 = vld [vmem:[%s20248_s16 + $0x2a8] sm:$0xf] }
  0x64   : > { %2865 = vmatpush.bf16.msrb.mxu2 %v13797_v51  ;;  %v20346_v17 = vpack.c.bf16 %v447_v13, %v443_v12  ;;  %v13266_v21 = vld [vmem:[%s20248_s16 + $0x4b0] sm:$0xf0]  ;;  %v18624_v27 = vld [vmem:[%s20248_s16 + $0x124] sm:$0xf]  ;;  %2831 = vmatmul.bf16.vlgmr.msra.gmra.mxu3 %v20353_v24  ;;  %v18679_v19 = vld [vmem:[%s20248_s16 + $0x2d4] sm:$0xf0] }
  0x65   : > { %2879 = vmatpush.bf16.msrb.mxu3 %v14181_v55  ;;  %v13650_v23 = vld [vmem:[%s20248_s16 + $0x7b0] sm:$0xf0]  ;;  %v441_v30 = vld [vmem:[%s20250_s18] sm:$0xff]  ;;  %v13269_v32 = vor.u32 %v18732_v16, %v13266_v21  ;;  %2803 = vmatmul.bf16.vlgmr.msra.gmra.mxu1 %v20371_v42  ;;  %v18667_v36 = vld [vmem:[%s20248_s16 + $0x274] sm:$0xf0] }
  0x66   : > { %2838 = vmatpush.bf16.msrb.mxu0 %v12981_v61  ;;  %v14034_v26 = vld [vmem:[%s20248_s16 + $0xab0] sm:$0xf0]  ;;  %2817 = vmatmul.bf16.vlgmr.msra.gmra.mxu2 %v20346_v17  ;;  %v445_v31 = vld [vmem:[%s20250_s18 + $0x20] sm:$0xff]  ;;  %v13653_v33 = vor.u32 %v18828_v22, %v13650_v23  ;;  %v18775_v22 = vld [vmem:[%s20248_s16 + $0x5d4] sm:$0xf0] }
  0x67   : > { %2852 = vmatpush.bf16.msrb.mxu1 %v13365_v62  ;;  %v12834_v29 = vld [vmem:[%s20248_s16 + $0x150] sm:$0xf0]  ;;  %v18720_v34 = vld [vmem:[%s20248_s16 + $0x424] sm:$0xf]  ;;  %v20364_v35 = vpack.c.bf16 %v445_v31, %v441_v30  ;;  %v14037_v38 = vor.u32 %v18924_v25, %v14034_v26  ;;  %v13800_v23 = vld [vmem:[%s20248_s16 + $0x8a8] sm:$0xf]  ;;  %v13033_v31 = vor.u32 %v18679_v19, %v13032_v18 }
  0x68   : > { %2866 = vmatpush.bf16.msrb.mxu2 %v13749_v63  ;;  %v13218_v39 = vld [vmem:[%s20248_s16 + $0x450] sm:$0xf0]  ;;  %v18816_v40 = vld [vmem:[%s20248_s16 + $0x724] sm:$0xf]  ;;  %v12837_v45 = vor.u32 %v18624_v27, %v12834_v29  ;;  %v18871_v25 = vld [vmem:[%s20248_s16 + $0x8d4] sm:$0xf0] }
  0x69   : > { %2880 = vmatpush.bf16.msrb.mxu3 %v14133_v3  ;;  %v13602_v41 = vld [vmem:[%s20248_s16 + $0x750] sm:$0xf0]  ;;  %v18912_v43 = vld [vmem:[%s20248_s16 + $0xa24] sm:$0xf]  ;;  %2789 = vmatmul.bf16.vlgmr.msra.gmra.mxu0 %v20364_v35  ;;  %v13221_v46 = vor.u32 %v18720_v34, %v13218_v39  ;;  %v18967_v29 = vld [vmem:[%s20248_s16 + $0xbd4] sm:$0xf0] }
  0x6a   : > { %2839 = vmatpush.bf16.msrb.mxu0 %v12933_v10  ;;  %v13986_v44 = vld [vmem:[%s20248_s16 + $0xa50] sm:$0xf0]  ;;  %v13605_v47 = vor.u32 %v18816_v40, %v13602_v41  ;;  %v18612_v48 = vld [vmem:[%s20248_s16 + $0xc4] sm:$0xf]  ;;  %v12984_v34 = vld [vmem:[%s20248_s16 + $0x248] sm:$0xf] }
  0x6b   : > { %2853 = vmatpush.bf16.msrb.mxu1 %v13317_v14  ;;  %v12786_v49 = vld [vmem:[%s20248_s16 + $0xf0] sm:$0xf0]  ;;  %v18708_v50 = vld [vmem:[%s20248_s16 + $0x3c4] sm:$0xf]  ;;  %v13989_v51 = vor.u32 %v18912_v43, %v13986_v44  ;;  %v13368_v37 = vld [vmem:[%s20248_s16 + $0x548] sm:$0xf] }
  0x6c   : > { %2867 = vmatpush.bf16.msrb.mxu2 %v13701_v15  ;;  %v13170_v52 = vld [vmem:[%s20248_s16 + $0x3f0] sm:$0xf0]  ;;  %v18804_v53 = vld [vmem:[%s20248_s16 + $0x6c4] sm:$0xf]  ;;  %v12789_v57 = vor.u32 %v18612_v48, %v12786_v49  ;;  %v18763_v39 = vld [vmem:[%s20248_s16 + $0x574] sm:$0xf0] }
  0x6d   : > { %2881 = vmatpush.bf16.msrb.mxu3 %v14085_v20  ;;  %v13554_v54 = vld [vmem:[%s20248_s16 + $0x6f0] sm:$0xf0]  ;;  %v18900_v55 = vld [vmem:[%s20248_s16 + $0x9c4] sm:$0xf]  ;;  %v13173_v58 = vor.u32 %v18708_v50, %v13170_v52  ;;  %v13416_v20 = vld [vmem:[%s20248_s16 + $0x5a8] sm:$0xf] }
  0x6e   : > { %2840 = vmatpush.bf16.msrb.mxu0 %v12885_v28  ;;  %v13938_v56 = vld [vmem:[%s20248_s16 + $0x9f0] sm:$0xf0]  ;;  %v13557_v59 = vor.u32 %v18804_v53, %v13554_v54  ;;  %v18600_v60 = vld [vmem:[%s20248_s16 + $0x64] sm:$0xf]  ;;  %v14184_v28 = vld [vmem:[%s20248_s16 + $0xba8] sm:$0xf] }
  0x6f   : > { %2854 = vmatpush.bf16.msrb.mxu1 %v13269_v32  ;;  %v12738_v61 = vld [vmem:[%s20248_s16 + $0x90] sm:$0xf0]  ;;  %v18696_v62 = vld [vmem:[%s20248_s16 + $0x364] sm:$0xf]  ;;  %v13941_v63 = vor.u32 %v18900_v55, %v13938_v56  ;;  %v13417_v32 = vor.u32 %v18775_v22, %v13416_v20  ;;  %v13752_v40 = vld [vmem:[%s20248_s16 + $0x848] sm:$0xf] }
  0x70   : > { %2868 = vmatpush.bf16.msrb.mxu2 %v13653_v33  ;;  %v13122_v0 = vld [vmem:[%s20248_s16 + $0x390] sm:$0xf0]  ;;  %v18792_v1 = vld [vmem:[%s20248_s16 + $0x664] sm:$0xf]  ;;  %v12741_v5 = vor.u32 %v18600_v60, %v12738_v61  ;;  %v13801_v33 = vor.u32 %v18871_v25, %v13800_v23  ;;  %v18859_v41 = vld [vmem:[%s20248_s16 + $0x874] sm:$0xf0] }
  0x71   : > { %2882 = vmatpush.bf16.msrb.mxu3 %v14037_v38  ;;  %v13506_v2 = vld [vmem:[%s20248_s16 + $0x690] sm:$0xf0]  ;;  %v18888_v3 = vld [vmem:[%s20248_s16 + $0x964] sm:$0xf]  ;;  %v13125_v8 = vor.u32 %v18696_v62, %v13122_v0  ;;  %v14185_v38 = vor.u32 %v18967_v29, %v14184_v28  ;;  %v14136_v43 = vld [vmem:[%s20248_s16 + $0xb48] sm:$0xf] }
  0x72   : > { %2841 = vmatpush.bf16.msrb.mxu0 %v12837_v45  ;;  %v13890_v4 = vld [vmem:[%s20248_s16 + $0x990] sm:$0xf0]  ;;  %v18588_v6 = vld [vmem:[%s20248_s16 + $0x4] sm:$0xf]  ;;  %v13509_v9 = vor.u32 %v18792_v1, %v13506_v2  ;;  %v18955_v44 = vld [vmem:[%s20248_s16 + $0xb74] sm:$0xf0]  ;;  %v12985_v45 = vor.u32 %v18667_v36, %v12984_v34 }
  0x73   : > { %2855 = vmatpush.bf16.msrb.mxu1 %v13221_v46  ;;  %v12690_v7 = vld [vmem:[%s20248_s16 + $0x30] sm:$0xf0]  ;;  %v18684_v10 = vld [vmem:[%s20248_s16 + $0x304] sm:$0xf]  ;;  %v13893_v13 = vor.u32 %v18888_v3, %v13890_v4  ;;  %v13369_v46 = vor.u32 %v18763_v39, %v13368_v37  ;;  %v12936_v48 = vld [vmem:[%s20248_s16 + $0x1e8] sm:$0xf] }
  0x74   : > { %2869 = vmatpush.bf16.msrb.mxu2 %v13605_v47  ;;  %v13074_v11 = vld [vmem:[%s20248_s16 + $0x330] sm:$0xf0]  ;;  %v18780_v12 = vld [vmem:[%s20248_s16 + $0x604] sm:$0xf]  ;;  %v12693_v21 = vor.u32 %v18588_v6, %v12690_v7  ;;  %v13753_v47 = vor.u32 %v18859_v41, %v13752_v40  ;;  %v18655_v49 = vld [vmem:[%s20248_s16 + $0x214] sm:$0xf0] }
  0x75   : > { %2883 = vmatpush.bf16.msrb.mxu3 %v13989_v51  ;;  %v13458_v14 = vld [vmem:[%s20248_s16 + $0x630] sm:$0xf0]  ;;  %v18876_v15 = vld [vmem:[%s20248_s16 + $0x904] sm:$0xf]  ;;  %v13077_v26 = vor.u32 %v18684_v10, %v13074_v11  ;;  %v13320_v50 = vld [vmem:[%s20248_s16 + $0x4e8] sm:$0xf]  ;;  %v14137_v51 = vor.u32 %v18955_v44, %v14136_v43 }
  0x76   : > { %2842 = vmatpush.bf16.msrb.mxu0 %v12789_v57  ;;  %v13842_v16 = vld [vmem:[%s20248_s16 + $0x930] sm:$0xf0]  ;;  %v13461_v27 = vor.u32 %v18780_v12, %v13458_v14  ;;  %v18751_v52 = vld [vmem:[%s20248_s16 + $0x514] sm:$0xf0]  ;;  %v13704_v53 = vld [vmem:[%s20248_s16 + $0x7e8] sm:$0xf]  ;;  %v12937_v57 = vor.u32 %v18655_v49, %v12936_v48 }
  0x77   : > { %2856 = vmatpush.bf16.msrb.mxu1 %v13173_v58  ;;  %v13845_v30 = vor.u32 %v18876_v15, %v13842_v16  ;;  %v18847_v54 = vld [vmem:[%s20248_s16 + $0x814] sm:$0xf0]  ;;  %v14088_v55 = vld [vmem:[%s20248_s16 + $0xae8] sm:$0xf]  ;;  %v13321_v58 = vor.u32 %v18751_v52, %v13320_v50 }
  0x78   : > { %2870 = vmatpush.bf16.msrb.mxu2 %v13557_v59  ;;  %v18943_v56 = vld [vmem:[%s20248_s16 + $0xb14] sm:$0xf0]  ;;  %v13705_v59 = vor.u32 %v18847_v54, %v13704_v53  ;;  %v12888_v60 = vld [vmem:[%s20248_s16 + $0x188] sm:$0xf] }
  0x79   : > { %2884 = vmatpush.bf16.msrb.mxu3 %v13941_v63  ;;  %v18643_v61 = vld [vmem:[%s20248_s16 + $0x1b4] sm:$0xf0]  ;;  %v13272_v62 = vld [vmem:[%s20248_s16 + $0x488] sm:$0xf]  ;;  %v14089_v63 = vor.u32 %v18943_v56, %v14088_v55 }
  0x7a   : > { %2843 = vmatpush.bf16.msrb.mxu0 %v12741_v5  ;;  %v18739_v0 = vld [vmem:[%s20248_s16 + $0x4b4] sm:$0xf0]  ;;  %v13656_v1 = vld [vmem:[%s20248_s16 + $0x788] sm:$0xf]  ;;  %v12889_v5 = vor.u32 %v18643_v61, %v12888_v60  ;;  %v13418_v61 = vld [vmem:[%s20248_s16 + $0x5d8] sm:$0xf0] }
  0x7b   : > { %2857 = vmatpush.bf16.msrb.mxu1 %v13125_v8  ;;  %v18835_v2 = vld [vmem:[%s20248_s16 + $0x7b4] sm:$0xf0]  ;;  %v14040_v3 = vld [vmem:[%s20248_s16 + $0xa88] sm:$0xf]  ;;  %v13273_v6 = vor.u32 %v18739_v0, %v13272_v62  ;;  %v18865_v62 = vld [vmem:[%s20248_s16 + $0x8ac] sm:$0xf] }
  0x7c   : > { %2871 = vmatpush.bf16.msrb.mxu2 %v13509_v9  ;;  %v18931_v4 = vld [vmem:[%s20248_s16 + $0xab4] sm:$0xf0]  ;;  %v13657_v7 = vor.u32 %v18835_v2, %v13656_v1  ;;  %v12840_v8 = vld [vmem:[%s20248_s16 + $0x128] sm:$0xf]  ;;  %v18961_v2 = vld [vmem:[%s20248_s16 + $0xbac] sm:$0xf] }
  0x7d   : > { %2885 = vmatpush.bf16.msrb.mxu3 %v13893_v13  ;;  %v18631_v9 = vld [vmem:[%s20248_s16 + $0x154] sm:$0xf0]  ;;  %v13224_v10 = vld [vmem:[%s20248_s16 + $0x428] sm:$0xf]  ;;  %v14041_v11 = vor.u32 %v18931_v4, %v14040_v3  ;;  %v14186_v3 = vld [vmem:[%s20248_s16 + $0xbd8] sm:$0xf0] }
  0x7e   : > { %2844 = vmatpush.bf16.msrb.mxu0 %v12693_v21  ;;  %v18727_v12 = vld [vmem:[%s20248_s16 + $0x454] sm:$0xf0]  ;;  %v13608_v13 = vld [vmem:[%s20248_s16 + $0x728] sm:$0xf]  ;;  %v12841_v18 = vor.u32 %v18631_v9, %v12840_v8  ;;  %v18661_v8 = vld [vmem:[%s20248_s16 + $0x24c] sm:$0xf] }
  0x7f   : > { %2858 = vmatpush.bf16.msrb.mxu1 %v13077_v26  ;;  %v18823_v14 = vld [vmem:[%s20248_s16 + $0x754] sm:$0xf0]  ;;  %v13992_v15 = vld [vmem:[%s20248_s16 + $0xa28] sm:$0xf]  ;;  %v13225_v19 = vor.u32 %v18727_v12, %v13224_v10  ;;  %v12986_v9 = vld [vmem:[%s20248_s16 + $0x278] sm:$0xf0] }
  0x80   : > { %2872 = vmatpush.bf16.msrb.mxu2 %v13461_v27  ;;  %v18919_v16 = vld [vmem:[%s20248_s16 + $0xa54] sm:$0xf0]  ;;  %v13609_v20 = vor.u32 %v18823_v14, %v13608_v13  ;;  %v12792_v21 = vld [vmem:[%s20248_s16 + $0xc8] sm:$0xf]  ;;  %v18757_v10 = vld [vmem:[%s20248_s16 + $0x54c] sm:$0xf] }
  0x81   : > { %2886 = vmatpush.bf16.msrb.mxu3 %v13845_v30  ;;  %2845 = vmatmul.bf16.vlgmr.msrb.gmra.mxu0 %v20364_v35  ;;  %v18619_v22 = vld [vmem:[%s20248_s16 + $0xf4] sm:$0xf0]  ;;  %v13176_v23 = vld [vmem:[%s20248_s16 + $0x3c8] sm:$0xf]  ;;  %v13993_v25 = vor.u32 %v18919_v16, %v13992_v15  ;;  %v13370_v12 = vld [vmem:[%s20248_s16 + $0x578] sm:$0xf0] }
  0x82   : > { %2893 = vmatpush.bf16.msra.mxu0 %v13033_v31  ;;  %2859 = vmatmul.bf16.vlgmr.msrb.gmra.mxu1 %v20371_v42  ;;  %v18715_v26 = vld [vmem:[%s20248_s16 + $0x3f4] sm:$0xf0]  ;;  %v13560_v27 = vld [vmem:[%s20248_s16 + $0x6c8] sm:$0xf]  ;;  %v12793_v31 = vor.u32 %v18619_v22, %v12792_v21  ;;  %v18853_v13 = vld [vmem:[%s20248_s16 + $0x84c] sm:$0xf] }
  0x83   : > { %2907 = vmatpush.bf16.msra.mxu1 %v13417_v32  ;;  %2873 = vmatmul.bf16.vlgmr.msrb.gmra.mxu2 %v20346_v17  ;;  %v18811_v28 = vld [vmem:[%s20248_s16 + $0x6f4] sm:$0xf0]  ;;  %v13944_v29 = vld [vmem:[%s20248_s16 + $0x9c8] sm:$0xf]  ;;  %v13177_v32 = vor.u32 %v18715_v26, %v13176_v23  ;;  %v13754_v14 = vld [vmem:[%s20248_s16 + $0x878] sm:$0xf0] }
  0x84   : > { %2921 = vmatpush.bf16.msra.mxu2 %v13801_v33  ;;  %2887 = vmatmul.bf16.vlgmr.msrb.gmra.mxu3 %v20353_v24  ;;  %v18907_v30 = vld [vmem:[%s20248_s16 + $0x9f4] sm:$0xf0]  ;;  %v13561_v33 = vor.u32 %v18811_v28, %v13560_v27  ;;  %v12744_v34 = vld [vmem:[%s20248_s16 + $0x68] sm:$0xf]  ;;  %v18949_v15 = vld [vmem:[%s20248_s16 + $0xb4c] sm:$0xf] }
  0x85   : > { %2935 = vmatpush.bf16.msra.mxu3 %v14185_v38  ;;  %v18607_v36 = vld [vmem:[%s20248_s16 + $0x94] sm:$0xf0]  ;;  %v13128_v37 = vld [vmem:[%s20248_s16 + $0x368] sm:$0xf]  ;;  %v13945_v38 = vor.u32 %v18907_v30, %v13944_v29  ;;  %v14138_v16 = vld [vmem:[%s20248_s16 + $0xb78] sm:$0xf0] }
  0x86   : > { %2894 = vmatpush.bf16.msra.mxu0 %v12985_v45  ;;  %v18703_v39 = vld [vmem:[%s20248_s16 + $0x394] sm:$0xf0]  ;;  %v13512_v40 = vld [vmem:[%s20248_s16 + $0x668] sm:$0xf]  ;;  %v12745_v45 = vor.u32 %v18607_v36, %v12744_v34  ;;  %v18649_v21 = vld [vmem:[%s20248_s16 + $0x1ec] sm:$0xf] }
  0x87   : > { %2908 = vmatpush.bf16.msra.mxu1 %v13369_v46  ;;  %v18799_v41 = vld [vmem:[%s20248_s16 + $0x694] sm:$0xf0]  ;;  %v13896_v43 = vld [vmem:[%s20248_s16 + $0x968] sm:$0xf]  ;;  %v13129_v48 = vor.u32 %v18703_v39, %v13128_v37  ;;  %v12938_v22 = vld [vmem:[%s20248_s16 + $0x218] sm:$0xf0] }
  0x88   : > { %2922 = vmatpush.bf16.msra.mxu2 %v13753_v47  ;;  %v18895_v44 = vld [vmem:[%s20248_s16 + $0x994] sm:$0xf0]  ;;  %v12696_v46 = vld [vmem:[%s20248_s16 + $0x8] sm:$0xf]  ;;  %v13513_v49 = vor.u32 %v18799_v41, %v13512_v40  ;;  %v18745_v23 = vld [vmem:[%s20248_s16 + $0x4ec] sm:$0xf] }
  0x89   : > { %2936 = vmatpush.bf16.msra.mxu3 %v14137_v51  ;;  %v18595_v47 = vld [vmem:[%s20248_s16 + $0x34] sm:$0xf0]  ;;  %v13080_v50 = vld [vmem:[%s20248_s16 + $0x308] sm:$0xf]  ;;  %v13897_v53 = vor.u32 %v18895_v44, %v13896_v43  ;;  %v13322_v26 = vld [vmem:[%s20248_s16 + $0x518] sm:$0xf0] }
  0x8a   : > { %2895 = vmatpush.bf16.msra.mxu0 %v12937_v57  ;;  %v18691_v51 = vld [vmem:[%s20248_s16 + $0x334] sm:$0xf0]  ;;  %v13464_v52 = vld [vmem:[%s20248_s16 + $0x608] sm:$0xf]  ;;  %v18673_v57 = vld [vmem:[%s20248_s16 + $0x2ac] sm:$0xf]  ;;  %v12697_v60 = vor.u32 %v18595_v47, %v12696_v46 }
  0x8b   : > { %2909 = vmatpush.bf16.msra.mxu1 %v13321_v58  ;;  %v18787_v54 = vld [vmem:[%s20248_s16 + $0x634] sm:$0xf0]  ;;  %v13848_v55 = vld [vmem:[%s20248_s16 + $0x908] sm:$0xf]  ;;  %v13034_v58 = vld [vmem:[%s20248_s16 + $0x2d8] sm:$0xf0]  ;;  %v13081_v0 = vor.u32 %v18691_v51, %v13080_v50 }
  0x8c   : > { %2923 = vmatpush.bf16.msra.mxu2 %v13705_v59  ;;  %v18883_v56 = vld [vmem:[%s20248_s16 + $0x934] sm:$0xf0]  ;;  %v18769_v59 = vld [vmem:[%s20248_s16 + $0x5ac] sm:$0xf]  ;;  %v13465_v1 = vor.u32 %v18787_v54, %v13464_v52  ;;  %v13706_v28 = vld [vmem:[%s20248_s16 + $0x818] sm:$0xf0] }
  0x8d   : > { %2937 = vmatpush.bf16.msra.mxu3 %v14089_v63  ;;  %v13802_v63 = vld [vmem:[%s20248_s16 + $0x8d8] sm:$0xf0]  ;;  %v13849_v4 = vor.u32 %v18883_v56, %v13848_v55  ;;  %v18841_v27 = vld [vmem:[%s20248_s16 + $0x7ec] sm:$0xf] }
  0x8e   : > { %2896 = vmatpush.bf16.msra.mxu0 %v12889_v5  ;;  %v13037_v5 = vor.u32 %v18673_v57, %v13034_v58  ;;  %v18937_v29 = vld [vmem:[%s20248_s16 + $0xaec] sm:$0xf]  ;;  %v14090_v30 = vld [vmem:[%s20248_s16 + $0xb18] sm:$0xf0] }
  0x8f   : > { %2910 = vmatpush.bf16.msra.mxu1 %v13273_v6  ;;  %v13421_v6 = vor.u32 %v18769_v59, %v13418_v61  ;;  %v18637_v34 = vld [vmem:[%s20248_s16 + $0x18c] sm:$0xf]  ;;  %v12890_v36 = vld [vmem:[%s20248_s16 + $0x1b8] sm:$0xf0] }
  0x90   : > { %2924 = vmatpush.bf16.msra.mxu2 %v13657_v7  ;;  %v13805_v7 = vor.u32 %v18865_v62, %v13802_v63  ;;  %v18733_v37 = vld [vmem:[%s20248_s16 + $0x48c] sm:$0xf]  ;;  %v13274_v39 = vld [vmem:[%s20248_s16 + $0x4b8] sm:$0xf0] }
  0x91   : > { %2938 = vmatpush.bf16.msra.mxu3 %v14041_v11  ;;  %v14189_v11 = vor.u32 %v18961_v2, %v14186_v3  ;;  %v18829_v40 = vld [vmem:[%s20248_s16 + $0x78c] sm:$0xf]  ;;  %v13658_v41 = vld [vmem:[%s20248_s16 + $0x7b8] sm:$0xf0]  ;;  %v13277_v46 = vor.u32 %v18733_v37, %v13274_v39  ;;  %v13808_v37 = vld [vmem:[%s20248_s16 + $0x8b0] sm:$0xf] }
  0x92   : > { %2897 = vmatpush.bf16.msra.mxu0 %v12841_v18  ;;  %v12989_v18 = vor.u32 %v18661_v8, %v12986_v9  ;;  %v18925_v43 = vld [vmem:[%s20248_s16 + $0xa8c] sm:$0xf]  ;;  %v14042_v44 = vld [vmem:[%s20248_s16 + $0xab8] sm:$0xf0]  ;;  %v13661_v47 = vor.u32 %v18829_v40, %v13658_v41  ;;  %v14192_v41 = vld [vmem:[%s20248_s16 + $0xbb0] sm:$0xf] }
  0x93   : > { %2911 = vmatpush.bf16.msra.mxu1 %v13225_v19  ;;  %v13373_v19 = vor.u32 %v18757_v10, %v13370_v12  ;;  %v18721_v50 = vld [vmem:[%s20248_s16 + $0x42c] sm:$0xf]  ;;  %v14045_v51 = vor.u32 %v18925_v43, %v14042_v44  ;;  %v13226_v52 = vld [vmem:[%s20248_s16 + $0x458] sm:$0xf0]  ;;  %v18968_v43 = vld [vmem:[%s20248_s16 + $0xbdc] sm:$0xf0] }
  0x94   : > { %2925 = vmatpush.bf16.msra.mxu2 %v13609_v20  ;;  %v13757_v20 = vor.u32 %v18853_v13, %v13754_v14  ;;  %v13610_v54 = vld [vmem:[%s20248_s16 + $0x758] sm:$0xf0]  ;;  %v18913_v55 = vld [vmem:[%s20248_s16 + $0xa2c] sm:$0xf]  ;;  %v13229_v58 = vor.u32 %v18721_v50, %v13226_v52  ;;  %v13376_v50 = vld [vmem:[%s20248_s16 + $0x550] sm:$0xf] }
  0x95   : > { %2939 = vmatpush.bf16.msra.mxu3 %v13993_v25  ;;  %v14141_v25 = vor.u32 %v18949_v15, %v14138_v16  ;;  %v13994_v56 = vld [vmem:[%s20248_s16 + $0xa58] sm:$0xf0]  ;;  %v18709_v62 = vld [vmem:[%s20248_s16 + $0x3cc] sm:$0xf]  ;;  %v18764_v52 = vld [vmem:[%s20248_s16 + $0x57c] sm:$0xf0] }
  0x96   : > { %2898 = vmatpush.bf16.msra.mxu0 %v12793_v31  ;;  %v12941_v31 = vor.u32 %v18649_v21, %v12938_v22  ;;  %v12794_v61 = vld [vmem:[%s20248_s16 + $0xf8] sm:$0xf0]  ;;  %v13997_v63 = vor.u32 %v18913_v55, %v13994_v56  ;;  %v18901_v3 = vld [vmem:[%s20248_s16 + $0x9cc] sm:$0xf]  ;;  %v14144_v55 = vld [vmem:[%s20248_s16 + $0xb50] sm:$0xf] }
  0x97   : > { %2912 = vmatpush.bf16.msra.mxu1 %v13177_v32  ;;  %v13325_v32 = vor.u32 %v18745_v23, %v13322_v26  ;;  %v13562_v2 = vld [vmem:[%s20248_s16 + $0x6f8] sm:$0xf0]  ;;  %v18601_v8 = vld [vmem:[%s20248_s16 + $0x6c] sm:$0xf]  ;;  %v18956_v56 = vld [vmem:[%s20248_s16 + $0xb7c] sm:$0xf0] }
  0x98   : > { %2926 = vmatpush.bf16.msra.mxu2 %v13561_v33  ;;  %v13709_v33 = vor.u32 %v18841_v27, %v13706_v28  ;;  %v12746_v9 = vld [vmem:[%s20248_s16 + $0x98] sm:$0xf0]  ;;  %v18697_v10 = vld [vmem:[%s20248_s16 + $0x36c] sm:$0xf] }
  0x99   : > { %2940 = vmatpush.bf16.msra.mxu3 %v13945_v38  ;;  %v14093_v38 = vor.u32 %v18937_v29, %v14090_v30  ;;  %v13130_v12 = vld [vmem:[%s20248_s16 + $0x398] sm:$0xf0]  ;;  %v18793_v13 = vld [vmem:[%s20248_s16 + $0x66c] sm:$0xf] }
  0x9a   : > { %2899 = vmatpush.bf16.msra.mxu0 %v12745_v45  ;;  %v12893_v45 = vor.u32 %v18637_v34, %v12890_v36  ;;  %v13514_v14 = vld [vmem:[%s20248_s16 + $0x698] sm:$0xf0]  ;;  %v18889_v15 = vld [vmem:[%s20248_s16 + $0x96c] sm:$0xf]  ;;  %v13133_v21 = vor.u32 %v18697_v10, %v13130_v12  ;;  %v18776_v36 = vld [vmem:[%s20248_s16 + $0x5dc] sm:$0xf0] }
  0x9b   : > { %2913 = vmatpush.bf16.msra.mxu1 %v13129_v48  ;;  %v18625_v48 = vld [vmem:[%s20248_s16 + $0x12c] sm:$0xf]  ;;  %v13898_v16 = vld [vmem:[%s20248_s16 + $0x998] sm:$0xf0]  ;;  %v13517_v22 = vor.u32 %v18793_v13, %v13514_v14  ;;  %v13280_v10 = vld [vmem:[%s20248_s16 + $0x490] sm:$0xf] }
  0x9c   : > { %2927 = vmatpush.bf16.msra.mxu2 %v13513_v49  ;;  %v12842_v49 = vld [vmem:[%s20248_s16 + $0x158] sm:$0xf0]  ;;  %v18685_v23 = vld [vmem:[%s20248_s16 + $0x30c] sm:$0xf]  ;;  %v13901_v27 = vor.u32 %v18889_v15, %v13898_v16  ;;  %v18740_v12 = vld [vmem:[%s20248_s16 + $0x4bc] sm:$0xf0] }
  0x9d   : > { %2941 = vmatpush.bf16.msra.mxu3 %v13897_v53  ;;  %v18817_v53 = vld [vmem:[%s20248_s16 + $0x72c] sm:$0xf]  ;;  %v12845_v57 = vor.u32 %v18625_v48, %v12842_v49  ;;  %v13466_v28 = vld [vmem:[%s20248_s16 + $0x638] sm:$0xf0]  ;;  %v12992_v48 = vld [vmem:[%s20248_s16 + $0x250] sm:$0xf] }
  0x9e   : > { %2900 = vmatpush.bf16.msra.mxu0 %v12697_v60  ;;  %v13613_v59 = vor.u32 %v18817_v53, %v13610_v54  ;;  %v18613_v60 = vld [vmem:[%s20248_s16 + $0xcc] sm:$0xf]  ;;  %v13850_v30 = vld [vmem:[%s20248_s16 + $0x938] sm:$0xf0]  ;;  %v18668_v49 = vld [vmem:[%s20248_s16 + $0x27c] sm:$0xf0] }
  0x9f   : > { %2914 = vmatpush.bf16.msra.mxu1 %v13081_v0  ;;  %v13178_v0 = vld [vmem:[%s20248_s16 + $0x3f8] sm:$0xf0]  ;;  %v18781_v26 = vld [vmem:[%s20248_s16 + $0x60c] sm:$0xf]  ;;  %v13760_v53 = vld [vmem:[%s20248_s16 + $0x850] sm:$0xf] }
  0xa0   : > { %2928 = vmatpush.bf16.msra.mxu2 %v13465_v1  ;;  %v18805_v1 = vld [vmem:[%s20248_s16 + $0x6cc] sm:$0xf]  ;;  %v13469_v40 = vor.u32 %v18781_v26, %v13466_v28  ;;  %v18860_v54 = vld [vmem:[%s20248_s16 + $0x87c] sm:$0xf0]  ;;  %v13664_v13 = vld [vmem:[%s20248_s16 + $0x790] sm:$0xf] }
  0xa1   : > { %2942 = vmatpush.bf16.msra.mxu3 %v13849_v4  ;;  %2901 = vmatmul.bf16.vlgmr.msra.gmra.mxu0 %v20364_v35  ;;  %v13946_v4 = vld [vmem:[%s20248_s16 + $0x9f8] sm:$0xf0]  ;;  %v18877_v29 = vld [vmem:[%s20248_s16 + $0x90c] sm:$0xf]  ;;  %v18836_v14 = vld [vmem:[%s20248_s16 + $0x7bc] sm:$0xf0] }
  0xa2   : > { %2949 = vmatpush.bf16.msrb.mxu0 %v13037_v5  ;;  %2915 = vmatmul.bf16.vlgmr.msra.gmra.mxu1 %v20371_v42  ;;  %v12797_v5 = vor.u32 %v18613_v60, %v12794_v61  ;;  %v13853_v44 = vor.u32 %v18877_v29, %v13850_v30  ;;  %v12944_v60 = vld [vmem:[%s20248_s16 + $0x1f0] sm:$0xf]  ;;  %v18656_v61 = vld [vmem:[%s20248_s16 + $0x21c] sm:$0xf0] }
  0xa3   : > { %2963 = vmatpush.bf16.msrb.mxu1 %v13421_v6  ;;  %2929 = vmatmul.bf16.vlgmr.msra.gmra.mxu2 %v20346_v17  ;;  %v13181_v6 = vor.u32 %v18709_v62, %v13178_v0  ;;  %v13328_v62 = vld [vmem:[%s20248_s16 + $0x4f0] sm:$0xf]  ;;  %v18752_v0 = vld [vmem:[%s20248_s16 + $0x51c] sm:$0xf0] }
  0xa4   : > { %2977 = vmatpush.bf16.msrb.mxu2 %v13805_v7  ;;  %2943 = vmatmul.bf16.vlgmr.msra.gmra.mxu3 %v20353_v24  ;;  %v13565_v7 = vor.u32 %v18805_v1, %v13562_v2  ;;  %v13712_v1 = vld [vmem:[%s20248_s16 + $0x7f0] sm:$0xf]  ;;  %v18848_v2 = vld [vmem:[%s20248_s16 + $0x81c] sm:$0xf0] }
  0xa5   : > { %2991 = vmatpush.bf16.msrb.mxu3 %v14189_v11  ;;  %v13949_v11 = vor.u32 %v18901_v3, %v13946_v4  ;;  %v14096_v3 = vld [vmem:[%s20248_s16 + $0xaf0] sm:$0xf]  ;;  %v18944_v4 = vld [vmem:[%s20248_s16 + $0xb1c] sm:$0xf0] }
  0xa6   : > { %2950 = vmatpush.bf16.msrb.mxu0 %v12989_v18  ;;  %v12749_v18 = vor.u32 %v18601_v8, %v12746_v9  ;;  %v12896_v8 = vld [vmem:[%s20248_s16 + $0x190] sm:$0xf]  ;;  %v18644_v9 = vld [vmem:[%s20248_s16 + $0x1bc] sm:$0xf0] }
  0xa7   : > { %2964 = vmatpush.bf16.msrb.mxu1 %v13373_v19  ;;  %v18589_v19 = vld [vmem:[%s20248_s16 + $0xc] sm:$0xf]  ;;  %v14048_v15 = vld [vmem:[%s20248_s16 + $0xa90] sm:$0xf]  ;;  %v18932_v16 = vld [vmem:[%s20248_s16 + $0xabc] sm:$0xf0] }
  0xa8   : > { %2978 = vmatpush.bf16.msrb.mxu2 %v13757_v20  ;;  %v12698_v20 = vld [vmem:[%s20248_s16 + $0x38] sm:$0xf0]  ;;  %v18728_v26 = vld [vmem:[%s20248_s16 + $0x45c] sm:$0xf0]  ;;  %v14000_v29 = vld [vmem:[%s20248_s16 + $0xa30] sm:$0xf] }
  0xa9   : > { %2992 = vmatpush.bf16.msrb.mxu3 %v14141_v25  ;;  %v13082_v25 = vld [vmem:[%s20248_s16 + $0x338] sm:$0xf0]  ;;  %v12701_v34 = vor.u32 %v18589_v19, %v12698_v20  ;;  %v13281_v19 = vor.u32 %v18740_v12, %v13280_v10  ;;  %v13665_v20 = vor.u32 %v18836_v14, %v13664_v13  ;;  %v18824_v28 = vld [vmem:[%s20248_s16 + $0x75c] sm:$0xf0]  ;;  %v18866_v10 = vld [vmem:[%s20248_s16 + $0x8b4] sm:$0xf] }
  0xaa   : > { %2951 = vmatpush.bf16.msrb.mxu0 %v12941_v31  ;;  %v13040_v31 = vld [vmem:[%s20248_s16 + $0x2b0] sm:$0xf]  ;;  %v13085_v39 = vor.u32 %v18685_v23, %v13082_v25  ;;  %v14049_v25 = vor.u32 %v18932_v16, %v14048_v15  ;;  %v18920_v30 = vld [vmem:[%s20248_s16 + $0xa5c] sm:$0xf0]  ;;  %v18962_v14 = vld [vmem:[%s20248_s16 + $0xbb4] sm:$0xf] }
  0xab   : > { %2965 = vmatpush.bf16.msrb.mxu1 %v13325_v32  ;;  %v18680_v32 = vld [vmem:[%s20248_s16 + $0x2dc] sm:$0xf0]  ;;  %v13232_v23 = vld [vmem:[%s20248_s16 + $0x430] sm:$0xf]  ;;  %v14194_v15 = vld [vmem:[%s20248_s16 + $0xbe0] sm:$0xf0] }
  0xac   : > { %2979 = vmatpush.bf16.msrb.mxu2 %v13709_v33  ;;  %v13424_v33 = vld [vmem:[%s20248_s16 + $0x5b0] sm:$0xf] }
  0xad   : > { %2993 = vmatpush.bf16.msrb.mxu3 %v14093_v38  ;;  %v18872_v38 = vld [vmem:[%s20248_s16 + $0x8dc] sm:$0xf0] }
  0xae   : > { %2952 = vmatpush.bf16.msrb.mxu0 %v12893_v45  ;;  %v13041_v45 = vor.u32 %v18680_v32, %v13040_v31  ;;  %v13233_v32 = vor.u32 %v18728_v26, %v13232_v23  ;;  %v18758_v23 = vld [vmem:[%s20248_s16 + $0x554] sm:$0xf]  ;;  %v13378_v26 = vld [vmem:[%s20248_s16 + $0x580] sm:$0xf0] }
  0xaf   : > { %2966 = vmatpush.bf16.msrb.mxu1 %v13277_v46  ;;  %v13425_v46 = vor.u32 %v18776_v36, %v13424_v33  ;;  %v18620_v36 = vld [vmem:[%s20248_s16 + $0xfc] sm:$0xf0] }
  0xb0   : > { %2980 = vmatpush.bf16.msrb.mxu2 %v13661_v47  ;;  %v13809_v47 = vor.u32 %v18872_v38, %v13808_v37  ;;  %v13184_v37 = vld [vmem:[%s20248_s16 + $0x3d0] sm:$0xf]  ;;  %v14001_v38 = vor.u32 %v18920_v30, %v14000_v29  ;;  %v18950_v29 = vld [vmem:[%s20248_s16 + $0xb54] sm:$0xf]  ;;  %v14146_v30 = vld [vmem:[%s20248_s16 + $0xb80] sm:$0xf0] }
  0xb1   : > { %2994 = vmatpush.bf16.msrb.mxu3 %v14045_v51  ;;  %v14193_v51 = vor.u32 %v18968_v43, %v14192_v41  ;;  %v18812_v41 = vld [vmem:[%s20248_s16 + $0x6fc] sm:$0xf0]  ;;  %v13952_v43 = vld [vmem:[%s20248_s16 + $0x9d0] sm:$0xf] }
  0xb2   : > { %2953 = vmatpush.bf16.msrb.mxu0 %v12845_v57  ;;  %v12993_v57 = vor.u32 %v18668_v49, %v12992_v48  ;;  %v12752_v48 = vld [vmem:[%s20248_s16 + $0x70] sm:$0xf]  ;;  %v18608_v49 = vld [vmem:[%s20248_s16 + $0x9c] sm:$0xf0] }
  0xb3   : > { %2967 = vmatpush.bf16.msrb.mxu1 %v13229_v58  ;;  %v13377_v58 = vor.u32 %v18764_v52, %v13376_v50  ;;  %v13136_v50 = vld [vmem:[%s20248_s16 + $0x370] sm:$0xf]  ;;  %v18704_v52 = vld [vmem:[%s20248_s16 + $0x39c] sm:$0xf0] }
  0xb4   : > { %2981 = vmatpush.bf16.msrb.mxu2 %v13613_v59  ;;  %v13761_v59 = vor.u32 %v18860_v54, %v13760_v53  ;;  %v13520_v53 = vld [vmem:[%s20248_s16 + $0x670] sm:$0xf]  ;;  %v18800_v54 = vld [vmem:[%s20248_s16 + $0x69c] sm:$0xf0] }
  0xb5   : > { %2995 = vmatpush.bf16.msrb.mxu3 %v13997_v63  ;;  %v14145_v63 = vor.u32 %v18956_v56, %v14144_v55  ;;  %v13904_v55 = vld [vmem:[%s20248_s16 + $0x970] sm:$0xf]  ;;  %v18896_v56 = vld [vmem:[%s20248_s16 + $0x99c] sm:$0xf0] }
  0xb6   : > { %2954 = vmatpush.bf16.msrb.mxu0 %v12797_v5  ;;  %v12945_v5 = vor.u32 %v18656_v61, %v12944_v60  ;;  %v13137_v60 = vor.u32 %v18704_v52, %v13136_v50  ;;  %v13521_v61 = vor.u32 %v18800_v54, %v13520_v53  ;;  %v18734_v50 = vld [vmem:[%s20248_s16 + $0x494] sm:$0xf]  ;;  %v13282_v52 = vld [vmem:[%s20248_s16 + $0x4c0] sm:$0xf0] }
  0xb7   : > { %2968 = vmatpush.bf16.msrb.mxu1 %v13181_v6  ;;  %v13329_v6 = vor.u32 %v18752_v0, %v13328_v62  ;;  %v13088_v62 = vld [vmem:[%s20248_s16 + $0x310] sm:$0xf]  ;;  %v18830_v53 = vld [vmem:[%s20248_s16 + $0x794] sm:$0xf]  ;;  %v13666_v54 = vld [vmem:[%s20248_s16 + $0x7c0] sm:$0xf0] }
  0xb8   : > { %2982 = vmatpush.bf16.msrb.mxu2 %v13565_v7  ;;  %v13713_v7 = vor.u32 %v18848_v2, %v13712_v1  ;;  %v13472_v0 = vld [vmem:[%s20248_s16 + $0x610] sm:$0xf]  ;;  %v13905_v1 = vor.u32 %v18896_v56, %v13904_v55  ;;  %v18788_v2 = vld [vmem:[%s20248_s16 + $0x63c] sm:$0xf0]  ;;  %v18926_v55 = vld [vmem:[%s20248_s16 + $0xa94] sm:$0xf] }
  0xb9   : > { %2996 = vmatpush.bf16.msrb.mxu3 %v13949_v11  ;;  %v14097_v11 = vor.u32 %v18944_v4, %v14096_v3  ;;  %v13856_v3 = vld [vmem:[%s20248_s16 + $0x910] sm:$0xf]  ;;  %v18884_v4 = vld [vmem:[%s20248_s16 + $0x93c] sm:$0xf0]  ;;  %v13473_v13 = vor.u32 %v18788_v2, %v13472_v0  ;;  %v14050_v56 = vld [vmem:[%s20248_s16 + $0xac0] sm:$0xf0] }
  0xba   : > { %2955 = vmatpush.bf16.msrb.mxu0 %v12749_v18  ;;  %v12897_v18 = vor.u32 %v18644_v9, %v12896_v8  ;;  %v13426_v9 = vld [vmem:[%s20248_s16 + $0x5e0] sm:$0xf0]  ;;  %v13857_v16 = vor.u32 %v18884_v4, %v13856_v3  ;;  %v18914_v3 = vld [vmem:[%s20248_s16 + $0xa34] sm:$0xf] }
  0xbb   : > { %2969 = vmatpush.bf16.msrb.mxu1 %v13133_v21  ;;  %v12848_v21 = vld [vmem:[%s20248_s16 + $0x130] sm:$0xf]  ;;  %v13234_v0 = vld [vmem:[%s20248_s16 + $0x460] sm:$0xf0] }
  0xbc   : > { %2983 = vmatpush.bf16.msrb.mxu2 %v13517_v22  ;;  %v18632_v22 = vld [vmem:[%s20248_s16 + $0x15c] sm:$0xf0]  ;;  %v13618_v2 = vld [vmem:[%s20248_s16 + $0x760] sm:$0xf0] }
  0xbd   : > { %2997 = vmatpush.bf16.msrb.mxu3 %v13901_v27  ;;  %v13616_v27 = vld [vmem:[%s20248_s16 + $0x730] sm:$0xf]  ;;  %v12849_v31 = vor.u32 %v18632_v22, %v12848_v21  ;;  %v18662_v21 = vld [vmem:[%s20248_s16 + $0x254] sm:$0xf]  ;;  %v12994_v22 = vld [vmem:[%s20248_s16 + $0x280] sm:$0xf0] }
  0xbe   : > { %2956 = vmatpush.bf16.msrb.mxu0 %v12701_v34  ;;  %v13617_v33 = vor.u32 %v18824_v28, %v13616_v27  ;;  %v12800_v34 = vld [vmem:[%s20248_s16 + $0xd0] sm:$0xf]  ;;  %v18854_v27 = vld [vmem:[%s20248_s16 + $0x854] sm:$0xf]  ;;  %v13762_v28 = vld [vmem:[%s20248_s16 + $0x880] sm:$0xf0] }
  0xbf   : > { %2970 = vmatpush.bf16.msrb.mxu1 %v13085_v39  ;;  %v18716_v39 = vld [vmem:[%s20248_s16 + $0x3fc] sm:$0xf0]  ;;  %v14002_v4 = vld [vmem:[%s20248_s16 + $0xa60] sm:$0xf0] }
  0xc0   : > { %2984 = vmatpush.bf16.msrb.mxu2 %v13469_v40  ;;  %v13568_v40 = vld [vmem:[%s20248_s16 + $0x6d0] sm:$0xf] }
  0xc1   : > { %2998 = vmatpush.bf16.msrb.mxu3 %v13853_v44  ;;  %2957 = vmatmul.bf16.vlgmr.msrb.gmra.mxu0 %v20364_v35  ;;  %v18908_v44 = vld [vmem:[%s20248_s16 + $0x9fc] sm:$0xf0] }
  0xc2   : > { %3005 = vmatpush.bf16.msra.mxu0 %v13041_v45  ;;  %2971 = vmatmul.bf16.vlgmr.msrb.gmra.mxu1 %v20371_v42  ;;  %v12801_v45 = vor.u32 %v18620_v36, %v12800_v34  ;;  %v18650_v34 = vld [vmem:[%s20248_s16 + $0x1f4] sm:$0xf]  ;;  %v12946_v36 = vld [vmem:[%s20248_s16 + $0x220] sm:$0xf0] }
  0xc3   : > { %3019 = vmatpush.bf16.msra.mxu1 %v13425_v46  ;;  %2985 = vmatmul.bf16.vlgmr.msrb.gmra.mxu2 %v20346_v17  ;;  %v13185_v46 = vor.u32 %v18716_v39, %v13184_v37  ;;  %v18746_v37 = vld [vmem:[%s20248_s16 + $0x4f4] sm:$0xf]  ;;  %v13330_v39 = vld [vmem:[%s20248_s16 + $0x520] sm:$0xf0] }
  0xc4   : > { %3033 = vmatpush.bf16.msra.mxu2 %v13809_v47  ;;  %2999 = vmatmul.bf16.vlgmr.msrb.gmra.mxu3 %v20353_v24  ;;  %v13569_v47 = vor.u32 %v18812_v41, %v13568_v40  ;;  %v18842_v40 = vld [vmem:[%s20248_s16 + $0x7f4] sm:$0xf]  ;;  %v13714_v41 = vld [vmem:[%s20248_s16 + $0x820] sm:$0xf0] }
  0xc5   : > { %3047 = vmatpush.bf16.msra.mxu3 %v14193_v51  ;;  %v13953_v51 = vor.u32 %v18908_v44, %v13952_v43  ;;  %v18938_v43 = vld [vmem:[%s20248_s16 + $0xaf4] sm:$0xf]  ;;  %v14098_v44 = vld [vmem:[%s20248_s16 + $0xb20] sm:$0xf0] }
  0xc6   : > { %3006 = vmatpush.bf16.msra.mxu0 %v12993_v57  ;;  %v12753_v57 = vor.u32 %v18608_v49, %v12752_v48  ;;  %v18638_v48 = vld [vmem:[%s20248_s16 + $0x194] sm:$0xf]  ;;  %v12898_v49 = vld [vmem:[%s20248_s16 + $0x1c0] sm:$0xf0] }
  0xc7   : > { %3020 = vmatpush.bf16.msra.mxu1 %v13377_v58  ;;  %v12704_v58 = vld [vmem:[%s20248_s16 + $0x10] sm:$0xf] }
  0xc8   : > { %3034 = vmatpush.bf16.msra.mxu2 %v13761_v59  ;;  %v18596_v59 = vld [vmem:[%s20248_s16 + $0x3c] sm:$0xf0] }
  0xc9   : > { %3048 = vmatpush.bf16.msra.mxu3 %v14145_v63  ;;  %v18692_v63 = vld [vmem:[%s20248_s16 + $0x33c] sm:$0xf0]  ;;  %v12705_v8 = vor.u32 %v18596_v59, %v12704_v58  ;;  %v13285_v58 = vor.u32 %v18734_v50, %v13282_v52  ;;  %v13669_v59 = vor.u32 %v18830_v53, %v13666_v54  ;;  %v18878_v50 = vld [vmem:[%s20248_s16 + $0x914] sm:$0xf]  ;;  %v13048_v53 = vld [vmem:[%s20248_s16 + $0x2b8] sm:$0xf] }
  0xca   : > { %3007 = vmatpush.bf16.msra.mxu0 %v12945_v5  ;;  %v18674_v5 = vld [vmem:[%s20248_s16 + $0x2b4] sm:$0xf]  ;;  %v13089_v12 = vor.u32 %v18692_v63, %v13088_v62  ;;  %v14053_v63 = vor.u32 %v18926_v55, %v14050_v56  ;;  %v18681_v54 = vld [vmem:[%s20248_s16 + $0x2e4] sm:$0xf0]  ;;  %v13432_v55 = vld [vmem:[%s20248_s16 + $0x5b8] sm:$0xf] }
  0xcb   : > { %3021 = vmatpush.bf16.msra.mxu1 %v13329_v6  ;;  %v13042_v6 = vld [vmem:[%s20248_s16 + $0x2e0] sm:$0xf0]  ;;  %v18722_v62 = vld [vmem:[%s20248_s16 + $0x434] sm:$0xf] }
  0xcc   : > { %3035 = vmatpush.bf16.msra.mxu2 %v13713_v7  ;;  %v18770_v7 = vld [vmem:[%s20248_s16 + $0x5b4] sm:$0xf] }
  0xcd   : > { %3049 = vmatpush.bf16.msra.mxu3 %v14097_v11  ;;  %v13810_v11 = vld [vmem:[%s20248_s16 + $0x8e0] sm:$0xf0] }
  0xce   : > { %3008 = vmatpush.bf16.msra.mxu0 %v12897_v18  ;;  %v13045_v18 = vor.u32 %v18674_v5, %v13042_v6  ;;  %v13237_v6 = vor.u32 %v18722_v62, %v13234_v0  ;;  %v14200_v0 = vld [vmem:[%s20248_s16 + $0xbb8] sm:$0xf] }
  0xcf   : > { %3022 = vmatpush.bf16.msra.mxu1 %v13281_v19  ;;  %v13429_v19 = vor.u32 %v18770_v7, %v13426_v9  ;;  %v12802_v9 = vld [vmem:[%s20248_s16 + $0x100] sm:$0xf0] }
  0xd0   : > { %3036 = vmatpush.bf16.msra.mxu2 %v13665_v20  ;;  %v13813_v20 = vor.u32 %v18866_v10, %v13810_v11  ;;  %v18710_v10 = vld [vmem:[%s20248_s16 + $0x3d4] sm:$0xf]  ;;  %v14005_v11 = vor.u32 %v18914_v3, %v14002_v4  ;;  %v13049_v4 = vor.u32 %v18681_v54, %v13048_v53 }
  0xd1   : > { %3050 = vmatpush.bf16.msra.mxu3 %v14049_v25  ;;  %v14197_v25 = vor.u32 %v18962_v14, %v14194_v15  ;;  %v13570_v14 = vld [vmem:[%s20248_s16 + $0x700] sm:$0xf0]  ;;  %v18902_v15 = vld [vmem:[%s20248_s16 + $0x9d4] sm:$0xf] }
  0xd2   : > { %3009 = vmatpush.bf16.msra.mxu0 %v12849_v31  ;;  %v12997_v31 = vor.u32 %v18662_v21, %v12994_v22  ;;  %v18602_v22 = vld [vmem:[%s20248_s16 + $0x74] sm:$0xf] }
  0xd3   : > { %3023 = vmatpush.bf16.msra.mxu1 %v13233_v32  ;;  %v13381_v32 = vor.u32 %v18758_v23, %v13378_v26  ;;  %v12754_v23 = vld [vmem:[%s20248_s16 + $0xa0] sm:$0xf0] }
  0xd4   : > { %3037 = vmatpush.bf16.msra.mxu2 %v13617_v33  ;;  %v13765_v33 = vor.u32 %v18854_v27, %v13762_v28  ;;  %v13138_v28 = vld [vmem:[%s20248_s16 + $0x3a0] sm:$0xf0] }
  0xd5   : > { %3051 = vmatpush.bf16.msra.mxu3 %v14001_v38  ;;  %v14149_v38 = vor.u32 %v18950_v29, %v14146_v30  ;;  %v18794_v29 = vld [vmem:[%s20248_s16 + $0x674] sm:$0xf]  ;;  %v13522_v30 = vld [vmem:[%s20248_s16 + $0x6a0] sm:$0xf0] }
  0xd6   : > { %3010 = vmatpush.bf16.msra.mxu0 %v12801_v45  ;;  %v12949_v45 = vor.u32 %v18650_v34, %v12946_v36  ;;  %v13906_v34 = vld [vmem:[%s20248_s16 + $0x9a0] sm:$0xf0] }
  0xd7   : > { %3024 = vmatpush.bf16.msra.mxu1 %v13185_v46  ;;  %v13333_v46 = vor.u32 %v18746_v37, %v13330_v39  ;;  %v12757_v37 = vor.u32 %v18602_v22, %v12754_v23  ;;  %v12706_v39 = vld [vmem:[%s20248_s16 + $0x40] sm:$0xf0] }
  0xd8   : > { %3038 = vmatpush.bf16.msra.mxu2 %v13569_v47  ;;  %v13717_v47 = vor.u32 %v18842_v40, %v13714_v41  ;;  %v18686_v40 = vld [vmem:[%s20248_s16 + $0x314] sm:$0xf] }
  0xd9   : > { %3052 = vmatpush.bf16.msra.mxu3 %v13953_v51  ;;  %v14101_v51 = vor.u32 %v18938_v43, %v14098_v44  ;;  %v13525_v44 = vor.u32 %v18794_v29, %v13522_v30  ;;  %v13336_v29 = vld [vmem:[%s20248_s16 + $0x4f8] sm:$0xf] }
  0xda   : > { %3011 = vmatpush.bf16.msra.mxu0 %v12753_v57  ;;  %v12901_v57 = vor.u32 %v18638_v48, %v12898_v49  ;;  %v13474_v49 = vld [vmem:[%s20248_s16 + $0x640] sm:$0xf0] }
  0xdb   : > { %3025 = vmatpush.bf16.msra.mxu1 %v13137_v60  ;;  %v18626_v60 = vld [vmem:[%s20248_s16 + $0x134] sm:$0xf] }
  0xdc   : > { %3039 = vmatpush.bf16.msra.mxu2 %v13521_v61  ;;  %v12850_v61 = vld [vmem:[%s20248_s16 + $0x160] sm:$0xf0] }
  0xdd   : > { %3053 = vmatpush.bf16.msra.mxu3 %v13905_v1  ;;  %v18818_v1 = vld [vmem:[%s20248_s16 + $0x734] sm:$0xf]  ;;  %v12853_v5 = vor.u32 %v18626_v60, %v12850_v61 }
  0xde   : > { %3012 = vmatpush.bf16.msra.mxu0 %v12705_v8  ;;  %v13621_v7 = vor.u32 %v18818_v1, %v13618_v2  ;;  %v18614_v8 = vld [vmem:[%s20248_s16 + $0xd4] sm:$0xf]  ;;  %v18969_v1 = vld [vmem:[%s20248_s16 + $0xbe4] sm:$0xf0] }
  0xdf   : > { %3026 = vmatpush.bf16.msra.mxu1 %v13089_v12  ;;  %v13186_v12 = vld [vmem:[%s20248_s16 + $0x400] sm:$0xf0] }
  0xe0   : > { %3040 = vmatpush.bf16.msra.mxu2 %v13473_v13  ;;  %v18806_v13 = vld [vmem:[%s20248_s16 + $0x6d4] sm:$0xf] }
  0xe1   : > { %3054 = vmatpush.bf16.msra.mxu3 %v13857_v16  ;;  %3013 = vmatmul.bf16.vlgmr.msra.gmra.mxu0 %v20364_v35  ;;  %v13954_v16 = vld [vmem:[%s20248_s16 + $0xa00] sm:$0xf0]  ;;  %v13573_v21 = vor.u32 %v18806_v13, %v13570_v14  ;;  %v14201_v13 = vor.u32 %v18969_v1, %v14200_v0  ;;  %v18765_v14 = vld [vmem:[%s20248_s16 + $0x584] sm:$0xf0]  ;;  %v14008_v0 = vld [vmem:[%s20248_s16 + $0xa38] sm:$0xf] }
  0xe2   : > { %3061 = vmatpush.bf16.msrb.mxu0 %v13045_v18  ;;  %3027 = vmatmul.bf16.vlgmr.msra.gmra.mxu1 %v20371_v42  ;;  %v12805_v18 = vor.u32 %v18614_v8, %v12802_v9  ;;  %v2804_v26 = vpop.f32.mrf.mxu1  ;;  %v13957_v27 = vor.u32 %v18902_v15, %v13954_v16  ;;  %v13000_v9 = vld [vmem:[%s20248_s16 + $0x258] sm:$0xf]  ;;  %v18861_v16 = vld [vmem:[%s20248_s16 + $0x884] sm:$0xf0] }
  0xe3   : > { %3075 = vmatpush.bf16.msrb.mxu1 %v13429_v19  ;;  %3041 = vmatmul.bf16.vlgmr.msra.gmra.mxu2 %v20346_v17  ;;  %v13768_v15 = vld [vmem:[%s20248_s16 + $0x858] sm:$0xf]  ;;  %v18921_v1 = vld [vmem:[%s20248_s16 + $0xa64] sm:$0xf0] }
  0xe4   : > { %3089 = vmatpush.bf16.msrb.mxu2 %v13813_v20  ;;  %3055 = vmatmul.bf16.vlgmr.msra.gmra.mxu3 %v20353_v24  ;;  %v13189_v20 = vor.u32 %v18710_v10, %v13186_v12  ;;  %v18669_v10 = vld [vmem:[%s20248_s16 + $0x284] sm:$0xf0] }
  0xe5   : > { %3103 = vmatpush.bf16.msrb.mxu3 %v14197_v25  ;;  %v18698_v25 = vld [vmem:[%s20248_s16 + $0x374] sm:$0xf]  ;;  %v13001_v22 = vor.u32 %v18669_v10, %v13000_v9  ;;  %v14009_v9 = vor.u32 %v18921_v1, %v14008_v0  ;;  %v18717_v10 = vld [vmem:[%s20248_s16 + $0x404] sm:$0xf0]  ;;  %v18963_v1 = vld [vmem:[%s20248_s16 + $0xbbc] sm:$0xf] }
  0xe6   : > { %3062 = vmatpush.bf16.msrb.mxu0 %v12997_v31  ;;  %v2790_v19 = vpop.f32.mrf.mxu0  ;;  %v13141_v43 = vor.u32 %v18698_v25, %v13138_v28  ;;  %v18657_v28 = vld [vmem:[%s20248_s16 + $0x224] sm:$0xf0] }
  0xe7   : > { %3076 = vmatpush.bf16.msrb.mxu1 %v13381_v32  ;;  %v2805_v31 = vadd.f32 %v2804_v26, %v2790_v19  ;;  %v2832_v36 = vpop.f32.mrf.mxu3  ;;  %v14152_v19 = vld [vmem:[%s20248_s16 + $0xb58] sm:$0xf]  ;;  %v13769_v26 = vor.u32 %v18861_v16, %v13768_v15  ;;  %v18909_v16 = vld [vmem:[%s20248_s16 + $0xa04] sm:$0xf0] }
  0xe8   : > { %3090 = vmatpush.bf16.msrb.mxu2 %v13765_v33  ;;  %v18890_v33 = vld [vmem:[%s20248_s16 + $0x974] sm:$0xf]  ;;  %v13960_v15 = vld [vmem:[%s20248_s16 + $0x9d8] sm:$0xf] }
  0xe9   : > { %3104 = vmatpush.bf16.msrb.mxu3 %v14149_v38  ;;  %v2818_v32 = vpop.f32.mrf.mxu2  ;;  %v18590_v38 = vld [vmem:[%s20248_s16 + $0x14] sm:$0xf]  ;;  %v13909_v48 = vor.u32 %v18890_v33, %v13906_v34  ;;  %v18849_v33 = vld [vmem:[%s20248_s16 + $0x824] sm:$0xf0] }
  0xea   : > { %3063 = vmatpush.bf16.msrb.mxu0 %v12949_v45  ;;  %v2819_v41 = vadd.f32 %v2818_v32, %v2805_v31  ;;  %v13090_v45 = vld [vmem:[%s20248_s16 + $0x340] sm:$0xf0]  ;;  %v12709_v56 = vor.u32 %v18590_v38, %v12706_v39  ;;  %v2806_v2 = vpop.f32.mrf.mxu1  ;;  %v18753_v31 = vld [vmem:[%s20248_s16 + $0x524] sm:$0xf0]  ;;  %v13720_v32 = vld [vmem:[%s20248_s16 + $0x7f8] sm:$0xf] }
  0xeb   : > { %3077 = vmatpush.bf16.msrb.mxu1 %v13333_v46  ;;  %v18782_v46 = vld [vmem:[%s20248_s16 + $0x614] sm:$0xf]  ;;  %v13093_v62 = vor.u32 %v18686_v40, %v13090_v45  ;;  %v13337_v39 = vor.u32 %v18753_v31, %v13336_v29  ;;  %v13721_v40 = vor.u32 %v18849_v33, %v13720_v32  ;;  %v13961_v29 = vor.u32 %v18909_v16, %v13960_v15  ;;  %v13528_v31 = vld [vmem:[%s20248_s16 + $0x678] sm:$0xf]  ;;  %v18801_v32 = vld [vmem:[%s20248_s16 + $0x6a4] sm:$0xf0] }
  0xec   : > { %3091 = vmatpush.bf16.msrb.mxu2 %v13717_v47  ;;  %v453_v47 = vld [vmem:[#allocation2 + $0xb0] sm:$0xff]  ;;  %v2833_v52 = vadd.f32 %v2832_v36, %v2819_v41  ;;  %v14104_v36 = vld [vmem:[%s20248_s16 + $0xaf8] sm:$0xf]  ;;  %v18951_v15 = vld [vmem:[%s20248_s16 + $0xb5c] sm:$0xf] }
  0xed   : > { %3105 = vmatpush.bf16.msrb.mxu3 %v14101_v51  ;;  %v13858_v51 = vld [vmem:[%s20248_s16 + $0x940] sm:$0xf0]  ;;  %v12904_v41 = vld [vmem:[%s20248_s16 + $0x198] sm:$0xf]  ;;  %v14154_v16 = vld [vmem:[%s20248_s16 + $0xb88] sm:$0xf0] }
  0xee   : > { %3064 = vmatpush.bf16.msrb.mxu0 %v12901_v57  ;;  %v18777_v57 = vld [vmem:[%s20248_s16 + $0x5e4] sm:$0xf0]  ;;  %v3453_v60 = vadd.f32 %v2833_v52, %v453_v47  ;;  %v2792_v61 = vpop.f32.mrf.mxu0  ;;  %v13861_v3 = vor.u32 %v18878_v50, %v13858_v51  ;;  %v13672_v47 = vld [vmem:[%s20248_s16 + $0x798] sm:$0xf] }
  0xef   : > { %3078 = vmatpush.bf16.msrb.mxu1 %v13285_v58  ;;  %v13816_v58 = vld [vmem:[%s20248_s16 + $0x8b8] sm:$0xf]  ;;  %v2834_v12 = vpop.f32.mrf.mxu3  ;;  %v18933_v50 = vld [vmem:[%s20248_s16 + $0xac4] sm:$0xf0] }
  0xf0   : > { %3092 = vmatpush.bf16.msrb.mxu2 %v13669_v59  ;;  %v18873_v59 = vld [vmem:[%s20248_s16 + $0x8e4] sm:$0xf0]  ;;  %3477 = vst [vmem:[#allocation2 + $0xb0] sm:$0xff] %v3453_v60 }
  0xf1   : > { %3106 = vmatpush.bf16.msrb.mxu3 %v14053_v63  ;;  %v13477_v63 = vor.u32 %v18782_v46, %v13474_v49  ;;  %v13817_v8 = vor.u32 %v18873_v59, %v13816_v58  ;;  %v18741_v46 = vld [vmem:[%s20248_s16 + $0x4c4] sm:$0xf0]  ;;  %v14056_v49 = vld [vmem:[%s20248_s16 + $0xa98] sm:$0xf] }
  0xf2   : > { %3065 = vmatpush.bf16.msrb.mxu0 %v12853_v5  ;;  %v2807_v5 = vadd.f32 %v2806_v2, %v2792_v61  ;;  %v14057_v59 = vor.u32 %v18933_v50, %v14056_v49  ;;  %v18729_v60 = vld [vmem:[%s20248_s16 + $0x464] sm:$0xf0]  ;;  %v13624_v61 = vld [vmem:[%s20248_s16 + $0x738] sm:$0xf] }
  0xf3   : > { %3079 = vmatpush.bf16.msrb.mxu1 %v13237_v6  ;;  %v2820_v6 = vpop.f32.mrf.mxu2  ;;  %v13864_v50 = vld [vmem:[%s20248_s16 + $0x918] sm:$0xf] }
  0xf4   : > { %3093 = vmatpush.bf16.msrb.mxu2 %v13621_v7  ;;  %v13433_v7 = vor.u32 %v18777_v57, %v13432_v55  ;;  %v12856_v55 = vld [vmem:[%s20248_s16 + $0x138] sm:$0xf] }
  0xf5   : > { %3107 = vmatpush.bf16.msrb.mxu3 %v14005_v11  ;;  %v13384_v11 = vld [vmem:[%s20248_s16 + $0x558] sm:$0xf] }
  0xf6   : > { %3066 = vmatpush.bf16.msrb.mxu0 %v12805_v18  ;;  %v2821_v18 = vadd.f32 %v2820_v6, %v2807_v5  ;;  %v13385_v25 = vor.u32 %v18765_v14, %v13384_v11  ;;  %v13240_v57 = vld [vmem:[%s20248_s16 + $0x438] sm:$0xf]  ;;  %v18621_v6 = vld [vmem:[%s20248_s16 + $0x104] sm:$0xf0] }
  0xf7   : > { %3080 = vmatpush.bf16.msrb.mxu1 %v13189_v20  ;;  %v18957_v20 = vld [vmem:[%s20248_s16 + $0xb84] sm:$0xf0]  ;;  %v12808_v5 = vld [vmem:[%s20248_s16 + $0xd8] sm:$0xf] }
  0xf8   : > { %3094 = vmatpush.bf16.msrb.mxu2 %v13573_v21  ;;  %v465_v21 = vld [vmem:[#allocation2 + $0x38] sm:$0xff]  ;;  %v2835_v23 = vadd.f32 %v2834_v12, %v2821_v18  ;;  %v14153_v30 = vor.u32 %v18957_v20, %v14152_v19  ;;  %v18813_v12 = vld [vmem:[%s20248_s16 + $0x704] sm:$0xf0]  ;;  %v454_v18 = vld [vmem:[#allocation2] sm:$0xff]  ;;  %v12809_v19 = vor.u32 %v18621_v6, %v12808_v5 }
  0xf9   : > { %3108 = vmatpush.bf16.msrb.mxu3 %v13957_v27  ;;  %v12952_v27 = vld [vmem:[%s20248_s16 + $0x1f8] sm:$0xf]  ;;  %v18663_v5 = vld [vmem:[%s20248_s16 + $0x25c] sm:$0xf] }
  0xfa   : > { %3067 = vmatpush.bf16.msrb.mxu0 %v12757_v37  ;;  %v3465_v34 = vadd.f32 %v2835_v23, %v465_v21  ;;  %v18945_v37 = vld [vmem:[%s20248_s16 + $0xb24] sm:$0xf0]  ;;  %v12953_v38 = vor.u32 %v18657_v28, %v12952_v27  ;;  %v13576_v11 = vld [vmem:[%s20248_s16 + $0x6d8] sm:$0xf] }
  0xfb   : > { %3081 = vmatpush.bf16.msrb.mxu1 %v13141_v43  ;;  %v18645_v43 = vld [vmem:[%s20248_s16 + $0x1c4] sm:$0xf0]  ;;  %v14105_v45 = vor.u32 %v18945_v37, %v14104_v36  ;;  %v13577_v23 = vor.u32 %v18813_v12, %v13576_v11  ;;  %v13144_v27 = vld [vmem:[%s20248_s16 + $0x378] sm:$0xf]  ;;  %v13386_v11 = vld [vmem:[%s20248_s16 + $0x588] sm:$0xf0] }
  0xfc   : > { %3095 = vmatpush.bf16.msrb.mxu2 %v13525_v44  ;;  %3489 = vst [vmem:[#allocation2 + $0x38] sm:$0xff] %v3465_v34  ;;  %v13288_v44 = vld [vmem:[%s20248_s16 + $0x498] sm:$0xf]  ;;  %v12905_v51 = vor.u32 %v18645_v43, %v12904_v41  ;;  %v18897_v37 = vld [vmem:[%s20248_s16 + $0x9a4] sm:$0xf0] }
  0xfd   : > { %3109 = vmatpush.bf16.msrb.mxu3 %v13909_v48  ;;  %v18837_v48 = vld [vmem:[%s20248_s16 + $0x7c4] sm:$0xf0]  ;;  %v13289_v53 = vor.u32 %v18741_v46, %v13288_v44  ;;  %v13912_v36 = vld [vmem:[%s20248_s16 + $0x978] sm:$0xf]  ;;  %v13529_v44 = vor.u32 %v18801_v32, %v13528_v31 }
  0xfe   : > { %3068 = vmatpush.bf16.msrb.mxu0 %v12709_v56  ;;  %v2846_v52 = vpop.f32.mrf.mxu0  ;;  %v13673_v54 = vor.u32 %v18837_v48, %v13672_v47  ;;  %v18633_v56 = vld [vmem:[%s20248_s16 + $0x164] sm:$0xf0]  ;;  %v13096_v41 = vld [vmem:[%s20248_s16 + $0x318] sm:$0xf]  ;;  %v13913_v49 = vor.u32 %v18897_v37, %v13912_v36  ;;  %v12906_v36 = vld [vmem:[%s20248_s16 + $0x1c8] sm:$0xf0] }
  0xff   : > { %3082 = vmatpush.bf16.msrb.mxu1 %v13093_v62  ;;  %v2860_v58 = vpop.f32.mrf.mxu1  ;;  %v18825_v62 = vld [vmem:[%s20248_s16 + $0x764] sm:$0xf0]  ;;  %v12857_v2 = vor.u32 %v18633_v56, %v12856_v55  ;;  %v13480_v46 = vld [vmem:[%s20248_s16 + $0x618] sm:$0xf]  ;;  %v13050_v55 = vld [vmem:[%s20248_s16 + $0x2e8] sm:$0xf0] }
 0x100   : > { %3096 = vmatpush.bf16.msrb.mxu2 %v13477_v63  ;;  %v2861_v63 = vadd.f32 %v2860_v58, %v2846_v52  ;;  %v18789_v47 = vld [vmem:[%s20248_s16 + $0x644] sm:$0xf0]  ;;  %v18675_v52 = vld [vmem:[%s20248_s16 + $0x2bc] sm:$0xf] }
 0x101   : > { %3110 = vmatpush.bf16.msrb.mxu3 %v13861_v3  ;;  %3069 = vmatmul.bf16.vlgmr.msrb.gmra.mxu0 %v20364_v35  ;;  %v13241_v3 = vor.u32 %v18729_v60, %v13240_v57  ;;  %v18771_v56 = vld [vmem:[%s20248_s16 + $0x5bc] sm:$0xf]  ;;  %v466_v57 = vld [vmem:[#allocation2 + $0x50] sm:$0xff]  ;;  %v13481_v0 = vor.u32 %v18789_v47, %v13480_v46 }
 0x102   : > { %3117 = vmatpush.bf16.msra.mxu0 %v13049_v4  ;;  %3083 = vmatmul.bf16.vlgmr.msrb.gmra.mxu1 %v20371_v42  ;;  %v13625_v4 = vor.u32 %v18825_v62, %v13624_v61  ;;  %v18867_v60 = vld [vmem:[%s20248_s16 + $0x8bc] sm:$0xf]  ;;  %v13818_v61 = vld [vmem:[%s20248_s16 + $0x8e8] sm:$0xf0] }
 0x103   : > { %3131 = vmatpush.bf16.msra.mxu1 %v13433_v7  ;;  %3097 = vmatmul.bf16.vlgmr.msrb.gmra.mxu2 %v20346_v17  ;;  %v13192_v7 = vld [vmem:[%s20248_s16 + $0x3d8] sm:$0xf]  ;;  %v18735_v37 = vld [vmem:[%s20248_s16 + $0x49c] sm:$0xf] }
 0x104   : > { %3145 = vmatpush.bf16.msra.mxu2 %v13817_v8  ;;  %3111 = vmatmul.bf16.vlgmr.msrb.gmra.mxu3 %v20353_v24 }
 0x105   : > { %3159 = vmatpush.bf16.msra.mxu3 %v14201_v13 }
 0x106   : > { %3118 = vmatpush.bf16.msra.mxu0 %v13001_v22  ;;  %v2874_v8 = vpop.f32.mrf.mxu2  ;;  %v2848_v21 = vpop.f32.mrf.mxu0  ;;  %v13193_v22 = vor.u32 %v18717_v10, %v13192_v7  ;;  %v18759_v10 = vld [vmem:[%s20248_s16 + $0x55c] sm:$0xf] }
 0x107   : > { %3132 = vmatpush.bf16.msra.mxu1 %v13385_v25  ;;  %v2875_v13 = vadd.f32 %v2874_v8, %v2861_v63  ;;  %v2888_v14 = vpop.f32.mrf.mxu3  ;;  %v12760_v25 = vld [vmem:[%s20248_s16 + $0x78] sm:$0xf]  ;;  %v2862_v28 = vpop.f32.mrf.mxu1  ;;  %v13821_v8 = vor.u32 %v18867_v60, %v13818_v61 }
 0x108   : > { %3146 = vmatpush.bf16.msra.mxu2 %v13769_v26  ;;  %v18609_v26 = vld [vmem:[%s20248_s16 + $0xa4] sm:$0xf0]  ;;  %v2863_v34 = vadd.f32 %v2862_v28, %v2848_v21  ;;  %v18651_v21 = vld [vmem:[%s20248_s16 + $0x1fc] sm:$0xf]  ;;  %v13722_v28 = vld [vmem:[%s20248_s16 + $0x828] sm:$0xf0] }
 0x109   : > { %3160 = vmatpush.bf16.msra.mxu3 %v14153_v30  ;;  %v2889_v20 = vadd.f32 %v2888_v14, %v2875_v13  ;;  %v18705_v30 = vld [vmem:[%s20248_s16 + $0x3a4] sm:$0xf0]  ;;  %v18855_v13 = vld [vmem:[%s20248_s16 + $0x85c] sm:$0xf]  ;;  %v13770_v14 = vld [vmem:[%s20248_s16 + $0x888] sm:$0xf0] }
 0x10a   : > { %3119 = vmatpush.bf16.msra.mxu0 %v12953_v38  ;;  %v12712_v38 = vld [vmem:[%s20248_s16 + $0x18] sm:$0xf]  ;;  %v13145_v43 = vor.u32 %v18705_v30, %v13144_v27  ;;  %v18843_v27 = vld [vmem:[%s20248_s16 + $0x7fc] sm:$0xf]  ;;  %v14106_v30 = vld [vmem:[%s20248_s16 + $0xb28] sm:$0xf0] }
 0x10b   : > { %3133 = vmatpush.bf16.msra.mxu1 %v13337_v39  ;;  %v3454_v33 = vadd.f32 %v2889_v20, %v454_v18  ;;  %v12761_v39 = vor.u32 %v18609_v26, %v12760_v25  ;;  %v13773_v20 = vor.u32 %v18855_v13, %v13770_v14  ;;  %v14157_v25 = vor.u32 %v18951_v15, %v14154_v16  ;;  %v13338_v26 = vld [vmem:[%s20248_s16 + $0x528] sm:$0xf0] }
 0x10c   : > { %3147 = vmatpush.bf16.msra.mxu2 %v13721_v40  ;;  %v18597_v40 = vld [vmem:[%s20248_s16 + $0x44] sm:$0xf0] }
 0x10d   : > { %3161 = vmatpush.bf16.msra.mxu3 %v14105_v45  ;;  %3478 = vst [vmem:[#allocation2] sm:$0xff] %v3454_v33  ;;  %v18693_v45 = vld [vmem:[%s20248_s16 + $0x344] sm:$0xf0]  ;;  %v12713_v58 = vor.u32 %v18597_v40, %v12712_v38  ;;  %v13725_v33 = vor.u32 %v18843_v27, %v13722_v28  ;;  %v18831_v40 = vld [vmem:[%s20248_s16 + $0x79c] sm:$0xf] }
 0x10e   : > { %3120 = vmatpush.bf16.msra.mxu0 %v12905_v51  ;;  %v2876_v48 = vpop.f32.mrf.mxu2  ;;  %v18885_v51 = vld [vmem:[%s20248_s16 + $0x944] sm:$0xf0]  ;;  %v13097_v63 = vor.u32 %v18693_v45, %v13096_v41  ;;  %v13674_v41 = vld [vmem:[%s20248_s16 + $0x7c8] sm:$0xf0] }
 0x10f   : > { %3134 = vmatpush.bf16.msra.mxu1 %v13289_v53  ;;  %v2877_v53 = vadd.f32 %v2876_v48, %v2863_v34  ;;  %v18639_v34 = vld [vmem:[%s20248_s16 + $0x19c] sm:$0xf]  ;;  %v13677_v48 = vor.u32 %v18831_v40, %v13674_v41  ;;  %v13482_v40 = vld [vmem:[%s20248_s16 + $0x648] sm:$0xf0] }
 0x110   : > { %3148 = vmatpush.bf16.msra.mxu2 %v13673_v54  ;;  %v2890_v54 = vpop.f32.mrf.mxu3  ;;  %v12909_v45 = vor.u32 %v18639_v34, %v12906_v36  ;;  %v18687_v34 = vld [vmem:[%s20248_s16 + $0x31c] sm:$0xf] }
 0x111   : > { %3162 = vmatpush.bf16.msra.mxu3 %v14057_v59  ;;  %v13434_v59 = vld [vmem:[%s20248_s16 + $0x5e8] sm:$0xf0]  ;;  %v2891_v62 = vadd.f32 %v2890_v54, %v2877_v53 }
 0x112   : > { %3121 = vmatpush.bf16.msra.mxu0 %v12857_v2  ;;  %v14202_v2 = vld [vmem:[%s20248_s16 + $0xbe8] sm:$0xf0]  ;;  %v13437_v7 = vor.u32 %v18771_v56, %v13434_v59 }
 0x113   : > { %3135 = vmatpush.bf16.msra.mxu1 %v13241_v3  ;;  %v13865_v3 = vor.u32 %v18885_v51, %v13864_v50  ;;  %v3466_v6 = vadd.f32 %v2891_v62, %v466_v57  ;;  %v14205_v12 = vor.u32 %v18963_v1, %v14202_v2  ;;  %v12858_v50 = vld [vmem:[%s20248_s16 + $0x168] sm:$0xf0]  ;;  %v18723_v51 = vld [vmem:[%s20248_s16 + $0x43c] sm:$0xf] }
 0x114   : > { %3149 = vmatpush.bf16.msra.mxu2 %v13625_v4  ;;  %v13053_v4 = vor.u32 %v18675_v52, %v13050_v55  ;;  %v13242_v54 = vld [vmem:[%s20248_s16 + $0x468] sm:$0xf0]  ;;  %v18819_v55 = vld [vmem:[%s20248_s16 + $0x73c] sm:$0xf] }
 0x115   : > { %3163 = vmatpush.bf16.msra.mxu3 %v14009_v9  ;;  %v13002_v9 = vld [vmem:[%s20248_s16 + $0x288] sm:$0xf0]  ;;  %3490 = vst [vmem:[#allocation2 + $0x50] sm:$0xff] %v3466_v6  ;;  %v13245_v61 = vor.u32 %v18723_v51, %v13242_v54  ;;  %v18711_v1 = vld [vmem:[%s20248_s16 + $0x3dc] sm:$0xf]  ;;  %v467_v51 = vld [vmem:[#allocation2 + $0x70] sm:$0xff] }
 0x116   : > { %3122 = vmatpush.bf16.msra.mxu0 %v12809_v19  ;;  %v13005_v18 = vor.u32 %v18663_v5, %v13002_v9  ;;  %v13389_v19 = vor.u32 %v18759_v10, %v13386_v11  ;;  %v13626_v56 = vld [vmem:[%s20248_s16 + $0x768] sm:$0xf0]  ;;  %v18807_v5 = vld [vmem:[%s20248_s16 + $0x6dc] sm:$0xf]  ;;  %v455_v11 = vld [vmem:[#allocation2 + $0x10] sm:$0xff] }
 0x117   : > { %3136 = vmatpush.bf16.msra.mxu1 %v13193_v22  ;;  %v12954_v22 = vld [vmem:[%s20248_s16 + $0x228] sm:$0xf0]  ;;  %v13629_v62 = vor.u32 %v18819_v55, %v13626_v56  ;;  %v18903_v9 = vld [vmem:[%s20248_s16 + $0x9dc] sm:$0xf]  ;;  %v13824_v54 = vld [vmem:[%s20248_s16 + $0x8c0] sm:$0xf] }
 0x118   : > { %3150 = vmatpush.bf16.msra.mxu2 %v13577_v23  ;;  %v18747_v23 = vld [vmem:[%s20248_s16 + $0x4fc] sm:$0xf]  ;;  %v12957_v31 = vor.u32 %v18651_v21, %v12954_v22  ;;  %v14010_v59 = vld [vmem:[%s20248_s16 + $0xa68] sm:$0xf0]  ;;  %v18874_v55 = vld [vmem:[%s20248_s16 + $0x8ec] sm:$0xf0] }
 0x119   : > { %3164 = vmatpush.bf16.msra.mxu3 %v13961_v29  ;;  %v18939_v29 = vld [vmem:[%s20248_s16 + $0xafc] sm:$0xf]  ;;  %v13341_v32 = vor.u32 %v18747_v23, %v13338_v26  ;;  %v13578_v6 = vld [vmem:[%s20248_s16 + $0x708] sm:$0xf0] }
 0x11a   : > { %3123 = vmatpush.bf16.msra.mxu0 %v12761_v39  ;;  %v14109_v38 = vor.u32 %v18939_v29, %v14106_v30  ;;  %v13290_v39 = vld [vmem:[%s20248_s16 + $0x4c8] sm:$0xf0]  ;;  %v13581_v16 = vor.u32 %v18807_v5, %v13578_v6  ;;  %v18891_v29 = vld [vmem:[%s20248_s16 + $0x97c] sm:$0xf]  ;;  %v18766_v5 = vld [vmem:[%s20248_s16 + $0x58c] sm:$0xf0] }
 0x11b   : > { %3137 = vmatpush.bf16.msra.mxu1 %v13145_v43  ;;  %v18927_v43 = vld [vmem:[%s20248_s16 + $0xa9c] sm:$0xf]  ;;  %v13293_v47 = vor.u32 %v18735_v37, %v13290_v39  ;;  %v13962_v10 = vld [vmem:[%s20248_s16 + $0xa08] sm:$0xf0] }
 0x11c   : > { %3151 = vmatpush.bf16.msra.mxu2 %v13529_v44  ;;  %v14058_v44 = vld [vmem:[%s20248_s16 + $0xac8] sm:$0xf0]  ;;  %v13965_v22 = vor.u32 %v18903_v9, %v13962_v10  ;;  %v18783_v39 = vld [vmem:[%s20248_s16 + $0x61c] sm:$0xf]  ;;  %v14160_v9 = vld [vmem:[%s20248_s16 + $0xb60] sm:$0xf] }
 0x11d   : > { %3165 = vmatpush.bf16.msra.mxu3 %v13913_v49  ;;  %v18627_v49 = vld [vmem:[%s20248_s16 + $0x13c] sm:$0xf]  ;;  %v14061_v53 = vor.u32 %v18927_v43, %v14058_v44  ;;  %v13146_v23 = vld [vmem:[%s20248_s16 + $0x3a8] sm:$0xf0]  ;;  %v18958_v10 = vld [vmem:[%s20248_s16 + $0xb8c] sm:$0xf0] }
 0x11e   : > { %3124 = vmatpush.bf16.msra.mxu0 %v12713_v58  ;;  %v2902_v46 = vpop.f32.mrf.mxu0  ;;  %v18915_v58 = vld [vmem:[%s20248_s16 + $0xa3c] sm:$0xf]  ;;  %v12861_v60 = vor.u32 %v18627_v49, %v12858_v50  ;;  %v13530_v26 = vld [vmem:[%s20248_s16 + $0x6a8] sm:$0xf0]  ;;  %v18682_v49 = vld [vmem:[%s20248_s16 + $0x2ec] sm:$0xf0] }
 0x11f   : > { %3138 = vmatpush.bf16.msra.mxu1 %v13097_v63  ;;  %v2916_v52 = vpop.f32.mrf.mxu1  ;;  %v18615_v63 = vld [vmem:[%s20248_s16 + $0xdc] sm:$0xf]  ;;  %v13914_v30 = vld [vmem:[%s20248_s16 + $0x9a8] sm:$0xf0]  ;;  %v13440_v50 = vld [vmem:[%s20248_s16 + $0x5c0] sm:$0xf] }
 0x120   : > { %3152 = vmatpush.bf16.msra.mxu2 %v13481_v0  ;;  %v2917_v57 = vadd.f32 %v2916_v52, %v2902_v46  ;;  %v12810_v0 = vld [vmem:[%s20248_s16 + $0x108] sm:$0xf0]  ;;  %v13917_v43 = vor.u32 %v18891_v29, %v13914_v30  ;;  %v18879_v44 = vld [vmem:[%s20248_s16 + $0x91c] sm:$0xf]  ;;  %v13056_v46 = vld [vmem:[%s20248_s16 + $0x2c0] sm:$0xf] }
 0x121   : > { %3166 = vmatpush.bf16.msra.mxu3 %v13865_v3  ;;  %3125 = vmatmul.bf16.vlgmr.msra.gmra.mxu0 %v20364_v35  ;;  %v14013_v3 = vor.u32 %v18915_v58, %v14010_v59  ;;  %v13485_v58 = vor.u32 %v18783_v39, %v13482_v40  ;;  %v14208_v59 = vld [vmem:[%s20248_s16 + $0xbc0] sm:$0xf]  ;;  %v18646_v29 = vld [vmem:[%s20248_s16 + $0x1cc] sm:$0xf0] }
 0x122   : > { %3173 = vmatpush.bf16.msrb.mxu0 %v13053_v4  ;;  %3139 = vmatmul.bf16.vlgmr.msra.gmra.mxu1 %v20371_v42  ;;  %v13194_v4 = vld [vmem:[%s20248_s16 + $0x408] sm:$0xf0]  ;;  %v13296_v30 = vld [vmem:[%s20248_s16 + $0x4a0] sm:$0xf] }
 0x123   : > { %3187 = vmatpush.bf16.msrb.mxu1 %v13437_v7  ;;  %3153 = vmatmul.bf16.vlgmr.msra.gmra.mxu2 %v20346_v17  ;;  %v13197_v15 = vor.u32 %v18711_v1, %v13194_v4  ;;  %v13392_v4 = vld [vmem:[%s20248_s16 + $0x560] sm:$0xf] }
 0x124   : > { %3201 = vmatpush.bf16.msrb.mxu2 %v13821_v8  ;;  %3167 = vmatmul.bf16.vlgmr.msra.gmra.mxu3 %v20353_v24 }
 0x125   : > { %3215 = vmatpush.bf16.msrb.mxu3 %v14205_v12  ;;  %v12813_v12 = vor.u32 %v18615_v63, %v12810_v0  ;;  %v13008_v63 = vld [vmem:[%s20248_s16 + $0x260] sm:$0xf] }
 0x126   : > { %3174 = vmatpush.bf16.msrb.mxu0 %v13005_v18  ;;  %v2930_v2 = vpop.f32.mrf.mxu2  ;;  %v2904_v14 = vpop.f32.mrf.mxu0  ;;  %v18603_v18 = vld [vmem:[%s20248_s16 + $0x7c] sm:$0xf] }
 0x127   : > { %3188 = vmatpush.bf16.msrb.mxu1 %v13389_v19  ;;  %v2931_v7 = vadd.f32 %v2930_v2, %v2917_v57  ;;  %v2944_v8 = vpop.f32.mrf.mxu3  ;;  %v12762_v19 = vld [vmem:[%s20248_s16 + $0xa8] sm:$0xf0]  ;;  %v2918_v21 = vpop.f32.mrf.mxu1  ;;  %v13825_v2 = vor.u32 %v18874_v55, %v13824_v54 }
 0x128   : > { %3202 = vmatpush.bf16.msrb.mxu2 %v13773_v20  ;;  %v18699_v20 = vld [vmem:[%s20248_s16 + $0x37c] sm:$0xf]  ;;  %v2919_v28 = vadd.f32 %v2918_v21, %v2904_v14  ;;  %v12960_v14 = vld [vmem:[%s20248_s16 + $0x200] sm:$0xf]  ;;  %v18850_v21 = vld [vmem:[%s20248_s16 + $0x82c] sm:$0xf0] }
 0x129   : > { %3216 = vmatpush.bf16.msrb.mxu3 %v14157_v25  ;;  %v2945_v13 = vadd.f32 %v2944_v8, %v2931_v7  ;;  %v18795_v25 = vld [vmem:[%s20248_s16 + $0x67c] sm:$0xf]  ;;  %v13149_v36 = vor.u32 %v18699_v20, %v13146_v23  ;;  %v13776_v7 = vld [vmem:[%s20248_s16 + $0x860] sm:$0xf]  ;;  %v18862_v8 = vld [vmem:[%s20248_s16 + $0x88c] sm:$0xf0] }
 0x12a   : > { %3175 = vmatpush.bf16.msrb.mxu0 %v12957_v31  ;;  %v18591_v31 = vld [vmem:[%s20248_s16 + $0x1c] sm:$0xf]  ;;  %v13533_v37 = vor.u32 %v18795_v25, %v13530_v26  ;;  %v13728_v20 = vld [vmem:[%s20248_s16 + $0x800] sm:$0xf]  ;;  %v18946_v23 = vld [vmem:[%s20248_s16 + $0xb2c] sm:$0xf0] }
 0x12b   : > { %3189 = vmatpush.bf16.msrb.mxu1 %v13341_v32  ;;  %v3455_v27 = vadd.f32 %v2945_v13, %v455_v11  ;;  %v12765_v32 = vor.u32 %v18603_v18, %v12762_v19  ;;  %v13777_v13 = vor.u32 %v18862_v8, %v13776_v7  ;;  %v14161_v18 = vor.u32 %v18958_v10, %v14160_v9  ;;  %v18754_v19 = vld [vmem:[%s20248_s16 + $0x52c] sm:$0xf0] }
 0x12c   : > { %3203 = vmatpush.bf16.msrb.mxu2 %v13725_v33  ;;  %v12714_v33 = vld [vmem:[%s20248_s16 + $0x48] sm:$0xf0] }
 0x12d   : > { %3217 = vmatpush.bf16.msrb.mxu3 %v14109_v38  ;;  %3479 = vst [vmem:[#allocation2 + $0x10] sm:$0xff] %v3455_v27  ;;  %v13098_v38 = vld [vmem:[%s20248_s16 + $0x348] sm:$0xf0]  ;;  %v12717_v52 = vor.u32 %v18591_v31, %v12714_v33  ;;  %v13729_v27 = vor.u32 %v18850_v21, %v13728_v20  ;;  %v13680_v33 = vld [vmem:[%s20248_s16 + $0x7a0] sm:$0xf] }
 0x12e   : > { %3176 = vmatpush.bf16.msrb.mxu0 %v12909_v45  ;;  %v2932_v41 = vpop.f32.mrf.mxu2  ;;  %v13866_v45 = vld [vmem:[%s20248_s16 + $0x948] sm:$0xf0]  ;;  %v13101_v57 = vor.u32 %v18687_v34, %v13098_v38  ;;  %v18838_v34 = vld [vmem:[%s20248_s16 + $0x7cc] sm:$0xf0] }
 0x12f   : > { %3190 = vmatpush.bf16.msrb.mxu1 %v13293_v47  ;;  %v2933_v47 = vadd.f32 %v2932_v41, %v2919_v28  ;;  %v12912_v28 = vld [vmem:[%s20248_s16 + $0x1a0] sm:$0xf]  ;;  %v13681_v41 = vor.u32 %v18838_v34, %v13680_v33  ;;  %v18790_v33 = vld [vmem:[%s20248_s16 + $0x64c] sm:$0xf0] }
 0x130   : > { %3204 = vmatpush.bf16.msrb.mxu2 %v13677_v48  ;;  %v2946_v48 = vpop.f32.mrf.mxu3  ;;  %v12913_v38 = vor.u32 %v18646_v29, %v12912_v28  ;;  %v13104_v28 = vld [vmem:[%s20248_s16 + $0x320] sm:$0xf] }
 0x131   : > { %3218 = vmatpush.bf16.msrb.mxu3 %v14061_v53  ;;  %v18778_v53 = vld [vmem:[%s20248_s16 + $0x5ec] sm:$0xf0]  ;;  %v2947_v56 = vadd.f32 %v2946_v48, %v2933_v47 }
 0x132   : > { %3177 = vmatpush.bf16.msrb.mxu0 %v12861_v60  ;;  %v18970_v60 = vld [vmem:[%s20248_s16 + $0xbec] sm:$0xf0]  ;;  %v13441_v1 = vor.u32 %v18778_v53, %v13440_v50 }
 0x133   : > { %3191 = vmatpush.bf16.msrb.mxu1 %v13245_v61  ;;  %v13869_v61 = vor.u32 %v18879_v44, %v13866_v45  ;;  %v3467_v0 = vadd.f32 %v2947_v56, %v467_v51  ;;  %v14209_v6 = vor.u32 %v18970_v60, %v14208_v59  ;;  %v18634_v44 = vld [vmem:[%s20248_s16 + $0x16c] sm:$0xf0]  ;;  %v13248_v45 = vld [vmem:[%s20248_s16 + $0x440] sm:$0xf] }
 0x134   : > { %3205 = vmatpush.bf16.msrb.mxu2 %v13629_v62  ;;  %v13057_v62 = vor.u32 %v18682_v49, %v13056_v46  ;;  %v18730_v48 = vld [vmem:[%s20248_s16 + $0x46c] sm:$0xf0]  ;;  %v13632_v49 = vld [vmem:[%s20248_s16 + $0x740] sm:$0xf] }
 0x135   : > { %3219 = vmatpush.bf16.msrb.mxu3 %v14013_v3  ;;  %v18670_v3 = vld [vmem:[%s20248_s16 + $0x28c] sm:$0xf0]  ;;  %3491 = vst [vmem:[#allocation2 + $0x70] sm:$0xff] %v3467_v0  ;;  %v13249_v55 = vor.u32 %v18730_v48, %v13248_v45  ;;  %v13200_v59 = vld [vmem:[%s20248_s16 + $0x3e0] sm:$0xf] }
 0x136   : > { %3178 = vmatpush.bf16.msrb.mxu0 %v12813_v12  ;;  %v13009_v11 = vor.u32 %v18670_v3, %v13008_v63  ;;  %v13393_v12 = vor.u32 %v18766_v5, %v13392_v4  ;;  %v18826_v50 = vld [vmem:[%s20248_s16 + $0x76c] sm:$0xf0]  ;;  %v13584_v63 = vld [vmem:[%s20248_s16 + $0x6e0] sm:$0xf]  ;;  %v456_v5 = vld [vmem:[#allocation2 + $0x48] sm:$0xff] }
 0x137   : > { %3192 = vmatpush.bf16.msrb.mxu1 %v13197_v15  ;;  %v18658_v15 = vld [vmem:[%s20248_s16 + $0x22c] sm:$0xf0]  ;;  %v13633_v56 = vor.u32 %v18826_v50, %v13632_v49  ;;  %v13968_v3 = vld [vmem:[%s20248_s16 + $0x9e0] sm:$0xf]  ;;  %v18868_v48 = vld [vmem:[%s20248_s16 + $0x8c4] sm:$0xf] }
 0x138   : > { %3206 = vmatpush.bf16.msrb.mxu2 %v13581_v16  ;;  %v13344_v16 = vld [vmem:[%s20248_s16 + $0x500] sm:$0xf]  ;;  %v12961_v25 = vor.u32 %v18658_v15, %v12960_v14  ;;  %v18922_v53 = vld [vmem:[%s20248_s16 + $0xa6c] sm:$0xf0]  ;;  %v13826_v49 = vld [vmem:[%s20248_s16 + $0x8f0] sm:$0xf0] }
 0x139   : > { %3220 = vmatpush.bf16.msrb.mxu3 %v13965_v22  ;;  %v14112_v22 = vld [vmem:[%s20248_s16 + $0xb00] sm:$0xf]  ;;  %v13345_v26 = vor.u32 %v18754_v19, %v13344_v16  ;;  %v18814_v0 = vld [vmem:[%s20248_s16 + $0x70c] sm:$0xf0] }
 0x13a   : > { %3179 = vmatpush.bf16.msrb.mxu0 %v12765_v32  ;;  %v14113_v31 = vor.u32 %v18946_v23, %v14112_v22  ;;  %v18742_v32 = vld [vmem:[%s20248_s16 + $0x4cc] sm:$0xf0]  ;;  %v13585_v10 = vor.u32 %v18814_v0, %v13584_v63  ;;  %v13920_v22 = vld [vmem:[%s20248_s16 + $0x980] sm:$0xf]  ;;  %v13394_v63 = vld [vmem:[%s20248_s16 + $0x590] sm:$0xf0] }
 0x13b   : > { %3193 = vmatpush.bf16.msrb.mxu1 %v13149_v36  ;;  %v14064_v36 = vld [vmem:[%s20248_s16 + $0xaa0] sm:$0xf]  ;;  %v13297_v40 = vor.u32 %v18742_v32, %v13296_v30  ;;  %v18910_v4 = vld [vmem:[%s20248_s16 + $0xa0c] sm:$0xf0] }
 0x13c   : > { %3207 = vmatpush.bf16.msrb.mxu2 %v13533_v37  ;;  %v18934_v37 = vld [vmem:[%s20248_s16 + $0xacc] sm:$0xf0]  ;;  %v13969_v15 = vor.u32 %v18910_v4, %v13968_v3  ;;  %v13488_v32 = vld [vmem:[%s20248_s16 + $0x620] sm:$0xf]  ;;  %v18952_v3 = vld [vmem:[%s20248_s16 + $0xb64] sm:$0xf] }
 0x13d   : > { %3221 = vmatpush.bf16.msrb.mxu3 %v13917_v43  ;;  %v12864_v43 = vld [vmem:[%s20248_s16 + $0x140] sm:$0xf]  ;;  %v14065_v47 = vor.u32 %v18934_v37, %v14064_v36  ;;  %v18706_v16 = vld [vmem:[%s20248_s16 + $0x3ac] sm:$0xf0]  ;;  %v14162_v4 = vld [vmem:[%s20248_s16 + $0xb90] sm:$0xf0] }
 0x13e   : > { %3180 = vmatpush.bf16.msrb.mxu0 %v12717_v52  ;;  %v2958_v39 = vpop.f32.mrf.mxu0  ;;  %v14016_v52 = vld [vmem:[%s20248_s16 + $0xa40] sm:$0xf]  ;;  %v12865_v54 = vor.u32 %v18634_v44, %v12864_v43  ;;  %v18802_v19 = vld [vmem:[%s20248_s16 + $0x6ac] sm:$0xf0]  ;;  %v13058_v43 = vld [vmem:[%s20248_s16 + $0x2f0] sm:$0xf0] }
 0x13f   : > { %3194 = vmatpush.bf16.msrb.mxu1 %v13101_v57  ;;  %v2972_v46 = vpop.f32.mrf.mxu1  ;;  %v12816_v57 = vld [vmem:[%s20248_s16 + $0xe0] sm:$0xf]  ;;  %v18898_v23 = vld [vmem:[%s20248_s16 + $0x9ac] sm:$0xf0]  ;;  %v18772_v44 = vld [vmem:[%s20248_s16 + $0x5c4] sm:$0xf] }
 0x140   : > { %3208 = vmatpush.bf16.msrb.mxu2 %v13485_v58  ;;  %v2973_v51 = vadd.f32 %v2972_v46, %v2958_v39  ;;  %v18622_v58 = vld [vmem:[%s20248_s16 + $0x10c] sm:$0xf0]  ;;  %v13921_v36 = vor.u32 %v18898_v23, %v13920_v22  ;;  %v13872_v37 = vld [vmem:[%s20248_s16 + $0x920] sm:$0xf]  ;;  %v18676_v39 = vld [vmem:[%s20248_s16 + $0x2c4] sm:$0xf] }
 0x141   : > { %3222 = vmatpush.bf16.msrb.mxu3 %v13869_v61  ;;  %3181 = vmatmul.bf16.vlgmr.msrb.gmra.mxu0 %v20364_v35  ;;  %v14017_v61 = vor.u32 %v18922_v53, %v14016_v52  ;;  %v468_v45 = vld [vmem:[#allocation2 + $0xa0] sm:$0xff]  ;;  %v13489_v52 = vor.u32 %v18790_v33, %v13488_v32  ;;  %v12914_v22 = vld [vmem:[%s20248_s16 + $0x1d0] sm:$0xf0] }
 0x142   : > { %3229 = vmatpush.bf16.msra.mxu0 %v13057_v62  ;;  %3195 = vmatmul.bf16.vlgmr.msrb.gmra.mxu1 %v20371_v42  ;;  %v18718_v62 = vld [vmem:[%s20248_s16 + $0x40c] sm:$0xf0]  ;;  %v18964_v53 = vld [vmem:[%s20248_s16 + $0xbc4] sm:$0xf] }
 0x143   : > { %3243 = vmatpush.bf16.msra.mxu1 %v13441_v1  ;;  %3209 = vmatmul.bf16.vlgmr.msrb.gmra.mxu2 %v20346_v17  ;;  %v13201_v9 = vor.u32 %v18718_v62, %v13200_v59  ;;  %v18760_v62 = vld [vmem:[%s20248_s16 + $0x564] sm:$0xf] }
 0x144   : > { %3257 = vmatpush.bf16.msra.mxu2 %v13825_v2  ;;  %3223 = vmatmul.bf16.vlgmr.msrb.gmra.mxu3 %v20353_v24  ;;  %v18736_v23 = vld [vmem:[%s20248_s16 + $0x4a4] sm:$0xf] }
 0x145   : > { %3271 = vmatpush.bf16.msra.mxu3 %v14209_v6  ;;  %v12817_v6 = vor.u32 %v18622_v58, %v12816_v57  ;;  %v18664_v57 = vld [vmem:[%s20248_s16 + $0x264] sm:$0xf] }
 0x146   : > { %3230 = vmatpush.bf16.msra.mxu0 %v13009_v11  ;;  %v2986_v60 = vpop.f32.mrf.mxu2  ;;  %v2960_v8 = vpop.f32.mrf.mxu0  ;;  %v12768_v11 = vld [vmem:[%s20248_s16 + $0x80] sm:$0xf] }
 0x147   : > { %3244 = vmatpush.bf16.msra.mxu1 %v13393_v12  ;;  %v2987_v1 = vadd.f32 %v2986_v60, %v2973_v51  ;;  %v3000_v2 = vpop.f32.mrf.mxu3  ;;  %v18610_v12 = vld [vmem:[%s20248_s16 + $0xac] sm:$0xf0]  ;;  %v2974_v14 = vpop.f32.mrf.mxu1  ;;  %v13829_v60 = vor.u32 %v18868_v48, %v13826_v49 }
 0x148   : > { %3258 = vmatpush.bf16.msra.mxu2 %v13777_v13  ;;  %v13152_v13 = vld [vmem:[%s20248_s16 + $0x380] sm:$0xf]  ;;  %v2975_v21 = vadd.f32 %v2974_v14, %v2960_v8  ;;  %v18652_v8 = vld [vmem:[%s20248_s16 + $0x204] sm:$0xf]  ;;  %v13730_v14 = vld [vmem:[%s20248_s16 + $0x830] sm:$0xf0] }
 0x149   : > { %3272 = vmatpush.bf16.msra.mxu3 %v14161_v18  ;;  %v3001_v7 = vadd.f32 %v3000_v2, %v2987_v1  ;;  %v13536_v18 = vld [vmem:[%s20248_s16 + $0x680] sm:$0xf]  ;;  %v13153_v29 = vor.u32 %v18706_v16, %v13152_v13  ;;  %v18856_v1 = vld [vmem:[%s20248_s16 + $0x864] sm:$0xf]  ;;  %v13778_v2 = vld [vmem:[%s20248_s16 + $0x890] sm:$0xf0] }
 0x14a   : > { %3231 = vmatpush.bf16.msra.mxu0 %v12961_v25  ;;  %v12720_v25 = vld [vmem:[%s20248_s16 + $0x20] sm:$0xf]  ;;  %v13537_v30 = vor.u32 %v18802_v19, %v13536_v18  ;;  %v18844_v13 = vld [vmem:[%s20248_s16 + $0x804] sm:$0xf]  ;;  %v14114_v16 = vld [vmem:[%s20248_s16 + $0xb30] sm:$0xf0] }
 0x14b   : > { %3245 = vmatpush.bf16.msra.mxu1 %v13345_v26  ;;  %v3456_v20 = vadd.f32 %v3001_v7, %v456_v5  ;;  %v12769_v26 = vor.u32 %v18610_v12, %v12768_v11  ;;  %v13781_v7 = vor.u32 %v18856_v1, %v13778_v2  ;;  %v14165_v11 = vor.u32 %v18952_v3, %v14162_v4  ;;  %v13346_v12 = vld [vmem:[%s20248_s16 + $0x530] sm:$0xf0] }
 0x14c   : > { %3259 = vmatpush.bf16.msra.mxu2 %v13729_v27  ;;  %v18598_v27 = vld [vmem:[%s20248_s16 + $0x4c] sm:$0xf0] }
 0x14d   : > { %3273 = vmatpush.bf16.msra.mxu3 %v14113_v31  ;;  %3480 = vst [vmem:[#allocation2 + $0x48] sm:$0xff] %v3456_v20  ;;  %v18694_v31 = vld [vmem:[%s20248_s16 + $0x34c] sm:$0xf0]  ;;  %v12721_v46 = vor.u32 %v18598_v27, %v12720_v25  ;;  %v13733_v20 = vor.u32 %v18844_v13, %v13730_v14  ;;  %v18832_v27 = vld [vmem:[%s20248_s16 + $0x7a4] sm:$0xf] }
 0x14e   : > { %3232 = vmatpush.bf16.msra.mxu0 %v12913_v38  ;;  %v2988_v34 = vpop.f32.mrf.mxu2  ;;  %v18886_v38 = vld [vmem:[%s20248_s16 + $0x94c] sm:$0xf0]  ;;  %v13105_v51 = vor.u32 %v18694_v31, %v13104_v28  ;;  %v13682_v28 = vld [vmem:[%s20248_s16 + $0x7d0] sm:$0xf0] }
 0x14f   : > { %3246 = vmatpush.bf16.msra.mxu1 %v13297_v40  ;;  %v2989_v40 = vadd.f32 %v2988_v34, %v2975_v21  ;;  %v18640_v21 = vld [vmem:[%s20248_s16 + $0x1a4] sm:$0xf]  ;;  %v13685_v34 = vor.u32 %v18832_v27, %v13682_v28  ;;  %v13490_v27 = vld [vmem:[%s20248_s16 + $0x650] sm:$0xf0] }
 0x150   : > { %3260 = vmatpush.bf16.msra.mxu2 %v13681_v41  ;;  %v3002_v41 = vpop.f32.mrf.mxu3  ;;  %v12917_v31 = vor.u32 %v18640_v21, %v12914_v22  ;;  %v18688_v21 = vld [vmem:[%s20248_s16 + $0x324] sm:$0xf] }
 0x151   : > { %3274 = vmatpush.bf16.msra.mxu3 %v14065_v47  ;;  %v13442_v47 = vld [vmem:[%s20248_s16 + $0x5f0] sm:$0xf0]  ;;  %v3003_v50 = vadd.f32 %v3002_v41, %v2989_v40 }
 0x152   : > { %3233 = vmatpush.bf16.msra.mxu0 %v12865_v54  ;;  %v14210_v54 = vld [vmem:[%s20248_s16 + $0xbf0] sm:$0xf0]  ;;  %v13445_v59 = vor.u32 %v18772_v44, %v13442_v47 }
 0x153   : > { %3247 = vmatpush.bf16.msra.mxu1 %v13249_v55  ;;  %v13873_v55 = vor.u32 %v18886_v38, %v13872_v37  ;;  %v3468_v58 = vadd.f32 %v3003_v50, %v468_v45  ;;  %v14213_v0 = vor.u32 %v18964_v53, %v14210_v54  ;;  %v12866_v37 = vld [vmem:[%s20248_s16 + $0x170] sm:$0xf0]  ;;  %v18724_v38 = vld [vmem:[%s20248_s16 + $0x444] sm:$0xf] }
 0x154   : > { %3261 = vmatpush.bf16.msra.mxu2 %v13633_v56  ;;  %v13061_v56 = vor.u32 %v18676_v39, %v13058_v43  ;;  %v13250_v41 = vld [vmem:[%s20248_s16 + $0x470] sm:$0xf0]  ;;  %v18820_v43 = vld [vmem:[%s20248_s16 + $0x744] sm:$0xf] }
 0x155   : > { %3275 = vmatpush.bf16.msra.mxu3 %v14017_v61  ;;  %v13010_v61 = vld [vmem:[%s20248_s16 + $0x290] sm:$0xf0]  ;;  %3492 = vst [vmem:[#allocation2 + $0xa0] sm:$0xff] %v3468_v58  ;;  %v13253_v49 = vor.u32 %v18724_v38, %v13250_v41  ;;  %v18712_v53 = vld [vmem:[%s20248_s16 + $0x3e4] sm:$0xf]  ;;  %v469_v38 = vld [vmem:[#allocation2 + $0xa8] sm:$0xff] }
 0x156   : > { %3234 = vmatpush.bf16.msra.mxu0 %v12817_v6  ;;  %v13013_v5 = vor.u32 %v18664_v57, %v13010_v61  ;;  %v13397_v6 = vor.u32 %v18760_v62, %v13394_v63  ;;  %v13634_v44 = vld [vmem:[%s20248_s16 + $0x770] sm:$0xf0]  ;;  %v18808_v57 = vld [vmem:[%s20248_s16 + $0x6e4] sm:$0xf]  ;;  %v13832_v41 = vld [vmem:[%s20248_s16 + $0x8c8] sm:$0xf] }
 0x157   : > { %3248 = vmatpush.bf16.msra.mxu1 %v13201_v9  ;;  %v12962_v9 = vld [vmem:[%s20248_s16 + $0x230] sm:$0xf0]  ;;  %v13637_v50 = vor.u32 %v18820_v43, %v13634_v44  ;;  %v18904_v61 = vld [vmem:[%s20248_s16 + $0x9e4] sm:$0xf]  ;;  %v18875_v43 = vld [vmem:[%s20248_s16 + $0x8f4] sm:$0xf0] }
 0x158   : > { %3262 = vmatpush.bf16.msra.mxu2 %v13585_v10  ;;  %v18748_v10 = vld [vmem:[%s20248_s16 + $0x504] sm:$0xf]  ;;  %v12965_v18 = vor.u32 %v18652_v8, %v12962_v9  ;;  %v14018_v47 = vld [vmem:[%s20248_s16 + $0xa70] sm:$0xf0] }
 0x159   : > { %3276 = vmatpush.bf16.msra.mxu3 %v13969_v15  ;;  %v18940_v15 = vld [vmem:[%s20248_s16 + $0xb04] sm:$0xf]  ;;  %v13349_v19 = vor.u32 %v18748_v10, %v13346_v12  ;;  %v13586_v58 = vld [vmem:[%s20248_s16 + $0x710] sm:$0xf0] }
 0x15a   : > { %3235 = vmatpush.bf16.msra.mxu0 %v12769_v26  ;;  %v14117_v25 = vor.u32 %v18940_v15, %v14114_v16  ;;  %v13298_v26 = vld [vmem:[%s20248_s16 + $0x4d0] sm:$0xf0]  ;;  %v457_v63 = vld [vmem:[#allocation2 + $0x60] sm:$0xff]  ;;  %v13589_v4 = vor.u32 %v18808_v57, %v13586_v58  ;;  %v18767_v57 = vld [vmem:[%s20248_s16 + $0x594] sm:$0xf0] }
 0x15b   : > { %3249 = vmatpush.bf16.msra.mxu1 %v13153_v29  ;;  %v18928_v29 = vld [vmem:[%s20248_s16 + $0xaa4] sm:$0xf]  ;;  %v13301_v33 = vor.u32 %v18736_v23, %v13298_v26  ;;  %v13970_v62 = vld [vmem:[%s20248_s16 + $0xa10] sm:$0xf0] }
 0x15c   : > { %3263 = vmatpush.bf16.msra.mxu2 %v13537_v30  ;;  %v14066_v30 = vld [vmem:[%s20248_s16 + $0xad0] sm:$0xf0]  ;;  %v13973_v9 = vor.u32 %v18904_v61, %v13970_v62  ;;  %v18892_v15 = vld [vmem:[%s20248_s16 + $0x984] sm:$0xf]  ;;  %v14168_v61 = vld [vmem:[%s20248_s16 + $0xb68] sm:$0xf] }
 0x15d   : > { %3277 = vmatpush.bf16.msra.mxu3 %v13921_v36  ;;  %v18628_v36 = vld [vmem:[%s20248_s16 + $0x144] sm:$0xf]  ;;  %v14069_v40 = vor.u32 %v18928_v29, %v14066_v30  ;;  %v13154_v10 = vld [vmem:[%s20248_s16 + $0x3b0] sm:$0xf0]  ;;  %v18959_v62 = vld [vmem:[%s20248_s16 + $0xb94] sm:$0xf0] }
 0x15e   : > { %3236 = vmatpush.bf16.msra.mxu0 %v12721_v46  ;;  %v3014_v32 = vpop.f32.mrf.mxu0  ;;  %v18916_v46 = vld [vmem:[%s20248_s16 + $0xa44] sm:$0xf]  ;;  %v12869_v48 = vor.u32 %v18628_v36, %v12866_v37  ;;  %v13538_v12 = vld [vmem:[%s20248_s16 + $0x6b0] sm:$0xf0]  ;;  %v18683_v36 = vld [vmem:[%s20248_s16 + $0x2f4] sm:$0xf0] }
 0x15f   : > { %3250 = vmatpush.bf16.msra.mxu1 %v13105_v51  ;;  %v3028_v39 = vpop.f32.mrf.mxu1  ;;  %v18616_v51 = vld [vmem:[%s20248_s16 + $0xe4] sm:$0xf]  ;;  %v13922_v16 = vld [vmem:[%s20248_s16 + $0x9b0] sm:$0xf0]  ;;  %v13448_v37 = vld [vmem:[%s20248_s16 + $0x5c8] sm:$0xf] }
 0x160   : > { %3264 = vmatpush.bf16.msra.mxu2 %v13489_v52  ;;  %v3029_v45 = vadd.f32 %v3028_v39, %v3014_v32  ;;  %v12818_v52 = vld [vmem:[%s20248_s16 + $0x110] sm:$0xf0]  ;;  %v18784_v26 = vld [vmem:[%s20248_s16 + $0x624] sm:$0xf]  ;;  %v13925_v29 = vor.u32 %v18892_v15, %v13922_v16  ;;  %v13064_v32 = vld [vmem:[%s20248_s16 + $0x2c8] sm:$0xf] }
 0x161   : > { %3278 = vmatpush.bf16.msra.mxu3 %v13873_v55  ;;  %3237 = vmatmul.bf16.vlgmr.msra.gmra.mxu0 %v20364_v35  ;;  %v14021_v55 = vor.u32 %v18916_v46, %v14018_v47  ;;  %v18880_v30 = vld [vmem:[%s20248_s16 + $0x924] sm:$0xf]  ;;  %v13493_v46 = vor.u32 %v18784_v26, %v13490_v27  ;;  %v14216_v47 = vld [vmem:[%s20248_s16 + $0xbc8] sm:$0xf]  ;;  %v18647_v15 = vld [vmem:[%s20248_s16 + $0x1d4] sm:$0xf0] }
 0x162   : > { %3285 = vmatpush.bf16.msrb.mxu0 %v13061_v56  ;;  %3251 = vmatmul.bf16.vlgmr.msra.gmra.mxu1 %v20371_v42  ;;  %v13202_v56 = vld [vmem:[%s20248_s16 + $0x410] sm:$0xf0]  ;;  %v13304_v16 = vld [vmem:[%s20248_s16 + $0x4a8] sm:$0xf] }
 0x163   : > { %3299 = vmatpush.bf16.msrb.mxu1 %v13445_v59  ;;  %3265 = vmatmul.bf16.vlgmr.msra.gmra.mxu2 %v20346_v17  ;;  %v13205_v3 = vor.u32 %v18712_v53, %v13202_v56  ;;  %v13400_v56 = vld [vmem:[%s20248_s16 + $0x568] sm:$0xf] }
 0x164   : > { %3313 = vmatpush.bf16.msrb.mxu2 %v13829_v60  ;;  %3279 = vmatmul.bf16.vlgmr.msra.gmra.mxu3 %v20353_v24 }
 0x165   : > { %3327 = vmatpush.bf16.msrb.mxu3 %v14213_v0  ;;  %v12821_v0 = vor.u32 %v18616_v51, %v12818_v52  ;;  %v13016_v51 = vld [vmem:[%s20248_s16 + $0x268] sm:$0xf] }
 0x166   : > { %3286 = vmatpush.bf16.msrb.mxu0 %v13013_v5  ;;  %v3042_v54 = vpop.f32.mrf.mxu2  ;;  %v3016_v2 = vpop.f32.mrf.mxu0  ;;  %v18604_v5 = vld [vmem:[%s20248_s16 + $0x84] sm:$0xf] }
 0x167   : > { %3300 = vmatpush.bf16.msrb.mxu1 %v13397_v6  ;;  %v3043_v59 = vadd.f32 %v3042_v54, %v3029_v45  ;;  %v3056_v60 = vpop.f32.mrf.mxu3  ;;  %v12770_v6 = vld [vmem:[%s20248_s16 + $0xb0] sm:$0xf0]  ;;  %v3030_v8 = vpop.f32.mrf.mxu1  ;;  %v13833_v54 = vor.u32 %v18875_v43, %v13832_v41 }
 0x168   : > { %3314 = vmatpush.bf16.msrb.mxu2 %v13781_v7  ;;  %v18700_v7 = vld [vmem:[%s20248_s16 + $0x384] sm:$0xf]  ;;  %v3031_v14 = vadd.f32 %v3030_v8, %v3016_v2  ;;  %v12968_v2 = vld [vmem:[%s20248_s16 + $0x208] sm:$0xf]  ;;  %v18851_v8 = vld [vmem:[%s20248_s16 + $0x834] sm:$0xf0] }
 0x169   : > { %3328 = vmatpush.bf16.msrb.mxu3 %v14165_v11  ;;  %v3057_v1 = vadd.f32 %v3056_v60, %v3043_v59  ;;  %v18796_v11 = vld [vmem:[%s20248_s16 + $0x684] sm:$0xf]  ;;  %v13157_v22 = vor.u32 %v18700_v7, %v13154_v10  ;;  %v13784_v59 = vld [vmem:[%s20248_s16 + $0x868] sm:$0xf]  ;;  %v18863_v60 = vld [vmem:[%s20248_s16 + $0x894] sm:$0xf0] }
 0x16a   : > { %3287 = vmatpush.bf16.msrb.mxu0 %v12965_v18  ;;  %v18592_v18 = vld [vmem:[%s20248_s16 + $0x24] sm:$0xf]  ;;  %v13541_v23 = vor.u32 %v18796_v11, %v13538_v12  ;;  %v13736_v7 = vld [vmem:[%s20248_s16 + $0x808] sm:$0xf]  ;;  %v18947_v10 = vld [vmem:[%s20248_s16 + $0xb34] sm:$0xf0] }
 0x16b   : > { %3301 = vmatpush.bf16.msrb.mxu1 %v13349_v19  ;;  %v3457_v13 = vadd.f32 %v3057_v1, %v457_v63  ;;  %v12773_v19 = vor.u32 %v18604_v5, %v12770_v6  ;;  %v13785_v1 = vor.u32 %v18863_v60, %v13784_v59  ;;  %v14169_v5 = vor.u32 %v18959_v62, %v14168_v61  ;;  %v18755_v6 = vld [vmem:[%s20248_s16 + $0x534] sm:$0xf0] }
 0x16c   : > { %3315 = vmatpush.bf16.msrb.mxu2 %v13733_v20  ;;  %v12722_v20 = vld [vmem:[%s20248_s16 + $0x50] sm:$0xf0] }
 0x16d   : > { %3329 = vmatpush.bf16.msrb.mxu3 %v14117_v25  ;;  %3481 = vst [vmem:[#allocation2 + $0x60] sm:$0xff] %v3457_v13  ;;  %v13106_v25 = vld [vmem:[%s20248_s16 + $0x350] sm:$0xf0]  ;;  %v12725_v39 = vor.u32 %v18592_v18, %v12722_v20  ;;  %v13737_v13 = vor.u32 %v18851_v8, %v13736_v7  ;;  %v13688_v20 = vld [vmem:[%s20248_s16 + $0x7a8] sm:$0xf] }
 0x16e   : > { %3288 = vmatpush.bf16.msrb.mxu0 %v12917_v31  ;;  %v3044_v28 = vpop.f32.mrf.mxu2  ;;  %v13874_v31 = vld [vmem:[%s20248_s16 + $0x950] sm:$0xf0]  ;;  %v13109_v45 = vor.u32 %v18688_v21, %v13106_v25  ;;  %v18839_v21 = vld [vmem:[%s20248_s16 + $0x7d4] sm:$0xf0] }
 0x16f   : > { %3302 = vmatpush.bf16.msrb.mxu1 %v13301_v33  ;;  %v3045_v33 = vadd.f32 %v3044_v28, %v3031_v14  ;;  %v12920_v14 = vld [vmem:[%s20248_s16 + $0x1a8] sm:$0xf]  ;;  %v13689_v28 = vor.u32 %v18839_v21, %v13688_v20  ;;  %v18791_v20 = vld [vmem:[%s20248_s16 + $0x654] sm:$0xf0] }
 0x170   : > { %3316 = vmatpush.bf16.msrb.mxu2 %v13685_v34  ;;  %v3058_v34 = vpop.f32.mrf.mxu3  ;;  %v12921_v25 = vor.u32 %v18647_v15, %v12920_v14  ;;  %v13112_v14 = vld [vmem:[%s20248_s16 + $0x328] sm:$0xf] }
 0x171   : > { %3330 = vmatpush.bf16.msrb.mxu3 %v14069_v40  ;;  %v18779_v40 = vld [vmem:[%s20248_s16 + $0x5f4] sm:$0xf0]  ;;  %v3059_v44 = vadd.f32 %v3058_v34, %v3045_v33 }
 0x172   : > { %3289 = vmatpush.bf16.msrb.mxu0 %v12869_v48  ;;  %v18971_v48 = vld [vmem:[%s20248_s16 + $0xbf4] sm:$0xf0]  ;;  %v13449_v53 = vor.u32 %v18779_v40, %v13448_v37 }
 0x173   : > { %3303 = vmatpush.bf16.msrb.mxu1 %v13253_v49  ;;  %v13877_v49 = vor.u32 %v18880_v30, %v13874_v31  ;;  %v3469_v52 = vadd.f32 %v3059_v44, %v469_v38  ;;  %v14217_v58 = vor.u32 %v18971_v48, %v14216_v47  ;;  %v18635_v30 = vld [vmem:[%s20248_s16 + $0x174] sm:$0xf0]  ;;  %v13256_v31 = vld [vmem:[%s20248_s16 + $0x448] sm:$0xf] }
 0x174   : > { %3317 = vmatpush.bf16.msrb.mxu2 %v13637_v50  ;;  %v13065_v50 = vor.u32 %v18683_v36, %v13064_v32  ;;  %v18731_v34 = vld [vmem:[%s20248_s16 + $0x474] sm:$0xf0]  ;;  %v13640_v36 = vld [vmem:[%s20248_s16 + $0x748] sm:$0xf] }
 0x175   : > { %3331 = vmatpush.bf16.msrb.mxu3 %v14021_v55  ;;  %v18671_v55 = vld [vmem:[%s20248_s16 + $0x294] sm:$0xf0]  ;;  %3493 = vst [vmem:[#allocation2 + $0xa8] sm:$0xff] %v3469_v52  ;;  %v13257_v43 = vor.u32 %v18731_v34, %v13256_v31  ;;  %v13208_v47 = vld [vmem:[%s20248_s16 + $0x3e8] sm:$0xf] }
 0x176   : > { %3290 = vmatpush.bf16.msrb.mxu0 %v12821_v0  ;;  %v13017_v63 = vor.u32 %v18671_v55, %v13016_v51  ;;  %v13401_v0 = vor.u32 %v18767_v57, %v13400_v56  ;;  %v18827_v37 = vld [vmem:[%s20248_s16 + $0x774] sm:$0xf0]  ;;  %v13592_v51 = vld [vmem:[%s20248_s16 + $0x6e8] sm:$0xf]  ;;  %v18869_v34 = vld [vmem:[%s20248_s16 + $0x8cc] sm:$0xf] }
 0x177   : > { %3304 = vmatpush.bf16.msrb.mxu1 %v13205_v3  ;;  %v18659_v3 = vld [vmem:[%s20248_s16 + $0x234] sm:$0xf0]  ;;  %v13641_v44 = vor.u32 %v18827_v37, %v13640_v36  ;;  %v13976_v55 = vld [vmem:[%s20248_s16 + $0x9e8] sm:$0xf]  ;;  %v13834_v36 = vld [vmem:[%s20248_s16 + $0x8f8] sm:$0xf0] }
 0x178   : > { %3318 = vmatpush.bf16.msrb.mxu2 %v13589_v4  ;;  %v13352_v4 = vld [vmem:[%s20248_s16 + $0x508] sm:$0xf]  ;;  %v12969_v11 = vor.u32 %v18659_v3, %v12968_v2  ;;  %v18923_v40 = vld [vmem:[%s20248_s16 + $0xa74] sm:$0xf0] }
 0x179   : > { %3332 = vmatpush.bf16.msrb.mxu3 %v13973_v9  ;;  %v14120_v9 = vld [vmem:[%s20248_s16 + $0xb08] sm:$0xf]  ;;  %v13353_v12 = vor.u32 %v18755_v6, %v13352_v4  ;;  %v18815_v52 = vld [vmem:[%s20248_s16 + $0x714] sm:$0xf0] }
 0x17a   : > { %3291 = vmatpush.bf16.msrb.mxu0 %v12773_v19  ;;  %v14121_v18 = vor.u32 %v18947_v10, %v14120_v9  ;;  %v18743_v19 = vld [vmem:[%s20248_s16 + $0x4d4] sm:$0xf0]  ;;  %v458_v57 = vld [vmem:[#allocation2 + $0x28] sm:$0xff]  ;;  %v13593_v62 = vor.u32 %v18815_v52, %v13592_v51  ;;  %v13402_v51 = vld [vmem:[%s20248_s16 + $0x598] sm:$0xf0] }
 0x17b   : > { %3305 = vmatpush.bf16.msrb.mxu1 %v13157_v22  ;;  %v14072_v22 = vld [vmem:[%s20248_s16 + $0xaa8] sm:$0xf]  ;;  %v13305_v27 = vor.u32 %v18743_v19, %v13304_v16  ;;  %v18911_v56 = vld [vmem:[%s20248_s16 + $0xa14] sm:$0xf0] }
 0x17c   : > { %3319 = vmatpush.bf16.msrb.mxu2 %v13541_v23  ;;  %v18935_v23 = vld [vmem:[%s20248_s16 + $0xad4] sm:$0xf0]  ;;  %v13977_v3 = vor.u32 %v18911_v56, %v13976_v55  ;;  %v13928_v9 = vld [vmem:[%s20248_s16 + $0x988] sm:$0xf]  ;;  %v18953_v55 = vld [vmem:[%s20248_s16 + $0xb6c] sm:$0xf] }
 0x17d   : > { %3333 = vmatpush.bf16.msrb.mxu3 %v13925_v29  ;;  %v12872_v29 = vld [vmem:[%s20248_s16 + $0x148] sm:$0xf]  ;;  %v14073_v33 = vor.u32 %v18935_v23, %v14072_v22  ;;  %v18707_v4 = vld [vmem:[%s20248_s16 + $0x3b4] sm:$0xf0]  ;;  %v14170_v56 = vld [vmem:[%s20248_s16 + $0xb98] sm:$0xf0] }
 0x17e   : > { %3292 = vmatpush.bf16.msrb.mxu0 %v12725_v39  ;;  %v3070_v26 = vpop.f32.mrf.mxu0  ;;  %v14024_v39 = vld [vmem:[%s20248_s16 + $0xa48] sm:$0xf]  ;;  %v12873_v41 = vor.u32 %v18635_v30, %v12872_v29  ;;  %v18803_v6 = vld [vmem:[%s20248_s16 + $0x6b4] sm:$0xf0]  ;;  %v13066_v29 = vld [vmem:[%s20248_s16 + $0x2f8] sm:$0xf0] }
 0x17f   : > { %3306 = vmatpush.bf16.msrb.mxu1 %v13109_v45  ;;  %v3084_v32 = vpop.f32.mrf.mxu1  ;;  %v12824_v45 = vld [vmem:[%s20248_s16 + $0xe8] sm:$0xf]  ;;  %v18899_v10 = vld [vmem:[%s20248_s16 + $0x9b4] sm:$0xf0]  ;;  %v18773_v30 = vld [vmem:[%s20248_s16 + $0x5cc] sm:$0xf] }
 0x180   : > { %3320 = vmatpush.bf16.msrb.mxu2 %v13493_v46  ;;  %v3085_v38 = vadd.f32 %v3084_v32, %v3070_v26  ;;  %v18623_v46 = vld [vmem:[%s20248_s16 + $0x114] sm:$0xf0]  ;;  %v13496_v19 = vld [vmem:[%s20248_s16 + $0x628] sm:$0xf]  ;;  %v13929_v22 = vor.u32 %v18899_v10, %v13928_v9  ;;  %v18677_v26 = vld [vmem:[%s20248_s16 + $0x2cc] sm:$0xf] }
 0x181   : > { %3334 = vmatpush.bf16.msrb.mxu3 %v13877_v49  ;;  %3293 = vmatmul.bf16.vlgmr.msrb.gmra.mxu0 %v20364_v35  ;;  %v14025_v49 = vor.u32 %v18923_v40, %v14024_v39  ;;  %v13880_v23 = vld [vmem:[%s20248_s16 + $0x928] sm:$0xf]  ;;  %v13497_v39 = vor.u32 %v18791_v20, %v13496_v19  ;;  %v18965_v40 = vld [vmem:[%s20248_s16 + $0xbcc] sm:$0xf]  ;;  %v12922_v9 = vld [vmem:[%s20248_s16 + $0x1d8] sm:$0xf0] }
 0x182   : > { %3341 = vmatpush.bf16.msra.mxu0 %v13065_v50  ;;  %3307 = vmatmul.bf16.vlgmr.msrb.gmra.mxu1 %v20371_v42  ;;  %v18719_v50 = vld [vmem:[%s20248_s16 + $0x414] sm:$0xf0]  ;;  %v470_v31 = vld [vmem:[#allocation2 + $0x68] sm:$0xff] }
 0x183   : > { %3355 = vmatpush.bf16.msra.mxu1 %v13449_v53  ;;  %3321 = vmatmul.bf16.vlgmr.msrb.gmra.mxu2 %v20346_v17  ;;  %v13209_v61 = vor.u32 %v18719_v50, %v13208_v47  ;;  %v18761_v50 = vld [vmem:[%s20248_s16 + $0x56c] sm:$0xf] }
 0x184   : > { %3369 = vmatpush.bf16.msra.mxu2 %v13833_v54  ;;  %3335 = vmatmul.bf16.vlgmr.msrb.gmra.mxu3 %v20353_v24  ;;  %v18737_v10 = vld [vmem:[%s20248_s16 + $0x4ac] sm:$0xf] }
 0x185   : > { %3383 = vmatpush.bf16.msra.mxu3 %v14217_v58  ;;  %v12825_v58 = vor.u32 %v18623_v46, %v12824_v45  ;;  %v18665_v45 = vld [vmem:[%s20248_s16 + $0x26c] sm:$0xf] }
 0x186   : > { %3342 = vmatpush.bf16.msra.mxu0 %v13017_v63  ;;  %v3098_v48 = vpop.f32.mrf.mxu2  ;;  %v3072_v60 = vpop.f32.mrf.mxu0  ;;  %v12776_v63 = vld [vmem:[%s20248_s16 + $0x88] sm:$0xf] }
 0x187   : > { %3356 = vmatpush.bf16.msra.mxu1 %v13401_v0  ;;  %v3099_v53 = vadd.f32 %v3098_v48, %v3085_v38  ;;  %v3112_v54 = vpop.f32.mrf.mxu3  ;;  %v18611_v0 = vld [vmem:[%s20248_s16 + $0xb4] sm:$0xf0]  ;;  %v3086_v2 = vpop.f32.mrf.mxu1  ;;  %v13837_v48 = vor.u32 %v18869_v34, %v13834_v36 }
 0x188   : > { %3370 = vmatpush.bf16.msra.mxu2 %v13785_v1  ;;  %v13160_v1 = vld [vmem:[%s20248_s16 + $0x388] sm:$0xf]  ;;  %v3087_v8 = vadd.f32 %v3086_v2, %v3072_v60  ;;  %v18653_v60 = vld [vmem:[%s20248_s16 + $0x20c] sm:$0xf]  ;;  %v13738_v2 = vld [vmem:[%s20248_s16 + $0x838] sm:$0xf0] }
 0x189   : > { %3384 = vmatpush.bf16.msra.mxu3 %v14169_v5  ;;  %v3113_v59 = vadd.f32 %v3112_v54, %v3099_v53  ;;  %v13544_v5 = vld [vmem:[%s20248_s16 + $0x688] sm:$0xf]  ;;  %v13161_v15 = vor.u32 %v18707_v4, %v13160_v1  ;;  %v18857_v53 = vld [vmem:[%s20248_s16 + $0x86c] sm:$0xf]  ;;  %v13786_v54 = vld [vmem:[%s20248_s16 + $0x898] sm:$0xf0] }
 0x18a   : > { %3343 = vmatpush.bf16.msra.mxu0 %v12969_v11  ;;  %v12728_v11 = vld [vmem:[%s20248_s16 + $0x28] sm:$0xf]  ;;  %v13545_v16 = vor.u32 %v18803_v6, %v13544_v5  ;;  %v18845_v1 = vld [vmem:[%s20248_s16 + $0x80c] sm:$0xf]  ;;  %v14122_v4 = vld [vmem:[%s20248_s16 + $0xb38] sm:$0xf0] }
 0x18b   : > { %3357 = vmatpush.bf16.msra.mxu1 %v13353_v12  ;;  %v3458_v7 = vadd.f32 %v3113_v59, %v458_v57  ;;  %v12777_v12 = vor.u32 %v18611_v0, %v12776_v63  ;;  %v13789_v59 = vor.u32 %v18857_v53, %v13786_v54  ;;  %v14173_v63 = vor.u32 %v18953_v55, %v14170_v56  ;;  %v13354_v0 = vld [vmem:[%s20248_s16 + $0x538] sm:$0xf0] }
 0x18c   : > { %3371 = vmatpush.bf16.msra.mxu2 %v13737_v13  ;;  %v18599_v13 = vld [vmem:[%s20248_s16 + $0x54] sm:$0xf0] }
 0x18d   : > { %3385 = vmatpush.bf16.msra.mxu3 %v14121_v18  ;;  %3482 = vst [vmem:[#allocation2 + $0x28] sm:$0xff] %v3458_v7  ;;  %v18695_v18 = vld [vmem:[%s20248_s16 + $0x354] sm:$0xf0]  ;;  %v12729_v32 = vor.u32 %v18599_v13, %v12728_v11  ;;  %v13741_v7 = vor.u32 %v18845_v1, %v13738_v2  ;;  %v18833_v13 = vld [vmem:[%s20248_s16 + $0x7ac] sm:$0xf] }
 0x18e   : > { %3344 = vmatpush.bf16.msra.mxu0 %v12921_v25  ;;  %v3100_v21 = vpop.f32.mrf.mxu2  ;;  %v18887_v25 = vld [vmem:[%s20248_s16 + $0x954] sm:$0xf0]  ;;  %v13113_v38 = vor.u32 %v18695_v18, %v13112_v14  ;;  %v13690_v14 = vld [vmem:[%s20248_s16 + $0x7d8] sm:$0xf0] }
 0x18f   : > { %3358 = vmatpush.bf16.msra.mxu1 %v13305_v27  ;;  %v3101_v27 = vadd.f32 %v3100_v21, %v3087_v8  ;;  %v18641_v8 = vld [vmem:[%s20248_s16 + $0x1ac] sm:$0xf]  ;;  %v13693_v21 = vor.u32 %v18833_v13, %v13690_v14  ;;  %v13114_v13 = vld [vmem:[%s20248_s16 + $0x358] sm:$0xf0] }
 0x190   : > { %3372 = vmatpush.bf16.msra.mxu2 %v13689_v28  ;;  %v3114_v28 = vpop.f32.mrf.mxu3  ;;  %v12925_v18 = vor.u32 %v18641_v8, %v12922_v9  ;;  %v18593_v8 = vld [vmem:[%s20248_s16 + $0x2c] sm:$0xf]  ;;  %v12730_v9 = vld [vmem:[%s20248_s16 + $0x58] sm:$0xf0] }
 0x191   : > { %3386 = vmatpush.bf16.msra.mxu3 %v14073_v33  ;;  %v13450_v33 = vld [vmem:[%s20248_s16 + $0x5f8] sm:$0xf0]  ;;  %v3115_v37 = vadd.f32 %v3114_v28, %v3101_v27  ;;  %v18785_v14 = vld [vmem:[%s20248_s16 + $0x62c] sm:$0xf] }
 0x192   : > { %3345 = vmatpush.bf16.msra.mxu0 %v12873_v41  ;;  %v14218_v41 = vld [vmem:[%s20248_s16 + $0xbf8] sm:$0xf0]  ;;  %v13453_v47 = vor.u32 %v18773_v30, %v13450_v33 }
 0x193   : > { %3359 = vmatpush.bf16.msra.mxu1 %v13257_v43  ;;  %v13881_v43 = vor.u32 %v18887_v25, %v13880_v23  ;;  %v3470_v46 = vadd.f32 %v3115_v37, %v470_v31  ;;  %v14221_v52 = vor.u32 %v18965_v40, %v14218_v41  ;;  %v12874_v23 = vld [vmem:[%s20248_s16 + $0x178] sm:$0xf0]  ;;  %v18725_v25 = vld [vmem:[%s20248_s16 + $0x44c] sm:$0xf] }
 0x194   : > { %3373 = vmatpush.bf16.msra.mxu2 %v13641_v44  ;;  %v13069_v44 = vor.u32 %v18677_v26, %v13066_v29  ;;  %v13258_v28 = vld [vmem:[%s20248_s16 + $0x478] sm:$0xf0]  ;;  %v18821_v29 = vld [vmem:[%s20248_s16 + $0x74c] sm:$0xf] }
 0x195   : > { %3387 = vmatpush.bf16.msra.mxu3 %v14025_v49  ;;  %v13018_v49 = vld [vmem:[%s20248_s16 + $0x298] sm:$0xf0]  ;;  %3494 = vst [vmem:[#allocation2 + $0x68] sm:$0xff] %v3470_v46  ;;  %v13261_v36 = vor.u32 %v18725_v25, %v13258_v28  ;;  %v18713_v40 = vld [vmem:[%s20248_s16 + $0x3ec] sm:$0xf] }
 0x196   : > { %3346 = vmatpush.bf16.msra.mxu0 %v12825_v58  ;;  %v13021_v57 = vor.u32 %v18665_v45, %v13018_v49  ;;  %v13405_v58 = vor.u32 %v18761_v50, %v13402_v51  ;;  %v13642_v30 = vld [vmem:[%s20248_s16 + $0x778] sm:$0xf0]  ;;  %v18809_v45 = vld [vmem:[%s20248_s16 + $0x6ec] sm:$0xf]  ;;  %v459_v51 = vld [vmem:[#allocation2 + $0x40] sm:$0xff] }
 0x197   : > { %3360 = vmatpush.bf16.msra.mxu1 %v13209_v61  ;;  %v12970_v61 = vld [vmem:[%s20248_s16 + $0x238] sm:$0xf0]  ;;  %v13645_v37 = vor.u32 %v18821_v29, %v13642_v30  ;;  %v18905_v49 = vld [vmem:[%s20248_s16 + $0x9ec] sm:$0xf] }
 0x198   : > { %3374 = vmatpush.bf16.msra.mxu2 %v13593_v62  ;;  %v18749_v62 = vld [vmem:[%s20248_s16 + $0x50c] sm:$0xf]  ;;  %v12973_v5 = vor.u32 %v18653_v60, %v12970_v61  ;;  %v14026_v33 = vld [vmem:[%s20248_s16 + $0xa78] sm:$0xf0] }
 0x199   : > { %3388 = vmatpush.bf16.msra.mxu3 %v13977_v3  ;;  %v18941_v3 = vld [vmem:[%s20248_s16 + $0xb0c] sm:$0xf]  ;;  %v13357_v6 = vor.u32 %v18749_v62, %v13354_v0  ;;  %v13594_v46 = vld [vmem:[%s20248_s16 + $0x718] sm:$0xf0] }
 0x19a   : > { %3347 = vmatpush.bf16.msra.mxu0 %v12777_v12  ;;  %v14125_v11 = vor.u32 %v18941_v3, %v14122_v4  ;;  %v13306_v12 = vld [vmem:[%s20248_s16 + $0x4d8] sm:$0xf0]  ;;  %v13597_v56 = vor.u32 %v18809_v45, %v13594_v46  ;;  %v18893_v3 = vld [vmem:[%s20248_s16 + $0x98c] sm:$0xf] }
 0x19b   : > { %3361 = vmatpush.bf16.msra.mxu1 %v13161_v15  ;;  %v18929_v15 = vld [vmem:[%s20248_s16 + $0xaac] sm:$0xf]  ;;  %v13309_v20 = vor.u32 %v18737_v10, %v13306_v12  ;;  %v13978_v50 = vld [vmem:[%s20248_s16 + $0xa18] sm:$0xf0] }
 0x19c   : > { %3375 = vmatpush.bf16.msra.mxu2 %v13545_v16  ;;  %v14074_v16 = vld [vmem:[%s20248_s16 + $0xad8] sm:$0xf0]  ;;  %v13981_v61 = vor.u32 %v18905_v49, %v13978_v50  ;;  %v18689_v10 = vld [vmem:[%s20248_s16 + $0x32c] sm:$0xf] }
 0x19d   : > { %3389 = vmatpush.bf16.msra.mxu3 %v13929_v22  ;;  %v18629_v22 = vld [vmem:[%s20248_s16 + $0x14c] sm:$0xf]  ;;  %v14077_v27 = vor.u32 %v18929_v15, %v14074_v16  ;;  %v13162_v62 = vld [vmem:[%s20248_s16 + $0x3b8] sm:$0xf0]  ;;  %v13117_v25 = vor.u32 %v18689_v10, %v13114_v13 }
 0x19e   : > { %3348 = vmatpush.bf16.msra.mxu0 %v12729_v32  ;;  %v3126_v19 = vpop.f32.mrf.mxu0  ;;  %v18917_v32 = vld [vmem:[%s20248_s16 + $0xa4c] sm:$0xf]  ;;  %v12877_v34 = vor.u32 %v18629_v22, %v12874_v23  ;;  %v13546_v0 = vld [vmem:[%s20248_s16 + $0x6b8] sm:$0xf0]  ;;  %v12733_v22 = vor.u32 %v18593_v8, %v12730_v9 }
 0x19f   : > { %3362 = vmatpush.bf16.msra.mxu1 %v13113_v38  ;;  %v3140_v26 = vpop.f32.mrf.mxu1  ;;  %v18617_v38 = vld [vmem:[%s20248_s16 + $0xec] sm:$0xf]  ;;  %v13930_v4 = vld [vmem:[%s20248_s16 + $0x9b8] sm:$0xf0] }
 0x1a0   : > { %3376 = vmatpush.bf16.msra.mxu2 %v13497_v39  ;;  %v3141_v31 = vadd.f32 %v3140_v26, %v3126_v19  ;;  %v12826_v39 = vld [vmem:[%s20248_s16 + $0x118] sm:$0xf0]  ;;  %v13933_v12 = vor.u32 %v18893_v3, %v13930_v4  ;;  %v18881_v19 = vld [vmem:[%s20248_s16 + $0x92c] sm:$0xf] }
 0x1a1   : > { %3390 = vmatpush.bf16.msra.mxu3 %v13881_v43  ;;  %3349 = vmatmul.bf16.vlgmr.msra.gmra.mxu0 %v20364_v35  ;;  %v14029_v43 = vor.u32 %v18917_v32, %v14026_v33  ;;  %v13498_v15 = vld [vmem:[%s20248_s16 + $0x658] sm:$0xf0] }
 0x1a2   : > { %3397 = vmatpush.bf16.msrb.mxu0 %v13069_v44  ;;  %3363 = vmatmul.bf16.vlgmr.msra.gmra.mxu1 %v20371_v42  ;;  %v13210_v44 = vld [vmem:[%s20248_s16 + $0x418] sm:$0xf0]  ;;  %v13501_v26 = vor.u32 %v18785_v14, %v13498_v15 }
 0x1a3   : > { %3411 = vmatpush.bf16.msrb.mxu1 %v13453_v47  ;;  %3377 = vmatmul.bf16.vlgmr.msra.gmra.mxu2 %v20346_v17  ;;  %v13213_v55 = vor.u32 %v18713_v40, %v13210_v44  ;;  %v472_v44 = vld [vmem:[#allocation2 + $0x58] sm:$0xff] }
 0x1a4   : > { %3425 = vmatpush.bf16.msrb.mxu2 %v13837_v48  ;;  %3391 = vmatmul.bf16.vlgmr.msra.gmra.mxu3 %v20353_v24  ;;  %v474_v14 = vld [vmem:[#allocation2 + $0xb8] sm:$0xff] }
 0x1a5   : > { %3439 = vmatpush.bf16.msrb.mxu3 %v14221_v52  ;;  %v12829_v52 = vor.u32 %v18617_v38, %v12826_v39 }
 0x1a6   : > { %3398 = vmatpush.bf16.msrb.mxu0 %v13021_v57  ;;  %v3154_v41 = vpop.f32.mrf.mxu2  ;;  %v3128_v54 = vpop.f32.mrf.mxu0  ;;  %v18605_v57 = vld [vmem:[%s20248_s16 + $0x8c] sm:$0xf] }
 0x1a7   : > { %3412 = vmatpush.bf16.msrb.mxu1 %v13405_v58  ;;  %v3155_v47 = vadd.f32 %v3154_v41, %v3141_v31  ;;  %v3168_v48 = vpop.f32.mrf.mxu3  ;;  %v12778_v58 = vld [vmem:[%s20248_s16 + $0xb8] sm:$0xf0]  ;;  %v3142_v60 = vpop.f32.mrf.mxu1 }
 0x1a8   : > { %3426 = vmatpush.bf16.msrb.mxu2 %v13789_v59  ;;  %v18701_v59 = vld [vmem:[%s20248_s16 + $0x38c] sm:$0xf]  ;;  %v3143_v2 = vadd.f32 %v3142_v60, %v3128_v54  ;;  %v473_v60 = vld [vmem:[#allocation2 + $0x80] sm:$0xff] }
 0x1a9   : > { %3440 = vmatpush.bf16.msrb.mxu3 %v14173_v63  ;;  %v3169_v53 = vadd.f32 %v3168_v48, %v3155_v47  ;;  %v18797_v63 = vld [vmem:[%s20248_s16 + $0x68c] sm:$0xf] }
 0x1aa   : > { %3399 = vmatpush.bf16.msrb.mxu0 %v12973_v5  ;;  %v12781_v5 = vor.u32 %v18605_v57, %v12778_v58 }
 0x1ab   : > { %3413 = vmatpush.bf16.msrb.mxu1 %v13357_v6  ;;  %v3459_v1 = vadd.f32 %v3169_v53, %v459_v51  ;;  %v13165_v6 = vor.u32 %v18701_v59, %v13162_v62  ;;  %v461_v51 = vld [vmem:[#allocation2 + $0x88] sm:$0xff] }
 0x1ac   : > { %3427 = vmatpush.bf16.msrb.mxu2 %v13741_v7  ;;  %v13549_v7 = vor.u32 %v18797_v63, %v13546_v0 }
 0x1ad   : > { %3441 = vmatpush.bf16.msrb.mxu3 %v14125_v11  ;;  %3483 = vst [vmem:[#allocation2 + $0x40] sm:$0xff] %v3459_v1 }
 0x1ae   : > { %3400 = vmatpush.bf16.msrb.mxu0 %v12925_v18  ;;  %v3156_v11 = vpop.f32.mrf.mxu2 }
 0x1af   : > { %3414 = vmatpush.bf16.msrb.mxu1 %v13309_v20  ;;  %v3157_v16 = vadd.f32 %v3156_v11, %v3143_v2  ;;  %v3170_v18 = vpop.f32.mrf.mxu3  ;;  %v13882_v20 = vld [vmem:[%s20248_s16 + $0x958] sm:$0xf0] }
 0x1b0   : > { %3428 = vmatpush.bf16.msrb.mxu2 %v13693_v21  ;;  %v471_v21 = vld [vmem:[#allocation2 + $0x30] sm:$0xff] }
 0x1b1   : > { %3442 = vmatpush.bf16.msrb.mxu3 %v14077_v27  ;;  %v3171_v23 = vadd.f32 %v3170_v18, %v3157_v16  ;;  %v13885_v27 = vor.u32 %v18881_v19, %v13882_v20 }
 0x1b2   : > { %3401 = vmatpush.bf16.msrb.mxu0 %v12877_v34 }
 0x1b3   : > { %3415 = vmatpush.bf16.msrb.mxu1 %v13261_v36  ;;  %v3471_v28 = vadd.f32 %v3171_v23, %v471_v21  ;;  %v460_v36 = vld [vmem:[#allocation2 + $0x78] sm:$0xff] }
 0x1b4   : > { %3429 = vmatpush.bf16.msrb.mxu2 %v13645_v37 }
 0x1b5   : > { %3443 = vmatpush.bf16.msrb.mxu3 %v14029_v43  ;;  %3495 = vst [vmem:[#allocation2 + $0x30] sm:$0xff] %v3471_v28 }
 0x1b6   : > { %3402 = vmatpush.bf16.msrb.mxu0 %v12829_v52 }
 0x1b7   : > { %3416 = vmatpush.bf16.msrb.mxu1 %v13213_v55 }
 0x1b8   : > { %3430 = vmatpush.bf16.msrb.mxu2 %v13597_v56 }
 0x1b9   : > { %3444 = vmatpush.bf16.msrb.mxu3 %v13981_v61 }
 0x1ba   : > { %3403 = vmatpush.bf16.msrb.mxu0 %v12781_v5  ;;  %v462_v5 = vld [vmem:[#allocation2 + $0x90] sm:$0xff] }
 0x1bb   : > { %3417 = vmatpush.bf16.msrb.mxu1 %v13165_v6 }
 0x1bc   : > { %3431 = vmatpush.bf16.msrb.mxu2 %v13549_v7 }
 0x1bd   : > { %3445 = vmatpush.bf16.msrb.mxu3 %v13933_v12 }
 0x1be   : > { %3404 = vmatpush.bf16.msrb.mxu0 %v12733_v22  ;;  %v3182_v29 = vpop.f32.mrf.mxu0 }
 0x1bf   : > { %3418 = vmatpush.bf16.msrb.mxu1 %v13117_v25  ;;  %v3196_v30 = vpop.f32.mrf.mxu1  ;;  %v463_v25 = vld [vmem:[#allocation2 + $0x18] sm:$0xff] }
 0x1c0   : > { %3432 = vmatpush.bf16.msrb.mxu2 %v13501_v26  ;;  %v3197_v31 = vadd.f32 %v3196_v30, %v3182_v29 }
 0x1c1   : > { %3446 = vmatpush.bf16.msrb.mxu3 %v13885_v27  ;;  %3405 = vmatmul.bf16.vlgmr.msrb.gmra.mxu0 %v20364_v35 }
 0x1c2   : > { %3419 = vmatmul.bf16.vlgmr.msrb.gmra.mxu1 %v20371_v42 }
 0x1c3   : > { %3433 = vmatmul.bf16.vlgmr.msrb.gmra.mxu2 %v20346_v17 }
 0x1c4   : > { %3447 = vmatmul.bf16.vlgmr.msrb.gmra.mxu3 %v20353_v24 }
 0x1c6   : > { %v3210_v32 = vpop.f32.mrf.mxu2  ;;  %v3184_v38 = vpop.f32.mrf.mxu0 }
 0x1c7   : > { %v3211_v33 = vadd.f32 %v3210_v32, %v3197_v31  ;;  %v3224_v34 = vpop.f32.mrf.mxu3  ;;  %v3198_v39 = vpop.f32.mrf.mxu1 }
 0x1c8   : > { %v3199_v41 = vadd.f32 %v3198_v39, %v3184_v38 }
 0x1c9   : > { %v3225_v37 = vadd.f32 %v3224_v34, %v3211_v33  ;;  %v475_v34 = vld [vmem:[#allocation2 + $0x20] sm:$0xff] }
 0x1cb   : > { %v3460_v40 = vadd.f32 %v3225_v37, %v460_v36 }
 0x1cd   : > { %3484 = vst [vmem:[#allocation2 + $0x78] sm:$0xff] %v3460_v40 }
 0x1ce   : > { %v3212_v35 = vpop.f32.mrf.mxu2 }
 0x1cf   : > { %v3213_v43 = vadd.f32 %v3212_v35, %v3199_v41  ;;  %v3226_v42 = vpop.f32.mrf.mxu3 }
 0x1d1   : > { %v3227_v17 = vadd.f32 %v3226_v42, %v3213_v43  ;;  %v464_v42 = vld [vmem:[#allocation2 + $0x98] sm:$0xff] }
 0x1d3   : > { %v3472_v45 = vadd.f32 %v3227_v17, %v472_v44 }
 0x1d5   : > { %3496 = vst [vmem:[#allocation2 + $0x58] sm:$0xff] %v3472_v45 }
 0x1de   : > { %v3238_v24 = vpop.f32.mrf.mxu0 }
 0x1df   : > { %v3252_v46 = vpop.f32.mrf.mxu1 }
 0x1e0   : > { %v3253_v47 = vadd.f32 %v3252_v46, %v3238_v24 }
 0x1e6   : > { %v3266_v48 = vpop.f32.mrf.mxu2  ;;  %v3240_v53 = vpop.f32.mrf.mxu0 }
 0x1e7   : > { %v3267_v49 = vadd.f32 %v3266_v48, %v3253_v47  ;;  %v3280_v50 = vpop.f32.mrf.mxu3  ;;  %v3254_v54 = vpop.f32.mrf.mxu1 }
 0x1e8   : > { %v3255_v56 = vadd.f32 %v3254_v54, %v3240_v53 }
 0x1e9   : > { %v3281_v52 = vadd.f32 %v3280_v50, %v3267_v49  ;;  %v476_v49 = vld [vmem:[#allocation2 + $0x8] sm:$0xff] }
 0x1eb   : > { %v3461_v55 = vadd.f32 %v3281_v52, %v461_v51 }
 0x1ed   : > { %3485 = vst [vmem:[#allocation2 + $0x88] sm:$0xff] %v3461_v55 }
 0x1ee   : > { %v3268_v57 = vpop.f32.mrf.mxu2 }
 0x1ef   : > { %v3269_v58 = vadd.f32 %v3268_v57, %v3255_v56  ;;  %v3282_v59 = vpop.f32.mrf.mxu3 }
 0x1f1   : > { %v3283_v61 = vadd.f32 %v3282_v59, %v3269_v58 }
 0x1f3   : > { %v3473_v62 = vadd.f32 %v3283_v61, %v473_v60 }
 0x1f5   : > { %3497 = vst [vmem:[#allocation2 + $0x80] sm:$0xff] %v3473_v62 }
 0x1fe   : > { %v3294_v63 = vpop.f32.mrf.mxu0 }
 0x1ff   : > { %v3308_v0 = vpop.f32.mrf.mxu1 }
 0x200   : > { %v3309_v1 = vadd.f32 %v3308_v0, %v3294_v63 }
 0x206   : > { %v3322_v2 = vpop.f32.mrf.mxu2  ;;  %v3296_v7 = vpop.f32.mrf.mxu0 }
 0x207   : > { %v3323_v3 = vadd.f32 %v3322_v2, %v3309_v1  ;;  %v3336_v4 = vpop.f32.mrf.mxu3  ;;  %v3310_v8 = vpop.f32.mrf.mxu1 }
 0x208   : > { %v3311_v10 = vadd.f32 %v3310_v8, %v3296_v7 }
 0x209   : > { %v3337_v6 = vadd.f32 %v3336_v4, %v3323_v3 }
 0x20b   : > { %v3462_v9 = vadd.f32 %v3337_v6, %v462_v5 }
 0x20d   : > { %3486 = vst [vmem:[#allocation2 + $0x90] sm:$0xff] %v3462_v9 }
 0x20e   : > { %v3324_v11 = vpop.f32.mrf.mxu2 }
 0x20f   : > { %v3325_v12 = vadd.f32 %v3324_v11, %v3311_v10  ;;  %v3338_v13 = vpop.f32.mrf.mxu3 }
 0x211   : > { %v3339_v15 = vadd.f32 %v3338_v13, %v3325_v12 }
 0x213   : > { %v3474_v16 = vadd.f32 %v3339_v15, %v474_v14 }
 0x215   : > { %3498 = vst [vmem:[#allocation2 + $0xb8] sm:$0xff] %v3474_v16 }
 0x21e   : > { %v3350_v18 = vpop.f32.mrf.mxu0 }
 0x21f   : > { %v3364_v19 = vpop.f32.mrf.mxu1 }
 0x220   : > { %v3365_v20 = vadd.f32 %v3364_v19, %v3350_v18 }
 0x226   : > { %v3378_v21 = vpop.f32.mrf.mxu2  ;;  %v3352_v27 = vpop.f32.mrf.mxu0 }
 0x227   : > { %v3379_v22 = vadd.f32 %v3378_v21, %v3365_v20  ;;  %v3392_v23 = vpop.f32.mrf.mxu3  ;;  %v3366_v28 = vpop.f32.mrf.mxu1 }
 0x228   : > { %v3367_v30 = vadd.f32 %v3366_v28, %v3352_v27 }
 0x229   : > { %v3393_v26 = vadd.f32 %v3392_v23, %v3379_v22 }
 0x22b   : > { %v3463_v29 = vadd.f32 %v3393_v26, %v463_v25 }
 0x22d   : > { %3487 = vst [vmem:[#allocation2 + $0x18] sm:$0xff] %v3463_v29 }
 0x22e   : > { %v3380_v31 = vpop.f32.mrf.mxu2 }
 0x22f   : > { %v3381_v32 = vadd.f32 %v3380_v31, %v3367_v30  ;;  %v3394_v33 = vpop.f32.mrf.mxu3 }
 0x231   : > { %v3395_v36 = vadd.f32 %v3394_v33, %v3381_v32 }
 0x233   : > { %v3475_v37 = vadd.f32 %v3395_v36, %v475_v34 }
 0x235   : > { %3499 = vst [vmem:[#allocation2 + $0x20] sm:$0xff] %v3475_v37 }
 0x23e   : > { %v3406_v38 = vpop.f32.mrf.mxu0 }
 0x23f   : > { %v3420_v39 = vpop.f32.mrf.mxu1 }
 0x240   : > { %v3421_v40 = vadd.f32 %v3420_v39, %v3406_v38 }
 0x246   : > { %v3434_v41 = vpop.f32.mrf.mxu2  ;;  %v3408_v17 = vpop.f32.mrf.mxu0 }
 0x247   : > { %v3435_v35 = vadd.f32 %v3434_v41, %v3421_v40  ;;  %v3448_v43 = vpop.f32.mrf.mxu3  ;;  %v3422_v45 = vpop.f32.mrf.mxu1 }
 0x248   : > { %v3423_v46 = vadd.f32 %v3422_v45, %v3408_v17 }
 0x249   : > { %v3449_v44 = vadd.f32 %v3448_v43, %v3435_v35 }
 0x24b   : > { %v3464_v24 = vadd.f32 %v3449_v44, %v464_v42 }
 0x24d   : > { %3488 = vst [vmem:[#allocation2 + $0x98] sm:$0xff] %v3464_v24 }
 0x24e   : > { %v3436_v47 = vpop.f32.mrf.mxu2 }
 0x24f   : > { %v3437_v48 = vadd.f32 %v3436_v47, %v3423_v46  ;;  %v3450_v50 = vpop.f32.mrf.mxu3 }
 0x251   : > { %v3451_v51 = vadd.f32 %v3450_v50, %v3437_v48  ;;  %3504 = sbr.rel (%p14222_p11) target bundleno = 1989 (0x7c5), region = 87 }
 0x253   : > { %v3476_v52 = vadd.f32 %v3451_v51, %v476_v49 }
 0x255   : > { %3500 = vst [vmem:[#allocation2 + $0x8] sm:$0xff] %v3476_v52 }
 0x256   : > { %v14421_v53 = vld [vmem:[%s28146_s3 + $0x188] sm:$0xf]  ;;  %v19024_v54 = vld [vmem:[%s28146_s3 + $0x1a0] sm:$0xf0]  ;;  %v14393_v0 = vld [vmem:[%s28146_s3 + $0x150] sm:$0xf] }
 0x257   : > { %v14645_v55 = vld [vmem:[%s28146_s3 + $0x348] sm:$0xf]  ;;  %v14422_v56 = vor.u32 %v19024_v54, %v14421_v53  ;;  %v19080_v57 = vld [vmem:[%s28146_s3 + $0x360] sm:$0xf0]  ;;  %v19017_v2 = vld [vmem:[%s28146_s3 + $0x168] sm:$0xf0] }
 0x258   : > { %v14869_v58 = vld [vmem:[%s28146_s3 + $0x508] sm:$0xf]  ;;  %v19136_v59 = vld [vmem:[%s28146_s3 + $0x520] sm:$0xf0]  ;;  %v14646_v60 = vor.u32 %v19080_v57, %v14645_v55  ;;  %v14617_v3 = vld [vmem:[%s28146_s3 + $0x310] sm:$0xf]  ;;  %v14394_v5 = vor.u32 %v19017_v2, %v14393_v0 }
 0x259   : > { %v14870_v61 = vor.u32 %v19136_v59, %v14869_v58  ;;  %v15093_v62 = vld [vmem:[%s28146_s3 + $0x6c8] sm:$0xf]  ;;  %v19192_v63 = vld [vmem:[%s28146_s3 + $0x6e0] sm:$0xf0]  ;;  %7857 = vmatpush.bf16.msra.mxu0 %v14422_v56  ;;  %v19073_v4 = vld [vmem:[%s28146_s3 + $0x328] sm:$0xf0] }
 0x25a   : > { %v15094_v1 = vor.u32 %v19192_v63, %v15093_v62  ;;  %7871 = vmatpush.bf16.msra.mxu1 %v14646_v60  ;;  %v14618_v6 = vor.u32 %v19073_v4, %v14617_v3  ;;  %v14841_v7 = vld [vmem:[%s28146_s3 + $0x4d0] sm:$0xf]  ;;  %v19129_v8 = vld [vmem:[%s28146_s3 + $0x4e8] sm:$0xf0]  ;;  %v14365_v12 = vld [vmem:[%s28146_s3 + $0x118] sm:$0xf] }
 0x25b   : > { %7885 = vmatpush.bf16.msra.mxu2 %v14870_v61  ;;  %v15065_v9 = vld [vmem:[%s28146_s3 + $0x690] sm:$0xf]  ;;  %v14842_v10 = vor.u32 %v19129_v8, %v14841_v7  ;;  %v19185_v11 = vld [vmem:[%s28146_s3 + $0x6a8] sm:$0xf0]  ;;  %v19010_v13 = vld [vmem:[%s28146_s3 + $0x130] sm:$0xf0] }
 0x25c   : > { %7899 = vmatpush.bf16.msra.mxu3 %v15094_v1  ;;  %v15066_v14 = vor.u32 %v19185_v11, %v15065_v9  ;;  %v14589_v15 = vld [vmem:[%s28146_s3 + $0x2d8] sm:$0xf]  ;;  %v19066_v16 = vld [vmem:[%s28146_s3 + $0x2f0] sm:$0xf0]  ;;  %v14366_v19 = vor.u32 %v19010_v13, %v14365_v12  ;;  %v14337_v26 = vld [vmem:[%s28146_s3 + $0xe0] sm:$0xf] }
 0x25d   : > { %v14813_v18 = vld [vmem:[%s28146_s3 + $0x498] sm:$0xf]  ;;  %7858 = vmatpush.bf16.msra.mxu0 %v14394_v5  ;;  %v19122_v20 = vld [vmem:[%s28146_s3 + $0x4b0] sm:$0xf0]  ;;  %v14590_v23 = vor.u32 %v19066_v16, %v14589_v15  ;;  %v19003_v27 = vld [vmem:[%s28146_s3 + $0xf8] sm:$0xf0] }
 0x25e   : > { %v15037_v21 = vld [vmem:[%s28146_s3 + $0x658] sm:$0xf]  ;;  %v19178_v22 = vld [vmem:[%s28146_s3 + $0x670] sm:$0xf0]  ;;  %7872 = vmatpush.bf16.msra.mxu1 %v14618_v6  ;;  %v14814_v25 = vor.u32 %v19122_v20, %v14813_v18  ;;  %v14561_v28 = vld [vmem:[%s28146_s3 + $0x2a0] sm:$0xf]  ;;  %v14338_v36 = vor.u32 %v19003_v27, %v14337_v26 }
 0x25f   : > { %7886 = vmatpush.bf16.msra.mxu2 %v14842_v10  ;;  %v15038_v29 = vor.u32 %v19178_v22, %v15037_v21  ;;  %v19059_v30 = vld [vmem:[%s28146_s3 + $0x2b8] sm:$0xf0]  ;;  %v14785_v31 = vld [vmem:[%s28146_s3 + $0x460] sm:$0xf]  ;;  %v14309_v39 = vld [vmem:[%s28146_s3 + $0xa8] sm:$0xf] }
 0x260   : > { %7900 = vmatpush.bf16.msra.mxu3 %v15066_v14  ;;  %v19115_v32 = vld [vmem:[%s28146_s3 + $0x478] sm:$0xf0]  ;;  %v15009_v33 = vld [vmem:[%s28146_s3 + $0x620] sm:$0xf]  ;;  %v14562_v37 = vor.u32 %v19059_v30, %v14561_v28  ;;  %v18996_v40 = vld [vmem:[%s28146_s3 + $0xc0] sm:$0xf0] }
 0x261   : > { %v19171_v34 = vld [vmem:[%s28146_s3 + $0x638] sm:$0xf0]  ;;  %7859 = vmatpush.bf16.msra.mxu0 %v14366_v19  ;;  %v14786_v38 = vor.u32 %v19115_v32, %v14785_v31  ;;  %v14533_v41 = vld [vmem:[%s28146_s3 + $0x268] sm:$0xf]  ;;  %v19052_v43 = vld [vmem:[%s28146_s3 + $0x280] sm:$0xf0]  ;;  %v14310_v24 = vor.u32 %v18996_v40, %v14309_v39 }
 0x262   : > { %7873 = vmatpush.bf16.msra.mxu1 %v14590_v23  ;;  %v15010_v35 = vor.u32 %v19171_v34, %v15009_v33  ;;  %v14757_v42 = vld [vmem:[%s28146_s3 + $0x428] sm:$0xf]  ;;  %v19108_v44 = vld [vmem:[%s28146_s3 + $0x440] sm:$0xf0]  ;;  %v14534_v46 = vor.u32 %v19052_v43, %v14533_v41  ;;  %v14281_v48 = vld [vmem:[%s28146_s3 + $0x70] sm:$0xf] }
 0x263   : > { %7887 = vmatpush.bf16.msra.mxu2 %v14814_v25  ;;  %v14981_v17 = vld [vmem:[%s28146_s3 + $0x5e8] sm:$0xf]  ;;  %v19164_v45 = vld [vmem:[%s28146_s3 + $0x600] sm:$0xf0]  ;;  %v14758_v47 = vor.u32 %v19108_v44, %v14757_v42  ;;  %v18989_v49 = vld [vmem:[%s28146_s3 + $0x88] sm:$0xf0] }
 0x264   : > { %7901 = vmatpush.bf16.msra.mxu3 %v15038_v29  ;;  %v14505_v50 = vld [vmem:[%s28146_s3 + $0x230] sm:$0xf]  ;;  %v14982_v51 = vor.u32 %v19164_v45, %v14981_v17  ;;  %v19045_v52 = vld [vmem:[%s28146_s3 + $0x248] sm:$0xf0]  ;;  %v14282_v57 = vor.u32 %v18989_v49, %v14281_v48  ;;  %v14253_v60 = vld [vmem:[%s28146_s3 + $0x38] sm:$0xf] }
 0x265   : > { %7860 = vmatpush.bf16.msra.mxu0 %v14338_v36  ;;  %v14729_v53 = vld [vmem:[%s28146_s3 + $0x3f0] sm:$0xf]  ;;  %v19101_v54 = vld [vmem:[%s28146_s3 + $0x408] sm:$0xf0]  ;;  %v14506_v58 = vor.u32 %v19045_v52, %v14505_v50  ;;  %v18982_v61 = vld [vmem:[%s28146_s3 + $0x50] sm:$0xf0] }
 0x266   : > { %7874 = vmatpush.bf16.msra.mxu1 %v14562_v37  ;;  %v14953_v55 = vld [vmem:[%s28146_s3 + $0x5b0] sm:$0xf]  ;;  %v19157_v56 = vld [vmem:[%s28146_s3 + $0x5c8] sm:$0xf0]  ;;  %v14730_v59 = vor.u32 %v19101_v54, %v14729_v53  ;;  %v14477_v62 = vld [vmem:[%s28146_s3 + $0x1f8] sm:$0xf]  ;;  %v14254_v5 = vor.u32 %v18982_v61, %v14253_v60 }
 0x267   : > { %7888 = vmatpush.bf16.msra.mxu2 %v14786_v38  ;;  %v14954_v63 = vor.u32 %v19157_v56, %v14953_v55  ;;  %v19038_v0 = vld [vmem:[%s28146_s3 + $0x210] sm:$0xf0]  ;;  %v14701_v1 = vld [vmem:[%s28146_s3 + $0x3b8] sm:$0xf]  ;;  %v14225_v6 = vld [vmem:[%s28146_s3] sm:$0xf] }
 0x268   : > { %7902 = vmatpush.bf16.msra.mxu3 %v15010_v35  ;;  %v19094_v2 = vld [vmem:[%s28146_s3 + $0x3d0] sm:$0xf0]  ;;  %v14925_v3 = vld [vmem:[%s28146_s3 + $0x578] sm:$0xf]  ;;  %v18975_v7 = vld [vmem:[%s28146_s3 + $0x18] sm:$0xf0]  ;;  %v14478_v9 = vor.u32 %v19038_v0, %v14477_v62 }
 0x269   : > { %7861 = vmatpush.bf16.msra.mxu0 %v14310_v24  ;;  %v19150_v4 = vld [vmem:[%s28146_s3 + $0x590] sm:$0xf0]  ;;  %v14449_v8 = vld [vmem:[%s28146_s3 + $0x1c0] sm:$0xf]  ;;  %v14702_v10 = vor.u32 %v19094_v2, %v14701_v1  ;;  %v19031_v11 = vld [vmem:[%s28146_s3 + $0x1d8] sm:$0xf0]  ;;  %v14226_v22 = vor.u32 %v18975_v7, %v14225_v6 }
 0x26a   : > { %7875 = vmatpush.bf16.msra.mxu1 %v14534_v46  ;;  %v14673_v12 = vld [vmem:[%s28146_s3 + $0x380] sm:$0xf]  ;;  %v19087_v13 = vld [vmem:[%s28146_s3 + $0x398] sm:$0xf0]  ;;  %v14926_v14 = vor.u32 %v19150_v4, %v14925_v3  ;;  %v15317_v18 = vld [vmem:[%s28146_s3 + $0x888] sm:$0xf]  ;;  %v14450_v27 = vor.u32 %v19031_v11, %v14449_v8 }
 0x26b   : > { %7889 = vmatpush.bf16.msra.mxu2 %v14758_v47  ;;  %v14897_v15 = vld [vmem:[%s28146_s3 + $0x540] sm:$0xf]  ;;  %v19143_v16 = vld [vmem:[%s28146_s3 + $0x558] sm:$0xf0]  ;;  %v19248_v19 = vld [vmem:[%s28146_s3 + $0x8a0] sm:$0xf0]  ;;  %v14674_v28 = vor.u32 %v19087_v13, %v14673_v12 }
 0x26c   : > { %7903 = vmatpush.bf16.msra.mxu3 %v14982_v51  ;;  %v15541_v20 = vld [vmem:[%s28146_s3 + $0xa48] sm:$0xf]  ;;  %v19304_v21 = vld [vmem:[%s28146_s3 + $0xa60] sm:$0xf0]  ;;  %v15289_v30 = vld [vmem:[%s28146_s3 + $0x850] sm:$0xf]  ;;  %v14898_v32 = vor.u32 %v19143_v16, %v14897_v15  ;;  %v15318_v33 = vor.u32 %v19248_v19, %v15317_v18 }
 0x26d   : > { %7862 = vmatpush.bf16.msra.mxu0 %v14282_v57  ;;  %v15765_v23 = vld [vmem:[%s28146_s3 + $0xc08] sm:$0xf]  ;;  %v19360_v25 = vld [vmem:[%s28146_s3 + $0xc20] sm:$0xf0]  ;;  %v19241_v31 = vld [vmem:[%s28146_s3 + $0x868] sm:$0xf0]  ;;  %v15542_v38 = vor.u32 %v19304_v21, %v15541_v20 }
 0x26e   : > { %7876 = vmatpush.bf16.msra.mxu1 %v14506_v58  ;;  %v15989_v26 = vld [vmem:[%s28146_s3 + $0xdc8] sm:$0xf]  ;;  %v19416_v29 = vld [vmem:[%s28146_s3 + $0xde0] sm:$0xf0]  ;;  %v15513_v34 = vld [vmem:[%s28146_s3 + $0xa10] sm:$0xf]  ;;  %v15766_v39 = vor.u32 %v19360_v25, %v15765_v23  ;;  %v15290_v47 = vor.u32 %v19241_v31, %v15289_v30 }
 0x26f   : > { %7890 = vmatpush.bf16.msra.mxu2 %v14730_v59  ;;  %v19297_v36 = vld [vmem:[%s28146_s3 + $0xa28] sm:$0xf0]  ;;  %v15737_v37 = vld [vmem:[%s28146_s3 + $0xbd0] sm:$0xf]  ;;  %v15990_v43 = vor.u32 %v19416_v29, %v15989_v26  ;;  %v21329_v42 = vld [vmem:[%s28146_s3 + $0x818] sm:$0xf] }
 0x270   : > { %7904 = vmatpush.bf16.msra.mxu3 %v14954_v63  ;;  %v19353_v40 = vld [vmem:[%s28146_s3 + $0xbe8] sm:$0xf0]  ;;  %v15961_v41 = vld [vmem:[%s28146_s3 + $0xd90] sm:$0xf]  ;;  %v21334_v44 = vld [vmem:[%s28146_s3 + $0x830] sm:$0xf0]  ;;  %v15514_v53 = vor.u32 %v19297_v36, %v15513_v34 }
 0x271   : > { %7863 = vmatpush.bf16.msra.mxu0 %v14254_v5  ;;  %v19409_v35 = vld [vmem:[%s28146_s3 + $0xda8] sm:$0xf0]  ;;  %v21339_v17 = vld [vmem:[%s28146_s3 + $0x9d8] sm:$0xf]  ;;  %v3505_v45 = vld [vmem:[#allocation2 + $0xb0] sm:$0xff]  ;;  %v15738_v54 = vor.u32 %v19353_v40, %v15737_v37  ;;  %v15262_v0 = vor.u32 %v21334_v44, %v21329_v42  ;;  %vm11358_vm0 = vcmask 523264  }
 0x272   : > { %7877 = vmatpush.bf16.msra.mxu1 %v14478_v9  ;;  %v3517_v24 = vld [vmem:[#allocation2 + $0x38] sm:$0xff]  ;;  %v21344_v46 = vld [vmem:[%s28145_s2] sm:$0xff]  ;;  %v19290_v48 = vld [vmem:[%s28146_s3 + $0x9f0] sm:$0xf0]  ;;  %v15962_v55 = vor.u32 %v19409_v35, %v15961_v41 }
 0x273   : > { %7891 = vmatpush.bf16.msra.mxu2 %v14702_v10  ;;  %v3533_v49 = vperm.slane %v21344_v46, 0  ;;  %v3507_v50 = vld [vmem:[#allocation2 + $0x10] sm:$0xff]  ;;  %v3535_v52 = vperm.slane %v21344_v46, 2  ;;  %v15709_v56 = vld [vmem:[%s28146_s3 + $0xb98] sm:$0xf]  ;;  %v15486_v1 = vor.u32 %v19290_v48, %v21339_v17  ;;  %v3506_v4 = vld [vmem:[#allocation2] sm:$0xff] }
 0x274   : > { %7905 = vmatpush.bf16.msra.mxu3 %v14926_v14  ;;  %v3519_v51 = vld [vmem:[#allocation2 + $0x70] sm:$0xff]  ;;  %v15933_v58 = vld [vmem:[%s28146_s3 + $0xd58] sm:$0xf]  ;;  %v15233_v2 = vld [vmem:[%s28146_s3 + $0x7e0] sm:$0xf]  ;;  %v3534_v6 = vperm.slane %v21344_v46, 1 }
 0x275   : > { %7864 = vmatpush.bf16.msra.mxu0 %v14226_v22  ;;  %v19346_v57 = vld [vmem:[%s28146_s3 + $0xbb0] sm:$0xf0]  ;;  %v3557_v60 = vadd.f32 %v3533_v49, %v3505_v45  ;;  %v3569_v61 = vadd.f32 %v3533_v49, %v3517_v24  ;;  %v3559_v62 = vadd.f32 %v3535_v52, %v3507_v50  ;;  %v3571_v63 = vadd.f32 %v3535_v52, %v3519_v51  ;;  %v19227_v3 = vld [vmem:[%s28146_s3 + $0x7f8] sm:$0xf0]  ;;  %v3508_v11 = vld [vmem:[#allocation2 + $0x48] sm:$0xff] }
 0x276   : > { %7878 = vmatpush.bf16.msra.mxu1 %v14450_v27  ;;  %v19402_v59 = vld [vmem:[%s28146_s3 + $0xd70] sm:$0xf0]  ;;  %v3520_v12 = vld [vmem:[#allocation2 + $0xa0] sm:$0xff]  ;;  %v15710_v13 = vor.u32 %v19346_v57, %v15709_v56  ;;  %v19283_v15 = vld [vmem:[%s28146_s3 + $0x9b8] sm:$0xf0]  ;;  %v3558_v16 = vadd.f32 %v3534_v6, %v3506_v4  ;;  %v3536_v19 = vperm.slane %v21344_v46, 3 }
 0x277   : > { %7892 = vmatpush.bf16.msra.mxu2 %v14674_v28  ;;  %v3518_v5 = vld [vmem:[#allocation2 + $0x50] sm:$0xff]  ;;  %v3581_v7 = vmax.f32 %v3557_v60, 0.0  ;;  %v3593_v8 = vmax.f32 %v3569_v61, 0.0  ;;  %v3583_v9 = vmax.f32 %v3559_v62, 0.0  ;;  %v3595_v10 = vmax.f32 %v3571_v63, 0.0 }
 0x278   : > { %7906 = vmatpush.bf16.msra.mxu3 %v14898_v32  ;;  %v15457_v14 = vld [vmem:[%s28146_s3 + $0x9a0] sm:$0xf]  ;;  %v3570_v18 = vadd.f32 %v3534_v6, %v3518_v5  ;;  %v15934_v20 = vor.u32 %v19402_v59, %v15933_v58  ;;  %v19339_v22 = vld [vmem:[%s28146_s3 + $0xb78] sm:$0xf0]  ;;  %v3582_v28 = vmax.f32 %v3558_v16, 0.0  ;;  %v3560_v30 = vadd.f32 %v3536_v19, %v3508_v11 }
 0x279   : > { %7913 = vmatpush.bf16.msrb.mxu0 %v15318_v33  ;;  %v15681_v21 = vld [vmem:[%s28146_s3 + $0xb60] sm:$0xf]  ;;  %v21386_v23 = vpack.c.bf16 %v3593_v8, %v3581_v7  ;;  %v21388_v25 = vpack.c.bf16 %v3595_v10, %v3583_v9  ;;  %v19395_v27 = vld [vmem:[%s28146_s3 + $0xd38] sm:$0xf0]  ;;  %v3572_v31 = vadd.f32 %v3536_v19, %v3520_v12  ;;  %v15234_v32 = vor.u32 %v19227_v3, %v15233_v2  ;;  %v15205_v34 = vld [vmem:[%s28146_s3 + $0x7a8] sm:$0xf] }
 0x27a   : > { %7927 = vmatpush.bf16.msrb.mxu1 %v15542_v38  ;;  %v15905_v26 = vld [vmem:[%s28146_s3 + $0xd20] sm:$0xf]  ;;  %v3594_v29 = vmax.f32 %v3570_v18, 0.0  ;;  %v15458_v33 = vor.u32 %v19283_v15, %v15457_v14  ;;  %v15682_v36 = vor.u32 %v19339_v22, %v15681_v21  ;;  %v19220_v37 = vld [vmem:[%s28146_s3 + $0x7c0] sm:$0xf0]  ;;  %v3584_v40 = vmax.f32 %v3560_v30, 0.0 }
 0x27b   : > { %7941 = vmatpush.bf16.msrb.mxu2 %v15766_v39  ;;  %v15429_v38 = vld [vmem:[%s28146_s3 + $0x968] sm:$0xf]  ;;  %v3596_v41 = vmax.f32 %v3572_v31, 0.0  ;;  %v15906_v35 = vor.u32 %v19395_v27, %v15905_v26  ;;  %7865 = vmatmul.bf16.vlgmr.msra.gmra.mxu0 %v21386_v23  ;;  %v19332_v44 = vld [vmem:[%s28146_s3 + $0xb40] sm:$0xf0]  ;;  %v3537_v3 = vperm.slane %v21344_v46, 4 }
 0x27c   : > { %7955 = vmatpush.bf16.msrb.mxu3 %v15990_v43  ;;  %7893 = vmatmul.bf16.vlgmr.msra.gmra.mxu2 %v21388_v25  ;;  %v21406_v39 = vpack.c.bf16 %v3594_v29, %v3582_v28  ;;  %v19276_v43 = vld [vmem:[%s28146_s3 + $0x980] sm:$0xf0]  ;;  %v15653_v42 = vld [vmem:[%s28146_s3 + $0xb28] sm:$0xf]  ;;  %v15177_v48 = vld [vmem:[%s28146_s3 + $0x770] sm:$0xf] }
 0x27d   : > { %7914 = vmatpush.bf16.msrb.mxu0 %v15290_v47  ;;  %v15877_v17 = vld [vmem:[%s28146_s3 + $0xce8] sm:$0xf]  ;;  %v19388_v45 = vld [vmem:[%s28146_s3 + $0xd00] sm:$0xf0]  ;;  %v21425_v24 = vpack.c.bf16 %v3596_v41, %v3584_v40  ;;  %v15206_v47 = vor.u32 %v19220_v37, %v15205_v34  ;;  %v19213_v49 = vld [vmem:[%s28146_s3 + $0x788] sm:$0xf0]  ;;  %v15430_v51 = vor.u32 %v19276_v43, %v15429_v38  ;;  %v15654_v52 = vor.u32 %v19332_v44, %v15653_v42 }
 0x27e   : > { %7928 = vmatpush.bf16.msrb.mxu1 %v15514_v53  ;;  %v15401_v50 = vld [vmem:[%s28146_s3 + $0x930] sm:$0xf]  ;;  %v19269_v53 = vld [vmem:[%s28146_s3 + $0x948] sm:$0xf0]  ;;  %v15878_v56 = vor.u32 %v19388_v45, %v15877_v17  ;;  %v15149_v59 = vld [vmem:[%s28146_s3 + $0x738] sm:$0xf]  ;;  %v15178_v63 = vor.u32 %v19213_v49, %v15177_v48 }
 0x27f   : > { %7942 = vmatpush.bf16.msrb.mxu2 %v15738_v54  ;;  %7879 = vmatmul.bf16.vlgmr.msra.gmra.mxu1 %v21406_v39  ;;  %v15625_v54 = vld [vmem:[%s28146_s3 + $0xaf0] sm:$0xf]  ;;  %v19381_v58 = vld [vmem:[%s28146_s3 + $0xcc8] sm:$0xf0]  ;;  %v19206_v60 = vld [vmem:[%s28146_s3 + $0x750] sm:$0xf0]  ;;  %v15402_v4 = vor.u32 %v19269_v53, %v15401_v50 }
 0x280   : > { %7956 = vmatpush.bf16.msrb.mxu3 %v15962_v55  ;;  %v19325_v55 = vld [vmem:[%s28146_s3 + $0xb08] sm:$0xf0]  ;;  %v15849_v57 = vld [vmem:[%s28146_s3 + $0xcb0] sm:$0xf]  ;;  %v21461_v61 = vld [vmem:[%s28146_s3 + $0x8f8] sm:$0xf]  ;;  %v15150_v18 = vor.u32 %v19206_v60, %v15149_v59 }
 0x281   : > { %7915 = vmatpush.bf16.msrb.mxu0 %v15262_v0  ;;  %7907 = vmatmul.bf16.vlgmr.msra.gmra.mxu3 %v21425_v24  ;;  %v19262_v62 = vld [vmem:[%s28146_s3 + $0x910] sm:$0xf0]  ;;  %v15597_v0 = vld [vmem:[%s28146_s3 + $0xab8] sm:$0xf]  ;;  %v3509_v2 = vld [vmem:[#allocation2 + $0x60] sm:$0xff]  ;;  %v15626_v5 = vor.u32 %v19325_v55, %v15625_v54  ;;  %v3539_v10 = vperm.slane %v21344_v46, 6  ;;  %v15850_v12 = vor.u32 %v19381_v58, %v15849_v57 }
 0x282   : > { %7929 = vmatpush.bf16.msrb.mxu1 %v15486_v1  ;;  %v19318_v1 = vld [vmem:[%s28146_s3 + $0xad0] sm:$0xf0]  ;;  %v15821_v6 = vld [vmem:[%s28146_s3 + $0xc78] sm:$0xf]  ;;  %v3521_v8 = vld [vmem:[#allocation2 + $0xa8] sm:$0xff]  ;;  %v3538_v11 = vperm.slane %v21344_v46, 5  ;;  %v15374_v19 = vor.u32 %v19262_v62, %v21461_v61  ;;  %v3561_v29 = vadd.f32 %v3537_v3, %v3509_v2 }
 0x283   : > { %7943 = vmatpush.bf16.msrb.mxu2 %v15710_v13  ;;  %v19374_v7 = vld [vmem:[%s28146_s3 + $0xc90] sm:$0xf0]  ;;  %v3511_v9 = vld [vmem:[#allocation2 + $0x40] sm:$0xff]  ;;  %v3510_v14 = vld [vmem:[#allocation2 + $0x28] sm:$0xff]  ;;  %v3540_v16 = vperm.slane %v21344_v46, 7  ;;  %v15598_v26 = vor.u32 %v19318_v1, %v15597_v0  ;;  %v3573_v30 = vadd.f32 %v3537_v3, %v3521_v8 }
 0x284   : > { %7957 = vmatpush.bf16.msrb.mxu3 %v15934_v20  ;;  %v3523_v13 = vld [vmem:[#allocation2 + $0x30] sm:$0xff]  ;;  %v3522_v15 = vld [vmem:[#allocation2 + $0x68] sm:$0xff]  ;;  %v15121_v20 = vld [vmem:[%s28146_s3 + $0x700] sm:$0xf]  ;;  %v3563_v31 = vadd.f32 %v3539_v10, %v3511_v9  ;;  %v3562_v37 = vadd.f32 %v3538_v11, %v3510_v14  ;;  %v15822_v40 = vor.u32 %v19374_v7, %v15821_v6  ;;  %v3585_v53 = vmax.f32 %v3561_v29, 0.0 }
 0x285   : > { %7916 = vmatpush.bf16.msrb.mxu0 %v15234_v32  ;;  %v3512_v21 = vld [vmem:[#allocation2 + $0x78] sm:$0xff]  ;;  %v15345_v28 = vld [vmem:[%s28146_s3 + $0x8c0] sm:$0xf]  ;;  %v3574_v38 = vadd.f32 %v3538_v11, %v3522_v15  ;;  %v19472_v43 = vld [vmem:[%s28146_s3 + $0xfa0] sm:$0xf0]  ;;  %v3597_v54 = vmax.f32 %v3573_v30, 0.0 }
 0x286   : > { %7930 = vmatpush.bf16.msrb.mxu1 %v15458_v33  ;;  %v3524_v22 = vld [vmem:[#allocation2 + $0x58] sm:$0xff]  ;;  %v15569_v32 = vld [vmem:[%s28146_s3 + $0xa80] sm:$0xf]  ;;  %v3564_v42 = vadd.f32 %v3540_v16, %v3512_v21  ;;  %v16437_v45 = vld [vmem:[%s28146_s3 + $0x1148] sm:$0xf]  ;;  %v3586_v58 = vmax.f32 %v3562_v37, 0.0 }
 0x287   : > { %7944 = vmatpush.bf16.msrb.mxu2 %v15682_v36  ;;  %v19199_v27 = vld [vmem:[%s28146_s3 + $0x718] sm:$0xf0]  ;;  %v15793_v34 = vld [vmem:[%s28146_s3 + $0xc40] sm:$0xf]  ;;  %v3575_v36 = vadd.f32 %v3539_v10, %v3523_v13  ;;  %v3576_v44 = vadd.f32 %v3540_v16, %v3524_v22  ;;  %v16661_v48 = vld [vmem:[%s28146_s3 + $0x1308] sm:$0xf]  ;;  %v21540_v6 = vpack.c.bf16 %v3597_v54, %v3585_v53 }
 0x288   : > { %7958 = vmatpush.bf16.msrb.mxu3 %v15906_v35  ;;  %v19255_v46 = vld [vmem:[%s28146_s3 + $0x8d8] sm:$0xf0]  ;;  %v16213_v35 = vld [vmem:[%s28146_s3 + $0xf88] sm:$0xf]  ;;  %v15122_v17 = vor.u32 %v19199_v27, %v15121_v20  ;;  %v19640_v55 = vld [vmem:[%s28146_s3 + $0x14e0] sm:$0xf0] }
 0x289   : > { %7917 = vmatpush.bf16.msrb.mxu0 %v15206_v47  ;;  %v19311_v33 = vld [vmem:[%s28146_s3 + $0xa98] sm:$0xf0]  ;;  %v19528_v47 = vld [vmem:[%s28146_s3 + $0x1160] sm:$0xf0]  ;;  %v15346_v49 = vor.u32 %v19255_v46, %v15345_v28  ;;  %v3599_v57 = vmax.f32 %v3575_v36, 0.0  ;;  %v3598_v59 = vmax.f32 %v3574_v38, 0.0  ;;  %v16214_v61 = vor.u32 %v19472_v43, %v16213_v35 }
 0x28a   : > { %7931 = vmatpush.bf16.msrb.mxu1 %v15430_v51  ;;  %v19367_v41 = vld [vmem:[%s28146_s3 + $0xc58] sm:$0xf0]  ;;  %v15570_v50 = vor.u32 %v19311_v33, %v15569_v32  ;;  %v19584_v51 = vld [vmem:[%s28146_s3 + $0x1320] sm:$0xf0]  ;;  %v3588_v62 = vmax.f32 %v3564_v42, 0.0  ;;  %v16438_v0 = vor.u32 %v19528_v47, %v16437_v45 }
 0x28b   : > { %7945 = vmatpush.bf16.msrb.mxu2 %v15654_v52  ;;  %v16885_v52 = vld [vmem:[%s28146_s3 + $0x14c8] sm:$0xf]  ;;  %v15794_v60 = vor.u32 %v19367_v41, %v15793_v34  ;;  %v16662_v1 = vor.u32 %v19584_v51, %v16661_v48  ;;  %v16185_v2 = vld [vmem:[%s28146_s3 + $0xf50] sm:$0xf]  ;;  %v19465_v3 = vld [vmem:[%s28146_s3 + $0xf68] sm:$0xf0]  ;;  %v21553_v11 = vpack.c.bf16 %v3598_v59, %v3586_v58 }
 0x28c   : > { %7959 = vmatpush.bf16.msrb.mxu3 %v15878_v56  ;;  %v3587_v56 = vmax.f32 %v3563_v31, 0.0  ;;  %v19521_v7 = vld [vmem:[%s28146_s3 + $0x1128] sm:$0xf0]  ;;  %v16633_v8 = vld [vmem:[%s28146_s3 + $0x12d0] sm:$0xf]  ;;  %v16186_v15 = vor.u32 %v19465_v3, %v16185_v2 }
 0x28d   : > { %7918 = vmatpush.bf16.msrb.mxu0 %v15178_v63  ;;  %v3600_v63 = vmax.f32 %v3576_v44, 0.0  ;;  %v19577_v9 = vld [vmem:[%s28146_s3 + $0x12e8] sm:$0xf0]  ;;  %v19458_v20 = vld [vmem:[%s28146_s3 + $0xf30] sm:$0xf0] }
 0x28e   : > { %7932 = vmatpush.bf16.msrb.mxu1 %v15402_v4  ;;  %v16409_v4 = vld [vmem:[%s28146_s3 + $0x1110] sm:$0xf]  ;;  %v21551_v10 = vpack.c.bf16 %v3599_v57, %v3587_v56  ;;  %v19633_v13 = vld [vmem:[%s28146_s3 + $0x14a8] sm:$0xf0]  ;;  %v16381_v21 = vld [vmem:[%s28146_s3 + $0x10d8] sm:$0xf] }
 0x28f   : > { %7946 = vmatpush.bf16.msrb.mxu2 %v15626_v5  ;;  %v16886_v5 = vor.u32 %v19640_v55, %v16885_v52  ;;  %v21561_v14 = vpack.c.bf16 %v3600_v63, %v3588_v62  ;;  %v16410_v16 = vor.u32 %v19521_v7, %v16409_v4  ;;  %v16605_v27 = vld [vmem:[%s28146_s3 + $0x1298] sm:$0xf]  ;;  %v19570_v28 = vld [vmem:[%s28146_s3 + $0x12b0] sm:$0xf0]  ;;  %v16129_v33 = vld [vmem:[%s28146_s3 + $0xee0] sm:$0xf] }
 0x290   : > { %7960 = vmatpush.bf16.msrb.mxu3 %v15850_v12  ;;  %v16857_v12 = vld [vmem:[%s28146_s3 + $0x1490] sm:$0xf]  ;;  %v16829_v46 = vld [vmem:[%s28146_s3 + $0x1458] sm:$0xf]  ;;  %v19626_v29 = vld [vmem:[%s28146_s3 + $0x1470] sm:$0xf0]  ;;  %v16606_v32 = vor.u32 %v19570_v28, %v16605_v27 }
 0x291   : > { %7919 = vmatpush.bf16.msrb.mxu0 %v15150_v18  ;;  %v16634_v18 = vor.u32 %v19577_v9, %v16633_v8  ;;  %v16858_v22 = vor.u32 %v19633_v13, %v16857_v12  ;;  %v19451_v34 = vld [vmem:[%s28146_s3 + $0xef8] sm:$0xf0]  ;;  %v16353_v36 = vld [vmem:[%s28146_s3 + $0x10a0] sm:$0xf]  ;;  %v16830_v37 = vor.u32 %v19626_v29, %v16829_v46  ;;  %v16101_v45 = vld [vmem:[%s28146_s3 + $0xea8] sm:$0xf] }
 0x292   : > { %7933 = vmatpush.bf16.msrb.mxu1 %v15374_v19  ;;  %v16157_v19 = vld [vmem:[%s28146_s3 + $0xf18] sm:$0xf]  ;;  %v19507_v38 = vld [vmem:[%s28146_s3 + $0x10b8] sm:$0xf0]  ;;  %v16801_v35 = vld [vmem:[%s28146_s3 + $0x1420] sm:$0xf]  ;;  %v16130_v42 = vor.u32 %v19451_v34, %v16129_v33 }
 0x293   : > { %7947 = vmatpush.bf16.msrb.mxu2 %v15598_v26  ;;  %v19514_v26 = vld [vmem:[%s28146_s3 + $0x10f0] sm:$0xf0]  ;;  %v16158_v30 = vor.u32 %v19458_v20, %v16157_v19  ;;  %v19563_v41 = vld [vmem:[%s28146_s3 + $0x1278] sm:$0xf0]  ;;  %v16354_v44 = vor.u32 %v19507_v38, %v16353_v36  ;;  %v19444_v47 = vld [vmem:[%s28146_s3 + $0xec0] sm:$0xf0] }
 0x294   : > { %7961 = vmatpush.bf16.msrb.mxu3 %v15822_v40  ;;  %v16382_v31 = vor.u32 %v19514_v26, %v16381_v21  ;;  %v16577_v40 = vld [vmem:[%s28146_s3 + $0x1260] sm:$0xf]  ;;  %v19619_v43 = vld [vmem:[%s28146_s3 + $0x1438] sm:$0xf0]  ;;  %v16325_v48 = vld [vmem:[%s28146_s3 + $0x1068] sm:$0xf]  ;;  %v16102_v56 = vor.u32 %v19444_v47, %v16101_v45 }
 0x295   : > { %7920 = vmatpush.bf16.msrb.mxu0 %v15122_v17  ;;  %v16578_v17 = vor.u32 %v19563_v41, %v16577_v40  ;;  %v16549_v51 = vld [vmem:[%s28146_s3 + $0x1228] sm:$0xf]  ;;  %v19556_v52 = vld [vmem:[%s28146_s3 + $0x1240] sm:$0xf0]  ;;  %v16073_v55 = vld [vmem:[%s28146_s3 + $0xe70] sm:$0xf] }
 0x296   : > { %7934 = vmatpush.bf16.msrb.mxu1 %v15346_v49  ;;  %v16802_v49 = vor.u32 %v19619_v43, %v16801_v35  ;;  %v16773_v53 = vld [vmem:[%s28146_s3 + $0x13e8] sm:$0xf]  ;;  %v19612_v54 = vld [vmem:[%s28146_s3 + $0x1400] sm:$0xf0]  ;;  %v19437_v57 = vld [vmem:[%s28146_s3 + $0xe88] sm:$0xf0] }
 0x297   : > { %7948 = vmatpush.bf16.msrb.mxu2 %v15570_v50  ;;  %v19500_v50 = vld [vmem:[%s28146_s3 + $0x1080] sm:$0xf0]  ;;  %v16297_v58 = vld [vmem:[%s28146_s3 + $0x1030] sm:$0xf]  ;;  %v19493_v59 = vld [vmem:[%s28146_s3 + $0x1048] sm:$0xf0]  ;;  %v16074_v9 = vor.u32 %v19437_v57, %v16073_v55 }
 0x298   : > { %7962 = vmatpush.bf16.msrb.mxu3 %v15794_v60  ;;  %7921 = vmatmul.bf16.vlgmr.msrb.gmra.mxu0 %v21540_v6  ;;  %v16326_v60 = vor.u32 %v19500_v50, %v16325_v48  ;;  %v16521_v62 = vld [vmem:[%s28146_s3 + $0x11f0] sm:$0xf]  ;;  %v19549_v63 = vld [vmem:[%s28146_s3 + $0x1208] sm:$0xf0]  ;;  %v16045_v4 = vld [vmem:[%s28146_s3 + $0xe38] sm:$0xf] }
 0x299   : > { %7969 = vmatpush.bf16.msra.mxu0 %v16214_v61  ;;  %7935 = vmatmul.bf16.vlgmr.msrb.gmra.mxu1 %v21553_v11  ;;  %v16550_v61 = vor.u32 %v19556_v52, %v16549_v51  ;;  %v16745_v2 = vld [vmem:[%s28146_s3 + $0x13b0] sm:$0xf]  ;;  %v19605_v3 = vld [vmem:[%s28146_s3 + $0x13c8] sm:$0xf0]  ;;  %v21675_v7 = vld [vmem:[%s28146_s3 + $0xff8] sm:$0xf]  ;;  %v16522_v19 = vor.u32 %v19549_v63, %v16521_v62 }
 0x29a   : > { %7983 = vmatpush.bf16.msra.mxu1 %v16438_v0  ;;  %7949 = vmatmul.bf16.vlgmr.msrb.gmra.mxu2 %v21551_v10  ;;  %v3530_v0 = vld [vmem:[%s28145_s2 + $0x8] sm:$0xf]  ;;  %v19486_v8 = vld [vmem:[%s28146_s3 + $0x1010] sm:$0xf0]  ;;  %v16493_v12 = vld [vmem:[%s28146_s3 + $0x11b8] sm:$0xf]  ;;  %v16746_v46 = vor.u32 %v19605_v3, %v16745_v2 }
 0x29b   : > { %7997 = vmatpush.bf16.msra.mxu2 %v16662_v1  ;;  %7963 = vmatmul.bf16.vlgmr.msrb.gmra.mxu3 %v21561_v14  ;;  %v16774_v1 = vor.u32 %v19612_v54, %v16773_v53  ;;  %v19542_v13 = vld [vmem:[%s28146_s3 + $0x11d0] sm:$0xf0]  ;;  %v16717_v20 = vld [vmem:[%s28146_s3 + $0x1378] sm:$0xf]  ;;  %v3525_v26 = vld [vmem:[#allocation2 + $0x80] sm:$0xff]  ;;  %v3542_v28 = vperm.slane %v3530_v0, 1  ;;  %v16270_v34 = vor.u32 %v19486_v8, %v21675_v7 }
 0x29c   : > { %8011 = vmatpush.bf16.msra.mxu3 %v16886_v5  ;;  %v19430_v5 = vld [vmem:[%s28146_s3 + $0xe50] sm:$0xf0]  ;;  %v3515_v27 = vld [vmem:[#allocation2 + $0x18] sm:$0xff]  ;;  %v3527_v29 = vld [vmem:[#allocation2 + $0x20] sm:$0xff]  ;;  %v16494_v40 = vor.u32 %v19542_v13, %v16493_v12 }
 0x29d   : > { %7970 = vmatpush.bf16.msra.mxu0 %v16186_v15  ;;  %v3541_v15 = vperm.slane %v3530_v0, 0  ;;  %v19598_v21 = vld [vmem:[%s28146_s3 + $0x1390] sm:$0xf0]  ;;  %v16046_v33 = vor.u32 %v19430_v5, %v16045_v4  ;;  %v16017_v36 = vld [vmem:[%s28146_s3 + $0xe00] sm:$0xf]  ;;  %v3528_v38 = vld [vmem:[#allocation2 + $0x8] sm:$0xff] }
 0x29e   : > { %7984 = vmatpush.bf16.msra.mxu1 %v16410_v16  ;;  %v3543_v16 = vperm.slane %v3530_v0, 2  ;;  %v19423_v41 = vld [vmem:[%s28146_s3 + $0xe18] sm:$0xf0]  ;;  %v16241_v35 = vld [vmem:[%s28146_s3 + $0xfc0] sm:$0xf]  ;;  %v16718_v52 = vor.u32 %v19598_v21, %v16717_v20 }
 0x29f   : > { %7998 = vmatpush.bf16.msra.mxu2 %v16634_v18  ;;  %v16298_v18 = vor.u32 %v19493_v59, %v16297_v58  ;;  %v19479_v43 = vld [vmem:[%s28146_s3 + $0xfd8] sm:$0xf0]  ;;  %v16465_v45 = vld [vmem:[%s28146_s3 + $0x1180] sm:$0xf]  ;;  %v19021_v54 = vld [vmem:[%s28146_s3 + $0x18c] sm:$0xf]  ;;  %v16018_v58 = vor.u32 %v19423_v41, %v16017_v36 }
 0x2a0   : > { %8012 = vmatpush.bf16.msra.mxu3 %v16858_v22  ;;  %v3513_v22 = vld [vmem:[#allocation2 + $0x88] sm:$0xff]  ;;  %v19535_v47 = vld [vmem:[%s28146_s3 + $0x1198] sm:$0xf0]  ;;  %v16689_v48 = vld [vmem:[%s28146_s3 + $0x1340] sm:$0xf]  ;;  %v16242_v62 = vor.u32 %v19479_v43, %v16241_v35 }
 0x2a1   : > { %7971 = vmatpush.bf16.msra.mxu0 %v16158_v30  ;;  %v3514_v30 = vld [vmem:[#allocation2 + $0x90] sm:$0xff]  ;;  %v19591_v53 = vld [vmem:[%s28146_s3 + $0x1358] sm:$0xf0]  ;;  %v14423_v55 = vld [vmem:[%s28146_s3 + $0x1a4] sm:$0xf0]  ;;  %v16466_v63 = vor.u32 %v19535_v47, %v16465_v45 }
 0x2a2   : > { %7985 = vmatpush.bf16.msra.mxu1 %v16382_v31  ;;  %v3526_v31 = vld [vmem:[#allocation2 + $0xb8] sm:$0xff]  ;;  %v3566_v50 = vadd.f32 %v3542_v28, %v3514_v30  ;;  %v19077_v59 = vld [vmem:[%s28146_s3 + $0x34c] sm:$0xf]  ;;  %v15095_v4 = vld [vmem:[%s28146_s3 + $0x6e4] sm:$0xf0]  ;;  %v16690_v12 = vor.u32 %v19591_v53, %v16689_v48  ;;  %v14426_v13 = vor.u32 %v19021_v54, %v14423_v55 }
 0x2a3   : > { %7999 = vmatpush.bf16.msra.mxu2 %v16606_v32  ;;  %v3544_v32 = vperm.slane %v3530_v0, 3  ;;  %v3578_v51 = vadd.f32 %v3542_v28, %v3526_v31  ;;  %v14871_v0 = vld [vmem:[%s28146_s3 + $0x524] sm:$0xf0]  ;;  %v19014_v20 = vld [vmem:[%s28146_s3 + $0x154] sm:$0xf] }
 0x2a4   : > { %8013 = vmatpush.bf16.msra.mxu3 %v16830_v37  ;;  %v3516_v37 = vld [vmem:[#allocation2 + $0x98] sm:$0xff]  ;;  %v3590_v8 = vmax.f32 %v3566_v50, 0.0  ;;  %v14395_v21 = vld [vmem:[%s28146_s3 + $0x16c] sm:$0xf0]  ;;  %v19056_v53 = vld [vmem:[%s28146_s3 + $0x2a4] sm:$0xf] }
 0x2a5   : > { %7972 = vmatpush.bf16.msra.mxu0 %v16130_v42  ;;  %v3565_v42 = vadd.f32 %v3541_v15, %v3513_v22  ;;  %v3580_v57 = vadd.f32 %v3544_v32, %v3528_v38  ;;  %v19070_v22 = vld [vmem:[%s28146_s3 + $0x314] sm:$0xf]  ;;  %v14619_v28 = vld [vmem:[%s28146_s3 + $0x32c] sm:$0xf0]  ;;  %v14398_v36 = vor.u32 %v19014_v20, %v14395_v21  ;;  %v14367_v41 = vld [vmem:[%s28146_s3 + $0x134] sm:$0xf0] }
 0x2a6   : > { %7986 = vmatpush.bf16.msra.mxu1 %v16354_v44  ;;  %v3577_v44 = vadd.f32 %v3541_v15, %v3525_v26  ;;  %v19063_v35 = vld [vmem:[%s28146_s3 + $0x2dc] sm:$0xf]  ;;  %v15039_v47 = vld [vmem:[%s28146_s3 + $0x674] sm:$0xf0]  ;;  %v14563_v55 = vld [vmem:[%s28146_s3 + $0x2bc] sm:$0xf0] }
 0x2a7   : > { %8000 = vmatpush.bf16.msra.mxu2 %v16578_v17  ;;  %v3567_v17 = vadd.f32 %v3543_v16, %v3515_v27  ;;  %v3589_v2 = vmax.f32 %v3565_v42, 0.0  ;;  %v14591_v42 = vld [vmem:[%s28146_s3 + $0x2f4] sm:$0xf0]  ;;  %v19175_v45 = vld [vmem:[%s28146_s3 + $0x65c] sm:$0xf] }
 0x2a8   : > { %8014 = vmatpush.bf16.msra.mxu3 %v16802_v49  ;;  %v3579_v49 = vadd.f32 %v3543_v16, %v3527_v29  ;;  %v3601_v3 = vmax.f32 %v3577_v44, 0.0  ;;  %v3604_v16 = vmax.f32 %v3580_v57, 0.0  ;;  %v14843_v29 = vld [vmem:[%s28146_s3 + $0x4ec] sm:$0xf0]  ;;  %v19119_v44 = vld [vmem:[%s28146_s3 + $0x49c] sm:$0xf]  ;;  %v15042_v54 = vor.u32 %v19175_v45, %v15039_v47 }
 0x2a9   : > { %7973 = vmatpush.bf16.msra.mxu0 %v16102_v56  ;;  %v3568_v56 = vadd.f32 %v3544_v32, %v3516_v37  ;;  %v3591_v5 = vmax.f32 %v3567_v17, 0.0  ;;  %v19182_v32 = vld [vmem:[%s28146_s3 + $0x694] sm:$0xf]  ;;  %v14622_v37 = vor.u32 %v19070_v22, %v14619_v28  ;;  %v14815_v17 = vld [vmem:[%s28146_s3 + $0x4b4] sm:$0xf0] }
 0x2aa   : > { %7987 = vmatpush.bf16.msra.mxu1 %v16326_v60  ;;  %v14647_v60 = vld [vmem:[%s28146_s3 + $0x364] sm:$0xf0]  ;;  %v3603_v7 = vmax.f32 %v3579_v49, 0.0  ;;  %v21750_v27 = vpack.c.bf16 %v3601_v3, %v3589_v2  ;;  %v14594_v49 = vor.u32 %v19063_v35, %v14591_v42  ;;  %v14818_v50 = vor.u32 %v19119_v44, %v14815_v17  ;;  %v14787_v57 = vld [vmem:[%s28146_s3 + $0x47c] sm:$0xf0] }
 0x2ab   : > { %8001 = vmatpush.bf16.msra.mxu2 %v16550_v61  ;;  %v19133_v61 = vld [vmem:[%s28146_s3 + $0x50c] sm:$0xf]  ;;  %v3592_v15 = vmax.f32 %v3568_v56, 0.0  ;;  %v19112_v56 = vld [vmem:[%s28146_s3 + $0x464] sm:$0xf] }
 0x2ac   : > { %8015 = vmatpush.bf16.msra.mxu3 %v16774_v1  ;;  %v19189_v1 = vld [vmem:[%s28146_s3 + $0x6cc] sm:$0xf]  ;;  %v21761_v30 = vpack.c.bf16 %v3603_v7, %v3591_v5  ;;  %v14535_v3 = vld [vmem:[%s28146_s3 + $0x284] sm:$0xf0]  ;;  %v14507_v20 = vld [vmem:[%s28146_s3 + $0x24c] sm:$0xf0] }
 0x2ad   : > { %7974 = vmatpush.bf16.msra.mxu0 %v16074_v9  ;;  %v3602_v9 = vmax.f32 %v3578_v51, 0.0  ;;  %v15098_v26 = vor.u32 %v19189_v1, %v15095_v4  ;;  %v19000_v51 = vld [vmem:[%s28146_s3 + $0xe4] sm:$0xf]  ;;  %v19049_v1 = vld [vmem:[%s28146_s3 + $0x26c] sm:$0xf] }
 0x2ae   : > { %7988 = vmatpush.bf16.msra.mxu1 %v16298_v18  ;;  %v14650_v18 = vor.u32 %v19077_v59, %v14647_v60  ;;  %v15011_v59 = vld [vmem:[%s28146_s3 + $0x63c] sm:$0xf0]  ;;  %v19105_v4 = vld [vmem:[%s28146_s3 + $0x42c] sm:$0xf]  ;;  %v14759_v5 = vld [vmem:[%s28146_s3 + $0x444] sm:$0xf0] }
 0x2af   : > { %8002 = vmatpush.bf16.msra.mxu2 %v16522_v19  ;;  %v14874_v19 = vor.u32 %v19133_v61, %v14871_v0  ;;  %v21763_v31 = vpack.c.bf16 %v3602_v9, %v3590_v8  ;;  %v14566_v61 = vor.u32 %v19056_v53, %v14563_v55  ;;  %v14311_v0 = vld [vmem:[%s28146_s3 + $0xc4] sm:$0xf0]  ;;  %v19161_v7 = vld [vmem:[%s28146_s3 + $0x5ec] sm:$0xf]  ;;  %v19098_v21 = vld [vmem:[%s28146_s3 + $0x3f4] sm:$0xf] }
 0x2b0   : > { %8016 = vmatpush.bf16.msra.mxu3 %v16746_v46  ;;  %v19126_v46 = vld [vmem:[%s28146_s3 + $0x4d4] sm:$0xf]  ;;  %v14983_v8 = vld [vmem:[%s28146_s3 + $0x604] sm:$0xf0]  ;;  %v14731_v22 = vld [vmem:[%s28146_s3 + $0x40c] sm:$0xf0] }
 0x2b1   : > { %7975 = vmatpush.bf16.msra.mxu0 %v16046_v33  ;;  %v15067_v33 = vld [vmem:[%s28146_s3 + $0x6ac] sm:$0xf0]  ;;  %v14846_v38 = vor.u32 %v19126_v46, %v14843_v29  ;;  %v14703_v35 = vld [vmem:[%s28146_s3 + $0x3d4] sm:$0xf0]  ;;  %v18972_v17 = vld [vmem:[%s28146_s3 + $0x4] sm:$0xf] }
 0x2b2   : > { %7989 = vmatpush.bf16.msra.mxu1 %v16270_v34  ;;  %v21771_v34 = vpack.c.bf16 %v3604_v16, %v3592_v15  ;;  %v15070_v43 = vor.u32 %v19182_v32, %v15067_v33  ;;  %v18986_v15 = vld [vmem:[%s28146_s3 + $0x74] sm:$0xf]  ;;  %v14283_v16 = vld [vmem:[%s28146_s3 + $0x8c] sm:$0xf0]  ;;  %v14734_v32 = vor.u32 %v19098_v21, %v14731_v22  ;;  %v18979_v33 = vld [vmem:[%s28146_s3 + $0x3c] sm:$0xf] }
 0x2b3   : > { %8003 = vmatpush.bf16.msra.mxu2 %v16494_v40  ;;  %v19007_v40 = vld [vmem:[%s28146_s3 + $0x11c] sm:$0xf]  ;;  %v14955_v28 = vld [vmem:[%s28146_s3 + $0x5cc] sm:$0xf0]  ;;  %v14286_v46 = vor.u32 %v18986_v15, %v14283_v16  ;;  %v14927_v42 = vld [vmem:[%s28146_s3 + $0x594] sm:$0xf0] }
 0x2b4   : > { %8017 = vmatpush.bf16.msra.mxu3 %v16718_v52  ;;  %v14370_v48 = vor.u32 %v19007_v40, %v14367_v41  ;;  %v14339_v52 = vld [vmem:[%s28146_s3 + $0xfc] sm:$0xf0]  ;;  %v14479_v40 = vld [vmem:[%s28146_s3 + $0x214] sm:$0xf0]  ;;  %v19091_v41 = vld [vmem:[%s28146_s3 + $0x3bc] sm:$0xf] }
 0x2b5   : > { %7976 = vmatpush.bf16.msra.mxu0 %v16018_v58  ;;  %v19168_v58 = vld [vmem:[%s28146_s3 + $0x624] sm:$0xf]  ;;  %v14342_v60 = vor.u32 %v19000_v51, %v14339_v52  ;;  %v14227_v45 = vld [vmem:[%s28146_s3 + $0x1c] sm:$0xf0]  ;;  %v15515_v15 = vld [vmem:[%s28146_s3 + $0xa2c] sm:$0xf0] }
 0x2b6   : > { %7990 = vmatpush.bf16.msra.mxu1 %v16242_v62  ;;  %v14790_v62 = vor.u32 %v19112_v56, %v14787_v57  ;;  %v15014_v2 = vor.u32 %v19168_v58, %v15011_v59  ;;  %v19028_v47 = vld [vmem:[%s28146_s3 + $0x1c4] sm:$0xf]  ;;  %v14675_v52 = vld [vmem:[%s28146_s3 + $0x39c] sm:$0xf0]  ;;  %v19245_v56 = vld [vmem:[%s28146_s3 + $0x88c] sm:$0xf]  ;;  %v14230_v59 = vor.u32 %v18972_v17, %v14227_v45 }
 0x2b7   : > { %8004 = vmatpush.bf16.msra.mxu2 %v16466_v63  ;;  %v18993_v63 = vld [vmem:[%s28146_s3 + $0xac] sm:$0xf]  ;;  %v19084_v51 = vld [vmem:[%s28146_s3 + $0x384] sm:$0xf]  ;;  %v14899_v55 = vld [vmem:[%s28146_s3 + $0x55c] sm:$0xf0] }
 0x2b8   : > { %8018 = vmatpush.bf16.msra.mxu3 %v16690_v12  ;;  %7977 = vmatmul.bf16.vlgmr.msra.gmra.mxu0 %v21750_v27  ;;  %v14314_v9 = vor.u32 %v18993_v63, %v14311_v0  ;;  %v14538_v12 = vor.u32 %v19049_v1, %v14535_v3  ;;  %v15319_v57 = vld [vmem:[%s28146_s3 + $0x8a4] sm:$0xf0]  ;;  %v19301_v58 = vld [vmem:[%s28146_s3 + $0xa4c] sm:$0xf]  ;;  %v14678_v0 = vor.u32 %v19084_v51, %v14675_v52  ;;  %v19350_v16 = vld [vmem:[%s28146_s3 + $0xbd4] sm:$0xf] }
 0x2b9   : > { %8025 = vmatpush.bf16.msrb.mxu0 %v14426_v13  ;;  %7991 = vmatmul.bf16.vlgmr.msra.gmra.mxu1 %v21763_v31  ;;  %v14762_v13 = vor.u32 %v19105_v4, %v14759_v5  ;;  %v19413_v1 = vld [vmem:[%s28146_s3 + $0xdcc] sm:$0xf]  ;;  %v15322_v4 = vor.u32 %v19245_v56, %v15319_v57  ;;  %v19280_v17 = vld [vmem:[%s28146_s3 + $0x9a4] sm:$0xf]  ;;  %v15907_v51 = vld [vmem:[%s28146_s3 + $0xd3c] sm:$0xf0] }
 0x2ba   : > { %8039 = vmatpush.bf16.msrb.mxu1 %v14650_v18  ;;  %8005 = vmatmul.bf16.vlgmr.msra.gmra.mxu2 %v21761_v30  ;;  %v19042_v18 = vld [vmem:[%s28146_s3 + $0x234] sm:$0xf]  ;;  %v15207_v56 = vld [vmem:[%s28146_s3 + $0x7c4] sm:$0xf0]  ;;  %v19273_v57 = vld [vmem:[%s28146_s3 + $0x96c] sm:$0xf] }
 0x2bb   : > { %8053 = vmatpush.bf16.msrb.mxu2 %v14874_v19  ;;  %8019 = vmatmul.bf16.vlgmr.msra.gmra.mxu3 %v21771_v34  ;;  %v14986_v19 = vor.u32 %v19161_v7, %v14983_v8  ;;  %v14510_v29 = vor.u32 %v19042_v18, %v14507_v20  ;;  %v19238_v8 = vld [vmem:[%s28146_s3 + $0x854] sm:$0xf]  ;;  %v15739_v18 = vld [vmem:[%s28146_s3 + $0xbec] sm:$0xf0] }
 0x2bc   : > { %8067 = vmatpush.bf16.msrb.mxu3 %v15098_v26  ;;  %v19154_v26 = vld [vmem:[%s28146_s3 + $0x5b4] sm:$0xf]  ;;  %v15963_v20 = vld [vmem:[%s28146_s3 + $0xdac] sm:$0xf0] }
 0x2bd   : > { %8026 = vmatpush.bf16.msrb.mxu0 %v14398_v36  ;;  %v14255_v36 = vld [vmem:[%s28146_s3 + $0x54] sm:$0xf0] }
 0x2be   : > { %8040 = vmatpush.bf16.msrb.mxu1 %v14622_v37  ;;  %v19035_v37 = vld [vmem:[%s28146_s3 + $0x1fc] sm:$0xf]  ;;  %v14258_v44 = vor.u32 %v18979_v33, %v14255_v36  ;;  %v15487_v33 = vld [vmem:[%s28146_s3 + $0x9f4] sm:$0xf0] }
 0x2bf   : > { %8054 = vmatpush.bf16.msrb.mxu2 %v14846_v38  ;;  %v14958_v38 = vor.u32 %v19154_v26, %v14955_v28  ;;  %v15742_v26 = vor.u32 %v19350_v16, %v15739_v18  ;;  %v19231_v28 = vld [vmem:[%s28146_s3 + $0x81c] sm:$0xf] }
 0x2c0   : > { %8068 = vmatpush.bf16.msrb.mxu3 %v15070_v43  ;;  %v19147_v43 = vld [vmem:[%s28146_s3 + $0x57c] sm:$0xf] }
 0x2c1   : > { %8027 = vmatpush.bf16.msrb.mxu0 %v14370_v48  ;;  %v14482_v48 = vor.u32 %v19035_v37, %v14479_v40  ;;  %v14930_v53 = vor.u32 %v19147_v43, %v14927_v42  ;;  %v19343_v36 = vld [vmem:[%s28146_s3 + $0xb9c] sm:$0xf]  ;;  %v15711_v37 = vld [vmem:[%s28146_s3 + $0xbb4] sm:$0xf0]  ;;  %v19224_v42 = vld [vmem:[%s28146_s3 + $0x7e4] sm:$0xf] }
 0x2c2   : > { %8041 = vmatpush.bf16.msrb.mxu1 %v14594_v49  ;;  %v14706_v49 = vor.u32 %v19091_v41, %v14703_v35  ;;  %v15935_v40 = vld [vmem:[%s28146_s3 + $0xd74] sm:$0xf0]  ;;  %v15714_v43 = vor.u32 %v19343_v36, %v15711_v37  ;;  %v19196_v37 = vld [vmem:[%s28146_s3 + $0x704] sm:$0xf] }
 0x2c3   : > { %8055 = vmatpush.bf16.msrb.mxu2 %v14818_v50  ;;  %v14451_v50 = vld [vmem:[%s28146_s3 + $0x1dc] sm:$0xf0] }
 0x2c4   : > { %8069 = vmatpush.bf16.msrb.mxu3 %v15042_v54  ;;  %v19140_v54 = vld [vmem:[%s28146_s3 + $0x544] sm:$0xf]  ;;  %v14454_v63 = vor.u32 %v19028_v47, %v14451_v50  ;;  %v15459_v47 = vld [vmem:[%s28146_s3 + $0x9bc] sm:$0xf0] }
 0x2c5   : > { %8028 = vmatpush.bf16.msrb.mxu0 %v14342_v60  ;;  %v15543_v60 = vld [vmem:[%s28146_s3 + $0xa64] sm:$0xf0]  ;;  %v14902_v3 = vor.u32 %v19140_v54, %v14899_v55  ;;  %v19392_v50 = vld [vmem:[%s28146_s3 + $0xd24] sm:$0xf]  ;;  %v19217_v55 = vld [vmem:[%s28146_s3 + $0x7ac] sm:$0xf] }
 0x2c6   : > { %8042 = vmatpush.bf16.msrb.mxu1 %v14566_v61  ;;  %v19357_v61 = vld [vmem:[%s28146_s3 + $0xc0c] sm:$0xf]  ;;  %v15546_v5 = vor.u32 %v19301_v58, %v15543_v60  ;;  %v15910_v58 = vor.u32 %v19392_v50, %v15907_v51 }
 0x2c7   : > { %8056 = vmatpush.bf16.msrb.mxu2 %v14790_v62  ;;  %v15767_v62 = vld [vmem:[%s28146_s3 + $0xc24] sm:$0xf0]  ;;  %v19329_v60 = vld [vmem:[%s28146_s3 + $0xb2c] sm:$0xf] }
 0x2c8   : > { %8070 = vmatpush.bf16.msrb.mxu3 %v15014_v2  ;;  %v15991_v2 = vld [vmem:[%s28146_s3 + $0xde4] sm:$0xf0]  ;;  %v15770_v7 = vor.u32 %v19357_v61, %v15767_v62  ;;  %v19385_v62 = vld [vmem:[%s28146_s3 + $0xcec] sm:$0xf] }
 0x2c9   : > { %8029 = vmatpush.bf16.msrb.mxu0 %v14314_v9  ;;  %v15291_v9 = vld [vmem:[%s28146_s3 + $0x86c] sm:$0xf0]  ;;  %v15655_v61 = vld [vmem:[%s28146_s3 + $0xb44] sm:$0xf0]  ;;  %v19525_v50 = vld [vmem:[%s28146_s3 + $0x114c] sm:$0xf] }
 0x2ca   : > { %8043 = vmatpush.bf16.msrb.mxu1 %v14538_v12  ;;  %v19294_v12 = vld [vmem:[%s28146_s3 + $0xa14] sm:$0xf]  ;;  %v15294_v21 = vor.u32 %v19238_v8, %v15291_v9  ;;  %v15403_v8 = vld [vmem:[%s28146_s3 + $0x94c] sm:$0xf0] }
 0x2cb   : > { %8057 = vmatpush.bf16.msrb.mxu2 %v14762_v13  ;;  %v15994_v13 = vor.u32 %v19413_v1, %v15991_v2  ;;  %v15518_v22 = vor.u32 %v19294_v12, %v15515_v15  ;;  %v15658_v2 = vor.u32 %v19329_v60, %v15655_v61  ;;  %v19322_v9 = vld [vmem:[%s28146_s3 + $0xaf4] sm:$0xf]  ;;  %v15627_v12 = vld [vmem:[%s28146_s3 + $0xb0c] sm:$0xf0] }
 0x2cc   : > { %8071 = vmatpush.bf16.msrb.mxu3 %v14986_v19  ;;  %v19406_v19 = vld [vmem:[%s28146_s3 + $0xd94] sm:$0xf]  ;;  %v15851_v15 = vld [vmem:[%s28146_s3 + $0xccc] sm:$0xf0] }
 0x2cd   : > { %8030 = vmatpush.bf16.msrb.mxu0 %v14286_v46  ;;  %v15263_v46 = vld [vmem:[%s28146_s3 + $0x834] sm:$0xf0] }
 0x2ce   : > { %8044 = vmatpush.bf16.msrb.mxu1 %v14510_v29  ;;  %v19287_v29 = vld [vmem:[%s28146_s3 + $0x9dc] sm:$0xf]  ;;  %v15266_v41 = vor.u32 %v19231_v28, %v15263_v46  ;;  %v15375_v28 = vld [vmem:[%s28146_s3 + $0x914] sm:$0xf0] }
 0x2cf   : > { %8058 = vmatpush.bf16.msrb.mxu2 %v14734_v32  ;;  %v15966_v32 = vor.u32 %v19406_v19, %v15963_v20  ;;  %v15490_v35 = vor.u32 %v19287_v29, %v15487_v33  ;;  %v15630_v19 = vor.u32 %v19322_v9, %v15627_v12  ;;  %v19203_v20 = vld [vmem:[%s28146_s3 + $0x73c] sm:$0xf]  ;;  %v15599_v29 = vld [vmem:[%s28146_s3 + $0xad4] sm:$0xf0] }
 0x2d0   : > { %8072 = vmatpush.bf16.msrb.mxu3 %v14958_v38  ;;  %v19399_v38 = vld [vmem:[%s28146_s3 + $0xd5c] sm:$0xf]  ;;  %v15823_v33 = vld [vmem:[%s28146_s3 + $0xc94] sm:$0xf0] }
 0x2d1   : > { %8031 = vmatpush.bf16.msrb.mxu0 %v14258_v44  ;;  %v15235_v44 = vld [vmem:[%s28146_s3 + $0x7fc] sm:$0xf0]  ;;  %v15938_v45 = vor.u32 %v19399_v38, %v15935_v40  ;;  %v19315_v46 = vld [vmem:[%s28146_s3 + $0xabc] sm:$0xf] }
 0x2d2   : > { %8045 = vmatpush.bf16.msrb.mxu1 %v14482_v48  ;;  %v19336_v48 = vld [vmem:[%s28146_s3 + $0xb64] sm:$0xf]  ;;  %v15238_v52 = vor.u32 %v19224_v42, %v15235_v44  ;;  %v15123_v38 = vld [vmem:[%s28146_s3 + $0x71c] sm:$0xf0] }
 0x2d3   : > { %8059 = vmatpush.bf16.msrb.mxu2 %v14706_v49  ;;  %v15683_v49 = vld [vmem:[%s28146_s3 + $0xb7c] sm:$0xf0]  ;;  %v19308_v42 = vld [vmem:[%s28146_s3 + $0xa84] sm:$0xf]  ;;  %v15126_v51 = vor.u32 %v19196_v37, %v15123_v38 }
 0x2d4   : > { %8073 = vmatpush.bf16.msrb.mxu3 %v14930_v53  ;;  %v15462_v53 = vor.u32 %v19280_v17, %v15459_v47  ;;  %v15686_v54 = vor.u32 %v19336_v48, %v15683_v49  ;;  %v15571_v17 = vld [vmem:[%s28146_s3 + $0xa9c] sm:$0xf0]  ;;  %v19469_v48 = vld [vmem:[%s28146_s3 + $0xf8c] sm:$0xf]  ;;  %v16215_v49 = vld [vmem:[%s28146_s3 + $0xfa4] sm:$0xf0] }
 0x2d5   : > { %8032 = vmatpush.bf16.msrb.mxu0 %v14230_v59  ;;  %v15431_v59 = vld [vmem:[%s28146_s3 + $0x984] sm:$0xf0]  ;;  %v15795_v47 = vld [vmem:[%s28146_s3 + $0xc5c] sm:$0xf0]  ;;  %v16218_v60 = vor.u32 %v19469_v48, %v16215_v49  ;;  %v19504_v37 = vld [vmem:[%s28146_s3 + $0x10a4] sm:$0xf] }
 0x2d6   : > { %8046 = vmatpush.bf16.msrb.mxu1 %v14454_v63  ;;  %v15879_v63 = vld [vmem:[%s28146_s3 + $0xd04] sm:$0xf0]  ;;  %v15434_v1 = vor.u32 %v19273_v57, %v15431_v59  ;;  %v19637_v57 = vld [vmem:[%s28146_s3 + $0x14cc] sm:$0xf] }
 0x2d7   : > { %8060 = vmatpush.bf16.msrb.mxu2 %v14678_v0  ;;  %v15210_v0 = vor.u32 %v19217_v55, %v15207_v56  ;;  %v15574_v56 = vor.u32 %v19308_v42, %v15571_v17  ;;  %v16803_v42 = vld [vmem:[%s28146_s3 + $0x143c] sm:$0xf0]  ;;  %v19441_v17 = vld [vmem:[%s28146_s3 + $0xeac] sm:$0xf]  ;;  %v16103_v48 = vld [vmem:[%s28146_s3 + $0xec4] sm:$0xf0] }
 0x2d8   : > { %8074 = vmatpush.bf16.msrb.mxu3 %v14902_v3  ;;  %8033 = vmatmul.bf16.vlgmr.msrb.gmra.mxu0 %v21386_v23  ;;  %v19210_v3 = vld [vmem:[%s28146_s3 + $0x774] sm:$0xf]  ;;  %v19497_v49 = vld [vmem:[%s28146_s3 + $0x106c] sm:$0xf] }
 0x2d9   : > { %8081 = vmatpush.bf16.msra.mxu0 %v15322_v4  ;;  %8047 = vmatmul.bf16.vlgmr.msrb.gmra.mxu1 %v21406_v39  ;;  %v15179_v4 = vld [vmem:[%s28146_s3 + $0x78c] sm:$0xf0] }
 0x2da   : > { %8095 = vmatpush.bf16.msra.mxu1 %v15546_v5  ;;  %8061 = vmatmul.bf16.vlgmr.msrb.gmra.mxu2 %v21388_v25  ;;  %v19266_v5 = vld [vmem:[%s28146_s3 + $0x934] sm:$0xf]  ;;  %v15182_v16 = vor.u32 %v19210_v3, %v15179_v4  ;;  %v16411_v3 = vld [vmem:[%s28146_s3 + $0x112c] sm:$0xf0] }
 0x2db   : > { %8109 = vmatpush.bf16.msra.mxu2 %v15770_v7  ;;  %8075 = vmatmul.bf16.vlgmr.msrb.gmra.mxu3 %v21425_v24  ;;  %v15882_v7 = vor.u32 %v19385_v62, %v15879_v63  ;;  %v15406_v18 = vor.u32 %v19266_v5, %v15403_v8  ;;  %v19462_v63 = vld [vmem:[%s28146_s3 + $0xf54] sm:$0xf]  ;;  %v16635_v5 = vld [vmem:[%s28146_s3 + $0x12ec] sm:$0xf0] }
 0x2dc   : > { %8123 = vmatpush.bf16.msra.mxu3 %v15994_v13  ;;  %v19378_v13 = vld [vmem:[%s28146_s3 + $0xcb4] sm:$0xf]  ;;  %v16859_v8 = vld [vmem:[%s28146_s3 + $0x14ac] sm:$0xf0] }
 0x2dd   : > { %8082 = vmatpush.bf16.msra.mxu0 %v15294_v21  ;;  %v15151_v21 = vld [vmem:[%s28146_s3 + $0x754] sm:$0xf0]  ;;  %v19574_v4 = vld [vmem:[%s28146_s3 + $0x12d4] sm:$0xf] }
 0x2de   : > { %8096 = vmatpush.bf16.msra.mxu1 %v15518_v22  ;;  %v19259_v22 = vld [vmem:[%s28146_s3 + $0x8fc] sm:$0xf]  ;;  %v15154_v36 = vor.u32 %v19203_v20, %v15151_v21  ;;  %v16383_v20 = vld [vmem:[%s28146_s3 + $0x10f4] sm:$0xf0] }
 0x2df   : > { %8110 = vmatpush.bf16.msra.mxu2 %v15742_v26  ;;  %v15854_v26 = vor.u32 %v19378_v13, %v15851_v15  ;;  %v15378_v40 = vor.u32 %v19259_v22, %v15375_v28  ;;  %v16638_v13 = vor.u32 %v19574_v4, %v16635_v5  ;;  %v19455_v15 = vld [vmem:[%s28146_s3 + $0xf1c] sm:$0xf]  ;;  %v16607_v22 = vld [vmem:[%s28146_s3 + $0x12b4] sm:$0xf0]  ;;  %v19602_v4 = vld [vmem:[%s28146_s3 + $0x13b4] sm:$0xf] }
 0x2e0   : > { %8124 = vmatpush.bf16.msra.mxu3 %v15966_v32  ;;  %v19371_v32 = vld [vmem:[%s28146_s3 + $0xc7c] sm:$0xf]  ;;  %v16831_v28 = vld [vmem:[%s28146_s3 + $0x1474] sm:$0xf0]  ;;  %v16747_v5 = vld [vmem:[%s28146_s3 + $0x13cc] sm:$0xf0] }
 0x2e1   : > { %8083 = vmatpush.bf16.msra.mxu0 %v15266_v41  ;;  %v15602_v41 = vor.u32 %v19315_v46, %v15599_v29  ;;  %v15826_v44 = vor.u32 %v19371_v32, %v15823_v33  ;;  %v19567_v21 = vld [vmem:[%s28146_s3 + $0x129c] sm:$0xf]  ;;  %v19448_v33 = vld [vmem:[%s28146_s3 + $0xee4] sm:$0xf] }
 0x2e2   : > { %8097 = vmatpush.bf16.msra.mxu1 %v15490_v35  ;;  %v19252_v35 = vld [vmem:[%s28146_s3 + $0x8c4] sm:$0xf]  ;;  %v16610_v32 = vor.u32 %v19567_v21, %v16607_v22  ;;  %v16271_v21 = vld [vmem:[%s28146_s3 + $0x1014] sm:$0xf0]  ;;  %v19539_v22 = vld [vmem:[%s28146_s3 + $0x11bc] sm:$0xf] }
 0x2e3   : > { %8111 = vmatpush.bf16.msra.mxu2 %v15714_v43  ;;  %v15347_v43 = vld [vmem:[%s28146_s3 + $0x8dc] sm:$0xf0] }
 0x2e4   : > { %8125 = vmatpush.bf16.msra.mxu3 %v15938_v45  ;;  %v19364_v45 = vld [vmem:[%s28146_s3 + $0xc44] sm:$0xf]  ;;  %v15350_v55 = vor.u32 %v19252_v35, %v15347_v43  ;;  %v16579_v35 = vld [vmem:[%s28146_s3 + $0x127c] sm:$0xf0] }
 0x2e5   : > { %8084 = vmatpush.bf16.msra.mxu0 %v15238_v52  ;;  %v16439_v52 = vld [vmem:[%s28146_s3 + $0x1164] sm:$0xf0]  ;;  %v15798_v59 = vor.u32 %v19364_v45, %v15795_v47  ;;  %v19616_v43 = vld [vmem:[%s28146_s3 + $0x1424] sm:$0xf] }
 0x2e6   : > { %8098 = vmatpush.bf16.msra.mxu1 %v15462_v53  ;;  %v19581_v53 = vld [vmem:[%s28146_s3 + $0x130c] sm:$0xf]  ;;  %v16442_v61 = vor.u32 %v19525_v50, %v16439_v52  ;;  %v22229_v50 = vld [vmem:[%s28147_s4] sm:$0x7f]  ;;  %v16327_v52 = vld [vmem:[%s28146_s3 + $0x1084] sm:$0xf0] }
 0x2e7   : > { %8112 = vmatpush.bf16.msra.mxu2 %v15686_v54  ;;  %v16663_v54 = vld [vmem:[%s28146_s3 + $0x1324] sm:$0xf0] }
 0x2e8   : > { %8126 = vmatpush.bf16.msra.mxu3 %v15910_v58  ;;  %v16887_v58 = vld [vmem:[%s28146_s3 + $0x14e4] sm:$0xf0]  ;;  %v16666_v62 = vor.u32 %v19581_v53, %v16663_v54  ;;  %v19553_v53 = vld [vmem:[%s28146_s3 + $0x122c] sm:$0xf] }
 0x2e9   : > { %8085 = vmatpush.bf16.msra.mxu0 %v15210_v0  ;;  %v16187_v0 = vld [vmem:[%s28146_s3 + $0xf6c] sm:$0xf0]  ;;  %v16551_v54 = vld [vmem:[%s28146_s3 + $0x1244] sm:$0xf0] }
 0x2ea   : > { %8099 = vmatpush.bf16.msra.mxu1 %v15434_v1  ;;  %v19518_v1 = vld [vmem:[%s28146_s3 + $0x1114] sm:$0xf]  ;;  %v16190_v9 = vor.u32 %v19462_v63, %v16187_v0 }
 0x2eb   : > { %8113 = vmatpush.bf16.msra.mxu2 %v15658_v2  ;;  %v16890_v2 = vor.u32 %v19637_v57, %v16887_v58  ;;  %v16414_v12 = vor.u32 %v19518_v1, %v16411_v3  ;;  %v16106_v57 = vor.u32 %v19441_v17, %v16103_v48  ;;  %v28155_v58 = vperm.slane %v22229_v50, 0  ;;  %v19490_v63 = vld [vmem:[%s28146_s3 + $0x1034] sm:$0xf]  ;;  %v16299_v1 = vld [vmem:[%s28146_s3 + $0x104c] sm:$0xf0] }
 0x2ec   : > { %8127 = vmatpush.bf16.msra.mxu3 %v15882_v7  ;;  %v19630_v7 = vld [vmem:[%s28146_s3 + $0x1494] sm:$0xf]  ;;  %v16523_v3 = vld [vmem:[%s28146_s3 + $0x120c] sm:$0xf0]  ;;  %v16467_v17 = vld [vmem:[%s28146_s3 + $0x119c] sm:$0xf0] }
 0x2ed   : > { %8086 = vmatpush.bf16.msra.mxu0 %v15182_v16  ;;  %v16159_v16 = vld [vmem:[%s28146_s3 + $0xf34] sm:$0xf0]  ;;  %v14429_v48 = vld [vmem:[%s28146_s3 + $0x190] sm:$0xf] }
 0x2ee   : > { %8100 = vmatpush.bf16.msra.mxu1 %v15406_v18  ;;  %v19511_v18 = vld [vmem:[%s28146_s3 + $0x10dc] sm:$0xf]  ;;  %v16162_v46 = vor.u32 %v19455_v15, %v16159_v16  ;;  %v16047_v16 = vld [vmem:[%s28146_s3 + $0xe54] sm:$0xf0] }
 0x2ef   : > { %8114 = vmatpush.bf16.msra.mxu2 %v15630_v19  ;;  %v16862_v19 = vor.u32 %v19630_v7, %v16859_v8  ;;  %v16386_v29 = vor.u32 %v19511_v18, %v16383_v20  ;;  %v19427_v15 = vld [vmem:[%s28146_s3 + $0xe3c] sm:$0xf]  ;;  %v16750_v20 = vor.u32 %v19602_v4, %v16747_v5  ;;  %v14401_v4 = vld [vmem:[%s28146_s3 + $0x158] sm:$0xf]  ;;  %v19018_v5 = vld [vmem:[%s28146_s3 + $0x170] sm:$0xf0] }
 0x2f0   : > { %8128 = vmatpush.bf16.msra.mxu3 %v15854_v26  ;;  %v19623_v26 = vld [vmem:[%s28146_s3 + $0x145c] sm:$0xf] }
 0x2f1   : > { %8087 = vmatpush.bf16.msra.mxu0 %v15154_v36  ;;  %v16131_v36 = vld [vmem:[%s28146_s3 + $0xefc] sm:$0xf0]  ;;  %v16834_v38 = vor.u32 %v19623_v26, %v16831_v28  ;;  %v19483_v18 = vld [vmem:[%s28146_s3 + $0xffc] sm:$0xf]  ;;  %v16495_v26 = vld [vmem:[%s28146_s3 + $0x11d4] sm:$0xf0] }
 0x2f2   : > { %8101 = vmatpush.bf16.msra.mxu1 %v15378_v40  ;;  %v16355_v40 = vld [vmem:[%s28146_s3 + $0x10bc] sm:$0xf0] }
 0x2f3   : > { %8115 = vmatpush.bf16.msra.mxu2 %v15602_v41  ;;  %v19560_v41 = vld [vmem:[%s28146_s3 + $0x1264] sm:$0xf]  ;;  %v16358_v45 = vor.u32 %v19504_v37, %v16355_v40  ;;  %v16019_v37 = vld [vmem:[%s28146_s3 + $0xe1c] sm:$0xf0]  ;;  %v16274_v40 = vor.u32 %v19483_v18, %v16271_v21 }
 0x2f4   : > { %8129 = vmatpush.bf16.msra.mxu3 %v15826_v44  ;;  %v16134_v44 = vor.u32 %v19448_v33, %v16131_v36  ;;  %v16582_v47 = vor.u32 %v19560_v41, %v16579_v35  ;;  %v16050_v33 = vor.u32 %v19427_v15, %v16047_v16  ;;  %v19420_v36 = vld [vmem:[%s28146_s3 + $0xe04] sm:$0xf]  ;;  %v16498_v41 = vor.u32 %v19539_v22, %v16495_v26  ;;  %v15073_v15 = vld [vmem:[%s28146_s3 + $0x698] sm:$0xf]  ;;  %v19186_v16 = vld [vmem:[%s28146_s3 + $0x6b0] sm:$0xf0] }
 0x2f5   : > { %8088 = vmatpush.bf16.msra.mxu0 %v15126_v51  ;;  %v16806_v51 = vor.u32 %v19616_v43, %v16803_v42  ;;  %v19476_v35 = vld [vmem:[%s28146_s3 + $0xfc4] sm:$0xf]  ;;  %v16243_v43 = vld [vmem:[%s28146_s3 + $0xfdc] sm:$0xf0]  ;;  %v19011_v26 = vld [vmem:[%s28146_s3 + $0x138] sm:$0xf0] }
 0x2f6   : > { %8102 = vmatpush.bf16.msra.mxu1 %v15350_v55  ;;  %v19609_v55 = vld [vmem:[%s28146_s3 + $0x13ec] sm:$0xf]  ;;  %v19532_v42 = vld [vmem:[%s28146_s3 + $0x1184] sm:$0xf]  ;;  %v14373_v22 = vld [vmem:[%s28146_s3 + $0x120] sm:$0xf] }
 0x2f7   : > { %8116 = vmatpush.bf16.msra.mxu2 %v15574_v56  ;;  %v16775_v56 = vld [vmem:[%s28146_s3 + $0x1404] sm:$0xf0] }
 0x2f8   : > { %8130 = vmatpush.bf16.msra.mxu3 %v15798_v59  ;;  %8089 = vmatmul.bf16.vlgmr.msra.gmra.mxu0 %v21540_v6  ;;  %v16330_v59 = vor.u32 %v19497_v49, %v16327_v52  ;;  %v16778_v0 = vor.u32 %v19609_v55, %v16775_v56  ;;  %v7866_v7 = vpop.f32.mrf.mxu0  ;;  %v19025_v49 = vld [vmem:[%s28146_s3 + $0x1a8] sm:$0xf0]  ;;  %v16022_v52 = vor.u32 %v19420_v36, %v16019_v37  ;;  %v15045_v36 = vld [vmem:[%s28146_s3 + $0x660] sm:$0xf]  ;;  %v19179_v37 = vld [vmem:[%s28146_s3 + $0x678] sm:$0xf0] }
 0x2f9   : > { %8137 = vmatpush.bf16.msrb.mxu0 %v16218_v60  ;;  %8103 = vmatmul.bf16.vlgmr.msra.gmra.mxu1 %v21553_v11  ;;  %v16554_v60 = vor.u32 %v19553_v53, %v16551_v54  ;;  %v19081_v53 = vld [vmem:[%s28146_s3 + $0x368] sm:$0xf0]  ;;  %v14877_v54 = vld [vmem:[%s28146_s3 + $0x510] sm:$0xf]  ;;  %v16246_v56 = vor.u32 %v19476_v35, %v16243_v43  ;;  %v14345_v43 = vld [vmem:[%s28146_s3 + $0xe8] sm:$0xf] }
 0x2fa   : > { %8151 = vmatpush.bf16.msrb.mxu1 %v16442_v61  ;;  %8117 = vmatmul.bf16.vlgmr.msra.gmra.mxu2 %v21551_v10  ;;  %v19434_v61 = vld [vmem:[%s28146_s3 + $0xe74] sm:$0xf]  ;;  %v19137_v55 = vld [vmem:[%s28146_s3 + $0x528] sm:$0xf0] }
 0x2fb   : > { %8165 = vmatpush.bf16.msrb.mxu2 %v16666_v62  ;;  %8131 = vmatmul.bf16.vlgmr.msra.gmra.mxu3 %v21561_v14  ;;  %v16075_v62 = vld [vmem:[%s28146_s3 + $0xe8c] sm:$0xf0] }
 0x2fc   : > { %8179 = vmatpush.bf16.msrb.mxu3 %v16890_v2  ;;  %v19546_v2 = vld [vmem:[%s28146_s3 + $0x11f4] sm:$0xf]  ;;  %v16078_v8 = vor.u32 %v19434_v61, %v16075_v62  ;;  %v14430_v62 = vor.u32 %v19025_v49, %v14429_v48  ;;  %v14793_v48 = vld [vmem:[%s28146_s3 + $0x468] sm:$0xf]  ;;  %v19116_v49 = vld [vmem:[%s28146_s3 + $0x480] sm:$0xf0] }
 0x2fd   : > { %8138 = vmatpush.bf16.msrb.mxu0 %v16190_v9  ;;  %v7867_v9 = vadd.f32 %v7866_v7, %v28155_v58  ;;  %v14625_v7 = vld [vmem:[%s28146_s3 + $0x318] sm:$0xf] }
 0x2fe   : > { %8152 = vmatpush.bf16.msrb.mxu1 %v16414_v12  ;;  %v16302_v12 = vor.u32 %v19490_v63, %v16299_v1  ;;  %v14878_v1 = vor.u32 %v19137_v55, %v14877_v54 }
 0x2ff   : > { %8166 = vmatpush.bf16.msrb.mxu2 %v16638_v13  ;;  %v16526_v13 = vor.u32 %v19546_v2, %v16523_v3 }
 0x300   : > { %8180 = vmatpush.bf16.msrb.mxu3 %v16862_v19  ;;  %v7880_v19 = vpop.f32.mrf.mxu1  ;;  %v22345_v2 = vpop.f32.mrf.mxu0 }
 0x301   : > { %8139 = vmatpush.bf16.msrb.mxu0 %v16162_v46  ;;  %v7881_v28 = vadd.f32 %v7880_v19, %v7867_v9  ;;  %v19595_v46 = vld [vmem:[%s28146_s3 + $0x137c] sm:$0xf]  ;;  %v19074_v9 = vld [vmem:[%s28146_s3 + $0x330] sm:$0xf0]  ;;  %v14402_v19 = vor.u32 %v19018_v5, %v14401_v4  ;;  %v19109_v4 = vld [vmem:[%s28146_s3 + $0x448] sm:$0xf0] }
 0x302   : > { %8153 = vmatpush.bf16.msrb.mxu1 %v16386_v29  ;;  %v16719_v29 = vld [vmem:[%s28146_s3 + $0x1394] sm:$0xf0]  ;;  %v14989_v5 = vld [vmem:[%s28146_s3 + $0x5f0] sm:$0xf] }
 0x303   : > { %8167 = vmatpush.bf16.msrb.mxu2 %v16610_v32  ;;  %v7894_v32 = vpop.f32.mrf.mxu2 }
 0x304   : > { %8181 = vmatpush.bf16.msrb.mxu3 %v16834_v38  ;;  %v7895_v38 = vadd.f32 %v7894_v32, %v7881_v28  ;;  %v7908_v63 = vpop.f32.mrf.mxu3  ;;  %v14597_v28 = vld [vmem:[%s28146_s3 + $0x2e0] sm:$0xf] }
 0x305   : > { %8140 = vmatpush.bf16.msrb.mxu0 %v16134_v44  ;;  %v16722_v44 = vor.u32 %v19595_v46, %v16719_v29  ;;  %v15074_v46 = vor.u32 %v19186_v16, %v15073_v15  ;;  %v19067_v29 = vld [vmem:[%s28146_s3 + $0x2f8] sm:$0xf0]  ;;  %v14821_v32 = vld [vmem:[%s28146_s3 + $0x4a0] sm:$0xf]  ;;  %v18990_v15 = vld [vmem:[%s28146_s3 + $0x90] sm:$0xf0] }
 0x306   : > { %8154 = vmatpush.bf16.msrb.mxu1 %v16358_v45  ;;  %v19588_v45 = vld [vmem:[%s28146_s3 + $0x1344] sm:$0xf]  ;;  %v7909_v3 = vadd.f32 %v7908_v63, %v7895_v38  ;;  %v14374_v38 = vor.u32 %v19011_v26, %v14373_v22  ;;  %v14513_v16 = vld [vmem:[%s28146_s3 + $0x238] sm:$0xf]  ;;  %v19102_v26 = vld [vmem:[%s28146_s3 + $0x410] sm:$0xf0] }
 0x307   : > { %8168 = vmatpush.bf16.msrb.mxu2 %v16582_v47  ;;  %v16691_v47 = vld [vmem:[%s28146_s3 + $0x135c] sm:$0xf0]  ;;  %v14737_v22 = vld [vmem:[%s28146_s3 + $0x3f8] sm:$0xf] }
 0x308   : > { %8182 = vmatpush.bf16.msrb.mxu3 %v16806_v51  ;;  %v14653_v51 = vld [vmem:[%s28146_s3 + $0x350] sm:$0xf]  ;;  %v16694_v61 = vor.u32 %v19588_v45, %v16691_v47  ;;  %v22371_v18 = vpop.f32.mrf.mxu1  ;;  %v19060_v47 = vld [vmem:[%s28146_s3 + $0x2c0] sm:$0xf0] }
 0x309   : > { %8141 = vmatpush.bf16.msrb.mxu0 %v16106_v57  ;;  %v16470_v57 = vor.u32 %v19532_v42, %v16467_v17  ;;  %v19004_v42 = vld [vmem:[%s28146_s3 + $0x100] sm:$0xf0]  ;;  %v15046_v17 = vor.u32 %v19179_v37, %v15045_v36 }
 0x30a   : > { %8155 = vmatpush.bf16.msrb.mxu1 %v16330_v59  ;;  %v15101_v59 = vld [vmem:[%s28146_s3 + $0x6d0] sm:$0xf]  ;;  %v14346_v55 = vor.u32 %v19004_v42, %v14345_v43  ;;  %v14485_v43 = vld [vmem:[%s28146_s3 + $0x200] sm:$0xf] }
 0x30b   : > { %8169 = vmatpush.bf16.msrb.mxu2 %v16554_v60  ;;  %v19193_v60 = vld [vmem:[%s28146_s3 + $0x6e8] sm:$0xf0] }
 0x30c   : > { %8183 = vmatpush.bf16.msrb.mxu3 %v16778_v0  ;;  %v14654_v0 = vor.u32 %v19081_v53, %v14653_v51  ;;  %v22412_v45 = vpop.f32.mrf.mxu3  ;;  %v19172_v53 = vld [vmem:[%s28146_s3 + $0x640] sm:$0xf0] }
 0x30d   : > { %8142 = vmatpush.bf16.msrb.mxu0 %v16078_v8  ;;  %v15102_v8 = vor.u32 %v19193_v60, %v15101_v59  ;;  %v14317_v60 = vld [vmem:[%s28146_s3 + $0xb0] sm:$0xf] }
 0x30e   : > { %8156 = vmatpush.bf16.msrb.mxu1 %v16302_v12  ;;  %v14849_v12 = vld [vmem:[%s28146_s3 + $0x4d8] sm:$0xf] }
 0x30f   : > { %8170 = vmatpush.bf16.msrb.mxu2 %v16526_v13  ;;  %v19130_v13 = vld [vmem:[%s28146_s3 + $0x4f0] sm:$0xf0] }
 0x310   : > { %8184 = vmatpush.bf16.msrb.mxu3 %v16750_v20  ;;  %v14626_v20 = vor.u32 %v19074_v9, %v14625_v7  ;;  %v14850_v21 = vor.u32 %v19130_v13, %v14849_v12  ;;  %v19165_v7 = vld [vmem:[%s28146_s3 + $0x608] sm:$0xf0]  ;;  %v14289_v13 = vld [vmem:[%s28146_s3 + $0x78] sm:$0xf] }
 0x311   : > { %8143 = vmatpush.bf16.msrb.mxu0 %v16050_v33  ;;  %v19123_v33 = vld [vmem:[%s28146_s3 + $0x4b8] sm:$0xf0] }
 0x312   : > { %8157 = vmatpush.bf16.msrb.mxu1 %v16274_v40  ;;  %v22401_v40 = vpop.f32.mrf.mxu2  ;;  %v14822_v35 = vor.u32 %v19123_v33, %v14821_v32  ;;  %v14290_v33 = vor.u32 %v18990_v15, %v14289_v13  ;;  %v15997_v13 = vld [vmem:[%s28146_s3 + $0xdd0] sm:$0xf]  ;;  %v19417_v15 = vld [vmem:[%s28146_s3 + $0xde8] sm:$0xf0] }
 0x313   : > { %8171 = vmatpush.bf16.msrb.mxu2 %v16498_v41  ;;  %v14598_v41 = vor.u32 %v19067_v29, %v14597_v28  ;;  %v19158_v29 = vld [vmem:[%s28146_s3 + $0x5d0] sm:$0xf0] }
 0x314   : > { %8185 = vmatpush.bf16.msrb.mxu3 %v16722_v44  ;;  %v14569_v44 = vld [vmem:[%s28146_s3 + $0x2a8] sm:$0xf] }
 0x315   : > { %8144 = vmatpush.bf16.msrb.mxu0 %v16022_v52  ;;  %v7922_v51 = vpop.f32.mrf.mxu0  ;;  %v15017_v52 = vld [vmem:[%s28146_s3 + $0x628] sm:$0xf] }
 0x316   : > { %8158 = vmatpush.bf16.msrb.mxu1 %v16246_v56  ;;  %v7923_v54 = vadd.f32 %v7922_v51, %v7909_v3  ;;  %v14570_v56 = vor.u32 %v19060_v47, %v14569_v44  ;;  %v7936_v59 = vpop.f32.mrf.mxu1  ;;  %v15018_v63 = vor.u32 %v19172_v53, %v15017_v52  ;;  %v14765_v3 = vld [vmem:[%s28146_s3 + $0x430] sm:$0xf]  ;;  %v19039_v44 = vld [vmem:[%s28146_s3 + $0x218] sm:$0xf0]  ;;  %v14233_v52 = vld [vmem:[%s28146_s3 + $0x8] sm:$0xf] }
 0x317   : > { %8172 = vmatpush.bf16.msrb.mxu2 %v16470_v57  ;;  %v14794_v57 = vor.u32 %v19116_v49, %v14793_v48  ;;  %v14766_v12 = vor.u32 %v19109_v4, %v14765_v3  ;;  %v19095_v47 = vld [vmem:[%s28146_s3 + $0x3d8] sm:$0xf0]  ;;  %v14933_v48 = vld [vmem:[%s28146_s3 + $0x580] sm:$0xf]  ;;  %v18976_v53 = vld [vmem:[%s28146_s3 + $0x20] sm:$0xf0] }
 0x318   : > { %8186 = vmatpush.bf16.msrb.mxu3 %v16694_v61  ;;  %8145 = vmatmul.bf16.vlgmr.msrb.gmra.mxu0 %v21750_v27  ;;  %v18997_v61 = vld [vmem:[%s28146_s3 + $0xc8] sm:$0xf0]  ;;  %v19151_v49 = vld [vmem:[%s28146_s3 + $0x598] sm:$0xf0]  ;;  %v15549_v3 = vld [vmem:[%s28146_s3 + $0xa50] sm:$0xf]  ;;  %v14234_v4 = vor.u32 %v18976_v53, %v14233_v52 }
 0x319   : > { %8193 = vmatpush.bf16.msra.mxu0 %v14430_v62  ;;  %8159 = vmatmul.bf16.vlgmr.msrb.gmra.mxu1 %v21763_v31  ;;  %v14541_v62 = vld [vmem:[%s28146_s3 + $0x270] sm:$0xf]  ;;  %v15717_v52 = vld [vmem:[%s28146_s3 + $0xba0] sm:$0xf]  ;;  %v19347_v53 = vld [vmem:[%s28146_s3 + $0xbb8] sm:$0xf0] }
 0x31a   : > { %8207 = vmatpush.bf16.msra.mxu1 %v14654_v0  ;;  %8173 = vmatmul.bf16.vlgmr.msrb.gmra.mxu2 %v21761_v30  ;;  %v7937_v0 = vadd.f32 %v7936_v59, %v7923_v54  ;;  %v14486_v54 = vor.u32 %v19039_v44, %v14485_v43  ;;  %v14681_v59 = vld [vmem:[%s28146_s3 + $0x388] sm:$0xf] }
 0x31b   : > { %8221 = vmatpush.bf16.msra.mxu2 %v14878_v1  ;;  %8187 = vmatmul.bf16.vlgmr.msrb.gmra.mxu3 %v21771_v34  ;;  %v19053_v1 = vld [vmem:[%s28146_s3 + $0x288] sm:$0xf0] }
 0x31c   : > { %8235 = vmatpush.bf16.msra.mxu3 %v15102_v8  ;;  %v14318_v8 = vor.u32 %v18997_v61, %v14317_v60  ;;  %v14542_v9 = vor.u32 %v19053_v1, %v14541_v62  ;;  %v14934_v60 = vor.u32 %v19151_v49, %v14933_v48  ;;  %v19088_v61 = vld [vmem:[%s28146_s3 + $0x3a0] sm:$0xf0]  ;;  %v14905_v62 = vld [vmem:[%s28146_s3 + $0x548] sm:$0xf]  ;;  %v19249_v1 = vld [vmem:[%s28146_s3 + $0x8a8] sm:$0xf0] }
 0x31d   : > { %8194 = vmatpush.bf16.msra.mxu0 %v14402_v19  ;;  %v14990_v19 = vor.u32 %v19165_v7, %v14989_v5  ;;  %v19305_v5 = vld [vmem:[%s28146_s3 + $0xa68] sm:$0xf0]  ;;  %v15773_v7 = vld [vmem:[%s28146_s3 + $0xc10] sm:$0xf]  ;;  %v15493_v48 = vld [vmem:[%s28146_s3 + $0x9e0] sm:$0xf] }
 0x31e   : > { %8208 = vmatpush.bf16.msra.mxu1 %v14626_v20  ;;  %v7950_v20 = vpop.f32.mrf.mxu2  ;;  %v7964_v32 = vpop.f32.mrf.mxu3 }
 0x31f   : > { %8222 = vmatpush.bf16.msra.mxu2 %v14850_v21  ;;  %v19046_v21 = vld [vmem:[%s28146_s3 + $0x250] sm:$0xf0]  ;;  %v7951_v28 = vadd.f32 %v7950_v20, %v7937_v0  ;;  %v15325_v0 = vld [vmem:[%s28146_s3 + $0x890] sm:$0xf]  ;;  %v15550_v20 = vor.u32 %v19305_v5, %v15549_v3  ;;  %v15689_v3 = vld [vmem:[%s28146_s3 + $0xb68] sm:$0xf] }
 0x320   : > { %8236 = vmatpush.bf16.msra.mxu3 %v15074_v46  ;;  %v14961_v46 = vld [vmem:[%s28146_s3 + $0x5b8] sm:$0xf]  ;;  %v14514_v37 = vor.u32 %v19046_v21, %v14513_v16 }
 0x321   : > { %8195 = vmatpush.bf16.msra.mxu0 %v14374_v38  ;;  %v22477_v36 = vadd.f32 %v7964_v32, %v7951_v28  ;;  %v14738_v38 = vor.u32 %v19102_v26, %v14737_v22  ;;  %v14962_v42 = vor.u32 %v19158_v29, %v14961_v46  ;;  %v15297_v22 = vld [vmem:[%s28146_s3 + $0x858] sm:$0xf]  ;;  %v19242_v26 = vld [vmem:[%s28146_s3 + $0x870] sm:$0xf0]  ;;  %v15998_v46 = vor.u32 %v19417_v15, %v15997_v13 }
 0x322   : > { %8209 = vmatpush.bf16.msra.mxu1 %v14598_v41  ;;  %v14261_v41 = vld [vmem:[%s28146_s3 + $0x40] sm:$0xf]  ;;  %v15521_v28 = vld [vmem:[%s28146_s3 + $0xa18] sm:$0xf]  ;;  %v19298_v29 = vld [vmem:[%s28146_s3 + $0xa30] sm:$0xf0]  ;;  %v15298_v43 = vor.u32 %v19242_v26, %v15297_v22 }
 0x323   : > { %8223 = vmatpush.bf16.msra.mxu2 %v14822_v35  ;;  %v18983_v35 = vld [vmem:[%s28146_s3 + $0x58] sm:$0xf0]  ;;  %v15745_v32 = vld [vmem:[%s28146_s3 + $0xbd8] sm:$0xf]  ;;  %v15437_v22 = vld [vmem:[%s28146_s3 + $0x970] sm:$0xf] }
 0x324   : > { %8237 = vmatpush.bf16.msra.mxu3 %v15046_v17  ;;  %v14709_v17 = vld [vmem:[%s28146_s3 + $0x3c0] sm:$0xf]  ;;  %v14262_v51 = vor.u32 %v18983_v35, %v14261_v41  ;;  %v19410_v41 = vld [vmem:[%s28146_s3 + $0xdb0] sm:$0xf0]  ;;  %v22577_v35 = vpop.f32.mrf.mxu1 }
 0x325   : > { %8196 = vmatpush.bf16.msra.mxu0 %v14346_v55  ;;  %v14710_v55 = vor.u32 %v19095_v47, %v14709_v17  ;;  %v15269_v17 = vld [vmem:[%s28146_s3 + $0x820] sm:$0xf]  ;;  %v19235_v47 = vld [vmem:[%s28146_s3 + $0x838] sm:$0xf0] }
 0x326   : > { %8210 = vmatpush.bf16.msra.mxu1 %v14570_v56  ;;  %v14457_v56 = vld [vmem:[%s28146_s3 + $0x1c8] sm:$0xf]  ;;  %v22627_v5 = vpop.f32.mrf.mxu3 }
 0x327   : > { %8224 = vmatpush.bf16.msra.mxu2 %v14794_v57  ;;  %v19032_v57 = vld [vmem:[%s28146_s3 + $0x1e0] sm:$0xf0] }
 0x328   : > { %8238 = vmatpush.bf16.msra.mxu3 %v15018_v63  ;;  %v19144_v63 = vld [vmem:[%s28146_s3 + $0x560] sm:$0xf0] }
 0x329   : > { %8197 = vmatpush.bf16.msra.mxu0 %v14318_v8  ;;  %v19361_v8 = vld [vmem:[%s28146_s3 + $0xc28] sm:$0xf0]  ;;  %v14906_v16 = vor.u32 %v19144_v63, %v14905_v62  ;;  %v15465_v62 = vld [vmem:[%s28146_s3 + $0x9a8] sm:$0xf]  ;;  %v22616_v63 = vpop.f32.mrf.mxu2 }
 0x32a   : > { %8211 = vmatpush.bf16.msra.mxu1 %v14542_v9  ;;  %v14458_v9 = vor.u32 %v19032_v57, %v14457_v56  ;;  %v15774_v21 = vor.u32 %v19361_v8, %v15773_v7  ;;  %v15270_v56 = vor.u32 %v19235_v47, %v15269_v17  ;;  %v15913_v8 = vld [vmem:[%s28146_s3 + $0xd28] sm:$0xf]  ;;  %v15409_v17 = vld [vmem:[%s28146_s3 + $0x938] sm:$0xf] }
 0x32b   : > { %8225 = vmatpush.bf16.msra.mxu2 %v14766_v12  ;;  %v14682_v12 = vor.u32 %v19088_v61, %v14681_v59  ;;  %v15718_v59 = vor.u32 %v19347_v53, %v15717_v52  ;;  %v19228_v61 = vld [vmem:[%s28146_s3 + $0x800] sm:$0xf0]  ;;  %v19326_v52 = vld [vmem:[%s28146_s3 + $0xb10] sm:$0xf0] }
 0x32c   : > { %8239 = vmatpush.bf16.msra.mxu3 %v14990_v19  ;;  %v15326_v19 = vor.u32 %v19249_v1, %v15325_v0  ;;  %v19284_v1 = vld [vmem:[%s28146_s3 + $0x9c0] sm:$0xf0] }
 0x32d   : > { %8198 = vmatpush.bf16.msra.mxu0 %v14290_v33  ;;  %v19354_v33 = vld [vmem:[%s28146_s3 + $0xbf0] sm:$0xf0] }
 0x32e   : > { %8212 = vmatpush.bf16.msra.mxu1 %v14514_v37  ;;  %v22569_v37 = vpop.f32.mrf.mxu0  ;;  %v15746_v44 = vor.u32 %v19354_v33, %v15745_v32  ;;  %v15885_v32 = vld [vmem:[%s28146_s3 + $0xcf0] sm:$0xf]  ;;  %v19389_v33 = vld [vmem:[%s28146_s3 + $0xd08] sm:$0xf0] }
 0x32f   : > { %8226 = vmatpush.bf16.msra.mxu2 %v14738_v38  ;;  %v15969_v38 = vld [vmem:[%s28146_s3 + $0xd98] sm:$0xf]  ;;  %v15886_v47 = vor.u32 %v19389_v33, %v15885_v32  ;;  %v16221_v32 = vld [vmem:[%s28146_s3 + $0xf90] sm:$0xf]  ;;  %v19473_v33 = vld [vmem:[%s28146_s3 + $0xfa8] sm:$0xf0] }
 0x330   : > { %8240 = vmatpush.bf16.msra.mxu3 %v14962_v42  ;;  %v15522_v42 = vor.u32 %v19298_v29, %v15521_v28  ;;  %v15970_v49 = vor.u32 %v19410_v41, %v15969_v38  ;;  %v19277_v28 = vld [vmem:[%s28146_s3 + $0x988] sm:$0xf0] }
 0x331   : > { %8199 = vmatpush.bf16.msra.mxu0 %v14262_v51  ;;  %v19291_v51 = vld [vmem:[%s28146_s3 + $0x9f8] sm:$0xf0]  ;;  %v19333_v29 = vld [vmem:[%s28146_s3 + $0xb48] sm:$0xf0]  ;;  %v15438_v41 = vor.u32 %v19277_v28, %v15437_v22  ;;  %v19256_v22 = vld [vmem:[%s28146_s3 + $0x8e0] sm:$0xf0] }
 0x332   : > { %8213 = vmatpush.bf16.msra.mxu1 %v14486_v54  ;;  %v15941_v54 = vld [vmem:[%s28146_s3 + $0xd60] sm:$0xf]  ;;  %v15494_v57 = vor.u32 %v19291_v51, %v15493_v48  ;;  %v15633_v51 = vld [vmem:[%s28146_s3 + $0xaf8] sm:$0xf]  ;;  %v19312_v28 = vld [vmem:[%s28146_s3 + $0xaa0] sm:$0xf0] }
 0x333   : > { %8227 = vmatpush.bf16.msra.mxu2 %v14710_v55  ;;  %v19403_v55 = vld [vmem:[%s28146_s3 + $0xd78] sm:$0xf0] }
 0x334   : > { %8241 = vmatpush.bf16.msra.mxu3 %v14934_v60  ;;  %v15241_v60 = vld [vmem:[%s28146_s3 + $0x7e8] sm:$0xf]  ;;  %v15942_v0 = vor.u32 %v19403_v55, %v15941_v54  ;;  %v15857_v55 = vld [vmem:[%s28146_s3 + $0xcb8] sm:$0xf] }
 0x335   : > { %8200 = vmatpush.bf16.msra.mxu0 %v14234_v4  ;;  %v19340_v4 = vld [vmem:[%s28146_s3 + $0xb80] sm:$0xf0]  ;;  %v15242_v13 = vor.u32 %v19228_v61, %v15241_v60  ;;  %v15634_v61 = vor.u32 %v19326_v52, %v15633_v51  ;;  %v16222_v52 = vor.u32 %v19473_v33, %v16221_v32  ;;  %v16137_v33 = vld [vmem:[%s28146_s3 + $0xee8] sm:$0xf] }
 0x336   : > { %8214 = vmatpush.bf16.msra.mxu1 %v14458_v9  ;;  %v7978_v7 = vpop.f32.mrf.mxu0  ;;  %v19396_v9 = vld [vmem:[%s28146_s3 + $0xd40] sm:$0xf0]  ;;  %v7992_v15 = vpop.f32.mrf.mxu1 }
 0x337   : > { %8228 = vmatpush.bf16.msra.mxu2 %v14682_v12  ;;  %v7979_v12 = vadd.f32 %v7978_v7, %v22477_v36  ;;  %v15914_v36 = vor.u32 %v19396_v9, %v15913_v8  ;;  %v15605_v7 = vld [vmem:[%s28146_s3 + $0xac0] sm:$0xf]  ;;  %v19319_v8 = vld [vmem:[%s28146_s3 + $0xad8] sm:$0xf0] }
 0x338   : > { %8242 = vmatpush.bf16.msra.mxu3 %v14906_v16  ;;  %8201 = vmatmul.bf16.vlgmr.msra.gmra.mxu0 %v21386_v23  ;;  %v15466_v16 = vor.u32 %v19284_v1, %v15465_v62  ;;  %v15157_v62 = vld [vmem:[%s28146_s3 + $0x740] sm:$0xf] }
 0x339   : > { %8249 = vmatpush.bf16.msrb.mxu0 %v15326_v19  ;;  %8215 = vmatmul.bf16.vlgmr.msra.gmra.mxu1 %v21406_v39  ;;  %v15690_v19 = vor.u32 %v19340_v4, %v15689_v3  ;;  %v7993_v26 = vadd.f32 %v7992_v15, %v7979_v12  ;;  %v15381_v1 = vld [vmem:[%s28146_s3 + $0x900] sm:$0xf]  ;;  %v19263_v4 = vld [vmem:[%s28146_s3 + $0x918] sm:$0xf0]  ;;  %v15129_v15 = vld [vmem:[%s28146_s3 + $0x708] sm:$0xf] }
 0x33a   : > { %8263 = vmatpush.bf16.msrb.mxu1 %v15550_v20  ;;  %8229 = vmatmul.bf16.vlgmr.msra.gmra.mxu2 %v21388_v25  ;;  %v15213_v20 = vld [vmem:[%s28146_s3 + $0x7b0] sm:$0xf]  ;;  %v15829_v9 = vld [vmem:[%s28146_s3 + $0xc80] sm:$0xf]  ;;  %v19375_v12 = vld [vmem:[%s28146_s3 + $0xc98] sm:$0xf0] }
 0x33b   : > { %8277 = vmatpush.bf16.msrb.mxu2 %v15774_v21  ;;  %8243 = vmatmul.bf16.vlgmr.msra.gmra.mxu3 %v21425_v24  ;;  %v19221_v21 = vld [vmem:[%s28146_s3 + $0x7c8] sm:$0xf0] }
 0x33c   : > { %8291 = vmatpush.bf16.msrb.mxu3 %v15998_v46  ;;  %v15661_v46 = vld [vmem:[%s28146_s3 + $0xb30] sm:$0xf]  ;;  %v15214_v38 = vor.u32 %v19221_v21, %v15213_v20  ;;  %v15606_v20 = vor.u32 %v19319_v8, %v15605_v7  ;;  %v15353_v21 = vld [vmem:[%s28146_s3 + $0x8c8] sm:$0xf] }
 0x33d   : > { %8250 = vmatpush.bf16.msrb.mxu0 %v15298_v43  ;;  %v15662_v43 = vor.u32 %v19333_v29, %v15661_v46  ;;  %v8006_v48 = vpop.f32.mrf.mxu2  ;;  %v15801_v46 = vld [vmem:[%s28146_s3 + $0xc48] sm:$0xf]  ;;  %v19368_v29 = vld [vmem:[%s28146_s3 + $0xc60] sm:$0xf0] }
 0x33e   : > { %8264 = vmatpush.bf16.msrb.mxu1 %v15522_v42  ;;  %v15185_v42 = vld [vmem:[%s28146_s3 + $0x778] sm:$0xf]  ;;  %v8007_v53 = vadd.f32 %v8006_v48, %v7993_v26  ;;  %v8020_v54 = vpop.f32.mrf.mxu3  ;;  %v15830_v26 = vor.u32 %v19375_v12, %v15829_v9  ;;  %v16893_v48 = vld [vmem:[%s28146_s3 + $0x14d0] sm:$0xf]  ;;  %v15802_v51 = vor.u32 %v19368_v29, %v15801_v46  ;;  %v22784_v8 = vpop.f32.mrf.mxu1  ;;  %v28154_v46 = vperm.slane %v22229_v50, 1 }
 0x33f   : > { %8278 = vmatpush.bf16.msrb.mxu2 %v15746_v44  ;;  %v19214_v44 = vld [vmem:[%s28146_s3 + $0x790] sm:$0xf0]  ;;  %28163 = vst [vmem:[#allocation5_spill] sm:$0xff] %v22784_v8 }
 0x340   : > { %8292 = vmatpush.bf16.msrb.mxu3 %v15970_v49  ;;  %v19270_v49 = vld [vmem:[%s28146_s3 + $0x950] sm:$0xf0] }
 0x341   : > { %8251 = vmatpush.bf16.msrb.mxu0 %v15270_v56  ;;  %v19382_v56 = vld [vmem:[%s28146_s3 + $0xcd0] sm:$0xf0]  ;;  %v15410_v60 = vor.u32 %v19270_v49, %v15409_v17  ;;  %v15354_v17 = vor.u32 %v19256_v22, %v15353_v21  ;;  %v19641_v49 = vld [vmem:[%s28146_s3 + $0x14e8] sm:$0xf0]  ;;  %v16613_v21 = vld [vmem:[%s28146_s3 + $0x12a0] sm:$0xf] }
 0x342   : > { %8265 = vmatpush.bf16.msrb.mxu1 %v15494_v57  ;;  %v15186_v57 = vor.u32 %v19214_v44, %v15185_v42  ;;  %v15858_v3 = vor.u32 %v19382_v56, %v15857_v55  ;;  %v16669_v42 = vld [vmem:[%s28146_s3 + $0x1310] sm:$0xf]  ;;  %v19585_v44 = vld [vmem:[%s28146_s3 + $0x1328] sm:$0xf0]  ;;  %v16193_v55 = vld [vmem:[%s28146_s3 + $0xf58] sm:$0xf] }
 0x343   : > { %8279 = vmatpush.bf16.msrb.mxu2 %v15718_v59  ;;  %v22684_v59 = vadd.f32 %v8020_v54, %v8007_v53  ;;  %v16670_v54 = vor.u32 %v19585_v44, %v16669_v42  ;;  %v19466_v56 = vld [vmem:[%s28146_s3 + $0xf70] sm:$0xf0]  ;;  %v19571_v22 = vld [vmem:[%s28146_s3 + $0x12b8] sm:$0xf0]  ;;  %v19508_v44 = vld [vmem:[%s28146_s3 + $0x10c0] sm:$0xf0] }
 0x344   : > { %8293 = vmatpush.bf16.msrb.mxu3 %v15942_v0  ;;  %v19207_v0 = vld [vmem:[%s28146_s3 + $0x758] sm:$0xf0]  ;;  %v16194_v7 = vor.u32 %v19466_v56, %v16193_v55  ;;  %v16614_v32 = vor.u32 %v19571_v22, %v16613_v21  ;;  %v19438_v21 = vld [vmem:[%s28146_s3 + $0xe90] sm:$0xf0]  ;;  %v16305_v22 = vld [vmem:[%s28146_s3 + $0x1038] sm:$0xf] }
 0x345   : > { %8252 = vmatpush.bf16.msrb.mxu0 %v15242_v13  ;;  %28162 = vst [vmem:[#allocation4_spill] sm:$0xff] %v22684_v59  ;;  %v15158_v13 = vor.u32 %v19207_v0, %v15157_v62  ;;  %v16641_v62 = vld [vmem:[%s28146_s3 + $0x12d8] sm:$0xf]  ;;  %v19578_v0 = vld [vmem:[%s28146_s3 + $0x12f0] sm:$0xf0] }
 0x346   : > { %8266 = vmatpush.bf16.msrb.mxu1 %v15466_v16  ;;  %v19200_v16 = vld [vmem:[%s28146_s3 + $0x720] sm:$0xf0]  ;;  %v16642_v12 = vor.u32 %v19578_v0, %v16641_v62 }
 0x347   : > { %8280 = vmatpush.bf16.msrb.mxu2 %v15690_v19  ;;  %v15382_v19 = vor.u32 %v19263_v4, %v15381_v1  ;;  %v22776_v1 = vpop.f32.mrf.mxu0  ;;  %v19634_v4 = vld [vmem:[%s28146_s3 + $0x14b0] sm:$0xf0] }
 0x348   : > { %8294 = vmatpush.bf16.msrb.mxu3 %v15914_v36  ;;  %v15577_v36 = vld [vmem:[%s28146_s3 + $0xa88] sm:$0xf] }
 0x349   : > { %8253 = vmatpush.bf16.msrb.mxu0 %v15214_v38  ;;  %v16445_v38 = vld [vmem:[%s28146_s3 + $0x1150] sm:$0xf] }
 0x34a   : > { %8267 = vmatpush.bf16.msrb.mxu1 %v15438_v41  ;;  %v15130_v41 = vor.u32 %v19200_v16, %v15129_v15  ;;  %v19459_v15 = vld [vmem:[%s28146_s3 + $0xf38] sm:$0xf0]  ;;  %v16389_v16 = vld [vmem:[%s28146_s3 + $0x10e0] sm:$0xf] }
 0x34b   : > { %8281 = vmatpush.bf16.msrb.mxu2 %v15662_v43  ;;  %v19529_v43 = vld [vmem:[%s28146_s3 + $0x1168] sm:$0xf0] }
 0x34c   : > { %8295 = vmatpush.bf16.msrb.mxu3 %v15886_v47  ;;  %v15578_v47 = vor.u32 %v19312_v28, %v15577_v36  ;;  %v16446_v53 = vor.u32 %v19529_v43, %v16445_v38  ;;  %v16837_v36 = vld [vmem:[%s28146_s3 + $0x1460] sm:$0xf]  ;;  %v19452_v38 = vld [vmem:[%s28146_s3 + $0xf00] sm:$0xf0]  ;;  %v22824_v43 = vpop.f32.mrf.mxu2 }
 0x34d   : > { %8254 = vmatpush.bf16.msrb.mxu0 %v15186_v57  ;;  %v16417_v57 = vld [vmem:[%s28146_s3 + $0x1118] sm:$0xf]  ;;  %28164 = vst [vmem:[#allocation6_spill] sm:$0xff] %v22824_v43 }
 0x34e   : > { %8268 = vmatpush.bf16.msrb.mxu1 %v15410_v60  ;;  %v16894_v60 = vor.u32 %v19641_v49, %v16893_v48  ;;  %v16809_v48 = vld [vmem:[%s28146_s3 + $0x1428] sm:$0xf]  ;;  %v19620_v49 = vld [vmem:[%s28146_s3 + $0x1440] sm:$0xf0] }
 0x34f   : > { %8282 = vmatpush.bf16.msrb.mxu2 %v15634_v61  ;;  %v19522_v61 = vld [vmem:[%s28146_s3 + $0x1130] sm:$0xf0]  ;;  %v16810_v0 = vor.u32 %v19620_v49, %v16809_v48  ;;  %v16053_v48 = vld [vmem:[%s28146_s3 + $0xe40] sm:$0xf]  ;;  %v19431_v49 = vld [vmem:[%s28146_s3 + $0xe58] sm:$0xf0] }
 0x350   : > { %8296 = vmatpush.bf16.msrb.mxu3 %v15858_v3  ;;  %v16865_v3 = vld [vmem:[%s28146_s3 + $0x1498] sm:$0xf]  ;;  %v16418_v9 = vor.u32 %v19522_v61, %v16417_v57  ;;  %v16109_v57 = vld [vmem:[%s28146_s3 + $0xeb0] sm:$0xf] }
 0x351   : > { %8255 = vmatpush.bf16.msrb.mxu0 %v15158_v13  ;;  %v16165_v13 = vld [vmem:[%s28146_s3 + $0xf20] sm:$0xf]  ;;  %v16333_v61 = vld [vmem:[%s28146_s3 + $0x1070] sm:$0xf] }
 0x352   : > { %8269 = vmatpush.bf16.msrb.mxu1 %v15382_v19  ;;  %v16866_v19 = vor.u32 %v19634_v4, %v16865_v3  ;;  %v16166_v28 = vor.u32 %v19459_v15, %v16165_v13  ;;  %v19501_v3 = vld [vmem:[%s28146_s3 + $0x1088] sm:$0xf0]  ;;  %v16557_v4 = vld [vmem:[%s28146_s3 + $0x1230] sm:$0xf] }
 0x353   : > { %8283 = vmatpush.bf16.msrb.mxu2 %v15606_v20  ;;  %v19515_v20 = vld [vmem:[%s28146_s3 + $0x10f8] sm:$0xf0]  ;;  %v19613_v13 = vld [vmem:[%s28146_s3 + $0x1408] sm:$0xf0] }
 0x354   : > { %8297 = vmatpush.bf16.msrb.mxu3 %v15830_v26  ;;  %v19627_v26 = vld [vmem:[%s28146_s3 + $0x1478] sm:$0xf0]  ;;  %v16390_v29 = vor.u32 %v19515_v20, %v16389_v16  ;;  %v16334_v16 = vor.u32 %v19501_v3, %v16333_v61  ;;  %v16081_v20 = vld [vmem:[%s28146_s3 + $0xe78] sm:$0xf]  ;;  %v19424_v3 = vld [vmem:[%s28146_s3 + $0xe20] sm:$0xf0] }
 0x355   : > { %8256 = vmatpush.bf16.msrb.mxu0 %v15130_v41  ;;  %v16361_v41 = vld [vmem:[%s28146_s3 + $0x10a8] sm:$0xf]  ;;  %v16838_v42 = vor.u32 %v19627_v26, %v16837_v36  ;;  %v19494_v26 = vld [vmem:[%s28146_s3 + $0x1050] sm:$0xf0]  ;;  %v19599_v61 = vld [vmem:[%s28146_s3 + $0x1398] sm:$0xf0] }
 0x356   : > { %8270 = vmatpush.bf16.msrb.mxu1 %v15354_v17  ;;  %v16585_v17 = vld [vmem:[%s28146_s3 + $0x1268] sm:$0xf]  ;;  %v16362_v55 = vor.u32 %v19508_v44, %v16361_v41  ;;  %v8048_v62 = vpop.f32.mrf.mxu1 }
 0x357   : > { %8284 = vmatpush.bf16.msrb.mxu2 %v15578_v47  ;;  %v19564_v47 = vld [vmem:[%s28146_s3 + $0x1280] sm:$0xf0] }
 0x358   : > { %8298 = vmatpush.bf16.msrb.mxu3 %v15802_v51  ;;  %8257 = vmatmul.bf16.vlgmr.msrb.gmra.mxu0 %v21540_v6  ;;  %v8034_v51 = vpop.f32.mrf.mxu0  ;;  %v16586_v56 = vor.u32 %v19564_v47, %v16585_v17  ;;  %v16306_v17 = vor.u32 %v19494_v26, %v16305_v22  ;;  %v14431_v22 = vld [vmem:[%s28146_s3 + $0x1ac] sm:$0xf0] }
 0x359   : > { %8305 = vmatpush.bf16.msra.mxu0 %v16222_v52  ;;  %8271 = vmatmul.bf16.vlgmr.msrb.gmra.mxu1 %v21553_v11  ;;  %v22841_v52 = vpop.f32.mrf.mxu3 }
 0x35a   : > { %8319 = vmatpush.bf16.msra.mxu1 %v16446_v53  ;;  %8285 = vmatmul.bf16.vlgmr.msrb.gmra.mxu2 %v21551_v10  ;;  %28165 = vst [vmem:[#allocation7_spill] sm:$0xff] %v22841_v52  ;;  %v16138_v53 = vor.u32 %v19452_v38, %v16137_v33  ;;  %v16753_v33 = vld [vmem:[%s28146_s3 + $0x13b8] sm:$0xf]  ;;  %v19606_v38 = vld [vmem:[%s28146_s3 + $0x13d0] sm:$0xf0] }
 0x35b   : > { %8333 = vmatpush.bf16.msra.mxu2 %v16670_v54  ;;  %8299 = vmatmul.bf16.vlgmr.msrb.gmra.mxu3 %v21561_v14  ;;  %v8035_v54 = vadd.f32 %v8034_v51, %v28154_v46  ;;  %v16277_v51 = vld [vmem:[%s28146_s3 + $0x1000] sm:$0xf] }
 0x35c   : > { %8347 = vmatpush.bf16.msra.mxu3 %v16894_v60  ;;  %v19445_v60 = vld [vmem:[%s28146_s3 + $0xec8] sm:$0xf0] }
 0x35d   : > { %8306 = vmatpush.bf16.msra.mxu0 %v16194_v7  ;;  %v19557_v7 = vld [vmem:[%s28146_s3 + $0x1248] sm:$0xf0]  ;;  %v16110_v15 = vor.u32 %v19445_v60, %v16109_v57  ;;  %v19543_v57 = vld [vmem:[%s28146_s3 + $0x11d8] sm:$0xf0]  ;;  %v16725_v60 = vld [vmem:[%s28146_s3 + $0x1380] sm:$0xf] }
 0x35e   : > { %8320 = vmatpush.bf16.msra.mxu1 %v16418_v9  ;;  %v8049_v9 = vadd.f32 %v8048_v62, %v8035_v54  ;;  %v16754_v54 = vor.u32 %v19606_v38, %v16753_v33  ;;  %v16054_v62 = vor.u32 %v19431_v49, %v16053_v48 }
 0x35f   : > { %8334 = vmatpush.bf16.msra.mxu2 %v16642_v12  ;;  %v16781_v12 = vld [vmem:[%s28146_s3 + $0x13f0] sm:$0xf] }
 0x360   : > { %8348 = vmatpush.bf16.msra.mxu3 %v16866_v19  ;;  %v16558_v19 = vor.u32 %v19557_v7, %v16557_v4  ;;  %v16782_v36 = vor.u32 %v19613_v13, %v16781_v12  ;;  %v19480_v12 = vld [vmem:[%s28146_s3 + $0xfe0] sm:$0xf0]  ;;  %v16473_v13 = vld [vmem:[%s28146_s3 + $0x1188] sm:$0xf]  ;;  %v22967_v49 = vpop.f32.mrf.mxu0 }
 0x361   : > { %8307 = vmatpush.bf16.msra.mxu0 %v16166_v28  ;;  %v16529_v28 = vld [vmem:[%s28146_s3 + $0x11f8] sm:$0xf]  ;;  %v8076_v44 = vpop.f32.mrf.mxu3 }
 0x362   : > { %8321 = vmatpush.bf16.msra.mxu1 %v16390_v29  ;;  %v19550_v29 = vld [vmem:[%s28146_s3 + $0x1210] sm:$0xf0] }
 0x363   : > { %8335 = vmatpush.bf16.msra.mxu2 %v16614_v32  ;;  %v8062_v32 = vpop.f32.mrf.mxu2  ;;  %v16530_v47 = vor.u32 %v19550_v29, %v16529_v28  ;;  %v14655_v28 = vld [vmem:[%s28146_s3 + $0x36c] sm:$0xf0]  ;;  %v19134_v29 = vld [vmem:[%s28146_s3 + $0x514] sm:$0xf] }
 0x364   : > { %8349 = vmatpush.bf16.msra.mxu3 %v16838_v42  ;;  %v8063_v41 = vadd.f32 %v8062_v32, %v8049_v9  ;;  %v16082_v42 = vor.u32 %v19438_v21, %v16081_v20  ;;  %v16249_v9 = vld [vmem:[%s28146_s3 + $0xfc8] sm:$0xf]  ;;  %v19592_v20 = vld [vmem:[%s28146_s3 + $0x1360] sm:$0xf0]  ;;  %v19022_v21 = vld [vmem:[%s28146_s3 + $0x194] sm:$0xf] }
 0x365   : > { %8308 = vmatpush.bf16.msra.mxu0 %v16138_v53  ;;  %v14879_v32 = vld [vmem:[%s28146_s3 + $0x52c] sm:$0xf0]  ;;  %v16250_v33 = vor.u32 %v19480_v12, %v16249_v9  ;;  %v19008_v12 = vld [vmem:[%s28146_s3 + $0x124] sm:$0xf] }
 0x366   : > { %8322 = vmatpush.bf16.msra.mxu1 %v16362_v55  ;;  %v22902_v53 = vadd.f32 %v8076_v44, %v8063_v41  ;;  %v19487_v55 = vld [vmem:[%s28146_s3 + $0x1018] sm:$0xf0]  ;;  %v19190_v41 = vld [vmem:[%s28146_s3 + $0x6d4] sm:$0xf]  ;;  %v14882_v48 = vor.u32 %v19134_v29, %v14879_v32 }
 0x367   : > { %8336 = vmatpush.bf16.msra.mxu2 %v16586_v56  ;;  %v16501_v56 = vld [vmem:[%s28146_s3 + $0x11c0] sm:$0xf]  ;;  %v16278_v4 = vor.u32 %v19487_v55, %v16277_v51  ;;  %v19015_v51 = vld [vmem:[%s28146_s3 + $0x15c] sm:$0xf] }
 0x368   : > { %8350 = vmatpush.bf16.msra.mxu3 %v16810_v0  ;;  %v16025_v0 = vld [vmem:[%s28146_s3 + $0xe08] sm:$0xf]  ;;  %v16502_v7 = vor.u32 %v19543_v57, %v16501_v56  ;;  %v19071_v55 = vld [vmem:[%s28146_s3 + $0x31c] sm:$0xf]  ;;  %v14627_v57 = vld [vmem:[%s28146_s3 + $0x334] sm:$0xf0] }
 0x369   : > { %8309 = vmatpush.bf16.msra.mxu0 %v16110_v15  ;;  %v16726_v15 = vor.u32 %v19599_v61, %v16725_v60  ;;  %v16026_v26 = vor.u32 %v19424_v3, %v16025_v0  ;;  %v19127_v60 = vld [vmem:[%s28146_s3 + $0x4dc] sm:$0xf]  ;;  %v14851_v61 = vld [vmem:[%s28146_s3 + $0x4f4] sm:$0xf0]  ;;  %v22993_v3 = vpop.f32.mrf.mxu1 }
 0x36a   : > { %8323 = vmatpush.bf16.msra.mxu1 %v16334_v16  ;;  %v19536_v16 = vld [vmem:[%s28146_s3 + $0x11a0] sm:$0xf0]  ;;  %v15075_v0 = vld [vmem:[%s28146_s3 + $0x6b4] sm:$0xf0]  ;;  %v14854_v9 = vor.u32 %v19127_v60, %v14851_v61 }
 0x36b   : > { %8337 = vmatpush.bf16.msra.mxu2 %v16558_v19  ;;  %v16697_v19 = vld [vmem:[%s28146_s3 + $0x1348] sm:$0xf]  ;;  %v16474_v38 = vor.u32 %v19536_v16, %v16473_v13  ;;  %v14375_v13 = vld [vmem:[%s28146_s3 + $0x13c] sm:$0xf0] }
 0x36c   : > { %8351 = vmatpush.bf16.msra.mxu3 %v16782_v36  ;;  %v19078_v36 = vld [vmem:[%s28146_s3 + $0x354] sm:$0xf]  ;;  %v16698_v44 = vor.u32 %v19592_v20, %v16697_v19  ;;  %v14599_v19 = vld [vmem:[%s28146_s3 + $0x2fc] sm:$0xf0]  ;;  %v19120_v20 = vld [vmem:[%s28146_s3 + $0x4a4] sm:$0xf] }
 0x36d   : > { %8310 = vmatpush.bf16.msra.mxu0 %v16082_v42  ;;  %v15103_v42 = vld [vmem:[%s28146_s3 + $0x6ec] sm:$0xf0] }
 0x36e   : > { %8324 = vmatpush.bf16.msra.mxu1 %v16306_v17  ;;  %v14434_v17 = vor.u32 %v19022_v21, %v14431_v22  ;;  %v15106_v56 = vor.u32 %v19190_v41, %v15103_v42  ;;  %v14823_v21 = vld [vmem:[%s28146_s3 + $0x4bc] sm:$0xf0]  ;;  %v19176_v22 = vld [vmem:[%s28146_s3 + $0x664] sm:$0xf]  ;;  %v19057_v41 = vld [vmem:[%s28146_s3 + $0x2ac] sm:$0xf] }
 0x36f   : > { %8338 = vmatpush.bf16.msra.mxu2 %v16530_v47  ;;  %v14658_v47 = vor.u32 %v19078_v36, %v14655_v28  ;;  %v15047_v36 = vld [vmem:[%s28146_s3 + $0x67c] sm:$0xf0]  ;;  %v23023_v28 = vpop.f32.mrf.mxu2  ;;  %v14826_v32 = vor.u32 %v19120_v20, %v14823_v21 }
 0x370   : > { %8352 = vmatpush.bf16.msra.mxu3 %v16754_v54  ;;  %v14403_v54 = vld [vmem:[%s28146_s3 + $0x174] sm:$0xf0]  ;;  %v15050_v42 = vor.u32 %v19176_v22, %v15047_v36  ;;  %v18987_v36 = vld [vmem:[%s28146_s3 + $0x7c] sm:$0xf] }
 0x371   : > { %8311 = vmatpush.bf16.msra.mxu0 %v16054_v62  ;;  %v19183_v62 = vld [vmem:[%s28146_s3 + $0x69c] sm:$0xf] }
 0x372   : > { %8325 = vmatpush.bf16.msra.mxu1 %v16278_v4  ;;  %v14406_v4 = vor.u32 %v19015_v51, %v14403_v54  ;;  %v15078_v16 = vor.u32 %v19183_v62, %v15075_v0  ;;  %v19169_v54 = vld [vmem:[%s28146_s3 + $0x62c] sm:$0xf]  ;;  %v18994_v0 = vld [vmem:[%s28146_s3 + $0xb4] sm:$0xf] }
 0x373   : > { %8339 = vmatpush.bf16.msra.mxu2 %v16502_v7  ;;  %v14630_v7 = vor.u32 %v19071_v55, %v14627_v57  ;;  %v15019_v55 = vld [vmem:[%s28146_s3 + $0x644] sm:$0xf0] }
 0x374   : > { %8353 = vmatpush.bf16.msra.mxu3 %v16726_v15  ;;  %v19064_v15 = vld [vmem:[%s28146_s3 + $0x2e4] sm:$0xf] }
 0x375   : > { %8312 = vmatpush.bf16.msra.mxu0 %v16026_v26  ;;  %v14378_v26 = vor.u32 %v19008_v12, %v14375_v13  ;;  %v14602_v29 = vor.u32 %v19064_v15, %v14599_v19  ;;  %v8090_v51 = vpop.f32.mrf.mxu0  ;;  %v14543_v12 = vld [vmem:[%s28146_s3 + $0x28c] sm:$0xf0]  ;;  %v19106_v13 = vld [vmem:[%s28146_s3 + $0x434] sm:$0xf] }
 0x376   : > { %8326 = vmatpush.bf16.msra.mxu1 %v16250_v33  ;;  %v19001_v33 = vld [vmem:[%s28146_s3 + $0xec] sm:$0xf]  ;;  %v8104_v62 = vpop.f32.mrf.mxu1  ;;  %v14767_v15 = vld [vmem:[%s28146_s3 + $0x44c] sm:$0xf0] }
 0x377   : > { %8340 = vmatpush.bf16.msra.mxu2 %v16474_v38  ;;  %v14347_v38 = vld [vmem:[%s28146_s3 + $0x104] sm:$0xf0]  ;;  %v14991_v19 = vld [vmem:[%s28146_s3 + $0x60c] sm:$0xf0]  ;;  %v14770_v22 = vor.u32 %v19106_v13, %v14767_v15  ;;  %v18973_v15 = vld [vmem:[%s28146_s3 + $0xc] sm:$0xf] }
 0x378   : > { %8354 = vmatpush.bf16.msra.mxu3 %v16698_v44  ;;  %8313 = vmatmul.bf16.vlgmr.msra.gmra.mxu0 %v21750_v27  ;;  %v23034_v44 = vpop.f32.mrf.mxu3  ;;  %v14350_v57 = vor.u32 %v19001_v33, %v14347_v38  ;;  %v14515_v38 = vld [vmem:[%s28146_s3 + $0x254] sm:$0xf0] }
 0x379   : > { %8361 = vmatpush.bf16.msrb.mxu0 %v14434_v17  ;;  %8327 = vmatmul.bf16.vlgmr.msra.gmra.mxu1 %v21763_v31  ;;  %v14571_v17 = vld [vmem:[%s28146_s3 + $0x2c4] sm:$0xf0] }
 0x37a   : > { %8375 = vmatpush.bf16.msrb.mxu1 %v14658_v47  ;;  %8341 = vmatmul.bf16.vlgmr.msra.gmra.mxu2 %v21761_v30  ;;  %v19113_v47 = vld [vmem:[%s28146_s3 + $0x46c] sm:$0xf]  ;;  %v14574_v60 = vor.u32 %v19057_v41, %v14571_v17  ;;  %v19099_v41 = vld [vmem:[%s28146_s3 + $0x3fc] sm:$0xf] }
 0x37b   : > { %8389 = vmatpush.bf16.msrb.mxu2 %v14882_v48  ;;  %8355 = vmatmul.bf16.vlgmr.msra.gmra.mxu3 %v21771_v34  ;;  %v14795_v48 = vld [vmem:[%s28146_s3 + $0x484] sm:$0xf0] }
 0x37c   : > { %8403 = vmatpush.bf16.msrb.mxu3 %v15106_v56  ;;  %v8091_v56 = vadd.f32 %v8090_v51, %v22902_v53  ;;  %v14798_v61 = vor.u32 %v19113_v47, %v14795_v48  ;;  %v15022_v53 = vor.u32 %v19169_v54, %v15019_v55  ;;  %v19155_v47 = vld [vmem:[%s28146_s3 + $0x5bc] sm:$0xf]  ;;  %v14963_v48 = vld [vmem:[%s28146_s3 + $0x5d4] sm:$0xf0] }
 0x37d   : > { %8362 = vmatpush.bf16.msrb.mxu0 %v14406_v4  ;;  %v14319_v4 = vld [vmem:[%s28146_s3 + $0xcc] sm:$0xf0]  ;;  %v8118_v33 = vpop.f32.mrf.mxu2 }
 0x37e   : > { %8376 = vmatpush.bf16.msrb.mxu1 %v14630_v7  ;;  %v19050_v7 = vld [vmem:[%s28146_s3 + $0x274] sm:$0xf]  ;;  %v14322_v20 = vor.u32 %v18994_v0, %v14319_v4  ;;  %v14966_v0 = vor.u32 %v19155_v47, %v14963_v48  ;;  %v14487_v4 = vld [vmem:[%s28146_s3 + $0x21c] sm:$0xf0]  ;;  %v15551_v47 = vld [vmem:[%s28146_s3 + $0xa6c] sm:$0xf0] }
 0x37f   : > { %8390 = vmatpush.bf16.msrb.mxu2 %v14854_v9  ;;  %v8105_v9 = vadd.f32 %v8104_v62, %v8091_v56  ;;  %v14546_v21 = vor.u32 %v19050_v7, %v14543_v12  ;;  %v19036_v62 = vld [vmem:[%s28146_s3 + $0x204] sm:$0xf]  ;;  %v14935_v12 = vld [vmem:[%s28146_s3 + $0x59c] sm:$0xf0]  ;;  %v19358_v48 = vld [vmem:[%s28146_s3 + $0xc14] sm:$0xf] }
 0x380   : > { %8404 = vmatpush.bf16.msrb.mxu3 %v15078_v16  ;;  %v19162_v16 = vld [vmem:[%s28146_s3 + $0x5f4] sm:$0xf]  ;;  %v8132_v51 = vpop.f32.mrf.mxu3  ;;  %v19092_v7 = vld [vmem:[%s28146_s3 + $0x3c4] sm:$0xf] }
 0x381   : > { %8363 = vmatpush.bf16.msrb.mxu0 %v14378_v26  ;;  %v14291_v26 = vld [vmem:[%s28146_s3 + $0x94] sm:$0xf0]  ;;  %v8119_v17 = vadd.f32 %v8118_v33, %v8105_v9  ;;  %v19148_v9 = vld [vmem:[%s28146_s3 + $0x584] sm:$0xf]  ;;  %v14907_v33 = vld [vmem:[%s28146_s3 + $0x564] sm:$0xf0] }
 0x382   : > { %8377 = vmatpush.bf16.msrb.mxu1 %v14602_v29  ;;  %v19043_v29 = vld [vmem:[%s28146_s3 + $0x23c] sm:$0xf]  ;;  %v14294_v54 = vor.u32 %v18987_v36, %v14291_v26  ;;  %v19085_v36 = vld [vmem:[%s28146_s3 + $0x38c] sm:$0xf]  ;;  %v14938_v26 = vor.u32 %v19148_v9, %v14935_v12 }
 0x383   : > { %8391 = vmatpush.bf16.msrb.mxu2 %v14826_v32  ;;  %v14994_v32 = vor.u32 %v19162_v16, %v14991_v19  ;;  %v23100_v55 = vadd.f32 %v8132_v51, %v8119_v17  ;;  %v14518_v56 = vor.u32 %v19043_v29, %v14515_v38  ;;  %v14235_v16 = vld [vmem:[%s28146_s3 + $0x24] sm:$0xf0]  ;;  %v14490_v19 = vor.u32 %v19036_v62, %v14487_v4  ;;  %v19246_v38 = vld [vmem:[%s28146_s3 + $0x894] sm:$0xf]  ;;  %v15775_v51 = vld [vmem:[%s28146_s3 + $0xc2c] sm:$0xf0] }
 0x384   : > { %8405 = vmatpush.bf16.msrb.mxu3 %v15050_v42  ;;  %v14739_v42 = vld [vmem:[%s28146_s3 + $0x414] sm:$0xf0]  ;;  %v14683_v29 = vld [vmem:[%s28146_s3 + $0x3a4] sm:$0xf0]  ;;  %v14238_v17 = vor.u32 %v18973_v15, %v14235_v16  ;;  %v15778_v4 = vor.u32 %v19358_v48, %v15775_v51  ;;  %v19295_v9 = vld [vmem:[%s28146_s3 + $0xa1c] sm:$0xf] }
 0x385   : > { %8364 = vmatpush.bf16.msrb.mxu0 %v14350_v57  ;;  %v14742_v57 = vor.u32 %v19099_v41, %v14739_v42  ;;  %v15327_v41 = vld [vmem:[%s28146_s3 + $0x8ac] sm:$0xf0]  ;;  %v19302_v42 = vld [vmem:[%s28146_s3 + $0xa54] sm:$0xf]  ;;  %v19351_v15 = vld [vmem:[%s28146_s3 + $0xbdc] sm:$0xf] }
 0x386   : > { %8378 = vmatpush.bf16.msrb.mxu1 %v14574_v60  ;;  %v18980_v60 = vld [vmem:[%s28146_s3 + $0x44] sm:$0xf]  ;;  %v15330_v62 = vor.u32 %v19246_v38, %v15327_v41  ;;  %v15747_v16 = vld [vmem:[%s28146_s3 + $0xbf4] sm:$0xf0]  ;;  %v15943_v51 = vld [vmem:[%s28146_s3 + $0xd7c] sm:$0xf0] }
 0x387   : > { %8392 = vmatpush.bf16.msrb.mxu2 %v14798_v61  ;;  %v14263_v61 = vld [vmem:[%s28146_s3 + $0x5c] sm:$0xf0]  ;;  %v19288_v38 = vld [vmem:[%s28146_s3 + $0x9e4] sm:$0xf] }
 0x388   : > { %8406 = vmatpush.bf16.msrb.mxu3 %v15022_v53  ;;  %v14711_v53 = vld [vmem:[%s28146_s3 + $0x3dc] sm:$0xf0]  ;;  %v14266_v13 = vor.u32 %v18980_v60, %v14263_v61  ;;  %v15999_v60 = vld [vmem:[%s28146_s3 + $0xdec] sm:$0xf0]  ;;  %v19400_v48 = vld [vmem:[%s28146_s3 + $0xd64] sm:$0xf] }
 0x389   : > { %8365 = vmatpush.bf16.msrb.mxu0 %v14322_v20  ;;  %v14714_v20 = vor.u32 %v19092_v7, %v14711_v53  ;;  %v19239_v7 = vld [vmem:[%s28146_s3 + $0x85c] sm:$0xf]  ;;  %v15299_v53 = vld [vmem:[%s28146_s3 + $0x874] sm:$0xf0] }
 0x38a   : > { %8379 = vmatpush.bf16.msrb.mxu1 %v14546_v21  ;;  %v19029_v21 = vld [vmem:[%s28146_s3 + $0x1cc] sm:$0xf] }
 0x38b   : > { %8393 = vmatpush.bf16.msrb.mxu2 %v14770_v22  ;;  %v14459_v22 = vld [vmem:[%s28146_s3 + $0x1e4] sm:$0xf0] }
 0x38c   : > { %8407 = vmatpush.bf16.msrb.mxu3 %v14994_v32  ;;  %v19141_v32 = vld [vmem:[%s28146_s3 + $0x54c] sm:$0xf] }
 0x38d   : > { %8366 = vmatpush.bf16.msrb.mxu0 %v14294_v54  ;;  %v14462_v54 = vor.u32 %v19029_v21, %v14459_v22  ;;  %v14910_v61 = vor.u32 %v19141_v32, %v14907_v33  ;;  %v15971_v21 = vld [vmem:[%s28146_s3 + $0xdb4] sm:$0xf0]  ;;  %v23200_v22 = vpop.f32.mrf.mxu1  ;;  %v19232_v32 = vld [vmem:[%s28146_s3 + $0x824] sm:$0xf]  ;;  %v15271_v33 = vld [vmem:[%s28146_s3 + $0x83c] sm:$0xf0] }
 0x38e   : > { %8380 = vmatpush.bf16.msrb.mxu1 %v14518_v56  ;;  %v14686_v56 = vor.u32 %v19085_v36, %v14683_v29  ;;  %v15302_v36 = vor.u32 %v19239_v7, %v15299_v53  ;;  %v15750_v29 = vor.u32 %v19351_v15, %v15747_v16  ;;  %v15467_v7 = vld [vmem:[%s28146_s3 + $0x9c4] sm:$0xf0]  ;;  %v19337_v53 = vld [vmem:[%s28146_s3 + $0xb6c] sm:$0xf] }
 0x38f   : > { %8394 = vmatpush.bf16.msrb.mxu2 %v14742_v57  ;;  %v19414_v57 = vld [vmem:[%s28146_s3 + $0xdd4] sm:$0xf]  ;;  %v19393_v15 = vld [vmem:[%s28146_s3 + $0xd2c] sm:$0xf]  ;;  %v15915_v16 = vld [vmem:[%s28146_s3 + $0xd44] sm:$0xf0] }
 0x390   : > { %8408 = vmatpush.bf16.msrb.mxu3 %v14966_v0  ;;  %v15554_v0 = vor.u32 %v19302_v42, %v15551_v47  ;;  %v16002_v12 = vor.u32 %v19414_v57, %v15999_v60  ;;  %v15495_v42 = vld [vmem:[%s28146_s3 + $0x9fc] sm:$0xf0]  ;;  %v19225_v60 = vld [vmem:[%s28146_s3 + $0x7ec] sm:$0xf] }
 0x391   : > { %8367 = vmatpush.bf16.msrb.mxu0 %v14266_v13  ;;  %v15523_v13 = vld [vmem:[%s28146_s3 + $0xa34] sm:$0xf0]  ;;  %v15719_v47 = vld [vmem:[%s28146_s3 + $0xbbc] sm:$0xf0] }
 0x392   : > { %8381 = vmatpush.bf16.msrb.mxu1 %v14490_v19  ;;  %v23192_v19 = vpop.f32.mrf.mxu0 }
 0x393   : > { %8395 = vmatpush.bf16.msrb.mxu2 %v14714_v20  ;;  %v19407_v20 = vld [vmem:[%s28146_s3 + $0xd9c] sm:$0xf] }
 0x394   : > { %8409 = vmatpush.bf16.msrb.mxu3 %v14938_v26  ;;  %v15526_v26 = vor.u32 %v19295_v9, %v15523_v13  ;;  %v15974_v41 = vor.u32 %v19407_v20, %v15971_v21  ;;  %v15691_v9 = vld [vmem:[%s28146_s3 + $0xb84] sm:$0xf0] }
 0x395   : > { %8368 = vmatpush.bf16.msrb.mxu0 %v14238_v17  ;;  %v19344_v17 = vld [vmem:[%s28146_s3 + $0xba4] sm:$0xf] }
 0x396   : > { %8382 = vmatpush.bf16.msrb.mxu1 %v14462_v54  ;;  %v15274_v54 = vor.u32 %v19232_v32, %v15271_v33  ;;  %v15722_v57 = vor.u32 %v19344_v17, %v15719_v47  ;;  %v19218_v32 = vld [vmem:[%s28146_s3 + $0x7b4] sm:$0xf]  ;;  %v15215_v33 = vld [vmem:[%s28146_s3 + $0x7cc] sm:$0xf0] }
 0x397   : > { %8396 = vmatpush.bf16.msrb.mxu2 %v14686_v56  ;;  %v15498_v56 = vor.u32 %v19288_v38, %v15495_v42  ;;  %v19274_v38 = vld [vmem:[%s28146_s3 + $0x974] sm:$0xf]  ;;  %v15439_v42 = vld [vmem:[%s28146_s3 + $0x98c] sm:$0xf0] }
 0x398   : > { %8410 = vmatpush.bf16.msrb.mxu3 %v14910_v61  ;;  %8369 = vmatmul.bf16.vlgmr.msrb.gmra.mxu0 %v21386_v23  ;;  %v15243_v61 = vld [vmem:[%s28146_s3 + $0x804] sm:$0xf0]  ;;  %v19330_v17 = vld [vmem:[%s28146_s3 + $0xb34] sm:$0xf]  ;;  %v15663_v47 = vld [vmem:[%s28146_s3 + $0xb4c] sm:$0xf0] }
 0x399   : > { %8417 = vmatpush.bf16.msra.mxu0 %v15330_v62  ;;  %8383 = vmatmul.bf16.vlgmr.msrb.gmra.mxu1 %v21406_v39  ;;  %v19281_v62 = vld [vmem:[%s28146_s3 + $0x9ac] sm:$0xf]  ;;  %v15246_v21 = vor.u32 %v19225_v60, %v15243_v61  ;;  %v19211_v60 = vld [vmem:[%s28146_s3 + $0x77c] sm:$0xf]  ;;  %v15187_v61 = vld [vmem:[%s28146_s3 + $0x794] sm:$0xf0] }
 0x39a   : > { %8431 = vmatpush.bf16.msra.mxu1 %v15554_v0  ;;  %8397 = vmatmul.bf16.vlgmr.msrb.gmra.mxu2 %v21388_v25  ;;  %v23239_v0 = vpop.f32.mrf.mxu2  ;;  %v8146_v13 = vpop.f32.mrf.mxu0 }
 0x39b   : > { %8445 = vmatpush.bf16.msra.mxu2 %v15778_v4  ;;  %8411 = vmatmul.bf16.vlgmr.msrb.gmra.mxu3 %v21425_v24  ;;  %v15946_v4 = vor.u32 %v19400_v48, %v15943_v51  ;;  %v8147_v20 = vadd.f32 %v8146_v13, %v23100_v55  ;;  %v15918_v55 = vor.u32 %v19393_v15, %v15915_v16  ;;  %v19386_v48 = vld [vmem:[%s28146_s3 + $0xcf4] sm:$0xf]  ;;  %v15887_v51 = vld [vmem:[%s28146_s3 + $0xd0c] sm:$0xf0]  ;;  %v15635_v13 = vld [vmem:[%s28146_s3 + $0xb14] sm:$0xf0] }
 0x39c   : > { %8459 = vmatpush.bf16.msra.mxu3 %v16002_v12  ;;  %v23250_v12 = vpop.f32.mrf.mxu3 }
 0x39d   : > { %8418 = vmatpush.bf16.msra.mxu0 %v15302_v36  ;;  %28166 = vst [vmem:[#allocation8_spill] sm:$0xff] %v23250_v12  ;;  %v8160_v36 = vpop.f32.mrf.mxu1 }
 0x39e   : > { %8432 = vmatpush.bf16.msra.mxu1 %v15526_v26  ;;  %v15470_v26 = vor.u32 %v19281_v62, %v15467_v7  ;;  %v19267_v62 = vld [vmem:[%s28146_s3 + $0x93c] sm:$0xf] }
 0x39f   : > { %8446 = vmatpush.bf16.msra.mxu2 %v15750_v29  ;;  %v15694_v29 = vor.u32 %v19337_v53, %v15691_v9  ;;  %v15411_v53 = vld [vmem:[%s28146_s3 + $0x954] sm:$0xf0]  ;;  %v19323_v9 = vld [vmem:[%s28146_s3 + $0xafc] sm:$0xf] }
 0x3a0   : > { %8460 = vmatpush.bf16.msra.mxu3 %v15974_v41  ;;  %v8161_v41 = vadd.f32 %v8160_v36, %v8147_v20  ;;  %v19379_v20 = vld [vmem:[%s28146_s3 + $0xcbc] sm:$0xf]  ;;  %v15190_v36 = vor.u32 %v19211_v60, %v15187_v61 }
 0x3a1   : > { %8419 = vmatpush.bf16.msra.mxu0 %v15274_v54  ;;  %v15218_v54 = vor.u32 %v19218_v32, %v15215_v33  ;;  %v15638_v32 = vor.u32 %v19323_v9, %v15635_v13  ;;  %v19204_v33 = vld [vmem:[%s28146_s3 + $0x744] sm:$0xf]  ;;  %v15579_v9 = vld [vmem:[%s28146_s3 + $0xaa4] sm:$0xf0]  ;;  %v19365_v13 = vld [vmem:[%s28146_s3 + $0xc4c] sm:$0xf] }
 0x3a2   : > { %8433 = vmatpush.bf16.msra.mxu1 %v15498_v56  ;;  %v15442_v56 = vor.u32 %v19274_v38, %v15439_v42  ;;  %v8174_v7 = vpop.f32.mrf.mxu2  ;;  %v15159_v38 = vld [vmem:[%s28146_s3 + $0x75c] sm:$0xf0] }
 0x3a3   : > { %8447 = vmatpush.bf16.msra.mxu2 %v15722_v57  ;;  %v15666_v57 = vor.u32 %v19330_v17, %v15663_v47  ;;  %v8175_v15 = vadd.f32 %v8174_v7, %v8161_v41  ;;  %v15383_v42 = vld [vmem:[%s28146_s3 + $0x91c] sm:$0xf0]  ;;  %v19316_v17 = vld [vmem:[%s28146_s3 + $0xac4] sm:$0xf]  ;;  %v19309_v7 = vld [vmem:[%s28146_s3 + $0xa8c] sm:$0xf] }
 0x3a4   : > { %8461 = vmatpush.bf16.msra.mxu3 %v15946_v4  ;;  %v15890_v4 = vor.u32 %v19386_v48, %v15887_v51  ;;  %v8188_v16 = vpop.f32.mrf.mxu3  ;;  %v15607_v47 = vld [vmem:[%s28146_s3 + $0xadc] sm:$0xf0]  ;;  %v19372_v48 = vld [vmem:[%s28146_s3 + $0xc84] sm:$0xf] }
 0x3a5   : > { %8420 = vmatpush.bf16.msra.mxu0 %v15246_v21  ;;  %v15859_v21 = vld [vmem:[%s28146_s3 + $0xcd4] sm:$0xf0]  ;;  %v15831_v51 = vld [vmem:[%s28146_s3 + $0xc9c] sm:$0xf0]  ;;  %v15610_v61 = vor.u32 %v19316_v17, %v15607_v47 }
 0x3a6   : > { %8434 = vmatpush.bf16.msra.mxu1 %v15470_v26  ;;  %v23307_v26 = vadd.f32 %v8188_v16, %v8175_v15  ;;  %v15862_v41 = vor.u32 %v19379_v20, %v15859_v21  ;;  %v15803_v15 = vld [vmem:[%s28146_s3 + $0xc64] sm:$0xf0]  ;;  %v19470_v16 = vld [vmem:[%s28146_s3 + $0xf94] sm:$0xf]  ;;  %v16223_v20 = vld [vmem:[%s28146_s3 + $0xfac] sm:$0xf0] }
 0x3a7   : > { %8448 = vmatpush.bf16.msra.mxu2 %v15694_v29  ;;  %v15414_v29 = vor.u32 %v19267_v62, %v15411_v53  ;;  %v19253_v62 = vld [vmem:[%s28146_s3 + $0x8cc] sm:$0xf]  ;;  %v15834_v53 = vor.u32 %v19372_v48, %v15831_v51  ;;  %v19526_v21 = vld [vmem:[%s28146_s3 + $0x1154] sm:$0xf]  ;;  %v15806_v17 = vor.u32 %v19365_v13, %v15803_v15  ;;  %v16226_v47 = vor.u32 %v19470_v16, %v16223_v20  ;;  %v23407_v15 = vpop.f32.mrf.mxu1 }
 0x3a8   : > { %8462 = vmatpush.bf16.msra.mxu3 %v15918_v55  ;;  %28167 = vst [vmem:[#allocation9_spill] sm:$0xff] %v23307_v26  ;;  %v19260_v55 = vld [vmem:[%s28146_s3 + $0x904] sm:$0xf] }
 0x3a9   : > { %8421 = vmatpush.bf16.msra.mxu0 %v15218_v54  ;;  %v15162_v54 = vor.u32 %v19204_v33, %v15159_v38  ;;  %v15386_v60 = vor.u32 %v19260_v55, %v15383_v42  ;;  %v16671_v33 = vld [vmem:[%s28146_s3 + $0x132c] sm:$0xf0]  ;;  %v15582_v55 = vor.u32 %v19309_v7, %v15579_v9  ;;  %v23399_v7 = vpop.f32.mrf.mxu0  ;;  %v16867_v9 = vld [vmem:[%s28146_s3 + $0x14b4] sm:$0xf0]  ;;  %28169 = vst [vmem:[#allocation11_spill] sm:$0xff] %v23407_v15 }
 0x3aa   : > { %8435 = vmatpush.bf16.msra.mxu1 %v15442_v56  ;;  %v19197_v56 = vld [vmem:[%s28146_s3 + $0x70c] sm:$0xf]  ;;  %v16895_v42 = vld [vmem:[%s28146_s3 + $0x14ec] sm:$0xf0]  ;;  %28168 = vst [vmem:[#allocation10_spill] sm:$0xff] %v23399_v7 }
 0x3ab   : > { %8449 = vmatpush.bf16.msra.mxu2 %v15666_v57  ;;  %v15131_v57 = vld [vmem:[%s28146_s3 + $0x724] sm:$0xf0] }
 0x3ac   : > { %8463 = vmatpush.bf16.msra.mxu3 %v15890_v4  ;;  %v15355_v4 = vld [vmem:[%s28146_s3 + $0x8e4] sm:$0xf0] }
 0x3ad   : > { %8422 = vmatpush.bf16.msra.mxu0 %v15190_v36  ;;  %v15134_v36 = vor.u32 %v19197_v56, %v15131_v57  ;;  %v15358_v38 = vor.u32 %v19253_v62, %v15355_v4  ;;  %v16195_v56 = vld [vmem:[%s28146_s3 + $0xf74] sm:$0xf0]  ;;  %v19519_v57 = vld [vmem:[%s28146_s3 + $0x111c] sm:$0xf] }
 0x3ae   : > { %8436 = vmatpush.bf16.msra.mxu1 %v15414_v29  ;;  %v16447_v29 = vld [vmem:[%s28146_s3 + $0x116c] sm:$0xf0]  ;;  %v19575_v62 = vld [vmem:[%s28146_s3 + $0x12dc] sm:$0xf]  ;;  %v16643_v4 = vld [vmem:[%s28146_s3 + $0x12f4] sm:$0xf0] }
 0x3af   : > { %8450 = vmatpush.bf16.msra.mxu2 %v15638_v32  ;;  %v19582_v32 = vld [vmem:[%s28146_s3 + $0x1314] sm:$0xf]  ;;  %v16450_v48 = vor.u32 %v19526_v21, %v16447_v29  ;;  %v16646_v20 = vor.u32 %v19575_v62, %v16643_v4  ;;  %v19456_v21 = vld [vmem:[%s28146_s3 + $0xf24] sm:$0xf]  ;;  %v16363_v4 = vld [vmem:[%s28146_s3 + $0x10c4] sm:$0xf0] }
 0x3b0   : > { %8464 = vmatpush.bf16.msra.mxu3 %v15862_v41  ;;  %v19638_v41 = vld [vmem:[%s28146_s3 + $0x14d4] sm:$0xf]  ;;  %v16674_v51 = vor.u32 %v19582_v32, %v16671_v33  ;;  %v19512_v29 = vld [vmem:[%s28146_s3 + $0x10e4] sm:$0xf]  ;;  %v16391_v33 = vld [vmem:[%s28146_s3 + $0x10fc] sm:$0xf0] }
 0x3b1   : > { %8423 = vmatpush.bf16.msra.mxu0 %v15162_v54  ;;  %v19463_v54 = vld [vmem:[%s28146_s3 + $0xf5c] sm:$0xf] }
 0x3b2   : > { %8437 = vmatpush.bf16.msra.mxu1 %v15386_v60  ;;  %v16898_v60 = vor.u32 %v19638_v41, %v16895_v42  ;;  %v16198_v13 = vor.u32 %v19463_v54, %v16195_v56  ;;  %v19624_v41 = vld [vmem:[%s28146_s3 + $0x1464] sm:$0xf]  ;;  %v16839_v42 = vld [vmem:[%s28146_s3 + $0x147c] sm:$0xf0]  ;;  %v19449_v56 = vld [vmem:[%s28146_s3 + $0xeec] sm:$0xf] }
 0x3b3   : > { %8451 = vmatpush.bf16.msra.mxu2 %v15610_v61  ;;  %v16419_v61 = vld [vmem:[%s28146_s3 + $0x1134] sm:$0xf0]  ;;  %v16842_v62 = vor.u32 %v19624_v41, %v16839_v42  ;;  %v19498_v41 = vld [vmem:[%s28146_s3 + $0x1074] sm:$0xf] }
 0x3b4   : > { %8465 = vmatpush.bf16.msra.mxu3 %v15834_v53  ;;  %v19631_v53 = vld [vmem:[%s28146_s3 + $0x149c] sm:$0xf]  ;;  %v16422_v16 = vor.u32 %v19519_v57, %v16419_v61  ;;  %v16139_v57 = vld [vmem:[%s28146_s3 + $0xf04] sm:$0xf0]  ;;  %v23452_v61 = vpop.f32.mrf.mxu2 }
 0x3b5   : > { %8424 = vmatpush.bf16.msra.mxu0 %v15134_v36  ;;  %v16167_v36 = vld [vmem:[%s28146_s3 + $0xf3c] sm:$0xf0]  ;;  %v16870_v32 = vor.u32 %v19631_v53, %v16867_v9  ;;  %28170 = vst [vmem:[#allocation12_spill] sm:$0xff] %v23452_v61  ;;  %v19561_v53 = vld [vmem:[%s28146_s3 + $0x126c] sm:$0xf] }
 0x3b6   : > { %8438 = vmatpush.bf16.msra.mxu1 %v15358_v38  ;;  %v19568_v38 = vld [vmem:[%s28146_s3 + $0x12a4] sm:$0xf]  ;;  %v16587_v9 = vld [vmem:[%s28146_s3 + $0x1284] sm:$0xf0]  ;;  %v8216_v42 = vpop.f32.mrf.mxu1 }
 0x3b7   : > { %8452 = vmatpush.bf16.msra.mxu2 %v15582_v55  ;;  %v16615_v55 = vld [vmem:[%s28146_s3 + $0x12bc] sm:$0xf0] }
 0x3b8   : > { %8466 = vmatpush.bf16.msra.mxu3 %v15806_v17  ;;  %8425 = vmatmul.bf16.vlgmr.msra.gmra.mxu0 %v21540_v6  ;;  %v16170_v17 = vor.u32 %v19456_v21, %v16167_v36  ;;  %v16618_v54 = vor.u32 %v19568_v38, %v16615_v55  ;;  %v23469_v21 = vpop.f32.mrf.mxu3  ;;  %v16142_v36 = vor.u32 %v19449_v56, %v16139_v57  ;;  %v19442_v38 = vld [vmem:[%s28146_s3 + $0xeb4] sm:$0xf]  ;;  %v16111_v55 = vld [vmem:[%s28146_s3 + $0xecc] sm:$0xf0] }
 0x3b9   : > { %8473 = vmatpush.bf16.msrb.mxu0 %v16226_v47  ;;  %8439 = vmatmul.bf16.vlgmr.msra.gmra.mxu1 %v21553_v11  ;;  %v23440_v47 = vld [vmem:[%s28147_s4] sm:$0x7f]  ;;  %28171 = vst [vmem:[#allocation13_spill] sm:$0xff] %v23469_v21  ;;  %v16559_v56 = vld [vmem:[%s28146_s3 + $0x124c] sm:$0xf0] }
 0x3ba   : > { %8487 = vmatpush.bf16.msrb.mxu1 %v16450_v48  ;;  %8453 = vmatmul.bf16.vlgmr.msra.gmra.mxu2 %v21551_v10  ;;  %v28153_v48 = vperm.slane %v23440_v47, 2 }
 0x3bb   : > { %8501 = vmatpush.bf16.msrb.mxu2 %v16674_v51  ;;  %8467 = vmatmul.bf16.vlgmr.msra.gmra.mxu3 %v21561_v14  ;;  %v16394_v51 = vor.u32 %v19512_v29, %v16391_v33  ;;  %v16590_v33 = vor.u32 %v19561_v53, %v16587_v9 }
 0x3bc   : > { %8515 = vmatpush.bf16.msrb.mxu3 %v16898_v60  ;;  %v19505_v60 = vld [vmem:[%s28146_s3 + $0x10ac] sm:$0xf] }
 0x3bd   : > { %8474 = vmatpush.bf16.msrb.mxu0 %v16198_v13  ;;  %v19617_v13 = vld [vmem:[%s28146_s3 + $0x142c] sm:$0xf] }
 0x3be   : > { %8488 = vmatpush.bf16.msrb.mxu1 %v16422_v16  ;;  %v16811_v16 = vld [vmem:[%s28146_s3 + $0x1444] sm:$0xf0] }
 0x3bf   : > { %8502 = vmatpush.bf16.msrb.mxu2 %v16646_v20  ;;  %v8202_v20 = vpop.f32.mrf.mxu0 }
 0x3c0   : > { %8516 = vmatpush.bf16.msrb.mxu3 %v16870_v32  ;;  %v8203_v29 = vadd.f32 %v8202_v20, %v28153_v48  ;;  %v16366_v32 = vor.u32 %v19505_v60, %v16363_v4  ;;  %v19610_v60 = vld [vmem:[%s28146_s3 + $0x13f4] sm:$0xf]  ;;  %v16114_v4 = vor.u32 %v19442_v38, %v16111_v55  ;;  %v19491_v20 = vld [vmem:[%s28146_s3 + $0x103c] sm:$0xf]  ;;  %v8230_v38 = vpop.f32.mrf.mxu2  ;;  %v19484_v48 = vld [vmem:[%s28146_s3 + $0x1004] sm:$0xf] }
 0x3c1   : > { %8475 = vmatpush.bf16.msrb.mxu0 %v16170_v17  ;;  %v16814_v17 = vor.u32 %v19617_v13, %v16811_v16  ;;  %v19435_v13 = vld [vmem:[%s28146_s3 + $0xe7c] sm:$0xf]  ;;  %v16083_v16 = vld [vmem:[%s28146_s3 + $0xe94] sm:$0xf0] }
 0x3c2   : > { %8489 = vmatpush.bf16.msrb.mxu1 %v16394_v51  ;;  %v16335_v51 = vld [vmem:[%s28146_s3 + $0x108c] sm:$0xf0]  ;;  %v8217_v57 = vadd.f32 %v8216_v42, %v8203_v29  ;;  %v19603_v55 = vld [vmem:[%s28146_s3 + $0x13bc] sm:$0xf] }
 0x3c3   : > { %8503 = vmatpush.bf16.msrb.mxu2 %v16618_v54  ;;  %v19554_v54 = vld [vmem:[%s28146_s3 + $0x1234] sm:$0xf]  ;;  %v16338_v53 = vor.u32 %v19498_v41, %v16335_v51  ;;  %v16755_v41 = vld [vmem:[%s28146_s3 + $0x13d4] sm:$0xf0]  ;;  %v8244_v51 = vpop.f32.mrf.mxu3 }
 0x3c4   : > { %8517 = vmatpush.bf16.msrb.mxu3 %v16842_v62  ;;  %v16783_v62 = vld [vmem:[%s28146_s3 + $0x140c] sm:$0xf0]  ;;  %v16562_v9 = vor.u32 %v19554_v54, %v16559_v56  ;;  %v8231_v42 = vadd.f32 %v8230_v38, %v8217_v57 }
 0x3c5   : > { %8476 = vmatpush.bf16.msrb.mxu0 %v16142_v36  ;;  %v16786_v29 = vor.u32 %v19610_v60, %v16783_v62  ;;  %v16307_v36 = vld [vmem:[%s28146_s3 + $0x1054] sm:$0xf0]  ;;  %v19428_v60 = vld [vmem:[%s28146_s3 + $0xe44] sm:$0xf]  ;;  %v16055_v62 = vld [vmem:[%s28146_s3 + $0xe5c] sm:$0xf0] }
 0x3c6   : > { %8490 = vmatpush.bf16.msrb.mxu1 %v16366_v32  ;;  %v19547_v32 = vld [vmem:[%s28146_s3 + $0x11fc] sm:$0xf]  ;;  %v16310_v54 = vor.u32 %v19491_v20, %v16307_v36  ;;  %v23530_v57 = vadd.f32 %v8244_v51, %v8231_v42  ;;  %v16727_v20 = vld [vmem:[%s28146_s3 + $0x139c] sm:$0xf0]  ;;  %v19421_v36 = vld [vmem:[%s28146_s3 + $0xe0c] sm:$0xf] }
 0x3c7   : > { %8504 = vmatpush.bf16.msrb.mxu2 %v16590_v33  ;;  %v16531_v33 = vld [vmem:[%s28146_s3 + $0x1214] sm:$0xf0]  ;;  %v19533_v42 = vld [vmem:[%s28146_s3 + $0x118c] sm:$0xf]  ;;  %v16475_v51 = vld [vmem:[%s28146_s3 + $0x11a4] sm:$0xf0]  ;;  %v23595_v21 = vpop.f32.mrf.mxu0 }
 0x3c8   : > { %8518 = vmatpush.bf16.msrb.mxu3 %v16814_v17  ;;  %v16086_v17 = vor.u32 %v19435_v13, %v16083_v16  ;;  %v16534_v56 = vor.u32 %v19547_v32, %v16531_v33  ;;  %v16503_v13 = vld [vmem:[%s28146_s3 + $0x11dc] sm:$0xf0]  ;;  %v19596_v16 = vld [vmem:[%s28146_s3 + $0x1384] sm:$0xf]  ;;  %v16027_v32 = vld [vmem:[%s28146_s3 + $0xe24] sm:$0xf0] }
 0x3c9   : > { %8477 = vmatpush.bf16.msrb.mxu0 %v16114_v4  ;;  %v16758_v4 = vor.u32 %v19603_v55, %v16755_v41  ;;  %v19477_v55 = vld [vmem:[%s28146_s3 + $0xfcc] sm:$0xf]  ;;  %v16251_v41 = vld [vmem:[%s28146_s3 + $0xfe4] sm:$0xf0] }
 0x3ca   : > { %8491 = vmatpush.bf16.msrb.mxu1 %v16338_v53  ;;  %v16279_v53 = vld [vmem:[%s28146_s3 + $0x101c] sm:$0xf0] }
 0x3cb   : > { %8505 = vmatpush.bf16.msrb.mxu2 %v16562_v9  ;;  %v19540_v9 = vld [vmem:[%s28146_s3 + $0x11c4] sm:$0xf]  ;;  %v16282_v33 = vor.u32 %v19484_v48, %v16279_v53  ;;  %v19589_v48 = vld [vmem:[%s28146_s3 + $0x134c] sm:$0xf]  ;;  %v19082_v53 = vld [vmem:[%s28146_s3 + $0x370] sm:$0xf0] }
 0x3cc   : > { %8519 = vmatpush.bf16.msrb.mxu3 %v16786_v29  ;;  %v16058_v29 = vor.u32 %v19428_v60, %v16055_v62  ;;  %v16506_v38 = vor.u32 %v19540_v9, %v16503_v13  ;;  %v19026_v60 = vld [vmem:[%s28146_s3 + $0x1b0] sm:$0xf0]  ;;  %v14661_v62 = vld [vmem:[%s28146_s3 + $0x358] sm:$0xf] }
 0x3cd   : > { %8478 = vmatpush.bf16.msrb.mxu0 %v16086_v17  ;;  %v16730_v17 = vor.u32 %v19596_v16, %v16727_v20  ;;  %v14885_v9 = vld [vmem:[%s28146_s3 + $0x518] sm:$0xf]  ;;  %v19138_v13 = vld [vmem:[%s28146_s3 + $0x530] sm:$0xf0]  ;;  %v16254_v16 = vor.u32 %v19477_v55, %v16251_v41  ;;  %v16478_v20 = vor.u32 %v19533_v42, %v16475_v51  ;;  %v14662_v58 = vor.u32 %v19082_v53, %v14661_v62  ;;  %v14633_v55 = vld [vmem:[%s28146_s3 + $0x320] sm:$0xf] }
 0x3ce   : > { %8492 = vmatpush.bf16.msrb.mxu1 %v16310_v54  ;;  %v16699_v54 = vld [vmem:[%s28146_s3 + $0x1364] sm:$0xf0]  ;;  %v14886_v26 = vor.u32 %v19138_v13, %v14885_v9  ;;  %v19075_v42 = vld [vmem:[%s28146_s3 + $0x338] sm:$0xf0]  ;;  %v19012_v9 = vld [vmem:[%s28146_s3 + $0x140] sm:$0xf0] }
 0x3cf   : > { %8506 = vmatpush.bf16.msrb.mxu2 %v16534_v56  ;;  %v14437_v56 = vld [vmem:[%s28146_s3 + $0x198] sm:$0xf]  ;;  %v19131_v51 = vld [vmem:[%s28146_s3 + $0x4f8] sm:$0xf0]  ;;  %v14634_v62 = vor.u32 %v19075_v42, %v14633_v55  ;;  %v14381_v53 = vld [vmem:[%s28146_s3 + $0x128] sm:$0xf] }
 0x3d0   : > { %8520 = vmatpush.bf16.msrb.mxu3 %v16758_v4  ;;  %v16030_v4 = vor.u32 %v19421_v36, %v16027_v32  ;;  %v19194_v36 = vld [vmem:[%s28146_s3 + $0x6f0] sm:$0xf0]  ;;  %v16702_v32 = vor.u32 %v19589_v48, %v16699_v54  ;;  %v14438_v46 = vor.u32 %v19026_v60, %v14437_v56  ;;  %v15081_v48 = vld [vmem:[%s28146_s3 + $0x6a0] sm:$0xf]  ;;  %v19187_v54 = vld [vmem:[%s28146_s3 + $0x6b8] sm:$0xf0]  ;;  %v23621_v56 = vpop.f32.mrf.mxu1 }
 0x3d1   : > { %8479 = vmatpush.bf16.msrb.mxu0 %v16058_v29  ;;  %v15109_v29 = vld [vmem:[%s28146_s3 + $0x6d8] sm:$0xf]  ;;  %v14605_v13 = vld [vmem:[%s28146_s3 + $0x2e8] sm:$0xf]  ;;  %v14353_v55 = vld [vmem:[%s28146_s3 + $0xf0] sm:$0xf] }
 0x3d2   : > { %8493 = vmatpush.bf16.msrb.mxu1 %v16282_v33  ;;  %v14409_v33 = vld [vmem:[%s28146_s3 + $0x160] sm:$0xf]  ;;  %v15110_v41 = vor.u32 %v19194_v36, %v15109_v29  ;;  %v19180_v29 = vld [vmem:[%s28146_s3 + $0x680] sm:$0xf0]  ;;  %v14382_v36 = vor.u32 %v19012_v9, %v14381_v53  ;;  %v14577_v42 = vld [vmem:[%s28146_s3 + $0x2b0] sm:$0xf] }
 0x3d3   : > { %8507 = vmatpush.bf16.msrb.mxu2 %v16506_v38  ;;  %v19019_v38 = vld [vmem:[%s28146_s3 + $0x178] sm:$0xf0]  ;;  %v19173_v53 = vld [vmem:[%s28146_s3 + $0x648] sm:$0xf0] }
 0x3d4   : > { %8521 = vmatpush.bf16.msrb.mxu3 %v16730_v17  ;;  %v14857_v17 = vld [vmem:[%s28146_s3 + $0x4e0] sm:$0xf]  ;;  %v14410_v60 = vor.u32 %v19019_v38, %v14409_v33 }
 0x3d5   : > { %8480 = vmatpush.bf16.msrb.mxu0 %v16030_v4  ;;  %v14858_v4 = vor.u32 %v19131_v51, %v14857_v17  ;;  %v23662_v51 = vpop.f32.mrf.mxu3 }
 0x3d6   : > { %8494 = vmatpush.bf16.msrb.mxu1 %v16254_v16  ;;  %v19124_v16 = vld [vmem:[%s28146_s3 + $0x4c0] sm:$0xf0] }
 0x3d7   : > { %8508 = vmatpush.bf16.msrb.mxu2 %v16478_v20  ;;  %v15053_v20 = vld [vmem:[%s28146_s3 + $0x668] sm:$0xf] }
 0x3d8   : > { %8522 = vmatpush.bf16.msrb.mxu3 %v16702_v32  ;;  %8481 = vmatmul.bf16.vlgmr.msrb.gmra.mxu0 %v21750_v27  ;;  %v23651_v32 = vpop.f32.mrf.mxu2  ;;  %v15054_v17 = vor.u32 %v19180_v29, %v15053_v20  ;;  %v18998_v20 = vld [vmem:[%s28146_s3 + $0xd0] sm:$0xf0]  ;;  %v14549_v29 = vld [vmem:[%s28146_s3 + $0x278] sm:$0xf] }
 0x3d9   : > { %8529 = vmatpush.bf16.msra.mxu0 %v14438_v46  ;;  %v15082_v46 = vor.u32 %v19187_v54, %v15081_v48  ;;  %8495 = vmatmul.bf16.vlgmr.msrb.gmra.mxu1 %v21763_v31  ;;  %v19061_v48 = vld [vmem:[%s28146_s3 + $0x2c8] sm:$0xf0]  ;;  %v14801_v54 = vld [vmem:[%s28146_s3 + $0x470] sm:$0xf] }
 0x3da   : > { %8543 = vmatpush.bf16.msra.mxu1 %v14662_v58  ;;  %v19068_v58 = vld [vmem:[%s28146_s3 + $0x300] sm:$0xf0]  ;;  %8509 = vmatmul.bf16.vlgmr.msrb.gmra.mxu2 %v21761_v30 }
 0x3db   : > { %8557 = vmatpush.bf16.msra.mxu2 %v14886_v26  ;;  %v14829_v26 = vld [vmem:[%s28146_s3 + $0x4a8] sm:$0xf]  ;;  %8523 = vmatmul.bf16.vlgmr.msrb.gmra.mxu3 %v21771_v34  ;;  %v14606_v33 = vor.u32 %v19068_v58, %v14605_v13 }
 0x3dc   : > { %8571 = vmatpush.bf16.msra.mxu3 %v15110_v41  ;;  %v14830_v38 = vor.u32 %v19124_v16, %v14829_v26  ;;  %v19005_v41 = vld [vmem:[%s28146_s3 + $0x108] sm:$0xf0]  ;;  %v8272_v26 = vpop.f32.mrf.mxu1  ;;  %v14325_v16 = vld [vmem:[%s28146_s3 + $0xb8] sm:$0xf] }
 0x3dd   : > { %8530 = vmatpush.bf16.msra.mxu0 %v14410_v60  ;;  %v19117_v60 = vld [vmem:[%s28146_s3 + $0x488] sm:$0xf0]  ;;  %v14354_v13 = vor.u32 %v19005_v41, %v14353_v55  ;;  %v19110_v55 = vld [vmem:[%s28146_s3 + $0x450] sm:$0xf0]  ;;  %v14997_v41 = vld [vmem:[%s28146_s3 + $0x5f8] sm:$0xf] }
 0x3de   : > { %8544 = vmatpush.bf16.msra.mxu1 %v14634_v62  ;;  %v8258_v62 = vpop.f32.mrf.mxu0  ;;  %v14802_v58 = vor.u32 %v19117_v60, %v14801_v54  ;;  %v14297_v60 = vld [vmem:[%s28146_s3 + $0x80] sm:$0xf] }
 0x3df   : > { %8558 = vmatpush.bf16.msra.mxu2 %v14858_v4  ;;  %v15025_v4 = vld [vmem:[%s28146_s3 + $0x630] sm:$0xf]  ;;  %v8259_v9 = vadd.f32 %v8258_v62, %v23530_v57  ;;  %v18991_v62 = vld [vmem:[%s28146_s3 + $0x98] sm:$0xf0] }
 0x3e0   : > { %8572 = vmatpush.bf16.msra.mxu3 %v15082_v46  ;;  %v14578_v46 = vor.u32 %v19061_v48, %v14577_v42  ;;  %v15026_v57 = vor.u32 %v19173_v53, %v15025_v4  ;;  %v19166_v42 = vld [vmem:[%s28146_s3 + $0x610] sm:$0xf0]  ;;  %v14521_v4 = vld [vmem:[%s28146_s3 + $0x240] sm:$0xf] }
 0x3e1   : > { %8531 = vmatpush.bf16.msra.mxu0 %v14382_v36  ;;  %v8273_v36 = vadd.f32 %v8272_v26, %v8259_v9  ;;  %v14998_v53 = vor.u32 %v19166_v42, %v14997_v41  ;;  %v8286_v9 = vpop.f32.mrf.mxu2  ;;  %v18984_v41 = vld [vmem:[%s28146_s3 + $0x60] sm:$0xf0]  ;;  %v14493_v42 = vld [vmem:[%s28146_s3 + $0x208] sm:$0xf] }
 0x3e2   : > { %8545 = vmatpush.bf16.msra.mxu1 %v14606_v33  ;;  %v19054_v33 = vld [vmem:[%s28146_s3 + $0x290] sm:$0xf0] }
 0x3e3   : > { %8559 = vmatpush.bf16.msra.mxu2 %v14830_v38  ;;  %v14773_v38 = vld [vmem:[%s28146_s3 + $0x438] sm:$0xf]  ;;  %v14550_v48 = vor.u32 %v19054_v33, %v14549_v29  ;;  %v8287_v26 = vadd.f32 %v8286_v9, %v8273_v36  ;;  %v8300_v29 = vpop.f32.mrf.mxu3  ;;  %v14269_v36 = vld [vmem:[%s28146_s3 + $0x48] sm:$0xf]  ;;  %v14241_v9 = vld [vmem:[%s28146_s3 + $0x10] sm:$0xf] }
 0x3e4   : > { %8573 = vmatpush.bf16.msra.mxu3 %v15054_v17  ;;  %v14326_v17 = vor.u32 %v18998_v20, %v14325_v16  ;;  %v14774_v54 = vor.u32 %v19110_v55, %v14773_v38  ;;  %v14969_v16 = vld [vmem:[%s28146_s3 + $0x5c0] sm:$0xf]  ;;  %v19159_v20 = vld [vmem:[%s28146_s3 + $0x5d8] sm:$0xf0] }
 0x3e5   : > { %8532 = vmatpush.bf16.msra.mxu0 %v14354_v13  ;;  %v19047_v13 = vld [vmem:[%s28146_s3 + $0x258] sm:$0xf0]  ;;  %v23728_v33 = vadd.f32 %v8300_v29, %v8287_v26  ;;  %v14465_v26 = vld [vmem:[%s28146_s3 + $0x1d0] sm:$0xf] }
 0x3e6   : > { %8546 = vmatpush.bf16.msra.mxu1 %v14578_v46  ;;  %v14745_v46 = vld [vmem:[%s28146_s3 + $0x400] sm:$0xf]  ;;  %v14522_v38 = vor.u32 %v19047_v13, %v14521_v4  ;;  %v19152_v4 = vld [vmem:[%s28146_s3 + $0x5a0] sm:$0xf0]  ;;  %v18977_v13 = vld [vmem:[%s28146_s3 + $0x28] sm:$0xf0] }
 0x3e7   : > { %8560 = vmatpush.bf16.msra.mxu2 %v14802_v58  ;;  %v19103_v58 = vld [vmem:[%s28146_s3 + $0x418] sm:$0xf0] }
 0x3e8   : > { %8574 = vmatpush.bf16.msra.mxu3 %v15026_v57  ;;  %v14298_v57 = vor.u32 %v18991_v62, %v14297_v60  ;;  %v14746_v55 = vor.u32 %v19103_v58, %v14745_v46  ;;  %v19096_v60 = vld [vmem:[%s28146_s3 + $0x3e0] sm:$0xf0]  ;;  %v14941_v62 = vld [vmem:[%s28146_s3 + $0x588] sm:$0xf] }
 0x3e9   : > { %8533 = vmatpush.bf16.msra.mxu0 %v14326_v17  ;;  %v14970_v17 = vor.u32 %v19159_v20, %v14969_v16  ;;  %v19033_v16 = vld [vmem:[%s28146_s3 + $0x1e8] sm:$0xf0]  ;;  %v14689_v20 = vld [vmem:[%s28146_s3 + $0x390] sm:$0xf]  ;;  %v14942_v29 = vor.u32 %v19152_v4, %v14941_v62 }
 0x3ea   : > { %8547 = vmatpush.bf16.msra.mxu1 %v14550_v48  ;;  %v19040_v48 = vld [vmem:[%s28146_s3 + $0x220] sm:$0xf0]  ;;  %v14466_v62 = vor.u32 %v19033_v16, %v14465_v26  ;;  %v15529_v26 = vld [vmem:[%s28146_s3 + $0xa20] sm:$0xf] }
 0x3eb   : > { %8561 = vmatpush.bf16.msra.mxu2 %v14774_v54  ;;  %v14717_v54 = vld [vmem:[%s28146_s3 + $0x3c8] sm:$0xf]  ;;  %v14494_v46 = vor.u32 %v19040_v48, %v14493_v42  ;;  %v15557_v42 = vld [vmem:[%s28146_s3 + $0xa58] sm:$0xf]  ;;  %v19306_v48 = vld [vmem:[%s28146_s3 + $0xa70] sm:$0xf0] }
 0x3ec   : > { %8575 = vmatpush.bf16.msra.mxu3 %v14998_v53  ;;  %v14270_v53 = vor.u32 %v18984_v41, %v14269_v36  ;;  %v14718_v58 = vor.u32 %v19096_v60, %v14717_v54  ;;  %v15333_v36 = vld [vmem:[%s28146_s3 + $0x898] sm:$0xf]  ;;  %v19250_v41 = vld [vmem:[%s28146_s3 + $0x8b0] sm:$0xf0]  ;;  %v15558_v61 = vor.u32 %v19306_v48, %v15557_v42 }
 0x3ed   : > { %8534 = vmatpush.bf16.msra.mxu0 %v14298_v57  ;;  %v19089_v57 = vld [vmem:[%s28146_s3 + $0x3a8] sm:$0xf0]  ;;  %v15781_v54 = vld [vmem:[%s28146_s3 + $0xc18] sm:$0xf]  ;;  %v19362_v60 = vld [vmem:[%s28146_s3 + $0xc30] sm:$0xf0]  ;;  %v15334_v59 = vor.u32 %v19250_v41, %v15333_v36  ;;  %v23828_v41 = vpop.f32.mrf.mxu1 }
 0x3ee   : > { %8548 = vmatpush.bf16.msra.mxu1 %v14522_v38  ;;  %v14913_v38 = vld [vmem:[%s28146_s3 + $0x550] sm:$0xf]  ;;  %v14690_v4 = vor.u32 %v19089_v57, %v14689_v20  ;;  %v15782_v52 = vor.u32 %v19362_v60, %v15781_v54  ;;  %v19299_v20 = vld [vmem:[%s28146_s3 + $0xa38] sm:$0xf0]  ;;  %28172 = vst [vmem:[#allocation14_spill] sm:$0xff] %v23828_v41 }
 0x3ef   : > { %8562 = vmatpush.bf16.msra.mxu2 %v14746_v55  ;;  %v19145_v55 = vld [vmem:[%s28146_s3 + $0x568] sm:$0xf0]  ;;  %v19355_v57 = vld [vmem:[%s28146_s3 + $0xbf8] sm:$0xf0]  ;;  %v15277_v54 = vld [vmem:[%s28146_s3 + $0x828] sm:$0xf] }
 0x3f0   : > { %8576 = vmatpush.bf16.msra.mxu3 %v14970_v17  ;;  %v14242_v17 = vor.u32 %v18977_v13, %v14241_v9  ;;  %v19418_v9 = vld [vmem:[%s28146_s3 + $0xdf0] sm:$0xf0]  ;;  %v14914_v13 = vor.u32 %v19145_v55, %v14913_v38  ;;  %v23820_v38 = vpop.f32.mrf.mxu0  ;;  %v15977_v55 = vld [vmem:[%s28146_s3 + $0xda0] sm:$0xf]  ;;  %v19411_v36 = vld [vmem:[%s28146_s3 + $0xdb8] sm:$0xf0] }
 0x3f1   : > { %8535 = vmatpush.bf16.msra.mxu0 %v14270_v53  ;;  %v16005_v53 = vld [vmem:[%s28146_s3 + $0xdd8] sm:$0xf]  ;;  %v19236_v60 = vld [vmem:[%s28146_s3 + $0x840] sm:$0xf0] }
 0x3f2   : > { %8549 = vmatpush.bf16.msra.mxu1 %v14494_v46  ;;  %v15305_v46 = vld [vmem:[%s28146_s3 + $0x860] sm:$0xf]  ;;  %v16006_v16 = vor.u32 %v19418_v9, %v16005_v53  ;;  %v15949_v53 = vld [vmem:[%s28146_s3 + $0xd68] sm:$0xf]  ;;  %v19404_v9 = vld [vmem:[%s28146_s3 + $0xd80] sm:$0xf0] }
 0x3f3   : > { %8563 = vmatpush.bf16.msra.mxu2 %v14718_v58  ;;  %v19243_v58 = vld [vmem:[%s28146_s3 + $0x878] sm:$0xf0] }
 0x3f4   : > { %8577 = vmatpush.bf16.msra.mxu3 %v14942_v29  ;;  %v15753_v29 = vld [vmem:[%s28146_s3 + $0xbe0] sm:$0xf]  ;;  %v15306_v42 = vor.u32 %v19243_v58, %v15305_v46 }
 0x3f5   : > { %8536 = vmatpush.bf16.msra.mxu0 %v14242_v17  ;;  %v15530_v17 = vor.u32 %v19299_v20, %v15529_v26  ;;  %v15754_v48 = vor.u32 %v19355_v57, %v15753_v29  ;;  %v15249_v26 = vld [vmem:[%s28146_s3 + $0x7f0] sm:$0xf]  ;;  %v23867_v29 = vpop.f32.mrf.mxu2  ;;  %v15950_v57 = vor.u32 %v19404_v9, %v15949_v53  ;;  %v15221_v53 = vld [vmem:[%s28146_s3 + $0x7b8] sm:$0xf]  ;;  %v19222_v9 = vld [vmem:[%s28146_s3 + $0x7d0] sm:$0xf0] }
 0x3f6   : > { %8550 = vmatpush.bf16.msra.mxu1 %v14466_v62  ;;  %v15501_v62 = vld [vmem:[%s28146_s3 + $0x9e8] sm:$0xf]  ;;  %v15473_v20 = vld [vmem:[%s28146_s3 + $0x9b0] sm:$0xf]  ;;  %28173 = vst [vmem:[#allocation15_spill] sm:$0xff] %v23867_v29 }
 0x3f7   : > { %8564 = vmatpush.bf16.msra.mxu2 %v14690_v4  ;;  %v15978_v4 = vor.u32 %v19411_v36, %v15977_v55  ;;  %v19285_v55 = vld [vmem:[%s28146_s3 + $0x9c8] sm:$0xf0]  ;;  %v15697_v36 = vld [vmem:[%s28146_s3 + $0xb70] sm:$0xf] }
 0x3f8   : > { %8578 = vmatpush.bf16.msra.mxu3 %v14914_v13  ;;  %8537 = vmatmul.bf16.vlgmr.msra.gmra.mxu0 %v21386_v23  ;;  %v15278_v13 = vor.u32 %v19236_v60, %v15277_v54  ;;  %v15921_v54 = vld [vmem:[%s28146_s3 + $0xd30] sm:$0xf]  ;;  %v19397_v60 = vld [vmem:[%s28146_s3 + $0xd48] sm:$0xf0] }
 0x3f9   : > { %8585 = vmatpush.bf16.msrb.mxu0 %v15334_v59  ;;  %v19292_v59 = vld [vmem:[%s28146_s3 + $0xa00] sm:$0xf0]  ;;  %8551 = vmatmul.bf16.vlgmr.msra.gmra.mxu1 %v21406_v39 }
 0x3fa   : > { %8599 = vmatpush.bf16.msrb.mxu1 %v15558_v61  ;;  %v19348_v61 = vld [vmem:[%s28146_s3 + $0xbc0] sm:$0xf0]  ;;  %8565 = vmatmul.bf16.vlgmr.msra.gmra.mxu2 %v21388_v25  ;;  %v15502_v46 = vor.u32 %v19292_v59, %v15501_v62  ;;  %v8328_v59 = vpop.f32.mrf.mxu1 }
 0x3fb   : > { %8613 = vmatpush.bf16.msrb.mxu2 %v15782_v52  ;;  %v15725_v52 = vld [vmem:[%s28146_s3 + $0xba8] sm:$0xf]  ;;  %8579 = vmatmul.bf16.vlgmr.msra.gmra.mxu3 %v21425_v24 }
 0x3fc   : > { %8627 = vmatpush.bf16.msrb.mxu3 %v16006_v16  ;;  %v15726_v58 = vor.u32 %v19348_v61, %v15725_v52  ;;  %v19229_v16 = vld [vmem:[%s28146_s3 + $0x808] sm:$0xf0]  ;;  %v15474_v52 = vor.u32 %v19285_v55, %v15473_v20  ;;  %v15893_v20 = vld [vmem:[%s28146_s3 + $0xcf8] sm:$0xf]  ;;  %v15222_v55 = vor.u32 %v19222_v9, %v15221_v53 }
 0x3fd   : > { %8586 = vmatpush.bf16.msrb.mxu0 %v15306_v42  ;;  %v19341_v42 = vld [vmem:[%s28146_s3 + $0xb88] sm:$0xf0] }
 0x3fe   : > { %8600 = vmatpush.bf16.msrb.mxu1 %v15530_v17  ;;  %v23878_v17 = vpop.f32.mrf.mxu3  ;;  %v15698_v61 = vor.u32 %v19341_v42, %v15697_v36 }
 0x3ff   : > { %8614 = vmatpush.bf16.msrb.mxu2 %v15754_v48  ;;  %28174 = vst [vmem:[#allocation16_spill] sm:$0xff] %v23878_v17  ;;  %v8314_v48 = vpop.f32.mrf.mxu0 }
 0x400   : > { %8628 = vmatpush.bf16.msrb.mxu3 %v15978_v4  ;;  %v8315_v62 = vadd.f32 %v8314_v48, %v23728_v33  ;;  %v15250_v4 = vor.u32 %v19229_v16, %v15249_v26  ;;  %v15922_v33 = vor.u32 %v19397_v60, %v15921_v54  ;;  %v19334_v16 = vld [vmem:[%s28146_s3 + $0xb50] sm:$0xf0]  ;;  %v15193_v48 = vld [vmem:[%s28146_s3 + $0x780] sm:$0xf]  ;;  %v19215_v54 = vld [vmem:[%s28146_s3 + $0x798] sm:$0xf0] }
 0x401   : > { %8587 = vmatpush.bf16.msrb.mxu0 %v15278_v13  ;;  %v15445_v13 = vld [vmem:[%s28146_s3 + $0x978] sm:$0xf]  ;;  %v15417_v60 = vld [vmem:[%s28146_s3 + $0x940] sm:$0xf] }
 0x402   : > { %8601 = vmatpush.bf16.msrb.mxu1 %v15502_v46  ;;  %v8329_v26 = vadd.f32 %v8328_v59, %v8315_v62  ;;  %v19278_v46 = vld [vmem:[%s28146_s3 + $0x990] sm:$0xf0]  ;;  %v19271_v59 = vld [vmem:[%s28146_s3 + $0x958] sm:$0xf0] }
 0x403   : > { %8615 = vmatpush.bf16.msrb.mxu2 %v15726_v58  ;;  %v15669_v58 = vld [vmem:[%s28146_s3 + $0xb38] sm:$0xf]  ;;  %v15446_v36 = vor.u32 %v19278_v46, %v15445_v13  ;;  %v15865_v13 = vld [vmem:[%s28146_s3 + $0xcc0] sm:$0xf]  ;;  %v15194_v46 = vor.u32 %v19215_v54, %v15193_v48  ;;  %v19320_v48 = vld [vmem:[%s28146_s3 + $0xae0] sm:$0xf0] }
 0x404   : > { %8629 = vmatpush.bf16.msrb.mxu3 %v15950_v57  ;;  %v19390_v57 = vld [vmem:[%s28146_s3 + $0xd10] sm:$0xf0]  ;;  %v15670_v42 = vor.u32 %v19334_v16, %v15669_v58  ;;  %v15418_v16 = vor.u32 %v19271_v59, %v15417_v60  ;;  %v15837_v54 = vld [vmem:[%s28146_s3 + $0xc88] sm:$0xf]  ;;  %v19376_v60 = vld [vmem:[%s28146_s3 + $0xca0] sm:$0xf0] }
 0x405   : > { %8588 = vmatpush.bf16.msrb.mxu0 %v15250_v4  ;;  %v15894_v62 = vor.u32 %v19390_v57, %v15893_v20  ;;  %v8342_v4 = vpop.f32.mrf.mxu2  ;;  %v19208_v57 = vld [vmem:[%s28146_s3 + $0x760] sm:$0xf0]  ;;  %v15137_v59 = vld [vmem:[%s28146_s3 + $0x710] sm:$0xf] }
 0x406   : > { %8602 = vmatpush.bf16.msrb.mxu1 %v15474_v52  ;;  %v15641_v52 = vld [vmem:[%s28146_s3 + $0xb00] sm:$0xf]  ;;  %v8343_v53 = vadd.f32 %v8342_v4, %v8329_v26  ;;  %v8356_v9 = vpop.f32.mrf.mxu3  ;;  %v15165_v26 = vld [vmem:[%s28146_s3 + $0x748] sm:$0xf] }
 0x407   : > { %8616 = vmatpush.bf16.msrb.mxu2 %v15698_v61  ;;  %v19327_v61 = vld [vmem:[%s28146_s3 + $0xb18] sm:$0xf0]  ;;  %v15389_v4 = vld [vmem:[%s28146_s3 + $0x908] sm:$0xf] }
 0x408   : > { %8630 = vmatpush.bf16.msrb.mxu3 %v15922_v33  ;;  %v19383_v33 = vld [vmem:[%s28146_s3 + $0xcd8] sm:$0xf0]  ;;  %v23935_v58 = vadd.f32 %v8356_v9, %v8343_v53  ;;  %v15642_v20 = vor.u32 %v19327_v61, %v15641_v52  ;;  %v19201_v52 = vld [vmem:[%s28146_s3 + $0x728] sm:$0xf0]  ;;  %v15361_v9 = vld [vmem:[%s28146_s3 + $0x8d0] sm:$0xf] }
 0x409   : > { %8589 = vmatpush.bf16.msrb.mxu0 %v15222_v55  ;;  %v15866_v55 = vor.u32 %v19383_v33, %v15865_v13  ;;  %v19257_v13 = vld [vmem:[%s28146_s3 + $0x8e8] sm:$0xf0]  ;;  %v15585_v33 = vld [vmem:[%s28146_s3 + $0xa90] sm:$0xf] }
 0x40a   : > { %8603 = vmatpush.bf16.msrb.mxu1 %v15446_v36  ;;  %28175 = vst [vmem:[#allocation17_spill] sm:$0xff] %v23935_v58  ;;  %v19264_v36 = vld [vmem:[%s28146_s3 + $0x920] sm:$0xf0] }
 0x40b   : > { %8617 = vmatpush.bf16.msrb.mxu2 %v15670_v42  ;;  %v15613_v42 = vld [vmem:[%s28146_s3 + $0xac8] sm:$0xf]  ;;  %v15390_v61 = vor.u32 %v19264_v36, %v15389_v4  ;;  %v19474_v4 = vld [vmem:[%s28146_s3 + $0xfb0] sm:$0xf0]  ;;  %v15138_v36 = vor.u32 %v19201_v52, %v15137_v59 }
 0x40c   : > { %8631 = vmatpush.bf16.msrb.mxu3 %v15894_v62  ;;  %v15166_v62 = vor.u32 %v19208_v57, %v15165_v26  ;;  %v15614_v53 = vor.u32 %v19320_v48, %v15613_v42  ;;  %v19369_v26 = vld [vmem:[%s28146_s3 + $0xc68] sm:$0xf0]  ;;  %v16229_v57 = vld [vmem:[%s28146_s3 + $0xf98] sm:$0xf]  ;;  %v19530_v42 = vld [vmem:[%s28146_s3 + $0x1170] sm:$0xf0] }
 0x40d   : > { %8590 = vmatpush.bf16.msrb.mxu0 %v15194_v46  ;;  %v15838_v46 = vor.u32 %v19376_v60, %v15837_v54  ;;  %v16677_v48 = vld [vmem:[%s28146_s3 + $0x1318] sm:$0xf]  ;;  %v19586_v54 = vld [vmem:[%s28146_s3 + $0x1330] sm:$0xf0]  ;;  %v15362_v60 = vor.u32 %v19257_v13, %v15361_v9  ;;  %v16230_v15 = vor.u32 %v19474_v4, %v16229_v57  ;;  %v16425_v9 = vld [vmem:[%s28146_s3 + $0x1120] sm:$0xf] }
 0x40e   : > { %8604 = vmatpush.bf16.msrb.mxu1 %v15418_v16  ;;  %v19313_v16 = vld [vmem:[%s28146_s3 + $0xaa8] sm:$0xf0]  ;;  %v19642_v59 = vld [vmem:[%s28146_s3 + $0x14f0] sm:$0xf0]  ;;  %v16678_v43 = vor.u32 %v19586_v54, %v16677_v48  ;;  %v19635_v57 = vld [vmem:[%s28146_s3 + $0x14b8] sm:$0xf0] }
 0x40f   : > { %8618 = vmatpush.bf16.msrb.mxu2 %v15642_v20  ;;  %v15809_v20 = vld [vmem:[%s28146_s3 + $0xc50] sm:$0xf]  ;;  %v15586_v58 = vor.u32 %v19313_v16, %v15585_v33  ;;  %v19523_v33 = vld [vmem:[%s28146_s3 + $0x1138] sm:$0xf0]  ;;  %v19460_v48 = vld [vmem:[%s28146_s3 + $0xf40] sm:$0xf0] }
 0x410   : > { %8632 = vmatpush.bf16.msrb.mxu3 %v15866_v55  ;;  %v16453_v55 = vld [vmem:[%s28146_s3 + $0x1158] sm:$0xf]  ;;  %v15810_v52 = vor.u32 %v19369_v26, %v15809_v20  ;;  %v19579_v16 = vld [vmem:[%s28146_s3 + $0x12f8] sm:$0xf0]  ;;  %v24027_v20 = vpop.f32.mrf.mxu0  ;;  %v16873_v26 = vld [vmem:[%s28146_s3 + $0x14a0] sm:$0xf] }
 0x411   : > { %8591 = vmatpush.bf16.msrb.mxu0 %v15166_v62  ;;  %v16901_v62 = vld [vmem:[%s28146_s3 + $0x14d8] sm:$0xf]  ;;  %v16454_v17 = vor.u32 %v19530_v42, %v16453_v55  ;;  %28176 = vst [vmem:[#allocation18_spill] sm:$0xff] %v24027_v20  ;;  %v24035_v55 = vpop.f32.mrf.mxu1  ;;  %v16397_v54 = vld [vmem:[%s28146_s3 + $0x10e8] sm:$0xf] }
 0x412   : > { %8605 = vmatpush.bf16.msrb.mxu1 %v15390_v61  ;;  %v16201_v61 = vld [vmem:[%s28146_s3 + $0xf60] sm:$0xf]  ;;  %v16902_v13 = vor.u32 %v19642_v59, %v16901_v62  ;;  %28177 = vst [vmem:[#allocation19_spill] sm:$0xff] %v24035_v55  ;;  %v16845_v62 = vld [vmem:[%s28146_s3 + $0x1468] sm:$0xf] }
 0x413   : > { %8619 = vmatpush.bf16.msrb.mxu2 %v15614_v53  ;;  %v19467_v53 = vld [vmem:[%s28146_s3 + $0xf78] sm:$0xf0]  ;;  %v19628_v59 = vld [vmem:[%s28146_s3 + $0x1480] sm:$0xf0] }
 0x414   : > { %8633 = vmatpush.bf16.msrb.mxu3 %v15838_v46  ;;  %v16649_v46 = vld [vmem:[%s28146_s3 + $0x12e0] sm:$0xf]  ;;  %v16202_v4 = vor.u32 %v19467_v53, %v16201_v61  ;;  %v28159_v61 = vperm.slane %v23440_v47, 3 }
 0x415   : > { %8592 = vmatpush.bf16.msrb.mxu0 %v15138_v36  ;;  %v16426_v36 = vor.u32 %v19523_v33, %v16425_v9  ;;  %v16650_v42 = vor.u32 %v19579_v16, %v16649_v46  ;;  %v19453_v33 = vld [vmem:[%s28146_s3 + $0xf08] sm:$0xf0]  ;;  %v16369_v46 = vld [vmem:[%s28146_s3 + $0x10b0] sm:$0xf]  ;;  %v24075_v16 = vpop.f32.mrf.mxu2 }
 0x416   : > { %8606 = vmatpush.bf16.msrb.mxu1 %v15362_v60  ;;  %v19572_v60 = vld [vmem:[%s28146_s3 + $0x12c0] sm:$0xf0]  ;;  %28178 = vst [vmem:[#allocation20_spill] sm:$0xff] %v24075_v16  ;;  %v16285_v16 = vld [vmem:[%s28146_s3 + $0x1008] sm:$0xf] }
 0x417   : > { %8620 = vmatpush.bf16.msrb.mxu2 %v15586_v58  ;;  %v16173_v58 = vld [vmem:[%s28146_s3 + $0xf28] sm:$0xf] }
 0x418   : > { %8634 = vmatpush.bf16.msrb.mxu3 %v15810_v52  ;;  %8593 = vmatmul.bf16.vlgmr.msrb.gmra.mxu0 %v21540_v6  ;;  %v16174_v52 = vor.u32 %v19460_v48, %v16173_v58  ;;  %v19621_v58 = vld [vmem:[%s28146_s3 + $0x1448] sm:$0xf0]  ;;  %v8370_v48 = vpop.f32.mrf.mxu0 }
 0x419   : > { %8641 = vmatpush.bf16.msra.mxu0 %v16230_v15  ;;  %v16874_v15 = vor.u32 %v19635_v57, %v16873_v26  ;;  %8607 = vmatmul.bf16.vlgmr.msrb.gmra.mxu1 %v21553_v11  ;;  %v16846_v26 = vor.u32 %v19628_v59, %v16845_v62  ;;  %v19509_v57 = vld [vmem:[%s28146_s3 + $0x10c8] sm:$0xf0]  ;;  %v16117_v62 = vld [vmem:[%s28146_s3 + $0xeb8] sm:$0xf]  ;;  %v19446_v59 = vld [vmem:[%s28146_s3 + $0xed0] sm:$0xf0] }
 0x41a   : > { %8655 = vmatpush.bf16.msra.mxu1 %v16454_v17  ;;  %v16621_v17 = vld [vmem:[%s28146_s3 + $0x12a8] sm:$0xf]  ;;  %8621 = vmatmul.bf16.vlgmr.msrb.gmra.mxu2 %v21551_v10 }
 0x41b   : > { %8669 = vmatpush.bf16.msra.mxu2 %v16678_v43  ;;  %v19516_v43 = vld [vmem:[%s28146_s3 + $0x1100] sm:$0xf0]  ;;  %8635 = vmatmul.bf16.vlgmr.msrb.gmra.mxu3 %v21561_v14  ;;  %v16622_v9 = vor.u32 %v19572_v60, %v16621_v17  ;;  %v16370_v17 = vor.u32 %v19509_v57, %v16369_v46  ;;  %v19558_v46 = vld [vmem:[%s28146_s3 + $0x1250] sm:$0xf0] }
 0x41c   : > { %8683 = vmatpush.bf16.msra.mxu3 %v16902_v13  ;;  %v16398_v53 = vor.u32 %v19516_v43, %v16397_v54  ;;  %v16145_v13 = vld [vmem:[%s28146_s3 + $0xef0] sm:$0xf]  ;;  %v24092_v54 = vpop.f32.mrf.mxu3  ;;  %v8371_v43 = vadd.f32 %v8370_v48, %v28159_v61  ;;  %v16089_v48 = vld [vmem:[%s28146_s3 + $0xe80] sm:$0xf] }
 0x41d   : > { %8642 = vmatpush.bf16.msra.mxu0 %v16202_v4  ;;  %v16593_v4 = vld [vmem:[%s28146_s3 + $0x1270] sm:$0xf]  ;;  %28179 = vst [vmem:[#allocation21_spill] sm:$0xff] %v24092_v54  ;;  %v19432_v54 = vld [vmem:[%s28146_s3 + $0xe60] sm:$0xf0] }
 0x41e   : > { %8656 = vmatpush.bf16.msra.mxu1 %v16426_v36  ;;  %v19565_v36 = vld [vmem:[%s28146_s3 + $0x1288] sm:$0xf0] }
 0x41f   : > { %8670 = vmatpush.bf16.msra.mxu2 %v16650_v42  ;;  %v16817_v42 = vld [vmem:[%s28146_s3 + $0x1430] sm:$0xf]  ;;  %v16594_v60 = vor.u32 %v19565_v36, %v16593_v4  ;;  %v16789_v4 = vld [vmem:[%s28146_s3 + $0x13f8] sm:$0xf]  ;;  %v16118_v36 = vor.u32 %v19446_v59, %v16117_v62  ;;  %v8398_v62 = vpop.f32.mrf.mxu2  ;;  %v16761_v59 = vld [vmem:[%s28146_s3 + $0x13c0] sm:$0xf] }
 0x420   : > { %8684 = vmatpush.bf16.msra.mxu3 %v16874_v15  ;;  %v16146_v15 = vor.u32 %v19453_v33, %v16145_v13  ;;  %v8384_v13 = vpop.f32.mrf.mxu1  ;;  %v16818_v33 = vor.u32 %v19621_v58, %v16817_v42  ;;  %v24218_v29 = vpop.f32.mrf.mxu0 }
 0x421   : > { %8643 = vmatpush.bf16.msra.mxu0 %v16174_v52  ;;  %v16341_v52 = vld [vmem:[%s28146_s3 + $0x1078] sm:$0xf]  ;;  %v8385_v57 = vadd.f32 %v8384_v13, %v8371_v43  ;;  %v19439_v43 = vld [vmem:[%s28146_s3 + $0xe98] sm:$0xf0]  ;;  %v16313_v13 = vld [vmem:[%s28146_s3 + $0x1040] sm:$0xf] }
 0x422   : > { %8657 = vmatpush.bf16.msra.mxu1 %v16398_v53  ;;  %v19502_v53 = vld [vmem:[%s28146_s3 + $0x1090] sm:$0xf0] }
 0x423   : > { %8671 = vmatpush.bf16.msra.mxu2 %v16622_v9  ;;  %v16565_v9 = vld [vmem:[%s28146_s3 + $0x1238] sm:$0xf]  ;;  %v16342_v42 = vor.u32 %v19502_v53, %v16341_v52  ;;  %v19607_v52 = vld [vmem:[%s28146_s3 + $0x13d8] sm:$0xf0]  ;;  %v16090_v53 = vor.u32 %v19439_v43, %v16089_v48  ;;  %v19544_v48 = vld [vmem:[%s28146_s3 + $0x11e0] sm:$0xf0] }
 0x424   : > { %8685 = vmatpush.bf16.msra.mxu3 %v16846_v26  ;;  %v19614_v26 = vld [vmem:[%s28146_s3 + $0x1410] sm:$0xf0]  ;;  %v16566_v58 = vor.u32 %v19558_v46, %v16565_v9  ;;  %v8412_v9 = vpop.f32.mrf.mxu3  ;;  %v16733_v43 = vld [vmem:[%s28146_s3 + $0x1388] sm:$0xf] }
 0x425   : > { %8644 = vmatpush.bf16.msra.mxu0 %v16146_v15  ;;  %v16790_v61 = vor.u32 %v19614_v26, %v16789_v4  ;;  %v19495_v15 = vld [vmem:[%s28146_s3 + $0x1058] sm:$0xf0]  ;;  %v16061_v26 = vld [vmem:[%s28146_s3 + $0xe48] sm:$0xf] }
 0x426   : > { %8658 = vmatpush.bf16.msra.mxu1 %v16370_v17  ;;  %v16537_v17 = vld [vmem:[%s28146_s3 + $0x1200] sm:$0xf]  ;;  %v16314_v46 = vor.u32 %v19495_v15, %v16313_v13  ;;  %v16062_v13 = vor.u32 %v19432_v54, %v16061_v26  ;;  %v16033_v15 = vld [vmem:[%s28146_s3 + $0xe10] sm:$0xf]  ;;  %v19481_v54 = vld [vmem:[%s28146_s3 + $0xfe8] sm:$0xf0] }
 0x427   : > { %8672 = vmatpush.bf16.msra.mxu2 %v16594_v60  ;;  %v19551_v60 = vld [vmem:[%s28146_s3 + $0x1218] sm:$0xf0] }
 0x428   : > { %8686 = vmatpush.bf16.msra.mxu3 %v16818_v33  ;;  %v8399_v33 = vadd.f32 %v8398_v62, %v8385_v57  ;;  %v16538_v4 = vor.u32 %v19551_v60, %v16537_v17  ;;  %v19425_v17 = vld [vmem:[%s28146_s3 + $0xe28] sm:$0xf0]  ;;  %v19079_v26 = vld [vmem:[%s28146_s3 + $0x35c] sm:$0xf] }
 0x429   : > { %8645 = vmatpush.bf16.msra.mxu0 %v16118_v36  ;;  %v16762_v36 = vor.u32 %v19607_v52, %v16761_v59  ;;  %v16257_v59 = vld [vmem:[%s28146_s3 + $0xfd0] sm:$0xf] }
 0x42a   : > { %8659 = vmatpush.bf16.msra.mxu1 %v16342_v42  ;;  %v24153_v57 = vadd.f32 %v8412_v9, %v8399_v33  ;;  %v19488_v42 = vld [vmem:[%s28146_s3 + $0x1020] sm:$0xf0]  ;;  %v16481_v52 = vld [vmem:[%s28146_s3 + $0x1190] sm:$0xf]  ;;  %v19593_v9 = vld [vmem:[%s28146_s3 + $0x1368] sm:$0xf0] }
 0x42b   : > { %8673 = vmatpush.bf16.msra.mxu2 %v16566_v58  ;;  %v16509_v58 = vld [vmem:[%s28146_s3 + $0x11c8] sm:$0xf]  ;;  %v16286_v60 = vor.u32 %v19488_v42, %v16285_v16  ;;  %v16705_v16 = vld [vmem:[%s28146_s3 + $0x1350] sm:$0xf]  ;;  %v14663_v42 = vld [vmem:[%s28146_s3 + $0x374] sm:$0xf0] }
 0x42c   : > { %8687 = vmatpush.bf16.msra.mxu3 %v16790_v61  ;;  %v19600_v61 = vld [vmem:[%s28146_s3 + $0x13a0] sm:$0xf0]  ;;  %v16510_v62 = vor.u32 %v19544_v48, %v16509_v58  ;;  %v19135_v58 = vld [vmem:[%s28146_s3 + $0x51c] sm:$0xf]  ;;  %v14887_v48 = vld [vmem:[%s28146_s3 + $0x534] sm:$0xf0]  ;;  %v14666_v20 = vor.u32 %v19079_v26, %v14663_v42 }
 0x42d   : > { %8646 = vmatpush.bf16.msra.mxu0 %v16090_v53  ;;  %v16734_v33 = vor.u32 %v19600_v61, %v16733_v43  ;;  %v19537_v53 = vld [vmem:[%s28146_s3 + $0x11a8] sm:$0xf0]  ;;  %v16258_v43 = vor.u32 %v19481_v54, %v16257_v59  ;;  %v14890_v7 = vor.u32 %v19135_v58, %v14887_v48  ;;  %v19072_v59 = vld [vmem:[%s28146_s3 + $0x324] sm:$0xf]  ;;  %v14383_v58 = vld [vmem:[%s28146_s3 + $0x144] sm:$0xf0] }
 0x42e   : > { %8660 = vmatpush.bf16.msra.mxu1 %v16314_v46  ;;  %v19023_v46 = vld [vmem:[%s28146_s3 + $0x19c] sm:$0xf]  ;;  %v16482_v61 = vor.u32 %v19537_v53, %v16481_v52  ;;  %v14635_v52 = vld [vmem:[%s28146_s3 + $0x33c] sm:$0xf0]  ;;  %v19009_v42 = vld [vmem:[%s28146_s3 + $0x12c] sm:$0xf] }
 0x42f   : > { %8674 = vmatpush.bf16.msra.mxu2 %v16538_v4  ;;  %v14439_v4 = vld [vmem:[%s28146_s3 + $0x1b4] sm:$0xf0]  ;;  %v14859_v53 = vld [vmem:[%s28146_s3 + $0x4fc] sm:$0xf0]  ;;  %v14638_v26 = vor.u32 %v19072_v59, %v14635_v52  ;;  %v19065_v48 = vld [vmem:[%s28146_s3 + $0x2ec] sm:$0xf] }
 0x430   : > { %8688 = vmatpush.bf16.msra.mxu3 %v16762_v36  ;;  %v16034_v36 = vor.u32 %v19425_v17, %v16033_v15  ;;  %v15111_v15 = vld [vmem:[%s28146_s3 + $0x6f4] sm:$0xf0]  ;;  %v16706_v17 = vor.u32 %v19593_v9, %v16705_v16  ;;  %v14442_v55 = vor.u32 %v19023_v46, %v14439_v4  ;;  %v19184_v16 = vld [vmem:[%s28146_s3 + $0x6a4] sm:$0xf]  ;;  %v15083_v9 = vld [vmem:[%s28146_s3 + $0x6bc] sm:$0xf0]  ;;  %v24244_v46 = vpop.f32.mrf.mxu1 }
 0x431   : > { %8647 = vmatpush.bf16.msra.mxu0 %v16062_v13  ;;  %v19191_v13 = vld [vmem:[%s28146_s3 + $0x6dc] sm:$0xf]  ;;  %v19002_v59 = vld [vmem:[%s28146_s3 + $0xf4] sm:$0xf] }
 0x432   : > { %8661 = vmatpush.bf16.msra.mxu1 %v16286_v60  ;;  %v19016_v60 = vld [vmem:[%s28146_s3 + $0x164] sm:$0xf]  ;;  %v15114_v54 = vor.u32 %v19191_v13, %v15111_v15  ;;  %v15055_v13 = vld [vmem:[%s28146_s3 + $0x684] sm:$0xf0]  ;;  %v14386_v15 = vor.u32 %v19009_v42, %v14383_v58  ;;  %v19058_v52 = vld [vmem:[%s28146_s3 + $0x2b4] sm:$0xf] }
 0x433   : > { %8675 = vmatpush.bf16.msra.mxu2 %v16510_v62  ;;  %v14411_v62 = vld [vmem:[%s28146_s3 + $0x17c] sm:$0xf0]  ;;  %v15027_v42 = vld [vmem:[%s28146_s3 + $0x64c] sm:$0xf0] }
 0x434   : > { %8689 = vmatpush.bf16.msra.mxu3 %v16734_v33  ;;  %v19128_v33 = vld [vmem:[%s28146_s3 + $0x4e4] sm:$0xf]  ;;  %v14414_v4 = vor.u32 %v19016_v60, %v14411_v62 }
 0x435   : > { %8648 = vmatpush.bf16.msra.mxu0 %v16034_v36  ;;  %v14862_v36 = vor.u32 %v19128_v33, %v14859_v53  ;;  %v24285_v53 = vpop.f32.mrf.mxu3 }
 0x436   : > { %8662 = vmatpush.bf16.msra.mxu1 %v16258_v43  ;;  %v14831_v43 = vld [vmem:[%s28146_s3 + $0x4c4] sm:$0xf0] }
 0x437   : > { %8676 = vmatpush.bf16.msra.mxu2 %v16482_v61  ;;  %v19177_v61 = vld [vmem:[%s28146_s3 + $0x66c] sm:$0xf] }
 0x438   : > { %8690 = vmatpush.bf16.msra.mxu3 %v16706_v17  ;;  %8649 = vmatmul.bf16.vlgmr.msra.gmra.mxu0 %v21750_v27  ;;  %v24274_v17 = vpop.f32.mrf.mxu2  ;;  %v15058_v33 = vor.u32 %v19177_v61, %v15055_v13  ;;  %v14327_v61 = vld [vmem:[%s28146_s3 + $0xd4] sm:$0xf0]  ;;  %v19051_v13 = vld [vmem:[%s28146_s3 + $0x27c] sm:$0xf] }
 0x439   : > { %8697 = vmatpush.bf16.msrb.mxu0 %v14442_v55  ;;  %v15086_v55 = vor.u32 %v19184_v16, %v15083_v9  ;;  %8663 = vmatmul.bf16.vlgmr.msra.gmra.mxu1 %v21763_v31  ;;  %v14579_v16 = vld [vmem:[%s28146_s3 + $0x2cc] sm:$0xf0]  ;;  %v19114_v9 = vld [vmem:[%s28146_s3 + $0x474] sm:$0xf] }
 0x43a   : > { %8711 = vmatpush.bf16.msrb.mxu1 %v14666_v20  ;;  %v19121_v20 = vld [vmem:[%s28146_s3 + $0x4ac] sm:$0xf]  ;;  %8677 = vmatmul.bf16.vlgmr.msra.gmra.mxu2 %v21761_v30 }
 0x43b   : > { %8725 = vmatpush.bf16.msrb.mxu2 %v14890_v7  ;;  %v14607_v7 = vld [vmem:[%s28146_s3 + $0x304] sm:$0xf0]  ;;  %8691 = vmatmul.bf16.vlgmr.msra.gmra.mxu3 %v21771_v34  ;;  %v14834_v62 = vor.u32 %v19121_v20, %v14831_v43  ;;  %v8440_v20 = vpop.f32.mrf.mxu1  ;;  %v18995_v43 = vld [vmem:[%s28146_s3 + $0xbc] sm:$0xf] }
 0x43c   : > { %8739 = vmatpush.bf16.msrb.mxu3 %v15114_v54  ;;  %v14610_v60 = vor.u32 %v19065_v48, %v14607_v7  ;;  %v14355_v54 = vld [vmem:[%s28146_s3 + $0x10c] sm:$0xf0] }
 0x43d   : > { %8698 = vmatpush.bf16.msrb.mxu0 %v14414_v4  ;;  %v14803_v4 = vld [vmem:[%s28146_s3 + $0x48c] sm:$0xf0]  ;;  %v14358_v48 = vor.u32 %v19002_v59, %v14355_v54  ;;  %v14775_v59 = vld [vmem:[%s28146_s3 + $0x454] sm:$0xf0]  ;;  %v19163_v54 = vld [vmem:[%s28146_s3 + $0x5fc] sm:$0xf] }
 0x43e   : > { %8712 = vmatpush.bf16.msrb.mxu1 %v14638_v26  ;;  %v8426_v26 = vpop.f32.mrf.mxu0  ;;  %v14806_v7 = vor.u32 %v19114_v9, %v14803_v4  ;;  %v18988_v4 = vld [vmem:[%s28146_s3 + $0x84] sm:$0xf] }
 0x43f   : > { %8726 = vmatpush.bf16.msrb.mxu2 %v14862_v36  ;;  %v19170_v36 = vld [vmem:[%s28146_s3 + $0x634] sm:$0xf]  ;;  %v8427_v58 = vadd.f32 %v8426_v26, %v24153_v57  ;;  %v14299_v26 = vld [vmem:[%s28146_s3 + $0x9c] sm:$0xf0] }
 0x440   : > { %8740 = vmatpush.bf16.msrb.mxu3 %v15086_v55  ;;  %v14582_v55 = vor.u32 %v19058_v52, %v14579_v16  ;;  %v15030_v57 = vor.u32 %v19170_v36, %v15027_v42  ;;  %v14999_v52 = vld [vmem:[%s28146_s3 + $0x614] sm:$0xf0]  ;;  %v19044_v36 = vld [vmem:[%s28146_s3 + $0x244] sm:$0xf] }
 0x441   : > { %8699 = vmatpush.bf16.msrb.mxu0 %v14386_v15  ;;  %v8441_v15 = vadd.f32 %v8440_v20, %v8427_v58  ;;  %v15002_v42 = vor.u32 %v19163_v54, %v14999_v52  ;;  %v8454_v58 = vpop.f32.mrf.mxu2  ;;  %v14271_v54 = vld [vmem:[%s28146_s3 + $0x64] sm:$0xf0]  ;;  %v19037_v52 = vld [vmem:[%s28146_s3 + $0x20c] sm:$0xf] }
 0x442   : > { %8713 = vmatpush.bf16.msrb.mxu1 %v14610_v60  ;;  %v14551_v60 = vld [vmem:[%s28146_s3 + $0x294] sm:$0xf0] }
 0x443   : > { %8727 = vmatpush.bf16.msrb.mxu2 %v14834_v62  ;;  %v19107_v62 = vld [vmem:[%s28146_s3 + $0x43c] sm:$0xf]  ;;  %v14554_v16 = vor.u32 %v19051_v13, %v14551_v60  ;;  %v8455_v20 = vadd.f32 %v8454_v58, %v8441_v15  ;;  %v8468_v13 = vpop.f32.mrf.mxu3  ;;  %v18981_v15 = vld [vmem:[%s28146_s3 + $0x4c] sm:$0xf]  ;;  %v18974_v58 = vld [vmem:[%s28146_s3 + $0x14] sm:$0xf] }
 0x444   : > { %8741 = vmatpush.bf16.msrb.mxu3 %v15058_v33  ;;  %v14330_v33 = vor.u32 %v18995_v43, %v14327_v61  ;;  %v14778_v9 = vor.u32 %v19107_v62, %v14775_v59  ;;  %v19156_v43 = vld [vmem:[%s28146_s3 + $0x5c4] sm:$0xf]  ;;  %v14971_v61 = vld [vmem:[%s28146_s3 + $0x5dc] sm:$0xf0] }
 0x445   : > { %8700 = vmatpush.bf16.msrb.mxu0 %v14358_v48  ;;  %v14523_v48 = vld [vmem:[%s28146_s3 + $0x25c] sm:$0xf0]  ;;  %v24351_v60 = vadd.f32 %v8468_v13, %v8455_v20  ;;  %v19030_v20 = vld [vmem:[%s28146_s3 + $0x1d4] sm:$0xf] }
 0x446   : > { %8714 = vmatpush.bf16.msrb.mxu1 %v14582_v55  ;;  %v19100_v55 = vld [vmem:[%s28146_s3 + $0x404] sm:$0xf]  ;;  %v14526_v62 = vor.u32 %v19044_v36, %v14523_v48  ;;  %v14943_v36 = vld [vmem:[%s28146_s3 + $0x5a4] sm:$0xf0]  ;;  %v14243_v48 = vld [vmem:[%s28146_s3 + $0x2c] sm:$0xf0] }
 0x447   : > { %8728 = vmatpush.bf16.msrb.mxu2 %v14806_v7  ;;  %v14747_v7 = vld [vmem:[%s28146_s3 + $0x41c] sm:$0xf0] }
 0x448   : > { %8742 = vmatpush.bf16.msrb.mxu3 %v15030_v57  ;;  %v14302_v57 = vor.u32 %v18988_v4, %v14299_v26  ;;  %v14750_v59 = vor.u32 %v19100_v55, %v14747_v7  ;;  %v14719_v4 = vld [vmem:[%s28146_s3 + $0x3e4] sm:$0xf0]  ;;  %v19149_v26 = vld [vmem:[%s28146_s3 + $0x58c] sm:$0xf] }
 0x449   : > { %8701 = vmatpush.bf16.msrb.mxu0 %v14330_v33  ;;  %v14974_v33 = vor.u32 %v19156_v43, %v14971_v61  ;;  %v14467_v43 = vld [vmem:[%s28146_s3 + $0x1ec] sm:$0xf0]  ;;  %v19086_v61 = vld [vmem:[%s28146_s3 + $0x394] sm:$0xf]  ;;  %v14946_v13 = vor.u32 %v19149_v26, %v14943_v36 }
 0x44a   : > { %8715 = vmatpush.bf16.msrb.mxu1 %v14554_v16  ;;  %v14495_v16 = vld [vmem:[%s28146_s3 + $0x224] sm:$0xf0]  ;;  %v14470_v26 = vor.u32 %v19030_v20, %v14467_v43  ;;  %v19296_v20 = vld [vmem:[%s28146_s3 + $0xa24] sm:$0xf] }
 0x44b   : > { %8729 = vmatpush.bf16.msrb.mxu2 %v14778_v9  ;;  %v19093_v9 = vld [vmem:[%s28146_s3 + $0x3cc] sm:$0xf]  ;;  %v14498_v55 = vor.u32 %v19037_v52, %v14495_v16  ;;  %v19303_v52 = vld [vmem:[%s28146_s3 + $0xa5c] sm:$0xf]  ;;  %v15559_v16 = vld [vmem:[%s28146_s3 + $0xa74] sm:$0xf0] }
 0x44c   : > { %8743 = vmatpush.bf16.msrb.mxu3 %v15002_v42  ;;  %v14274_v42 = vor.u32 %v18981_v15, %v14271_v54  ;;  %v14722_v7 = vor.u32 %v19093_v9, %v14719_v4  ;;  %v19247_v15 = vld [vmem:[%s28146_s3 + $0x89c] sm:$0xf]  ;;  %v15335_v54 = vld [vmem:[%s28146_s3 + $0x8b4] sm:$0xf0]  ;;  %v15562_v8 = vor.u32 %v19303_v52, %v15559_v16 }
 0x44d   : > { %8702 = vmatpush.bf16.msrb.mxu0 %v14302_v57  ;;  %v14691_v57 = vld [vmem:[%s28146_s3 + $0x3ac] sm:$0xf0]  ;;  %v19359_v9 = vld [vmem:[%s28146_s3 + $0xc1c] sm:$0xf]  ;;  %v15783_v4 = vld [vmem:[%s28146_s3 + $0xc34] sm:$0xf0]  ;;  %v15338_v12 = vor.u32 %v19247_v15, %v15335_v54  ;;  %v24451_v54 = vpop.f32.mrf.mxu1 }
 0x44e   : > { %8716 = vmatpush.bf16.msrb.mxu1 %v14526_v62  ;;  %v19142_v62 = vld [vmem:[%s28146_s3 + $0x554] sm:$0xf]  ;;  %v14694_v36 = vor.u32 %v19086_v61, %v14691_v57  ;;  %v15786_v41 = vor.u32 %v19359_v9, %v15783_v4  ;;  %v15531_v61 = vld [vmem:[%s28146_s3 + $0xa3c] sm:$0xf0]  ;;  %28180 = vst [vmem:[#allocation22_spill] sm:$0xff] %v24451_v54 }
 0x44f   : > { %8730 = vmatpush.bf16.msrb.mxu2 %v14750_v59  ;;  %v14915_v59 = vld [vmem:[%s28146_s3 + $0x56c] sm:$0xf0]  ;;  %v15755_v57 = vld [vmem:[%s28146_s3 + $0xbfc] sm:$0xf0]  ;;  %v19233_v9 = vld [vmem:[%s28146_s3 + $0x82c] sm:$0xf] }
 0x450   : > { %8744 = vmatpush.bf16.msrb.mxu3 %v14974_v33  ;;  %v14246_v33 = vor.u32 %v18974_v58, %v14243_v48  ;;  %v16007_v58 = vld [vmem:[%s28146_s3 + $0xdf4] sm:$0xf0]  ;;  %v14918_v48 = vor.u32 %v19142_v62, %v14915_v59  ;;  %v24443_v62 = vpop.f32.mrf.mxu0  ;;  %v19408_v59 = vld [vmem:[%s28146_s3 + $0xda4] sm:$0xf]  ;;  %v15979_v15 = vld [vmem:[%s28146_s3 + $0xdbc] sm:$0xf0] }
 0x451   : > { %8703 = vmatpush.bf16.msrb.mxu0 %v14274_v42  ;;  %v19415_v42 = vld [vmem:[%s28146_s3 + $0xddc] sm:$0xf]  ;;  %v15279_v4 = vld [vmem:[%s28146_s3 + $0x844] sm:$0xf0] }
 0x452   : > { %8717 = vmatpush.bf16.msrb.mxu1 %v14498_v55  ;;  %v19240_v55 = vld [vmem:[%s28146_s3 + $0x864] sm:$0xf]  ;;  %v16010_v43 = vor.u32 %v19415_v42, %v16007_v58  ;;  %v19401_v42 = vld [vmem:[%s28146_s3 + $0xd6c] sm:$0xf]  ;;  %v15951_v58 = vld [vmem:[%s28146_s3 + $0xd84] sm:$0xf0] }
 0x453   : > { %8731 = vmatpush.bf16.msrb.mxu2 %v14722_v7  ;;  %v15307_v7 = vld [vmem:[%s28146_s3 + $0x87c] sm:$0xf0] }
 0x454   : > { %8745 = vmatpush.bf16.msrb.mxu3 %v14946_v13  ;;  %v19352_v13 = vld [vmem:[%s28146_s3 + $0xbe4] sm:$0xf]  ;;  %v15310_v52 = vor.u32 %v19240_v55, %v15307_v7 }
 0x455   : > { %8704 = vmatpush.bf16.msrb.mxu0 %v14246_v33  ;;  %v15534_v33 = vor.u32 %v19296_v20, %v15531_v61  ;;  %v15758_v16 = vor.u32 %v19352_v13, %v15755_v57  ;;  %v19226_v20 = vld [vmem:[%s28146_s3 + $0x7f4] sm:$0xf]  ;;  %v24490_v13 = vpop.f32.mrf.mxu2  ;;  %v15954_v57 = vor.u32 %v19401_v42, %v15951_v58  ;;  %v19219_v42 = vld [vmem:[%s28146_s3 + $0x7bc] sm:$0xf]  ;;  %v15223_v58 = vld [vmem:[%s28146_s3 + $0x7d4] sm:$0xf0] }
 0x456   : > { %8718 = vmatpush.bf16.msrb.mxu1 %v14470_v26  ;;  %v19289_v26 = vld [vmem:[%s28146_s3 + $0x9ec] sm:$0xf]  ;;  %v19282_v61 = vld [vmem:[%s28146_s3 + $0x9b4] sm:$0xf]  ;;  %28181 = vst [vmem:[#allocation23_spill] sm:$0xff] %v24490_v13 }
 0x457   : > { %8732 = vmatpush.bf16.msrb.mxu2 %v14694_v36  ;;  %v15982_v36 = vor.u32 %v19408_v59, %v15979_v15  ;;  %v15475_v59 = vld [vmem:[%s28146_s3 + $0x9cc] sm:$0xf0]  ;;  %v19338_v15 = vld [vmem:[%s28146_s3 + $0xb74] sm:$0xf] }
 0x458   : > { %8746 = vmatpush.bf16.msrb.mxu3 %v14918_v48  ;;  %8705 = vmatmul.bf16.vlgmr.msrb.gmra.mxu0 %v21386_v23  ;;  %v15282_v48 = vor.u32 %v19233_v9, %v15279_v4  ;;  %v19394_v9 = vld [vmem:[%s28146_s3 + $0xd34] sm:$0xf]  ;;  %v15923_v4 = vld [vmem:[%s28146_s3 + $0xd4c] sm:$0xf0] }
 0x459   : > { %8753 = vmatpush.bf16.msra.mxu0 %v15338_v12  ;;  %v19345_v12 = vld [vmem:[%s28146_s3 + $0xbac] sm:$0xf]  ;;  %8719 = vmatmul.bf16.vlgmr.msrb.gmra.mxu1 %v21406_v39 }
 0x45a   : > { %8767 = vmatpush.bf16.msra.mxu1 %v15562_v8  ;;  %v15503_v8 = vld [vmem:[%s28146_s3 + $0xa04] sm:$0xf0]  ;;  %8733 = vmatmul.bf16.vlgmr.msrb.gmra.mxu2 %v21388_v25 }
 0x45b   : > { %8781 = vmatpush.bf16.msra.mxu2 %v15786_v41  ;;  %v15727_v41 = vld [vmem:[%s28146_s3 + $0xbc4] sm:$0xf0]  ;;  %8747 = vmatmul.bf16.vlgmr.msrb.gmra.mxu3 %v21425_v24  ;;  %v15506_v55 = vor.u32 %v19289_v26, %v15503_v8  ;;  %v8496_v8 = vpop.f32.mrf.mxu1 }
 0x45c   : > { %8795 = vmatpush.bf16.msra.mxu3 %v16010_v43  ;;  %v15730_v7 = vor.u32 %v19345_v12, %v15727_v41  ;;  %v15251_v43 = vld [vmem:[%s28146_s3 + $0x80c] sm:$0xf0]  ;;  %v15478_v12 = vor.u32 %v19282_v61, %v15475_v59  ;;  %v19387_v61 = vld [vmem:[%s28146_s3 + $0xcfc] sm:$0xf]  ;;  %v15226_v59 = vor.u32 %v19219_v42, %v15223_v58 }
 0x45d   : > { %8754 = vmatpush.bf16.msra.mxu0 %v15310_v52  ;;  %v15699_v52 = vld [vmem:[%s28146_s3 + $0xb8c] sm:$0xf0] }
 0x45e   : > { %8768 = vmatpush.bf16.msra.mxu1 %v15534_v33  ;;  %v24501_v33 = vpop.f32.mrf.mxu3  ;;  %v15702_v41 = vor.u32 %v19338_v15, %v15699_v52 }
 0x45f   : > { %8782 = vmatpush.bf16.msra.mxu2 %v15758_v16  ;;  %28182 = vst [vmem:[#allocation24_spill] sm:$0xff] %v24501_v33  ;;  %v8482_v16 = vpop.f32.mrf.mxu0 }
 0x460   : > { %8796 = vmatpush.bf16.msra.mxu3 %v15982_v36  ;;  %v8483_v26 = vadd.f32 %v8482_v16, %v24351_v60  ;;  %v15254_v36 = vor.u32 %v19226_v20, %v15251_v43  ;;  %v15926_v60 = vor.u32 %v19394_v9, %v15923_v4  ;;  %v15671_v43 = vld [vmem:[%s28146_s3 + $0xb54] sm:$0xf0]  ;;  %v19212_v16 = vld [vmem:[%s28146_s3 + $0x784] sm:$0xf]  ;;  %v15195_v9 = vld [vmem:[%s28146_s3 + $0x79c] sm:$0xf0] }
 0x461   : > { %8755 = vmatpush.bf16.msra.mxu0 %v15282_v48  ;;  %v19275_v48 = vld [vmem:[%s28146_s3 + $0x97c] sm:$0xf]  ;;  %v19268_v4 = vld [vmem:[%s28146_s3 + $0x944] sm:$0xf] }
 0x462   : > { %8769 = vmatpush.bf16.msra.mxu1 %v15506_v55  ;;  %v8497_v20 = vadd.f32 %v8496_v8, %v8483_v26  ;;  %v15447_v55 = vld [vmem:[%s28146_s3 + $0x994] sm:$0xf0]  ;;  %v15419_v8 = vld [vmem:[%s28146_s3 + $0x95c] sm:$0xf0] }
 0x463   : > { %8783 = vmatpush.bf16.msra.mxu2 %v15730_v7  ;;  %v19331_v7 = vld [vmem:[%s28146_s3 + $0xb3c] sm:$0xf]  ;;  %v15450_v15 = vor.u32 %v19275_v48, %v15447_v55  ;;  %v19380_v48 = vld [vmem:[%s28146_s3 + $0xcc4] sm:$0xf]  ;;  %v15198_v55 = vor.u32 %v19212_v16, %v15195_v9  ;;  %v15615_v16 = vld [vmem:[%s28146_s3 + $0xae4] sm:$0xf0] }
 0x464   : > { %8797 = vmatpush.bf16.msra.mxu3 %v15954_v57  ;;  %v15895_v57 = vld [vmem:[%s28146_s3 + $0xd14] sm:$0xf0]  ;;  %v15674_v52 = vor.u32 %v19331_v7, %v15671_v43  ;;  %v15422_v43 = vor.u32 %v19268_v4, %v15419_v8  ;;  %v19373_v9 = vld [vmem:[%s28146_s3 + $0xc8c] sm:$0xf]  ;;  %v15839_v4 = vld [vmem:[%s28146_s3 + $0xca4] sm:$0xf0] }
 0x465   : > { %8756 = vmatpush.bf16.msra.mxu0 %v15254_v36  ;;  %v15898_v26 = vor.u32 %v19387_v61, %v15895_v57  ;;  %v8510_v36 = vpop.f32.mrf.mxu2  ;;  %v15167_v57 = vld [vmem:[%s28146_s3 + $0x764] sm:$0xf0]  ;;  %v19198_v8 = vld [vmem:[%s28146_s3 + $0x714] sm:$0xf] }
 0x466   : > { %8770 = vmatpush.bf16.msra.mxu1 %v15478_v12  ;;  %v19324_v12 = vld [vmem:[%s28146_s3 + $0xb04] sm:$0xf]  ;;  %v8511_v42 = vadd.f32 %v8510_v36, %v8497_v20  ;;  %v8524_v58 = vpop.f32.mrf.mxu3  ;;  %v19205_v20 = vld [vmem:[%s28146_s3 + $0x74c] sm:$0xf] }
 0x467   : > { %8784 = vmatpush.bf16.msra.mxu2 %v15702_v41  ;;  %v15643_v41 = vld [vmem:[%s28146_s3 + $0xb1c] sm:$0xf0]  ;;  %v19261_v36 = vld [vmem:[%s28146_s3 + $0x90c] sm:$0xf] }
 0x468   : > { %8798 = vmatpush.bf16.msra.mxu3 %v15926_v60  ;;  %v15867_v60 = vld [vmem:[%s28146_s3 + $0xcdc] sm:$0xf0]  ;;  %v24558_v7 = vadd.f32 %v8524_v58, %v8511_v42  ;;  %v15646_v61 = vor.u32 %v19324_v12, %v15643_v41  ;;  %v15139_v12 = vld [vmem:[%s28146_s3 + $0x72c] sm:$0xf0]  ;;  %v19254_v58 = vld [vmem:[%s28146_s3 + $0x8d4] sm:$0xf] }
 0x469   : > { %8757 = vmatpush.bf16.msra.mxu0 %v15226_v59  ;;  %v15870_v59 = vor.u32 %v19380_v48, %v15867_v60  ;;  %v15363_v48 = vld [vmem:[%s28146_s3 + $0x8ec] sm:$0xf0]  ;;  %v19310_v60 = vld [vmem:[%s28146_s3 + $0xa94] sm:$0xf] }
 0x46a   : > { %8771 = vmatpush.bf16.msra.mxu1 %v15450_v15  ;;  %28183 = vst [vmem:[#allocation25_spill] sm:$0xff] %v24558_v7  ;;  %v15391_v15 = vld [vmem:[%s28146_s3 + $0x924] sm:$0xf0] }
 0x46b   : > { %8785 = vmatpush.bf16.msra.mxu2 %v15674_v52  ;;  %v19317_v52 = vld [vmem:[%s28146_s3 + $0xacc] sm:$0xf]  ;;  %v15394_v41 = vor.u32 %v19261_v36, %v15391_v15  ;;  %v16231_v36 = vld [vmem:[%s28146_s3 + $0xfb4] sm:$0xf0]  ;;  %v15142_v15 = vor.u32 %v19198_v8, %v15139_v12 }
 0x46c   : > { %8799 = vmatpush.bf16.msra.mxu3 %v15898_v26  ;;  %v15170_v26 = vor.u32 %v19205_v20, %v15167_v57  ;;  %v15618_v42 = vor.u32 %v19317_v52, %v15615_v16  ;;  %v15811_v20 = vld [vmem:[%s28146_s3 + $0xc6c] sm:$0xf0]  ;;  %v19471_v57 = vld [vmem:[%s28146_s3 + $0xf9c] sm:$0xf]  ;;  %v16455_v52 = vld [vmem:[%s28146_s3 + $0x1174] sm:$0xf0] }
 0x46d   : > { %8758 = vmatpush.bf16.msra.mxu0 %v15198_v55  ;;  %v15842_v55 = vor.u32 %v19373_v9, %v15839_v4  ;;  %v19583_v16 = vld [vmem:[%s28146_s3 + $0x131c] sm:$0xf]  ;;  %v16679_v9 = vld [vmem:[%s28146_s3 + $0x1334] sm:$0xf0]  ;;  %v15366_v4 = vor.u32 %v19254_v58, %v15363_v48  ;;  %v16234_v33 = vor.u32 %v19471_v57, %v16231_v36  ;;  %v19520_v58 = vld [vmem:[%s28146_s3 + $0x1124] sm:$0xf] }
 0x46e   : > { %8772 = vmatpush.bf16.msra.mxu1 %v15422_v43  ;;  %v15587_v43 = vld [vmem:[%s28146_s3 + $0xaac] sm:$0xf0]  ;;  %v16903_v8 = vld [vmem:[%s28146_s3 + $0x14f4] sm:$0xf0]  ;;  %v16682_v54 = vor.u32 %v19583_v16, %v16679_v9  ;;  %v16875_v57 = vld [vmem:[%s28146_s3 + $0x14bc] sm:$0xf0] }
 0x46f   : > { %8786 = vmatpush.bf16.msra.mxu2 %v15646_v61  ;;  %v19366_v61 = vld [vmem:[%s28146_s3 + $0xc54] sm:$0xf]  ;;  %v15590_v7 = vor.u32 %v19310_v60, %v15587_v43  ;;  %v16427_v60 = vld [vmem:[%s28146_s3 + $0x113c] sm:$0xf0]  ;;  %v16175_v16 = vld [vmem:[%s28146_s3 + $0xf44] sm:$0xf0] }
 0x470   : > { %8800 = vmatpush.bf16.msra.mxu3 %v15870_v59  ;;  %v19527_v59 = vld [vmem:[%s28146_s3 + $0x115c] sm:$0xf]  ;;  %v15814_v12 = vor.u32 %v19366_v61, %v15811_v20  ;;  %v16651_v43 = vld [vmem:[%s28146_s3 + $0x12fc] sm:$0xf0]  ;;  %v24650_v61 = vpop.f32.mrf.mxu0  ;;  %v19632_v20 = vld [vmem:[%s28146_s3 + $0x14a4] sm:$0xf] }
 0x471   : > { %8759 = vmatpush.bf16.msra.mxu0 %v15170_v26  ;;  %v19639_v26 = vld [vmem:[%s28146_s3 + $0x14dc] sm:$0xf]  ;;  %v16458_v13 = vor.u32 %v19527_v59, %v16455_v52  ;;  %28184 = vst [vmem:[#allocation26_spill] sm:$0xff] %v24650_v61  ;;  %v24658_v59 = vpop.f32.mrf.mxu1  ;;  %v19513_v9 = vld [vmem:[%s28146_s3 + $0x10ec] sm:$0xf] }
 0x472   : > { %8773 = vmatpush.bf16.msra.mxu1 %v15394_v41  ;;  %v19464_v41 = vld [vmem:[%s28146_s3 + $0xf64] sm:$0xf]  ;;  %v16906_v48 = vor.u32 %v19639_v26, %v16903_v8  ;;  %28185 = vst [vmem:[#allocation27_spill] sm:$0xff] %v24658_v59  ;;  %v19625_v26 = vld [vmem:[%s28146_s3 + $0x146c] sm:$0xf] }
 0x473   : > { %8787 = vmatpush.bf16.msra.mxu2 %v15618_v42  ;;  %v16203_v42 = vld [vmem:[%s28146_s3 + $0xf7c] sm:$0xf0]  ;;  %v16847_v8 = vld [vmem:[%s28146_s3 + $0x1484] sm:$0xf0]  ;;  %v19485_v59 = vld [vmem:[%s28146_s3 + $0x100c] sm:$0xf] }
 0x474   : > { %8801 = vmatpush.bf16.msra.mxu3 %v15842_v55  ;;  %v19576_v55 = vld [vmem:[%s28146_s3 + $0x12e4] sm:$0xf]  ;;  %v16206_v36 = vor.u32 %v19464_v41, %v16203_v42 }
 0x475   : > { %8760 = vmatpush.bf16.msra.mxu0 %v15142_v15  ;;  %v16430_v15 = vor.u32 %v19520_v58, %v16427_v60  ;;  %v16654_v52 = vor.u32 %v19576_v55, %v16651_v43  ;;  %v24691_v41 = vld [vmem:[%s28147_s4] sm:$0x7f]  ;;  %v19450_v60 = vld [vmem:[%s28146_s3 + $0xef4] sm:$0xf]  ;;  %v16147_v55 = vld [vmem:[%s28146_s3 + $0xf0c] sm:$0xf0] }
 0x476   : > { %8774 = vmatpush.bf16.msra.mxu1 %v15366_v4  ;;  %v16623_v4 = vld [vmem:[%s28146_s3 + $0x12c4] sm:$0xf0]  ;;  %28186 = vst [vmem:[#allocation28_spill] sm:$0xff] %v24691_v41  ;;  %v28160_v42 = vperm.slane %v24691_v41, 4  ;;  %v19506_v43 = vld [vmem:[%s28146_s3 + $0x10b4] sm:$0xf] }
 0x477   : > { %8788 = vmatpush.bf16.msra.mxu2 %v15590_v7  ;;  %v19457_v7 = vld [vmem:[%s28146_s3 + $0xf2c] sm:$0xf] }
 0x478   : > { %8802 = vmatpush.bf16.msra.mxu3 %v15814_v12  ;;  %8761 = vmatmul.bf16.vlgmr.msra.gmra.mxu0 %v21540_v6  ;;  %v16178_v12 = vor.u32 %v19457_v7, %v16175_v16  ;;  %v19618_v7 = vld [vmem:[%s28146_s3 + $0x1434] sm:$0xf]  ;;  %v16819_v16 = vld [vmem:[%s28146_s3 + $0x144c] sm:$0xf0] }
 0x479   : > { %8809 = vmatpush.bf16.msrb.mxu0 %v16234_v33  ;;  %v16878_v33 = vor.u32 %v19632_v20, %v16875_v57  ;;  %8775 = vmatmul.bf16.vlgmr.msra.gmra.mxu1 %v21553_v11  ;;  %v24703_v20 = vpop.f32.mrf.mxu2  ;;  %v16850_v57 = vor.u32 %v19625_v26, %v16847_v8  ;;  %v19443_v8 = vld [vmem:[%s28146_s3 + $0xebc] sm:$0xf] }
 0x47a   : > { %8823 = vmatpush.bf16.msrb.mxu1 %v16458_v13  ;;  %v19569_v13 = vld [vmem:[%s28146_s3 + $0x12ac] sm:$0xf]  ;;  %8789 = vmatmul.bf16.vlgmr.msra.gmra.mxu2 %v21551_v10  ;;  %28187 = vst [vmem:[#allocation29_spill] sm:$0xff] %v24703_v20  ;;  %v16119_v20 = vld [vmem:[%s28146_s3 + $0xed4] sm:$0xf0] }
 0x47b   : > { %8837 = vmatpush.bf16.msrb.mxu2 %v16682_v54  ;;  %v16399_v54 = vld [vmem:[%s28146_s3 + $0x1104] sm:$0xf0]  ;;  %8803 = vmatmul.bf16.vlgmr.msra.gmra.mxu3 %v21561_v14 }
 0x47c   : > { %8851 = vmatpush.bf16.msrb.mxu3 %v16906_v48  ;;  %v16402_v58 = vor.u32 %v19513_v9, %v16399_v54  ;;  %v16626_v48 = vor.u32 %v19569_v13, %v16623_v4  ;;  %v8538_v9 = vpop.f32.mrf.mxu0  ;;  %v16150_v54 = vor.u32 %v19450_v60, %v16147_v55  ;;  %v8552_v60 = vpop.f32.mrf.mxu1  ;;  %v16822_v55 = vor.u32 %v19618_v7, %v16819_v16 }
 0x47d   : > { %8810 = vmatpush.bf16.msrb.mxu0 %v16206_v36  ;;  %v16371_v36 = vld [vmem:[%s28146_s3 + $0x10cc] sm:$0xf0]  ;;  %v8539_v13 = vadd.f32 %v8538_v9, %v28160_v42  ;;  %v19436_v9 = vld [vmem:[%s28146_s3 + $0xe84] sm:$0xf] }
 0x47e   : > { %8824 = vmatpush.bf16.msrb.mxu1 %v16430_v15  ;;  %v19562_v15 = vld [vmem:[%s28146_s3 + $0x1274] sm:$0xf]  ;;  %v16374_v4 = vor.u32 %v19506_v43, %v16371_v36  ;;  %v16567_v43 = vld [vmem:[%s28146_s3 + $0x1254] sm:$0xf0] }
 0x47f   : > { %8838 = vmatpush.bf16.msrb.mxu2 %v16654_v52  ;;  %v16595_v52 = vld [vmem:[%s28146_s3 + $0x128c] sm:$0xf0]  ;;  %v8553_v36 = vadd.f32 %v8552_v60, %v8539_v13  ;;  %v16091_v13 = vld [vmem:[%s28146_s3 + $0xe9c] sm:$0xf0]  ;;  %v19492_v60 = vld [vmem:[%s28146_s3 + $0x1044] sm:$0xf] }
 0x480   : > { %8852 = vmatpush.bf16.msrb.mxu3 %v16878_v33  ;;  %v24720_v33 = vpop.f32.mrf.mxu3  ;;  %v16598_v26 = vor.u32 %v19562_v15, %v16595_v52  ;;  %v19611_v15 = vld [vmem:[%s28146_s3 + $0x13fc] sm:$0xf]  ;;  %v16122_v52 = vor.u32 %v19443_v8, %v16119_v20  ;;  %v16315_v20 = vld [vmem:[%s28146_s3 + $0x105c] sm:$0xf0]  ;;  %v19604_v8 = vld [vmem:[%s28146_s3 + $0x13c4] sm:$0xf] }
 0x481   : > { %28188 = vst [vmem:[#allocation30_spill] sm:$0xff] %v24720_v33  ;;  %8811 = vmatpush.bf16.msrb.mxu0 %v16178_v12  ;;  %v19499_v12 = vld [vmem:[%s28146_s3 + $0x107c] sm:$0xf]  ;;  %v16063_v33 = vld [vmem:[%s28146_s3 + $0xe64] sm:$0xf0] }
 0x482   : > { %8825 = vmatpush.bf16.msrb.mxu1 %v16402_v58  ;;  %v16343_v58 = vld [vmem:[%s28146_s3 + $0x1094] sm:$0xf0] }
 0x483   : > { %8839 = vmatpush.bf16.msrb.mxu2 %v16626_v48  ;;  %v19555_v48 = vld [vmem:[%s28146_s3 + $0x123c] sm:$0xf]  ;;  %v16346_v7 = vor.u32 %v19499_v12, %v16343_v58  ;;  %v16763_v12 = vld [vmem:[%s28146_s3 + $0x13dc] sm:$0xf0]  ;;  %v16094_v58 = vor.u32 %v19436_v9, %v16091_v13  ;;  %v16511_v9 = vld [vmem:[%s28146_s3 + $0x11e4] sm:$0xf0] }
 0x484   : > { %8853 = vmatpush.bf16.msrb.mxu3 %v16850_v57  ;;  %v16791_v57 = vld [vmem:[%s28146_s3 + $0x1414] sm:$0xf0]  ;;  %v16570_v16 = vor.u32 %v19555_v48, %v16567_v43  ;;  %v16318_v43 = vor.u32 %v19492_v60, %v16315_v20  ;;  %v19597_v13 = vld [vmem:[%s28146_s3 + $0x138c] sm:$0xf]  ;;  %v19422_v20 = vld [vmem:[%s28146_s3 + $0xe14] sm:$0xf] }
 0x485   : > { %8812 = vmatpush.bf16.msrb.mxu0 %v16150_v54  ;;  %v16794_v42 = vor.u32 %v19611_v15, %v16791_v57  ;;  %v19548_v54 = vld [vmem:[%s28146_s3 + $0x1204] sm:$0xf]  ;;  %v19429_v57 = vld [vmem:[%s28146_s3 + $0xe4c] sm:$0xf] }
 0x486   : > { %8826 = vmatpush.bf16.msrb.mxu1 %v16374_v4  ;;  %v16539_v4 = vld [vmem:[%s28146_s3 + $0x121c] sm:$0xf0]  ;;  %v16066_v60 = vor.u32 %v19429_v57, %v16063_v33  ;;  %v16259_v33 = vld [vmem:[%s28146_s3 + $0xfec] sm:$0xf0] }
 0x487   : > { %8840 = vmatpush.bf16.msrb.mxu2 %v16598_v26  ;;  %v8566_v26 = vpop.f32.mrf.mxu2  ;;  %v16542_v15 = vor.u32 %v19548_v54, %v16539_v4  ;;  %v16035_v54 = vld [vmem:[%s28146_s3 + $0xe2c] sm:$0xf0]  ;;  %v14669_v57 = vld [vmem:[%s28146_s3 + $0x360] sm:$0xf] }
 0x488   : > { %8854 = vmatpush.bf16.msrb.mxu3 %v16822_v55  ;;  %v8567_v55 = vadd.f32 %v8566_v26, %v8553_v36  ;;  %v8580_v48 = vpop.f32.mrf.mxu3 }
 0x489   : > { %8813 = vmatpush.bf16.msrb.mxu0 %v16122_v52  ;;  %v16766_v52 = vor.u32 %v19604_v8, %v16763_v12  ;;  %v19478_v8 = vld [vmem:[%s28146_s3 + $0xfd4] sm:$0xf] }
 0x48a   : > { %8827 = vmatpush.bf16.msrb.mxu1 %v16346_v7  ;;  %v24781_v36 = vadd.f32 %v8580_v48, %v8567_v55  ;;  %v16287_v7 = vld [vmem:[%s28146_s3 + $0x1024] sm:$0xf0]  ;;  %v19534_v12 = vld [vmem:[%s28146_s3 + $0x1194] sm:$0xf]  ;;  %v16707_v48 = vld [vmem:[%s28146_s3 + $0x136c] sm:$0xf0] }
 0x48b   : > { %8841 = vmatpush.bf16.msrb.mxu2 %v16570_v16  ;;  %v19541_v16 = vld [vmem:[%s28146_s3 + $0x11cc] sm:$0xf]  ;;  %v16290_v4 = vor.u32 %v19485_v59, %v16287_v7  ;;  %v19590_v59 = vld [vmem:[%s28146_s3 + $0x1354] sm:$0xf]  ;;  %v19083_v7 = vld [vmem:[%s28146_s3 + $0x378] sm:$0xf0] }
 0x48c   : > { %28189 = vst [vmem:[#allocation31_spill] sm:$0xff] %v24781_v36  ;;  %8855 = vmatpush.bf16.msrb.mxu3 %v16794_v42  ;;  %v16735_v42 = vld [vmem:[%s28146_s3 + $0x13a4] sm:$0xf0]  ;;  %v16514_v26 = vor.u32 %v19541_v16, %v16511_v9  ;;  %v14893_v16 = vld [vmem:[%s28146_s3 + $0x520] sm:$0xf]  ;;  %v14670_v41 = vor.u32 %v19083_v7, %v14669_v57 }
 0x48d   : > { %8814 = vmatpush.bf16.msrb.mxu0 %v16094_v58  ;;  %v16738_v55 = vor.u32 %v19597_v13, %v16735_v42  ;;  %v16483_v58 = vld [vmem:[%s28146_s3 + $0x11ac] sm:$0xf0]  ;;  %v19139_v9 = vld [vmem:[%s28146_s3 + $0x538] sm:$0xf0]  ;;  %v16262_v13 = vor.u32 %v19478_v8, %v16259_v33  ;;  %v14641_v8 = vld [vmem:[%s28146_s3 + $0x328] sm:$0xf] }
 0x48e   : > { %8828 = vmatpush.bf16.msrb.mxu1 %v16318_v43  ;;  %v14445_v43 = vld [vmem:[%s28146_s3 + $0x1a0] sm:$0xf]  ;;  %v16486_v42 = vor.u32 %v19534_v12, %v16483_v58  ;;  %v14894_v61 = vor.u32 %v19139_v9, %v14893_v16  ;;  %v19076_v12 = vld [vmem:[%s28146_s3 + $0x340] sm:$0xf0]  ;;  %v19013_v7 = vld [vmem:[%s28146_s3 + $0x148] sm:$0xf0] }
 0x48f   : > { %8842 = vmatpush.bf16.msrb.mxu2 %v16542_v15  ;;  %v19027_v15 = vld [vmem:[%s28146_s3 + $0x1b8] sm:$0xf0]  ;;  %v19132_v58 = vld [vmem:[%s28146_s3 + $0x500] sm:$0xf0]  ;;  %v14613_v16 = vld [vmem:[%s28146_s3 + $0x2f0] sm:$0xf] }
 0x490   : > { %8856 = vmatpush.bf16.msrb.mxu3 %v16766_v52  ;;  %v16038_v52 = vor.u32 %v19422_v20, %v16035_v54  ;;  %v19195_v20 = vld [vmem:[%s28146_s3 + $0x6f8] sm:$0xf0]  ;;  %v16710_v54 = vor.u32 %v19590_v59, %v16707_v48  ;;  %v14446_v36 = vor.u32 %v19027_v15, %v14445_v43  ;;  %v15089_v59 = vld [vmem:[%s28146_s3 + $0x6a8] sm:$0xf]  ;;  %v19188_v48 = vld [vmem:[%s28146_s3 + $0x6c0] sm:$0xf0]  ;;  %v14642_v15 = vor.u32 %v19076_v12, %v14641_v8 }
 0x491   : > { %8815 = vmatpush.bf16.msrb.mxu0 %v16066_v60  ;;  %v15117_v60 = vld [vmem:[%s28146_s3 + $0x6e0] sm:$0xf]  ;;  %v19125_v9 = vld [vmem:[%s28146_s3 + $0x4c8] sm:$0xf0]  ;;  %v14585_v8 = vld [vmem:[%s28146_s3 + $0x2b8] sm:$0xf] }
 0x492   : > { %8829 = vmatpush.bf16.msrb.mxu1 %v16290_v4  ;;  %v14417_v4 = vld [vmem:[%s28146_s3 + $0x168] sm:$0xf]  ;;  %v15118_v33 = vor.u32 %v19195_v20, %v15117_v60  ;;  %v19062_v12 = vld [vmem:[%s28146_s3 + $0x2d0] sm:$0xf0] }
 0x493   : > { %8843 = vmatpush.bf16.msrb.mxu2 %v16514_v26  ;;  %v19020_v26 = vld [vmem:[%s28146_s3 + $0x180] sm:$0xf0] }
 0x494   : > { %8857 = vmatpush.bf16.msrb.mxu3 %v16738_v55  ;;  %v14865_v55 = vld [vmem:[%s28146_s3 + $0x4e8] sm:$0xf]  ;;  %v14418_v43 = vor.u32 %v19020_v26, %v14417_v4  ;;  %v14361_v4 = vld [vmem:[%s28146_s3 + $0xf8] sm:$0xf]  ;;  %v19006_v26 = vld [vmem:[%s28146_s3 + $0x110] sm:$0xf0] }
 0x495   : > { %8816 = vmatpush.bf16.msrb.mxu0 %v16038_v52  ;;  %v14866_v57 = vor.u32 %v19132_v58, %v14865_v55  ;;  %v14389_v52 = vld [vmem:[%s28146_s3 + $0x130] sm:$0xf]  ;;  %v14809_v55 = vld [vmem:[%s28146_s3 + $0x478] sm:$0xf]  ;;  %v19118_v58 = vld [vmem:[%s28146_s3 + $0x490] sm:$0xf0] }
 0x496   : > { %8830 = vmatpush.bf16.msrb.mxu1 %v16262_v13  ;;  %v15061_v13 = vld [vmem:[%s28146_s3 + $0x670] sm:$0xf]  ;;  %v14390_v60 = vor.u32 %v19013_v7, %v14389_v52  ;;  %v14333_v52 = vld [vmem:[%s28146_s3 + $0xc0] sm:$0xf]  ;;  %v18999_v7 = vld [vmem:[%s28146_s3 + $0xd8] sm:$0xf0] }
 0x497   : > { %8844 = vmatpush.bf16.msrb.mxu2 %v16486_v42  ;;  %v19181_v42 = vld [vmem:[%s28146_s3 + $0x688] sm:$0xf0] }
 0x498   : > { %8858 = vmatpush.bf16.msrb.mxu3 %v16710_v54  ;;  %8817 = vmatmul.bf16.vlgmr.msrb.gmra.mxu0 %v21750_v27 }
 0x499   : > { %8865 = vmatpush.bf16.msra.mxu0 %v14446_v36  ;;  %v15090_v36 = vor.u32 %v19188_v48, %v15089_v59  ;;  %8831 = vmatmul.bf16.vlgmr.msrb.gmra.mxu1 %v21763_v31  ;;  %v15033_v59 = vld [vmem:[%s28146_s3 + $0x638] sm:$0xf]  ;;  %v19174_v48 = vld [vmem:[%s28146_s3 + $0x650] sm:$0xf0] }
 0x49a   : > { %8879 = vmatpush.bf16.msra.mxu1 %v14670_v41  ;;  %v14837_v41 = vld [vmem:[%s28146_s3 + $0x4b0] sm:$0xf]  ;;  %8845 = vmatmul.bf16.vlgmr.msrb.gmra.mxu2 %v21761_v30 }
 0x49b   : > { %8893 = vmatpush.bf16.msra.mxu2 %v14894_v61  ;;  %v19069_v61 = vld [vmem:[%s28146_s3 + $0x308] sm:$0xf0]  ;;  %8859 = vmatmul.bf16.vlgmr.msrb.gmra.mxu3 %v21771_v34  ;;  %v14838_v54 = vor.u32 %v19125_v9, %v14837_v41  ;;  %v14781_v41 = vld [vmem:[%s28146_s3 + $0x440] sm:$0xf]  ;;  %v19111_v9 = vld [vmem:[%s28146_s3 + $0x458] sm:$0xf0] }
 0x49c   : > { %8907 = vmatpush.bf16.msra.mxu3 %v15118_v33  ;;  %v14614_v20 = vor.u32 %v19069_v61, %v14613_v16  ;;  %v15062_v33 = vor.u32 %v19181_v42, %v15061_v13  ;;  %v14557_v16 = vld [vmem:[%s28146_s3 + $0x280] sm:$0xf]  ;;  %v19055_v61 = vld [vmem:[%s28146_s3 + $0x298] sm:$0xf0] }
 0x49d   : > { %8866 = vmatpush.bf16.msra.mxu0 %v14418_v43  ;;  %v14362_v43 = vor.u32 %v19006_v26, %v14361_v4  ;;  %v15005_v13 = vld [vmem:[%s28146_s3 + $0x600] sm:$0xf]  ;;  %v19167_v42 = vld [vmem:[%s28146_s3 + $0x618] sm:$0xf0]  ;;  %v14305_v4 = vld [vmem:[%s28146_s3 + $0x88] sm:$0xf] }
 0x49e   : > { %8880 = vmatpush.bf16.msra.mxu1 %v14642_v15  ;;  %v14586_v15 = vor.u32 %v19062_v12, %v14585_v8  ;;  %v18992_v26 = vld [vmem:[%s28146_s3 + $0xa0] sm:$0xf0]  ;;  %v14529_v8 = vld [vmem:[%s28146_s3 + $0x248] sm:$0xf] }
 0x49f   : > { %8894 = vmatpush.bf16.msra.mxu2 %v14866_v57  ;;  %v14810_v57 = vor.u32 %v19118_v58, %v14809_v55  ;;  %v19048_v12 = vld [vmem:[%s28146_s3 + $0x260] sm:$0xf0]  ;;  %v14753_v55 = vld [vmem:[%s28146_s3 + $0x408] sm:$0xf] }
 0x4a0   : > { %8908 = vmatpush.bf16.msra.mxu3 %v15090_v36  ;;  %v15034_v36 = vor.u32 %v19174_v48, %v15033_v59  ;;  %v19104_v58 = vld [vmem:[%s28146_s3 + $0x420] sm:$0xf0]  ;;  %v14977_v59 = vld [vmem:[%s28146_s3 + $0x5c8] sm:$0xf] }
 0x4a1   : > { %8867 = vmatpush.bf16.msra.mxu0 %v14390_v60  ;;  %v14334_v60 = vor.u32 %v18999_v7, %v14333_v52  ;;  %v19160_v48 = vld [vmem:[%s28146_s3 + $0x5e0] sm:$0xf0]  ;;  %v14277_v52 = vld [vmem:[%s28146_s3 + $0x50] sm:$0xf]  ;;  %v18985_v7 = vld [vmem:[%s28146_s3 + $0x68] sm:$0xf0] }
 0x4a2   : > { %8881 = vmatpush.bf16.msra.mxu1 %v14614_v20  ;;  %v14558_v20 = vor.u32 %v19055_v61, %v14557_v16  ;;  %v14501_v16 = vld [vmem:[%s28146_s3 + $0x210] sm:$0xf]  ;;  %v19041_v61 = vld [vmem:[%s28146_s3 + $0x228] sm:$0xf0] }
 0x4a3   : > { %8895 = vmatpush.bf16.msra.mxu2 %v14838_v54  ;;  %v14782_v54 = vor.u32 %v19111_v9, %v14781_v41  ;;  %v14725_v41 = vld [vmem:[%s28146_s3 + $0x3d0] sm:$0xf]  ;;  %v19097_v9 = vld [vmem:[%s28146_s3 + $0x3e8] sm:$0xf0] }
 0x4a4   : > { %8909 = vmatpush.bf16.msra.mxu3 %v15062_v33  ;;  %v15006_v33 = vor.u32 %v19167_v42, %v15005_v13  ;;  %v14949_v13 = vld [vmem:[%s28146_s3 + $0x590] sm:$0xf]  ;;  %v19153_v42 = vld [vmem:[%s28146_s3 + $0x5a8] sm:$0xf0] }
 0x4a5   : > { %8868 = vmatpush.bf16.msra.mxu0 %v14362_v43  ;;  %v14306_v43 = vor.u32 %v18992_v26, %v14305_v4  ;;  %v14502_v4 = vor.u32 %v19041_v61, %v14501_v16  ;;  %v14726_v26 = vor.u32 %v19097_v9, %v14725_v41  ;;  %v15789_v16 = vld [vmem:[%s28146_s3 + $0xc20] sm:$0xf] }
 0x4a6   : > { %8882 = vmatpush.bf16.msra.mxu1 %v14586_v15  ;;  %v14530_v15 = vor.u32 %v19048_v12, %v14529_v8  ;;  %v14473_v8 = vld [vmem:[%s28146_s3 + $0x1d8] sm:$0xf]  ;;  %v16013_v9 = vld [vmem:[%s28146_s3 + $0xde0] sm:$0xf] }
 0x4a7   : > { %8896 = vmatpush.bf16.msra.mxu2 %v14810_v57  ;;  %v14754_v57 = vor.u32 %v19104_v58, %v14753_v55  ;;  %v14697_v12 = vld [vmem:[%s28146_s3 + $0x398] sm:$0xf]  ;;  %v14950_v55 = vor.u32 %v19153_v42, %v14949_v13  ;;  %v19090_v58 = vld [vmem:[%s28146_s3 + $0x3b0] sm:$0xf0]  ;;  %v19419_v13 = vld [vmem:[%s28146_s3 + $0xdf8] sm:$0xf0] }
 0x4a8   : > { %8910 = vmatpush.bf16.msra.mxu3 %v15034_v36  ;;  %v14978_v36 = vor.u32 %v19160_v48, %v14977_v59  ;;  %v14921_v59 = vld [vmem:[%s28146_s3 + $0x558] sm:$0xf]  ;;  %v19146_v48 = vld [vmem:[%s28146_s3 + $0x570] sm:$0xf0]  ;;  %v14698_v41 = vor.u32 %v19090_v58, %v14697_v12  ;;  %v19300_v12 = vld [vmem:[%s28146_s3 + $0xa40] sm:$0xf0] }
 0x4a9   : > { %8869 = vmatpush.bf16.msra.mxu0 %v14334_v60  ;;  %v14278_v60 = vor.u32 %v18985_v7, %v14277_v52  ;;  %v19307_v7 = vld [vmem:[%s28146_s3 + $0xa78] sm:$0xf0]  ;;  %v14922_v42 = vor.u32 %v19146_v48, %v14921_v59  ;;  %v19356_v58 = vld [vmem:[%s28146_s3 + $0xc00] sm:$0xf0]  ;;  %v15985_v59 = vld [vmem:[%s28146_s3 + $0xda8] sm:$0xf] }
 0x4aa   : > { %8883 = vmatpush.bf16.msra.mxu1 %v14558_v20  ;;  %v14249_v20 = vld [vmem:[%s28146_s3 + $0x18] sm:$0xf]  ;;  %v19412_v48 = vld [vmem:[%s28146_s3 + $0xdc0] sm:$0xf0] }
 0x4ab   : > { %8897 = vmatpush.bf16.msra.mxu2 %v14782_v54  ;;  %v18978_v54 = vld [vmem:[%s28146_s3 + $0x30] sm:$0xf0] }
 0x4ac   : > { %8911 = vmatpush.bf16.msra.mxu3 %v15006_v33  ;;  %v19034_v33 = vld [vmem:[%s28146_s3 + $0x1f0] sm:$0xf0]  ;;  %v14250_v52 = vor.u32 %v18978_v54, %v14249_v20 }
 0x4ad   : > { %8870 = vmatpush.bf16.msra.mxu0 %v14306_v43  ;;  %v15341_v43 = vld [vmem:[%s28146_s3 + $0x8a0] sm:$0xf]  ;;  %v14474_v61 = vor.u32 %v19034_v33, %v14473_v8  ;;  %v15537_v8 = vld [vmem:[%s28146_s3 + $0xa28] sm:$0xf]  ;;  %v16014_v33 = vor.u32 %v19419_v13, %v16013_v9  ;;  %v19349_v9 = vld [vmem:[%s28146_s3 + $0xbc8] sm:$0xf0] }
 0x4ae   : > { %8884 = vmatpush.bf16.msra.mxu1 %v14530_v15  ;;  %v19251_v15 = vld [vmem:[%s28146_s3 + $0x8b8] sm:$0xf0]  ;;  %v15957_v13 = vld [vmem:[%s28146_s3 + $0xd70] sm:$0xf] }
 0x4af   : > { %8898 = vmatpush.bf16.msra.mxu2 %v14754_v57  ;;  %v15565_v57 = vld [vmem:[%s28146_s3 + $0xa60] sm:$0xf] }
 0x4b0   : > { %8912 = vmatpush.bf16.msra.mxu3 %v14978_v36  ;;  %v19363_v36 = vld [vmem:[%s28146_s3 + $0xc38] sm:$0xf0]  ;;  %v15566_v20 = vor.u32 %v19307_v7, %v15565_v57  ;;  %v19237_v7 = vld [vmem:[%s28146_s3 + $0x848] sm:$0xf0] }
 0x4b1   : > { %8871 = vmatpush.bf16.msra.mxu0 %v14278_v60  ;;  %v15342_v60 = vor.u32 %v19251_v15, %v15341_v43  ;;  %v15790_v54 = vor.u32 %v19363_v36, %v15789_v16  ;;  %v15538_v15 = vor.u32 %v19300_v12, %v15537_v8  ;;  %v15509_v16 = vld [vmem:[%s28146_s3 + $0x9f0] sm:$0xf]  ;;  %v15986_v36 = vor.u32 %v19412_v48, %v15985_v59  ;;  %v19342_v8 = vld [vmem:[%s28146_s3 + $0xb90] sm:$0xf0]  ;;  %v15229_v48 = vld [vmem:[%s28146_s3 + $0x7c0] sm:$0xf] }
 0x4b2   : > { %8885 = vmatpush.bf16.msra.mxu1 %v14502_v4  ;;  %v15313_v4 = vld [vmem:[%s28146_s3 + $0x868] sm:$0xf]  ;;  %v19398_v12 = vld [vmem:[%s28146_s3 + $0xd50] sm:$0xf0] }
 0x4b3   : > { %8899 = vmatpush.bf16.msra.mxu2 %v14726_v26  ;;  %v19244_v26 = vld [vmem:[%s28146_s3 + $0x880] sm:$0xf0] }
 0x4b4   : > { %8913 = vmatpush.bf16.msra.mxu3 %v14950_v55  ;;  %v15761_v55 = vld [vmem:[%s28146_s3 + $0xbe8] sm:$0xf]  ;;  %v15314_v43 = vor.u32 %v19244_v26, %v15313_v4  ;;  %v19230_v4 = vld [vmem:[%s28146_s3 + $0x810] sm:$0xf0]  ;;  %v15705_v26 = vld [vmem:[%s28146_s3 + $0xb78] sm:$0xf] }
 0x4b5   : > { %8872 = vmatpush.bf16.msra.mxu0 %v14250_v52  ;;  %v15762_v57 = vor.u32 %v19356_v58, %v15761_v55  ;;  %v15285_v52 = vld [vmem:[%s28146_s3 + $0x830] sm:$0xf]  ;;  %v15706_v59 = vor.u32 %v19342_v8, %v15705_v26  ;;  %v15873_v26 = vld [vmem:[%s28146_s3 + $0xcc8] sm:$0xf]  ;;  %v19384_v8 = vld [vmem:[%s28146_s3 + $0xce0] sm:$0xf0] }
 0x4b6   : > { %8886 = vmatpush.bf16.msra.mxu1 %v14474_v61  ;;  %v19293_v61 = vld [vmem:[%s28146_s3 + $0xa08] sm:$0xf0] }
 0x4b7   : > { %8900 = vmatpush.bf16.msra.mxu2 %v14698_v41  ;;  %v15733_v41 = vld [vmem:[%s28146_s3 + $0xbb0] sm:$0xf] }
 0x4b8   : > { %8914 = vmatpush.bf16.msra.mxu3 %v14922_v42  ;;  %8873 = vmatmul.bf16.vlgmr.msra.gmra.mxu0 %v21386_v23  ;;  %v19405_v42 = vld [vmem:[%s28146_s3 + $0xd88] sm:$0xf0]  ;;  %v15734_v23 = vor.u32 %v19349_v9, %v15733_v41  ;;  %v25142_v9 = vpop.f32.mrf.mxu0 }
 0x4b9   : > { %8921 = vmatpush.bf16.msrb.mxu0 %v15342_v60  ;;  %8887 = vmatmul.bf16.vlgmr.msra.gmra.mxu1 %v21406_v39  ;;  %v15286_v60 = vor.u32 %v19237_v7, %v15285_v52  ;;  %v15958_v39 = vor.u32 %v19405_v42, %v15957_v13  ;;  %v19279_v52 = vld [vmem:[%s28146_s3 + $0x998] sm:$0xf0]  ;;  %v15677_v7 = vld [vmem:[%s28146_s3 + $0xb40] sm:$0xf] }
 0x4ba   : > { %8935 = vmatpush.bf16.msrb.mxu1 %v15566_v20  ;;  %8901 = vmatmul.bf16.vlgmr.msra.gmra.mxu2 %v21388_v25  ;;  %v15510_v20 = vor.u32 %v19293_v61, %v15509_v16  ;;  %v15481_v25 = vld [vmem:[%s28146_s3 + $0x9b8] sm:$0xf]  ;;  %v19335_v16 = vld [vmem:[%s28146_s3 + $0xb58] sm:$0xf0] }
 0x4bb   : > { %8949 = vmatpush.bf16.msrb.mxu2 %v15790_v54  ;;  %8915 = vmatmul.bf16.vlgmr.msra.gmra.mxu3 %v21425_v24  ;;  %v15257_v54 = vld [vmem:[%s28146_s3 + $0x7f8] sm:$0xf]  ;;  %v19286_v24 = vld [vmem:[%s28146_s3 + $0x9d0] sm:$0xf0]  ;;  %v19391_v61 = vld [vmem:[%s28146_s3 + $0xd18] sm:$0xf0]  ;;  %v15678_v42 = vor.u32 %v19335_v16, %v15677_v7 }
 0x4bc   : > { %8963 = vmatpush.bf16.msrb.mxu3 %v16014_v33  ;;  %v15929_v33 = vld [vmem:[%s28146_s3 + $0xd38] sm:$0xf]  ;;  %v15258_v55 = vor.u32 %v19230_v4, %v15257_v54  ;;  %v15482_v58 = vor.u32 %v19286_v24, %v15481_v25  ;;  %v25153_v54 = vpop.f32.mrf.mxu1  ;;  %v19272_v25 = vld [vmem:[%s28146_s3 + $0x960] sm:$0xf0]  ;;  %v15845_v7 = vld [vmem:[%s28146_s3 + $0xc90] sm:$0xf] }
 0x4bd   : > { %8922 = vmatpush.bf16.msrb.mxu0 %v15314_v43  ;;  %v19223_v43 = vld [vmem:[%s28146_s3 + $0x7d8] sm:$0xf0]  ;;  %v19328_v24 = vld [vmem:[%s28146_s3 + $0xb20] sm:$0xf0]  ;;  %v19377_v16 = vld [vmem:[%s28146_s3 + $0xca8] sm:$0xf0] }
 0x4be   : > { %8936 = vmatpush.bf16.msrb.mxu1 %v15538_v15  ;;  %v15453_v15 = vld [vmem:[%s28146_s3 + $0x980] sm:$0xf]  ;;  %v15230_v41 = vor.u32 %v19223_v43, %v15229_v48  ;;  %v15397_v48 = vld [vmem:[%s28146_s3 + $0x910] sm:$0xf]  ;;  %v15874_v43 = vor.u32 %v19384_v8, %v15873_v26  ;;  %v15817_v26 = vld [vmem:[%s28146_s3 + $0xc58] sm:$0xf] }
 0x4bf   : > { %8950 = vmatpush.bf16.msrb.mxu2 %v15762_v57  ;;  %v15930_v57 = vor.u32 %v19398_v12, %v15929_v33  ;;  %v15454_v13 = vor.u32 %v19279_v52, %v15453_v15  ;;  %v19265_v15 = vld [vmem:[%s28146_s3 + $0x928] sm:$0xf0]  ;;  %v19370_v8 = vld [vmem:[%s28146_s3 + $0xc70] sm:$0xf0] }
 0x4c0   : > { %8964 = vmatpush.bf16.msrb.mxu3 %v15986_v36  ;;  %v15901_v36 = vld [vmem:[%s28146_s3 + $0xd00] sm:$0xf]  ;;  %v19321_v52 = vld [vmem:[%s28146_s3 + $0xae8] sm:$0xf0] }
 0x4c1   : > { %8923 = vmatpush.bf16.msrb.mxu0 %v15286_v60  ;;  %v15201_v60 = vld [vmem:[%s28146_s3 + $0x788] sm:$0xf]  ;;  %v15902_v4 = vor.u32 %v19391_v61, %v15901_v36  ;;  %v25194_v36 = vpop.f32.mrf.mxu2 }
 0x4c2   : > { %8937 = vmatpush.bf16.msrb.mxu1 %v15510_v20  ;;  %v19216_v20 = vld [vmem:[%s28146_s3 + $0x7a0] sm:$0xf0] }
 0x4c3   : > { %8951 = vmatpush.bf16.msrb.mxu2 %v15734_v23  ;;  %v15425_v23 = vld [vmem:[%s28146_s3 + $0x948] sm:$0xf]  ;;  %v15202_v33 = vor.u32 %v19216_v20, %v15201_v60  ;;  %v15398_v60 = vor.u32 %v19265_v15, %v15397_v48  ;;  %v16685_v15 = vld [vmem:[%s28146_s3 + $0x1320] sm:$0xf] }
 0x4c4   : > { %8965 = vmatpush.bf16.msrb.mxu3 %v15958_v39  ;;  %v15649_v39 = vld [vmem:[%s28146_s3 + $0xb08] sm:$0xf]  ;;  %v15426_v12 = vor.u32 %v19272_v25, %v15425_v23  ;;  %v15369_v23 = vld [vmem:[%s28146_s3 + $0x8d8] sm:$0xf] }
 0x4c5   : > { %8924 = vmatpush.bf16.msrb.mxu0 %v15258_v55  ;;  %v15650_v55 = vor.u32 %v19328_v24, %v15649_v39  ;;  %v15593_v25 = vld [vmem:[%s28146_s3 + $0xa98] sm:$0xf]  ;;  %v15846_v39 = vor.u32 %v19377_v16, %v15845_v7  ;;  %v19314_v24 = vld [vmem:[%s28146_s3 + $0xab0] sm:$0xf0]  ;;  %v16909_v16 = vld [vmem:[%s28146_s3 + $0x14e0] sm:$0xf] }
 0x4c6   : > { %8938 = vmatpush.bf16.msrb.mxu1 %v15482_v58  ;;  %v15173_v58 = vld [vmem:[%s28146_s3 + $0x750] sm:$0xf]  ;;  %v15594_v7 = vor.u32 %v19314_v24, %v15593_v25  ;;  %v19524_v25 = vld [vmem:[%s28146_s3 + $0x1140] sm:$0xf0] }
 0x4c7   : > { %8952 = vmatpush.bf16.msrb.mxu2 %v15706_v59  ;;  %v19209_v59 = vld [vmem:[%s28146_s3 + $0x768] sm:$0xf0]  ;;  %v19580_v24 = vld [vmem:[%s28146_s3 + $0x1300] sm:$0xf0] }
 0x4c8   : > { %8966 = vmatpush.bf16.msrb.mxu3 %v15930_v57  ;;  %v15621_v57 = vld [vmem:[%s28146_s3 + $0xad0] sm:$0xf]  ;;  %v15174_v61 = vor.u32 %v19209_v59, %v15173_v58  ;;  %v16461_v58 = vld [vmem:[%s28146_s3 + $0x1160] sm:$0xf]  ;;  %v25233_v59 = vpop.f32.mrf.mxu1 }
 0x4c9   : > { %8925 = vmatpush.bf16.msrb.mxu0 %v15230_v41  ;;  %v15145_v41 = vld [vmem:[%s28146_s3 + $0x718] sm:$0xf]  ;;  %v15622_v20 = vor.u32 %v19321_v52, %v15621_v57  ;;  %28191 = vst [vmem:[#allocation33_spill] sm:$0xff] %v25233_v59  ;;  %v19587_v57 = vld [vmem:[%s28146_s3 + $0x1338] sm:$0xf0] }
 0x4ca   : > { %8939 = vmatpush.bf16.msrb.mxu1 %v15454_v13  ;;  %v19202_v13 = vld [vmem:[%s28146_s3 + $0x730] sm:$0xf0] }
 0x4cb   : > { %8953 = vmatpush.bf16.msrb.mxu2 %v15678_v42  ;;  %v25202_v42 = vpop.f32.mrf.mxu3  ;;  %v15146_v48 = vor.u32 %v19202_v13, %v15145_v41  ;;  %v15818_v41 = vor.u32 %v19370_v8, %v15817_v26  ;;  %v16881_v26 = vld [vmem:[%s28146_s3 + $0x14a8] sm:$0xf]  ;;  %v19636_v8 = vld [vmem:[%s28146_s3 + $0x14c0] sm:$0xf0] }
 0x4cc   : > { %8967 = vmatpush.bf16.msrb.mxu3 %v15902_v4  ;;  %v19258_v4 = vld [vmem:[%s28146_s3 + $0x8f0] sm:$0xf0] }
 0x4cd   : > { %8926 = vmatpush.bf16.msrb.mxu0 %v15202_v33  ;;  %v25222_v33 = vpop.f32.mrf.mxu0  ;;  %v15370_v52 = vor.u32 %v19258_v4, %v15369_v23  ;;  %v16433_v23 = vld [vmem:[%s28146_s3 + $0x1128] sm:$0xf] }
 0x4ce   : > { %8940 = vmatpush.bf16.msrb.mxu1 %v15426_v12  ;;  %28190 = vst [vmem:[#allocation32_spill] sm:$0xff] %v25222_v33  ;;  %v16237_v12 = vld [vmem:[%s28146_s3 + $0xfa0] sm:$0xf]  ;;  %v16686_v33 = vor.u32 %v19587_v57, %v16685_v15  ;;  %v16434_v15 = vor.u32 %v19524_v25, %v16433_v23  ;;  %v19454_v25 = vld [vmem:[%s28146_s3 + $0xf10] sm:$0xf0] }
 0x4cf   : > { %8954 = vmatpush.bf16.msrb.mxu2 %v15650_v55  ;;  %v19475_v55 = vld [vmem:[%s28146_s3 + $0xfb8] sm:$0xf0] }
 0x4d0   : > { %8968 = vmatpush.bf16.msrb.mxu3 %v15874_v43  ;;  %v19531_v43 = vld [vmem:[%s28146_s3 + $0x1178] sm:$0xf0]  ;;  %v16238_v13 = vor.u32 %v19475_v55, %v16237_v12  ;;  %v25274_v12 = vpop.f32.mrf.mxu2 }
 0x4d1   : > { %8927 = vmatpush.bf16.msrb.mxu0 %v15174_v61  ;;  %v19643_v61 = vld [vmem:[%s28146_s3 + $0x14f8] sm:$0xf0]  ;;  %v16462_v59 = vor.u32 %v19531_v43, %v16461_v58  ;;  %v28192_v58 = vperm.slane %v22229_v50, 0 }
 0x4d2   : > { %8941 = vmatpush.bf16.msrb.mxu1 %v15398_v60  ;;  %v16209_v60 = vld [vmem:[%s28146_s3 + $0xf68] sm:$0xf]  ;;  %v16910_v4 = vor.u32 %v19643_v61, %v16909_v16  ;;  %v16405_v16 = vld [vmem:[%s28146_s3 + $0x10f0] sm:$0xf]  ;;  %v19573_v61 = vld [vmem:[%s28146_s3 + $0x12c8] sm:$0xf0] }
 0x4d3   : > { %8955 = vmatpush.bf16.msrb.mxu2 %v15622_v20  ;;  %v19468_v20 = vld [vmem:[%s28146_s3 + $0xf80] sm:$0xf0]  ;;  %v25279_v43 = vpop.f32.mrf.mxu3 }
 0x4d4   : > { %8969 = vmatpush.bf16.msrb.mxu3 %v15846_v39  ;;  %v16657_v39 = vld [vmem:[%s28146_s3 + $0x12e8] sm:$0xf]  ;;  %v16210_v55 = vor.u32 %v19468_v20, %v16209_v60  ;;  %v25310_v60 = vpop.f32.mrf.mxu1 }
 0x4d5   : > { %8928 = vmatpush.bf16.msrb.mxu0 %v15146_v48  ;;  %v7869_v48 = vadd.f32 %v22345_v2, %v28192_v58  ;;  %v16658_v57 = vor.u32 %v19580_v24, %v16657_v39  ;;  %v16882_v2 = vor.u32 %v19636_v8, %v16881_v26  ;;  %v16601_v24 = vld [vmem:[%s28146_s3 + $0x1278] sm:$0xf]  ;;  %v19566_v26 = vld [vmem:[%s28146_s3 + $0x1290] sm:$0xf0]  ;;  %v28193_v8 = vperm.slane %v22229_v50, 1 }
 0x4d6   : > { %8942 = vmatpush.bf16.msrb.mxu1 %v15370_v52  ;;  %v16181_v52 = vld [vmem:[%s28146_s3 + $0xf30] sm:$0xf]  ;;  %v16825_v58 = vld [vmem:[%s28146_s3 + $0x1438] sm:$0xf]  ;;  %v16125_v50 = vld [vmem:[%s28146_s3 + $0xec0] sm:$0xf] }
 0x4d7   : > { %8956 = vmatpush.bf16.msrb.mxu2 %v15594_v7  ;;  %v19461_v7 = vld [vmem:[%s28146_s3 + $0xf48] sm:$0xf0]  ;;  %v7883_v23 = vadd.f32 %v22371_v18, %v7869_v48  ;;  %v19510_v18 = vld [vmem:[%s28146_s3 + $0x10d0] sm:$0xf0] }
 0x4d8   : > { %8970 = vmatpush.bf16.msrb.mxu3 %v15818_v41  ;;  %8929 = vmatmul.bf16.vlgmr.msrb.gmra.mxu0 %v21540_v6  ;;  %v25300_v41 = vpop.f32.mrf.mxu0  ;;  %v16853_v6 = vld [vmem:[%s28146_s3 + $0x1470] sm:$0xf]  ;;  %v16182_v20 = vor.u32 %v19461_v7, %v16181_v52  ;;  %v19622_v48 = vld [vmem:[%s28146_s3 + $0x1450] sm:$0xf0]  ;;  %v16602_v7 = vor.u32 %v19566_v26, %v16601_v24  ;;  %v16097_v24 = vld [vmem:[%s28146_s3 + $0xe88] sm:$0xf] }
 0x4d9   : > { %8977 = vmatpush.bf16.msra.mxu0 %v16238_v13  ;;  %8943 = vmatmul.bf16.vlgmr.msrb.gmra.mxu1 %v21553_v11  ;;  %v19629_v13 = vld [vmem:[%s28146_s3 + $0x1488] sm:$0xf0]  ;;  %v19440_v26 = vld [vmem:[%s28146_s3 + $0xea0] sm:$0xf0] }
 0x4da   : > { %8991 = vmatpush.bf16.msra.mxu1 %v16462_v59  ;;  %v16629_v59 = vld [vmem:[%s28146_s3 + $0x12b0] sm:$0xf]  ;;  %8957 = vmatmul.bf16.vlgmr.msrb.gmra.mxu2 %v21551_v10  ;;  %v16854_v39 = vor.u32 %v19629_v13, %v16853_v6 }
 0x4db   : > { %9005 = vmatpush.bf16.msra.mxu2 %v16686_v33  ;;  %v19517_v33 = vld [vmem:[%s28146_s3 + $0x1108] sm:$0xf0]  ;;  %8971 = vmatmul.bf16.vlgmr.msrb.gmra.mxu3 %v21561_v14  ;;  %v16630_v11 = vor.u32 %v19573_v61, %v16629_v59  ;;  %v16377_v14 = vld [vmem:[%s28146_s3 + $0x10b8] sm:$0xf]  ;;  %v16573_v59 = vld [vmem:[%s28146_s3 + $0x1240] sm:$0xf]  ;;  %v25363_v13 = vpop.f32.mrf.mxu3 }
 0x4dc   : > { %9019 = vmatpush.bf16.msra.mxu3 %v16910_v4  ;;  %v16406_v10 = vor.u32 %v19517_v33, %v16405_v16  ;;  %v16153_v4 = vld [vmem:[%s28146_s3 + $0xef8] sm:$0xf]  ;;  %v16378_v52 = vor.u32 %v19510_v18, %v16377_v14  ;;  %v16349_v16 = vld [vmem:[%s28146_s3 + $0x1080] sm:$0xf]  ;;  %v19503_v33 = vld [vmem:[%s28146_s3 + $0x1098] sm:$0xf0] }
 0x4dd   : > { %8978 = vmatpush.bf16.msra.mxu0 %v16210_v55  ;;  %v8037_v55 = vadd.f32 %v22967_v49, %v28193_v8  ;;  %v19447_v49 = vld [vmem:[%s28146_s3 + $0xed8] sm:$0xf0]  ;;  %v28195_v8 = vperm.slane %v23440_v47, 3 }
 0x4de   : > { %8992 = vmatpush.bf16.msra.mxu1 %v16434_v15  ;;  %v16154_v15 = vor.u32 %v19454_v25, %v16153_v4  ;;  %v19559_v61 = vld [vmem:[%s28146_s3 + $0x1258] sm:$0xf0]  ;;  %v25376_v25 = vpop.f32.mrf.mxu1 }
 0x4df   : > { %9006 = vmatpush.bf16.msra.mxu2 %v16658_v57  ;;  %v7897_v57 = vadd.f32 %v22401_v40, %v7883_v23  ;;  %v16826_v40 = vor.u32 %v19622_v48, %v16825_v58  ;;  %v8051_v6 = vadd.f32 %v22993_v3, %v8037_v55  ;;  %v16797_v23 = vld [vmem:[%s28146_s3 + $0x1400] sm:$0xf]  ;;  %v16126_v3 = vor.u32 %v19447_v49, %v16125_v50  ;;  %v19496_v58 = vld [vmem:[%s28146_s3 + $0x1060] sm:$0xf0]  ;;  %v16545_v48 = vld [vmem:[%s28146_s3 + $0x1208] sm:$0xf] }
 0x4e0   : > { %9020 = vmatpush.bf16.msra.mxu3 %v16882_v2  ;;  %v25351_v2 = vpop.f32.mrf.mxu2  ;;  %v16574_v18 = vor.u32 %v19559_v61, %v16573_v59  ;;  %v19489_v61 = vld [vmem:[%s28146_s3 + $0x1028] sm:$0xf0] }
 0x4e1   : > { %8979 = vmatpush.bf16.msra.mxu0 %v16182_v20  ;;  %v25365_v20 = vpop.f32.mrf.mxu0  ;;  %v7911_v14 = vadd.f32 %v22412_v45, %v7897_v57  ;;  %v8373_v45 = vadd.f32 %v24218_v29, %v28195_v8  ;;  %v8065_v57 = vadd.f32 %v23023_v28, %v8051_v6  ;;  %v19608_v29 = vld [vmem:[%s28146_s3 + $0x13e0] sm:$0xf0]  ;;  %v16069_v28 = vld [vmem:[%s28146_s3 + $0xe50] sm:$0xf]  ;;  %v19482_v8 = vld [vmem:[%s28146_s3 + $0xff0] sm:$0xf0] }
 0x4e2   : > { %8993 = vmatpush.bf16.msra.mxu1 %v16406_v10  ;;  %v19615_v10 = vld [vmem:[%s28146_s3 + $0x1418] sm:$0xf0]  ;;  %v16517_v6 = vld [vmem:[%s28146_s3 + $0x11d0] sm:$0xf] }
 0x4e3   : > { %9007 = vmatpush.bf16.msra.mxu2 %v16630_v11  ;;  %v28194_v11 = vperm.slane %v23440_v47, 2  ;;  %v16798_v55 = vor.u32 %v19615_v10, %v16797_v23  ;;  %v16769_v47 = vld [vmem:[%s28146_s3 + $0x13c8] sm:$0xf]  ;;  %v7925_v50 = vadd.f32 %v22569_v37, %v7911_v14  ;;  %v19545_v23 = vld [vmem:[%s28146_s3 + $0x11e8] sm:$0xf0]  ;;  %v8079_v10 = vadd.f32 %v23034_v44, %v8065_v57 }
 0x4e4   : > { %9021 = vmatpush.bf16.msra.mxu3 %v16854_v39  ;;  %v16350_v39 = vor.u32 %v19503_v33, %v16349_v16  ;;  %v8387_v33 = vadd.f32 %v24244_v46, %v8373_v45  ;;  %v16770_v37 = vor.u32 %v19608_v29, %v16769_v47  ;;  %v16741_v46 = vld [vmem:[%s28146_s3 + $0x1390] sm:$0xf]  ;;  %v19426_v44 = vld [vmem:[%s28146_s3 + $0xe30] sm:$0xf0]  ;;  %v16489_v45 = vld [vmem:[%s28146_s3 + $0x1198] sm:$0xf] }
 0x4e5   : > { %v8205_v4 = vadd.f32 %v23595_v21, %v28194_v11  ;;  %8980 = vmatpush.bf16.msra.mxu0 %v16154_v15  ;;  %v16321_v21 = vld [vmem:[%s28146_s3 + $0x1048] sm:$0xf]  ;;  %v19552_v15 = vld [vmem:[%s28146_s3 + $0x1220] sm:$0xf0]  ;;  %v25431_v11 = vpop.f32.mrf.mxu3  ;;  %v19594_v57 = vld [vmem:[%s28146_s3 + $0x1370] sm:$0xf0] }
 0x4e6   : > { %8994 = vmatpush.bf16.msra.mxu1 %v16378_v52  ;;  %v16322_v49 = vor.u32 %v19496_v58, %v16321_v21  ;;  %v16546_v16 = vor.u32 %v19552_v15, %v16545_v48  ;;  %v16518_v21 = vor.u32 %v19545_v23, %v16517_v6  ;;  %v19538_v48 = vld [vmem:[%s28146_s3 + $0x11b0] sm:$0xf0]  ;;  %v16713_v15 = vld [vmem:[%s28146_s3 + $0x1358] sm:$0xf]  ;;  %v17109_v29 = vld [vmem:[%s28148_s5 + $0x188] sm:$0xf] }
 0x4e7   : > { %9008 = vmatpush.bf16.msra.mxu2 %v16602_v7  ;;  %v8219_v52 = vadd.f32 %v23621_v56, %v8205_v4  ;;  %v16098_v7 = vor.u32 %v19440_v26, %v16097_v24  ;;  %v16293_v56 = vld [vmem:[%s28146_s3 + $0x1010] sm:$0xf]  ;;  %v19601_v4 = vld [vmem:[%s28146_s3 + $0x13a8] sm:$0xf0] }
 0x4e8   : > { %9022 = vmatpush.bf16.msra.mxu3 %v16826_v40  ;;  %v19433_v40 = vld [vmem:[%s28146_s3 + $0xe68] sm:$0xf0]  ;;  %v25419_v59 = vpop.f32.mrf.mxu2  ;;  %v16294_v26 = vor.u32 %v19489_v61, %v16293_v56  ;;  %v16742_v58 = vor.u32 %v19601_v4, %v16741_v46  ;;  %v19864_v56 = vld [vmem:[%s28148_s5 + $0x6e0] sm:$0xf0]  ;;  %v17081_v4 = vld [vmem:[%s28148_s5 + $0x150] sm:$0xf] }
 0x4e9   : > { %8981 = vmatpush.bf16.msra.mxu0 %v16126_v3  ;;  %v8233_v3 = vadd.f32 %v23651_v32, %v8219_v52  ;;  %v16070_v14 = vor.u32 %v19433_v40, %v16069_v28  ;;  %v25447_v24 = vpop.f32.mrf.mxu0  ;;  %v16265_v32 = vld [vmem:[%s28146_s3 + $0xfd8] sm:$0xf]  ;;  %v19696_v52 = vld [vmem:[%s28148_s5 + $0x1a0] sm:$0xf0]  ;;  %v16490_v40 = vor.u32 %v19538_v48, %v16489_v45  ;;  %v19857_v45 = vld [vmem:[%s28148_s5 + $0x6a8] sm:$0xf0] }
 0x4ea   : > { %8995 = vmatpush.bf16.msra.mxu1 %v16350_v39  ;;  %v16041_v39 = vld [vmem:[%s28146_s3 + $0xe18] sm:$0xf]  ;;  %v16266_v28 = vor.u32 %v19482_v8, %v16265_v32  ;;  %v17110_v61 = vor.u32 %v19696_v52, %v17109_v29  ;;  %v17753_v8 = vld [vmem:[%s28148_s5 + $0x690] sm:$0xf]  ;;  %v19738_v52 = vld [vmem:[%s28148_s5 + $0x2f0] sm:$0xf0] }
 0x4eb   : > { %9009 = vmatpush.bf16.msra.mxu2 %v16574_v18  ;;  %v7939_v18 = vadd.f32 %v22577_v35, %v7925_v50  ;;  %v8401_v35 = vadd.f32 %v24274_v17, %v8387_v33  ;;  %v8093_v17 = vadd.f32 %v23192_v19, %v8079_v10  ;;  %v8247_v50 = vadd.f32 %v23662_v51, %v8233_v3  ;;  %v17557_v19 = vld [vmem:[%s28148_s5 + $0x508] sm:$0xf]  ;;  %v19689_v3 = vld [vmem:[%s28148_s5 + $0x168] sm:$0xf0] }
 0x4ec   : > { %9023 = vmatpush.bf16.msra.mxu3 %v16798_v55  ;;  %v25459_v55 = vpop.f32.mrf.mxu1  ;;  %v17781_v51 = vld [vmem:[%s28148_s5 + $0x6c8] sm:$0xf]  ;;  %v17754_v29 = vor.u32 %v19857_v45, %v17753_v8  ;;  %v19843_v8 = vld [vmem:[%s28148_s5 + $0x638] sm:$0xf0]  ;;  %v28204_v45 = vld [vmem:[#allocation16_spill] sm:$0xff] }
 0x4ed   : > { %8982 = vmatpush.bf16.msra.mxu0 %v16098_v7  ;;  %v7953_v47 = vadd.f32 %v22616_v63, %v7939_v18  ;;  %v17333_v7 = vld [vmem:[%s28148_s5 + $0x348] sm:$0xf]  ;;  %v19752_v63 = vld [vmem:[%s28148_s5 + $0x360] sm:$0xf0]  ;;  %v8415_v33 = vadd.f32 %v24285_v53, %v8401_v35  ;;  %v8107_v23 = vadd.f32 %v23200_v22, %v8093_v17  ;;  %v17305_v53 = vld [vmem:[%s28148_s5 + $0x310] sm:$0xf] }
 0x4ee   : > { %8996 = vmatpush.bf16.msra.mxu1 %v16322_v49  ;;  %v16042_v49 = vor.u32 %v19426_v44, %v16041_v39  ;;  %v17334_v10 = vor.u32 %v19752_v63, %v17333_v7  ;;  %v19745_v22 = vld [vmem:[%s28148_s5 + $0x328] sm:$0xf0]  ;;  %v17529_v44 = vld [vmem:[%s28148_s5 + $0x4d0] sm:$0xf]  ;;  %v17501_v7 = vld [vmem:[%s28148_s5 + $0x498] sm:$0xf] }
 0x4ef   : > { %9010 = vmatpush.bf16.msra.mxu2 %v16546_v16  ;;  %v19808_v16 = vld [vmem:[%s28148_s5 + $0x520] sm:$0xf0]  ;;  %v7967_v6 = vadd.f32 %v22627_v5, %v7953_v47  ;;  %v17782_v5 = vor.u32 %v19864_v56, %v17781_v51  ;;  %v19801_v18 = vld [vmem:[%s28148_s5 + $0x4e8] sm:$0xf0]  ;;  %v8429_v35 = vadd.f32 %v24443_v62, %v8415_v33  ;;  %v17277_v62 = vld [vmem:[%s28148_s5 + $0x2d8] sm:$0xf] }
 0x4f0   : > { %9024 = vmatpush.bf16.msra.mxu3 %v16770_v37  ;;  %v16714_v37 = vor.u32 %v19594_v57, %v16713_v15  ;;  %v17558_v46 = vor.u32 %v19808_v16, %v17557_v19  ;;  %v25510_v39 = vpop.f32.mrf.mxu2  ;;  %v17530_v48 = vor.u32 %v19801_v18, %v17529_v44  ;;  %v17053_v15 = vld [vmem:[%s28148_s5 + $0x118] sm:$0xf]  ;;  %v19682_v57 = vld [vmem:[%s28148_s5 + $0x130] sm:$0xf0]  ;;  %v28198_v19 = vld [vmem:[#allocation8_spill] sm:$0xff] }
 0x4f1   : > { %8983 = vmatpush.bf16.msra.mxu0 %v16070_v14  ;;  %v8261_v14 = vadd.f32 %v23820_v38, %v8247_v50  ;;  %v8121_v38 = vadd.f32 %v23239_v0, %v8107_v23  ;;  %v25525_v32 = vpop.f32.mrf.mxu0  ;;  %v17306_v0 = vor.u32 %v19745_v22, %v17305_v53  ;;  %v28196_v47 = vld [vmem:[#allocation14_spill] sm:$0xff]  ;;  %v17025_v23 = vld [vmem:[%s28148_s5 + $0xe0] sm:$0xf]  ;;  %v19787_v22 = vld [vmem:[%s28148_s5 + $0x478] sm:$0xf0] }
 0x4f2   : > { %8997 = vmatpush.bf16.msra.mxu1 %v16294_v26  ;;  %v7981_v26 = vadd.f32 %v22776_v1, %v7967_v6  ;;  %v17082_v1 = vor.u32 %v19689_v3, %v17081_v4  ;;  %v19794_v50 = vld [vmem:[%s28148_s5 + $0x4b0] sm:$0xf0] }
 0x4f3   : > { %9011 = vmatpush.bf16.msra.mxu2 %v16518_v21  ;;  %v25523_v21 = vpop.f32.mrf.mxu3  ;;  %v8275_v17 = vadd.f32 %v28196_v47, %v8261_v14  ;;  %v8135_v16 = vadd.f32 %v28198_v19, %v8121_v38  ;;  %v28200_v56 = vld [vmem:[#allocation22_spill] sm:$0xff]  ;;  %v17502_v6 = vor.u32 %v19794_v50, %v17501_v7  ;;  %v19731_v14 = vld [vmem:[%s28148_s5 + $0x2b8] sm:$0xf0]  ;;  %v17697_v38 = vld [vmem:[%s28148_s5 + $0x620] sm:$0xf] }
 0x4f4   : > { %9025 = vmatpush.bf16.msra.mxu3 %v16742_v58  ;;  %v25534_v58 = vpop.f32.mrf.mxu1  ;;  %v8443_v33 = vadd.f32 %v28200_v56, %v8429_v35  ;;  %v28203_v44 = vld [vmem:[#allocation6_spill] sm:$0xff]  ;;  %v17221_v7 = vld [vmem:[%s28148_s5 + $0x268] sm:$0xf]  ;;  %v28208_v56 = vld [vmem:[#allocation7_spill] sm:$0xff] }
 0x4f5   : > { %8984 = vmatpush.bf16.msra.mxu0 %v16042_v49  ;;  %v28197_v49 = vld [vmem:[#allocation5_spill] sm:$0xff]  ;;  %v28206_v50 = vld [vmem:[#allocation18_spill] sm:$0xff] }
 0x4f6   : > { %8998 = vmatpush.bf16.msra.mxu1 %v16266_v28  ;;  %v7995_v63 = vadd.f32 %v28197_v49, %v7981_v26  ;;  %v19850_v28 = vld [vmem:[%s28148_s5 + $0x670] sm:$0xf0] }
 0x4f7   : > { %9012 = vmatpush.bf16.msra.mxu2 %v16490_v40  ;;  %v28199_v40 = vld [vmem:[#allocation15_spill] sm:$0xff] }
 0x4f8   : > { %9026 = vmatpush.bf16.msra.mxu3 %v16714_v37  ;;  %8985 = vmatmul.bf16.vlgmr.msra.gmra.mxu0 %v21750_v27  ;;  %v17725_v27 = vld [vmem:[%s28148_s5 + $0x658] sm:$0xf]  ;;  %v8289_v51 = vadd.f32 %v28199_v40, %v8275_v17  ;;  %v17054_v37 = vor.u32 %v19682_v57, %v17053_v15  ;;  %v25580_v3 = vpop.f32.mrf.mxu2  ;;  %v8009_v18 = vadd.f32 %v28203_v44, %v7995_v63  ;;  %v28207_v63 = vld [vmem:[#allocation24_spill] sm:$0xff]  ;;  %v17445_v40 = vld [vmem:[%s28148_s5 + $0x428] sm:$0xf] }
 0x4f9   : > { %11362 = vmatpush.bf16.msrb.mxu0 %v17110_v61  ;;  %8999 = vmatmul.bf16.vlgmr.msra.gmra.mxu1 %v21763_v31  ;;  %v28201_v61 = vld [vmem:[#allocation10_spill] sm:$0xff]  ;;  %v17726_v53 = vor.u32 %v19850_v28, %v17725_v27  ;;  %v28205_v15 = vld [vmem:[#allocation11_spill] sm:$0xff]  ;;  %v17698_v27 = vor.u32 %v19843_v8, %v17697_v38  ;;  %v19724_v28 = vld [vmem:[%s28148_s5 + $0x280] sm:$0xf0] }
 0x4fa   : > { %11376 = vmatpush.bf16.msrb.mxu1 %v17334_v10  ;;  %9013 = vmatmul.bf16.vlgmr.msra.gmra.mxu2 %v21761_v30  ;;  %v8149_v31 = vadd.f32 %v28201_v61, %v8135_v16  ;;  %v17278_v30 = vor.u32 %v19738_v52, %v17277_v62  ;;  %v19675_v10 = vld [vmem:[%s28148_s5 + $0xf8] sm:$0xf0]  ;;  %v8303_v35 = vadd.f32 %v28204_v45, %v8289_v51  ;;  %v25608_v62 = vpop.f32.mrf.mxu0  ;;  %v19668_v52 = vld [vmem:[%s28148_s5 + $0xc0] sm:$0xf0]  ;;  %v19661_v44 = vld [vmem:[%s28148_s5 + $0x88] sm:$0xf0] }
 0x4fb   : > { %11390 = vmatpush.bf16.msrb.mxu2 %v17558_v46  ;;  %9027 = vmatmul.bf16.vlgmr.msra.gmra.mxu3 %v21771_v34  ;;  %v17249_v34 = vld [vmem:[%s28148_s5 + $0x2a0] sm:$0xf]  ;;  %v28202_v46 = vld [vmem:[#allocation23_spill] sm:$0xff]  ;;  %v25592_v26 = vpop.f32.mrf.mxu3  ;;  %v19780_v51 = vld [vmem:[%s28148_s5 + $0x440] sm:$0xf0] }
 0x4fc   : > { %11404 = vmatpush.bf16.msrb.mxu3 %v17782_v5  ;;  %v8457_v4 = vadd.f32 %v28202_v46, %v8443_v33  ;;  %v17473_v5 = vld [vmem:[%s28148_s5 + $0x460] sm:$0xf]  ;;  %v8163_v57 = vadd.f32 %v28205_v15, %v8149_v31  ;;  %v17250_v47 = vor.u32 %v19731_v14, %v17249_v34  ;;  %v8317_v49 = vadd.f32 %v28206_v50, %v8303_v35  ;;  %v25621_v16 = vpop.f32.mrf.mxu1  ;;  %v17669_v31 = vld [vmem:[%s28148_s5 + $0x5e8] sm:$0xf]  ;;  %v19717_v8 = vld [vmem:[%s28148_s5 + $0x248] sm:$0xf0] }
 0x4fd   : > { %11363 = vmatpush.bf16.msrb.mxu0 %v17082_v1  ;;  %v25604_v1 = vld [vmem:[%s28147_s4] sm:$0x7f]  ;;  %v17474_v17 = vor.u32 %v19787_v22, %v17473_v5  ;;  %v25633_v33 = vadd.f32 %v28208_v56, %v8009_v18  ;;  %v17222_v14 = vor.u32 %v19724_v28, %v17221_v7  ;;  %v17446_v5 = vor.u32 %v19780_v51, %v17445_v40  ;;  %v16969_v22 = vld [vmem:[%s28148_s5 + $0x70] sm:$0xf]  ;;  %v28213_v18 = vld [vmem:[#allocation19_spill] sm:$0xff] }
 0x4fe   : > { %11377 = vmatpush.bf16.msrb.mxu1 %v17306_v0  ;;  %v4392_v0 = vperm.slane %v25604_v1, 5  ;;  %v8471_v19 = vadd.f32 %v28207_v63, %v8457_v4  ;;  %v8331_v38 = vadd.f32 %v28213_v18, %v8317_v49  ;;  %v17417_v45 = vld [vmem:[%s28148_s5 + $0x3f0] sm:$0xf]  ;;  %v19773_v35 = vld [vmem:[%s28148_s5 + $0x408] sm:$0xf0]  ;;  %v28216_v7 = vld [vmem:[#allocation20_spill] sm:$0xff]  ;;  %v16970_v28 = vor.u32 %v19661_v44, %v16969_v22 }
 0x4ff   : > { %11391 = vmatpush.bf16.msrb.mxu2 %v17530_v48  ;;  %v17026_v48 = vor.u32 %v19675_v10, %v17025_v23  ;;  %v28211_v10 = vld [vmem:[#allocation28_spill] sm:$0xff]  ;;  %v28217_v49 = vld [vmem:[#allocation27_spill] sm:$0xff]  ;;  %v19822_v44 = vld [vmem:[%s28148_s5 + $0x590] sm:$0xf0] }
 0x500   : > { %11405 = vmatpush.bf16.msrb.mxu3 %v17754_v29  ;;  %v16997_v29 = vld [vmem:[%s28148_s5 + $0xa8] sm:$0xf]  ;;  %v28212_v34 = vperm.slane %v28211_v10, 4  ;;  %v8345_v50 = vadd.f32 %v28216_v7, %v8331_v38  ;;  %v17389_v10 = vld [vmem:[%s28148_s5 + $0x3b8] sm:$0xf] }
 0x501   : > { %11364 = vmatpush.bf16.msrb.mxu0 %v17054_v37  ;;  %v28209_v37 = vld [vmem:[#allocation12_spill] sm:$0xff]  ;;  %v16998_v4 = vor.u32 %v19668_v52, %v16997_v29  ;;  %v17641_v29 = vld [vmem:[%s28148_s5 + $0x5b0] sm:$0xf]  ;;  %v19829_v52 = vld [vmem:[%s28148_s5 + $0x5c8] sm:$0xf0] }
 0x502   : > { %11378 = vmatpush.bf16.msrb.mxu1 %v17278_v30  ;;  %v8177_v61 = vadd.f32 %v28209_v37, %v8163_v57  ;;  %v19836_v30 = vld [vmem:[%s28148_s5 + $0x600] sm:$0xf0]  ;;  %v8541_v46 = vadd.f32 %v25142_v9, %v28212_v34  ;;  %v17193_v9 = vld [vmem:[%s28148_s5 + $0x230] sm:$0xf]  ;;  %v9040_v57 = vmax.f32 %v25633_v33, 0.0  ;;  %v17418_v37 = vor.u32 %v19773_v35, %v17417_v45  ;;  %v28221_v38 = vld [vmem:[#allocation21_spill] sm:$0xff] }
 0x503   : > { %11392 = vmatpush.bf16.msrb.mxu2 %v17502_v6  ;;  %v28210_v6 = vld [vmem:[#allocation26_spill] sm:$0xff]  ;;  %v25685_v51 = vpop.f32.mrf.mxu3  ;;  %v17194_v56 = vor.u32 %v19717_v8, %v17193_v9  ;;  %v17613_v22 = vld [vmem:[%s28148_s5 + $0x578] sm:$0xf]  ;;  %v28220_v9 = vld [vmem:[#allocation17_spill] sm:$0xff] }
 0x504   : > { %11406 = vmatpush.bf16.msrb.mxu3 %v17726_v53  ;;  %v8485_v23 = vadd.f32 %v28210_v6, %v8471_v19  ;;  %v8707_v53 = vadd.f32 %v25525_v32, %v4392_v0  ;;  %v17670_v32 = vor.u32 %v19836_v30, %v17669_v31  ;;  %v8555_v19 = vadd.f32 %v25153_v54, %v8541_v46  ;;  %v19654_v54 = vld [vmem:[%s28148_s5 + $0x50] sm:$0xf0]  ;;  %v17165_v31 = vld [vmem:[%s28148_s5 + $0x1f8] sm:$0xf]  ;;  %v28218_v30 = vld [vmem:[#allocation29_spill] sm:$0xff]  ;;  %v25722_v45 = vpop.f32.mrf.mxu1 }
 0x505   : > { %11365 = vmatpush.bf16.msrb.mxu0 %v17026_v48  ;;  %v28214_v48 = vld [vmem:[#allocation4_spill] sm:$0xff]  ;;  %v17642_v6 = vor.u32 %v19829_v52, %v17641_v29  ;;  %v19766_v34 = vld [vmem:[%s28148_s5 + $0x3d0] sm:$0xf0]  ;;  %v28219_v46 = vld [vmem:[#allocation9_spill] sm:$0xff]  ;;  %v9035_v18 = vmax.f32 %v28220_v9, 0.0 }
 0x506   : > { %11379 = vmatpush.bf16.msrb.mxu1 %v17250_v47  ;;  %v9033_v15 = vmax.f32 %v28214_v48, 0.0  ;;  %v28215_v47 = vld [vmem:[#allocation13_spill] sm:$0xff]  ;;  %v8499_v63 = vadd.f32 %v28217_v49, %v8485_v23  ;;  %v8721_v40 = vadd.f32 %v25534_v58, %v8707_v53  ;;  %v19710_v23 = vld [vmem:[%s28148_s5 + $0x210] sm:$0xf0]  ;;  %v8569_v8 = vadd.f32 %v25194_v36, %v8555_v19  ;;  %v19647_v35 = vld [vmem:[%s28148_s5 + $0x18] sm:$0xf0] }
 0x507   : > { %11393 = vmatpush.bf16.msrb.mxu2 %v17474_v17  ;;  %v25671_v17 = vadd.f32 %v28215_v47, %v8177_v61  ;;  %v16941_v61 = vld [vmem:[%s28148_s5 + $0x38] sm:$0xf]  ;;  %v17166_v29 = vor.u32 %v19710_v23, %v17165_v31  ;;  %v17390_v52 = vor.u32 %v19766_v34, %v17389_v10  ;;  %v17137_v36 = vld [vmem:[%s28148_s5 + $0x1c0] sm:$0xf]  ;;  %v19703_v7 = vld [vmem:[%s28148_s5 + $0x1d8] sm:$0xf0] }
 0x508   : > { %11407 = vmatpush.bf16.msrb.mxu3 %v17698_v27  ;;  %v25682_v27 = vpop.f32.mrf.mxu2  ;;  %v8513_v58 = vadd.f32 %v28218_v30, %v8499_v63  ;;  %v8735_v47 = vadd.f32 %v25580_v3, %v8721_v40  ;;  %v28222_v49 = vld [vmem:[#allocation30_spill] sm:$0xff]  ;;  %v17614_v3 = vor.u32 %v19822_v44, %v17613_v22  ;;  %v19759_v19 = vld [vmem:[%s28148_s5 + $0x398] sm:$0xf0]  ;;  %v8583_v31 = vadd.f32 %v25202_v42, %v8569_v8 }
 0x509   : > { %11366 = vmatpush.bf16.msrb.mxu0 %v16998_v4  ;;  %v9034_v4 = vmax.f32 %v28219_v46, 0.0  ;;  %v9041_v53 = vmax.f32 %v25671_v17, 0.0  ;;  %v19815_v40 = vld [vmem:[%s28148_s5 + $0x558] sm:$0xf0]  ;;  %v17138_v42 = vor.u32 %v19703_v7, %v17137_v36  ;;  %v28225_v36 = vld [vmem:[#allocation32_spill] sm:$0xff] }
 0x50a   : > { %11380 = vmatpush.bf16.msrb.mxu1 %v17222_v14  ;;  %v8709_v14 = vadd.f32 %v25608_v62, %v4392_v0  ;;  %v16942_v0 = vor.u32 %v19654_v54, %v16941_v61  ;;  %v16913_v62 = vld [vmem:[%s28148_s5] sm:$0xf]  ;;  %v8527_v63 = vadd.f32 %v28222_v49, %v8513_v58  ;;  %v19920_v61 = vld [vmem:[%s28148_s5 + $0x8a0] sm:$0xf0]  ;;  %v18229_v54 = vld [vmem:[%s28148_s5 + $0xa48] sm:$0xf]  ;;  %v8749_v10 = vadd.f32 %v25592_v26, %v8735_v47 }
 0x50b   : > { %11394 = vmatpush.bf16.msrb.mxu2 %v17446_v5  ;;  %v8762_v5 = vpop.f32.mrf.mxu0  ;;  %v16914_v30 = vor.u32 %v19647_v35, %v16913_v62  ;;  %v19693_v58 = vld [vmem:[%s28148_s5 + $0x18c] sm:$0xf]  ;;  %v25776_v35 = vpop.f32.mrf.mxu3  ;;  %v17977_v26 = vld [vmem:[%s28148_s5 + $0x850] sm:$0xf]  ;;  %v17949_v46 = vld [vmem:[%s28148_s5 + $0x818] sm:$0xf] }
 0x50c   : > { %11408 = vmatpush.bf16.msrb.mxu3 %v17670_v32  ;;  %v25719_v32 = vadd.f32 %v28221_v38, %v8345_v50  ;;  %v17361_v50 = vld [vmem:[%s28148_s5 + $0x380] sm:$0xf]  ;;  %v9043_v44 = vmax.f32 %v8527_v63, 0.0  ;;  %v19913_v47 = vld [vmem:[%s28148_s5 + $0x868] sm:$0xf0]  ;;  %v8778_v48 = vpop.f32.mrf.mxu1 }
 0x50d   : > { %11367 = vmatpush.bf16.msrb.mxu0 %v16970_v28  ;;  %v17585_v28 = vld [vmem:[%s28148_s5 + $0x540] sm:$0xf]  ;;  %v17362_v34 = vor.u32 %v19759_v19, %v17361_v50  ;;  %v19969_v50 = vld [vmem:[%s28148_s5 + $0xa28] sm:$0xf0]  ;;  %v19686_v63 = vld [vmem:[%s28148_s5 + $0x154] sm:$0xf]  ;;  %v25803_v19 = vpack.c.bf16 %v9040_v57, %v9033_v15  ;;  %v17978_v33 = vor.u32 %v19913_v47, %v17977_v26 }
 0x50e   : > { %11381 = vmatpush.bf16.msrb.mxu1 %v17194_v56  ;;  %v8723_v56 = vadd.f32 %v25621_v16, %v8709_v14  ;;  %v19976_v16 = vld [vmem:[%s28148_s5 + $0xa60] sm:$0xf0]  ;;  %v9042_v23 = vmax.f32 %v25719_v32, 0.0  ;;  %v28223_v14 = vld [vmem:[#allocation25_spill] sm:$0xff]  ;;  %v17586_v8 = vor.u32 %v19815_v40, %v17585_v28  ;;  %v8763_v28 = vadd.f32 %v8762_v5, %v8749_v10  ;;  %v18145_v10 = vld [vmem:[%s28148_s5 + $0x9a0] sm:$0xf] }
 0x50f   : > { %11395 = vmatpush.bf16.msrb.mxu2 %v17418_v37  ;;  %v18005_v37 = vld [vmem:[%s28148_s5 + $0x888] sm:$0xf]  ;;  %v9036_v22 = vmax.f32 %v28223_v14, 0.0  ;;  %v18230_v49 = vor.u32 %v19976_v16, %v18229_v54  ;;  %v17055_v54 = vld [vmem:[%s28148_s5 + $0x134] sm:$0xf0] }
 0x510   : > { %11409 = vmatpush.bf16.msrb.mxu3 %v17642_v6  ;;  %v17111_v6 = vld [vmem:[%s28148_s5 + $0x1a4] sm:$0xf0]  ;;  %v25773_v38 = vpop.f32.mrf.mxu2  ;;  %v8737_v62 = vadd.f32 %v25682_v27, %v8723_v56  ;;  %v8597_v27 = vadd.f32 %v25300_v41, %v8583_v31  ;;  %v25809_v41 = vpack.c.bf16 %v9041_v53, %v9034_v4  ;;  %v25813_v56 = vpack.c.bf16 %v9042_v23, %v9035_v18  ;;  %v19906_v4 = vld [vmem:[%s28148_s5 + $0x830] sm:$0xf0]  ;;  %v18173_v53 = vld [vmem:[%s28148_s5 + $0x9d8] sm:$0xf] }
 0x511   : > { %11368 = vmatpush.bf16.msrb.mxu0 %v16942_v0  ;;  %v18006_v0 = vor.u32 %v19920_v61, %v18005_v37  ;;  %v17114_v32 = vor.u32 %v19693_v58, %v17111_v6  ;;  %v25815_v37 = vpack.c.bf16 %v9043_v44, %v9036_v22  ;;  %v28226_v5 = vld [vmem:[#allocation33_spill] sm:$0xff]  ;;  %v19962_v18 = vld [vmem:[%s28148_s5 + $0x9f0] sm:$0xf0]  ;;  %v19679_v61 = vld [vmem:[%s28148_s5 + $0x11c] sm:$0xf]  ;;  %v8777_v31 = vadd.f32 %v25722_v45, %v8763_v28 }
 0x512   : > { %11382 = vmatpush.bf16.msrb.mxu1 %v17166_v29  ;;  %v18201_v29 = vld [vmem:[%s28148_s5 + $0xa10] sm:$0xf]  ;;  %v8751_v15 = vadd.f32 %v25685_v51, %v8737_v62  ;;  %v8611_v51 = vadd.f32 %v25310_v60, %v8597_v27  ;;  %v18174_v58 = vor.u32 %v19962_v18, %v18173_v53  ;;  %v17058_v6 = vor.u32 %v19679_v61, %v17055_v54  ;;  %v17921_v23 = vld [vmem:[%s28148_s5 + $0x7e0] sm:$0xf]  ;;  %v19899_v45 = vld [vmem:[%s28148_s5 + $0x7f8] sm:$0xf0] }
 0x513   : > { %11396 = vmatpush.bf16.msrb.mxu2 %v17390_v52  ;;  %v28224_v52 = vld [vmem:[#allocation31_spill] sm:$0xff]  ;;  %v8764_v40 = vpop.f32.mrf.mxu0  ;;  %v18202_v57 = vor.u32 %v19969_v50, %v18201_v29  ;;  %v19672_v14 = vld [vmem:[%s28148_s5 + $0xe4] sm:$0xf]  ;;  %v17027_v22 = vld [vmem:[%s28148_s5 + $0xfc] sm:$0xf0]  ;;  %v8791_v44 = vadd.f32 %v25773_v38, %v8777_v31 }
 0x514   : > { %11410 = vmatpush.bf16.msrb.mxu3 %v17614_v3  ;;  %v8595_v7 = vadd.f32 %v28225_v36, %v28224_v52  ;;  %v17083_v3 = vld [vmem:[%s28148_s5 + $0x16c] sm:$0xf0]  ;;  %v8625_v60 = vadd.f32 %v25351_v2, %v8611_v51  ;;  %v8765_v16 = vadd.f32 %v8764_v40, %v8751_v15  ;;  %v17030_v47 = vor.u32 %v19672_v14, %v17027_v22  ;;  %v17893_v29 = vld [vmem:[%s28148_s5 + $0x7a8] sm:$0xf]  ;;  %v19892_v38 = vld [vmem:[%s28148_s5 + $0x7c0] sm:$0xf0] }
 0x515   : > { %11369 = vmatpush.bf16.msrb.mxu0 %v16914_v30  ;;  %v17086_v17 = vor.u32 %v19686_v63, %v17083_v3  ;;  %v17950_v30 = vor.u32 %v19906_v4, %v17949_v46  ;;  %v19665_v27 = vld [vmem:[%s28148_s5 + $0xac] sm:$0xf]  ;;  %v16999_v50 = vld [vmem:[%s28148_s5 + $0xc4] sm:$0xf0]  ;;  %v8805_v63 = vadd.f32 %v25776_v35, %v8791_v44  ;;  %v18089_v35 = vld [vmem:[%s28148_s5 + $0x930] sm:$0xf] }
 0x516   : > { %11383 = vmatpush.bf16.msrb.mxu1 %v17138_v42  ;;  %v8609_v9 = vadd.f32 %v28226_v5, %v8595_v7  ;;  %v8639_v62 = vadd.f32 %v25363_v13, %v8625_v60  ;;  %v18117_v13 = vld [vmem:[%s28148_s5 + $0x968] sm:$0xf]  ;;  %v19948_v7 = vld [vmem:[%s28148_s5 + $0x980] sm:$0xf0]  ;;  %v19885_v15 = vld [vmem:[%s28148_s5 + $0x788] sm:$0xf0] }
 0x517   : > { %11397 = vmatpush.bf16.msrb.mxu2 %v17362_v34  ;;  %v19955_v34 = vld [vmem:[%s28148_s5 + $0x9b8] sm:$0xf0]  ;;  %v19658_v46 = vld [vmem:[%s28148_s5 + $0x74] sm:$0xf]  ;;  %v16971_v4 = vld [vmem:[%s28148_s5 + $0x8c] sm:$0xf0] }
 0x518   : > { %11411 = vmatpush.bf16.msrb.mxu3 %v17586_v8  ;;  %11370 = vmatmul.bf16.vlgmr.msrb.gmra.mxu0 %v25803_v19  ;;  %v8623_v2 = vadd.f32 %v25274_v12, %v8609_v9  ;;  %v8792_v42 = vpop.f32.mrf.mxu2  ;;  %v8806_v8 = vpop.f32.mrf.mxu3  ;;  %v17922_v12 = vor.u32 %v19899_v45, %v17921_v23  ;;  %v18146_v26 = vor.u32 %v19955_v34, %v18145_v10  ;;  %v19651_v23 = vld [vmem:[%s28148_s5 + $0x3c] sm:$0xf]  ;;  %v16943_v45 = vld [vmem:[%s28148_s5 + $0x54] sm:$0xf0] }
 0x519   : > { %11418 = vmatpush.bf16.msra.mxu0 %v18006_v0  ;;  %11384 = vmatmul.bf16.vlgmr.msrb.gmra.mxu1 %v25809_v41  ;;  %v8653_v36 = vadd.f32 %v25447_v24, %v8639_v62  ;;  %v17865_v24 = vld [vmem:[%s28148_s5 + $0x770] sm:$0xf]  ;;  %v16974_v60 = vor.u32 %v19658_v46, %v16971_v4  ;;  %v16946_v22 = vor.u32 %v19651_v23, %v16943_v45  ;;  %v19871_v44 = vld [vmem:[%s28148_s5 + $0x718] sm:$0xf0]  ;;  %v17699_v23 = vld [vmem:[%s28148_s5 + $0x63c] sm:$0xf0] }
 0x51a   : > { %11432 = vmatpush.bf16.msra.mxu1 %v18230_v49  ;;  %11398 = vmatmul.bf16.vlgmr.msrb.gmra.mxu2 %v25813_v56  ;;  %v8832_v49 = vpop.f32.mrf.mxu1  ;;  %v8637_v52 = vadd.f32 %v25279_v43, %v8623_v2  ;;  %v17894_v43 = vor.u32 %v19892_v38, %v17893_v29  ;;  %v17866_v61 = vor.u32 %v19885_v15, %v17865_v24  ;;  %v19861_v38 = vld [vmem:[%s28148_s5 + $0x6cc] sm:$0xf]  ;;  %v17979_v46 = vld [vmem:[%s28148_s5 + $0x86c] sm:$0xf0]  ;;  %v19896_v45 = vld [vmem:[%s28148_s5 + $0x7e4] sm:$0xf] }
 0x51b   : > { %11412 = vmatmul.bf16.vlgmr.msrb.gmra.mxu3 %v25815_v37  ;;  %v8818_v0 = vpop.f32.mrf.mxu0 }
 0x51c   : > { %11460 = vmatpush.bf16.msra.mxu3 %v17114_v32  ;;  %v8779_v32 = vadd.f32 %v8778_v48, %v8765_v16  ;;  %v8651_v28 = vadd.f32 %v25365_v20, %v8637_v52  ;;  %v8819_v40 = vadd.f32 %v8818_v0, %v8805_v63  ;;  %v18118_v48 = vor.u32 %v19948_v7, %v18117_v13  ;;  %v19941_v20 = vld [vmem:[%s28148_s5 + $0x948] sm:$0xf0]  ;;  %v19878_v16 = vld [vmem:[%s28148_s5 + $0x750] sm:$0xf0]  ;;  %v17783_v13 = vld [vmem:[%s28148_s5 + $0x6e4] sm:$0xf0] }
 0x51d   : > { %11419 = vmatpush.bf16.msra.mxu0 %v17978_v33  ;;  %v17002_v33 = vor.u32 %v19665_v27, %v16999_v50  ;;  %v18090_v54 = vor.u32 %v19941_v20, %v18089_v35  ;;  %v18007_v7 = vld [vmem:[%s28148_s5 + $0x8a4] sm:$0xf0]  ;;  %v17786_v24 = vor.u32 %v19861_v38, %v17783_v13  ;;  %v19854_v20 = vld [vmem:[%s28148_s5 + $0x694] sm:$0xf] }
 0x51e   : > { %11433 = vmatpush.bf16.msra.mxu1 %v18202_v57  ;;  %v8793_v3 = vadd.f32 %v8792_v42, %v8779_v32  ;;  %v8667_v57 = vadd.f32 %v25459_v55, %v8653_v36  ;;  %v8665_v51 = vadd.f32 %v25376_v25, %v8651_v28  ;;  %v8833_v55 = vadd.f32 %v8832_v49, %v8819_v40  ;;  %v18061_v25 = vld [vmem:[%s28148_s5 + $0x8f8] sm:$0xf]  ;;  %v16915_v49 = vld [vmem:[%s28148_s5 + $0x1c] sm:$0xf0]  ;;  %v19805_v32 = vld [vmem:[%s28148_s5 + $0x50c] sm:$0xf] }
 0x51f   : > { %v19917_v36 = vld [vmem:[%s28148_s5 + $0x88c] sm:$0xf]  ;;  %v19798_v40 = vld [vmem:[%s28148_s5 + $0x4d4] sm:$0xf] }
 0x520   : > { %11461 = vmatpush.bf16.msra.mxu3 %v17086_v17  ;;  %v8846_v17 = vpop.f32.mrf.mxu2  ;;  %v8807_v53 = vadd.f32 %v8806_v8, %v8793_v3  ;;  %v8860_v9 = vpop.f32.mrf.mxu3  ;;  %v8681_v18 = vadd.f32 %v25510_v39, %v8667_v57  ;;  %v8679_v39 = vadd.f32 %v25419_v59, %v8665_v51  ;;  %v17809_v59 = vld [vmem:[%s28148_s5 + $0x700] sm:$0xf]  ;;  %v18010_v35 = vor.u32 %v19917_v36, %v18007_v7  ;;  %v17755_v57 = vld [vmem:[%s28148_s5 + $0x6ac] sm:$0xf0]  ;;  %v19791_v51 = vld [vmem:[%s28148_s5 + $0x49c] sm:$0xf] }
 0x521   : > { %11420 = vmatpush.bf16.msra.mxu0 %v17950_v30  ;;  %v17837_v30 = vld [vmem:[%s28148_s5 + $0x738] sm:$0xf]  ;;  %v8847_v10 = vadd.f32 %v8846_v17, %v8833_v55  ;;  %v18033_v8 = vld [vmem:[%s28148_s5 + $0x8c0] sm:$0xf]  ;;  %v17810_v52 = vor.u32 %v19871_v44, %v17809_v59  ;;  %v19910_v17 = vld [vmem:[%s28148_s5 + $0x854] sm:$0xf] }
 0x522   : > { %11434 = vmatpush.bf16.msra.mxu1 %v18174_v58  ;;  %v8834_v58 = vpop.f32.mrf.mxu1  ;;  %v8695_v2 = vadd.f32 %v25523_v21, %v8681_v18  ;;  %v17838_v42 = vor.u32 %v19878_v16, %v17837_v30  ;;  %v19927_v21 = vld [vmem:[%s28148_s5 + $0x8d8] sm:$0xf0]  ;;  %v8693_v0 = vadd.f32 %v25431_v11, %v8679_v39  ;;  %v17559_v11 = vld [vmem:[%s28148_s5 + $0x524] sm:$0xf0]  ;;  %v17982_v18 = vor.u32 %v19910_v17, %v17979_v46  ;;  %v17727_v55 = vld [vmem:[%s28148_s5 + $0x674] sm:$0xf0] }
 0x523   : > { %v8820_v5 = vpop.f32.mrf.mxu0  ;;  %v18034_v63 = vor.u32 %v19927_v21, %v18033_v8  ;;  %v19777_v59 = vld [vmem:[%s28148_s5 + $0x42c] sm:$0xf]  ;;  %v17671_v44 = vld [vmem:[%s28148_s5 + $0x604] sm:$0xf0]  ;;  %v20004_v7 = vld [vmem:[%s28148_s5 + $0xb40] sm:$0xf0] }
 0x524   : > { %11462 = vmatpush.bf16.msra.mxu3 %v17058_v6  ;;  %v8821_v31 = vadd.f32 %v8820_v5, %v8807_v53  ;;  %v19934_v6 = vld [vmem:[%s28148_s5 + $0x910] sm:$0xf0]  ;;  %v9044_v27 = vmax.f32 %v8695_v2, 0.0  ;;  %v9037_v28 = vmax.f32 %v8693_v0, 0.0  ;;  %v19889_v8 = vld [vmem:[%s28148_s5 + $0x7ac] sm:$0xf] }
 0x525   : > { %11421 = vmatpush.bf16.msra.mxu0 %v17922_v12  ;;  %v18062_v14 = vor.u32 %v19934_v6, %v18061_v25  ;;  %v19644_v12 = vld [vmem:[%s28148_s5 + $0x4] sm:$0xf]  ;;  %v17895_v21 = vld [vmem:[%s28148_s5 + $0x7c4] sm:$0xf0]  ;;  %v17587_v46 = vld [vmem:[%s28148_s5 + $0x55c] sm:$0xf0] }
 0x526   : > { %11435 = vmatpush.bf16.msra.mxu1 %v18146_v26  ;;  %v8835_v34 = vadd.f32 %v8834_v58, %v8821_v31  ;;  %v8861_v26 = vadd.f32 %v8860_v9, %v8847_v10  ;;  %v16918_v3 = vor.u32 %v19644_v12, %v16915_v49  ;;  %v25983_v4 = vpack.c.bf16 %v9044_v27, %v9037_v28  ;;  %v19903_v31 = vld [vmem:[%s28148_s5 + $0x81c] sm:$0xf]  ;;  %v19784_v25 = vld [vmem:[%s28148_s5 + $0x464] sm:$0xf]  ;;  %v17475_v58 = vld [vmem:[%s28148_s5 + $0x47c] sm:$0xf0] }
 0x527   : > { %v17758_v9 = vor.u32 %v19854_v20, %v17755_v57  ;;  %v19840_v6 = vld [vmem:[%s28148_s5 + $0x624] sm:$0xf]  ;;  %v17923_v10 = vld [vmem:[%s28148_s5 + $0x7fc] sm:$0xf0]  ;;  %v17478_v2 = vor.u32 %v19784_v25, %v17475_v58  ;;  %v19770_v12 = vld [vmem:[%s28148_s5 + $0x3f4] sm:$0xf]  ;;  %v17898_v49 = vor.u32 %v19889_v8, %v17895_v21 }
 0x528   : > { %11463 = vmatpush.bf16.msra.mxu3 %v17030_v47  ;;  %v8848_v62 = vpop.f32.mrf.mxu2  ;;  %v8862_v29 = vpop.f32.mrf.mxu3  ;;  %v18341_v36 = vld [vmem:[%s28148_s5 + $0xb28] sm:$0xf]  ;;  %v18313_v20 = vld [vmem:[%s28148_s5 + $0xaf0] sm:$0xf]  ;;  %v19997_v57 = vld [vmem:[%s28148_s5 + $0xb08] sm:$0xf0] }
 0x529   : > { %11422 = vmatpush.bf16.msra.mxu0 %v17894_v43  ;;  %v8849_v47 = vadd.f32 %v8848_v62, %v8835_v34  ;;  %v17562_v43 = vor.u32 %v19805_v32, %v17559_v11  ;;  %v17926_v34 = vor.u32 %v19896_v45, %v17923_v10  ;;  %v17419_v32 = vld [vmem:[%s28148_s5 + $0x40c] sm:$0xf0]  ;;  %v18342_v28 = vor.u32 %v20004_v7, %v18341_v36  ;;  %v18285_v25 = vld [vmem:[%s28148_s5 + $0xab8] sm:$0xf]  ;;  %v19983_v8 = vld [vmem:[%s28148_s5 + $0xa98] sm:$0xf0] }
 0x52a   : > { %11436 = vmatpush.bf16.msra.mxu1 %v18118_v48  ;;  %v17531_v48 = vld [vmem:[%s28148_s5 + $0x4ec] sm:$0xf0]  ;;  %v17422_v38 = vor.u32 %v19770_v12, %v17419_v32  ;;  %v17089_v10 = vld [vmem:[%s28148_s5 + $0x158] sm:$0xf]  ;;  %v19683_v12 = vld [vmem:[%s28148_s5 + $0x138] sm:$0xf0] }
 0x52b   : > { %v8863_v50 = vadd.f32 %v8862_v29, %v8849_v47  ;;  %v17534_v5 = vor.u32 %v19798_v40, %v17531_v48  ;;  %v17643_v47 = vld [vmem:[%s28148_s5 + $0x5cc] sm:$0xf0]  ;;  %v19882_v29 = vld [vmem:[%s28148_s5 + $0x774] sm:$0xf]  ;;  %v19756_v40 = vld [vmem:[%s28148_s5 + $0x384] sm:$0xf]  ;;  %11450 = vmatpush.bf16.msra.mxu2 %v18342_v28 }
 0x52c   : > { %11464 = vmatpush.bf16.msra.mxu3 %v17002_v33  ;;  %v9038_v33 = vmax.f32 %v8861_v26, 0.0  ;;  %v19826_v26 = vld [vmem:[%s28148_s5 + $0x5b4] sm:$0xf]  ;;  %v17867_v11 = vld [vmem:[%s28148_s5 + $0x78c] sm:$0xf0] }
 0x52d   : > { %11423 = vmatpush.bf16.msra.mxu0 %v17866_v61  ;;  %v9045_v15 = vmax.f32 %v8863_v50, 0.0  ;;  %v17503_v61 = vld [vmem:[%s28148_s5 + $0x4b4] sm:$0xf0]  ;;  %v17646_v13 = vor.u32 %v19826_v26, %v17643_v47  ;;  %v17870_v27 = vor.u32 %v19882_v29, %v17867_v11  ;;  %v17363_v48 = vld [vmem:[%s28148_s5 + $0x39c] sm:$0xf0] }
 0x52e   : > { %11437 = vmatpush.bf16.msra.mxu1 %v18090_v54  ;;  %v19847_v54 = vld [vmem:[%s28148_s5 + $0x65c] sm:$0xf]  ;;  %v17506_v30 = vor.u32 %v19791_v51, %v17503_v61  ;;  %v17391_v50 = vld [vmem:[%s28148_s5 + $0x3d4] sm:$0xf0]  ;;  %v18314_v51 = vor.u32 %v19997_v57, %v18313_v20  ;;  %v19697_v61 = vld [vmem:[%s28148_s5 + $0x1a8] sm:$0xf0] }
 0x52f   : > { %v25985_v53 = vpack.c.bf16 %v9045_v15, %v9038_v33  ;;  %v17730_v16 = vor.u32 %v19847_v54, %v17727_v55  ;;  %v17565_v54 = vld [vmem:[%s28148_s5 + $0x510] sm:$0xf]  ;;  %v19809_v55 = vld [vmem:[%s28148_s5 + $0x528] sm:$0xf0]  ;;  %v17509_v26 = vld [vmem:[%s28148_s5 + $0x4a0] sm:$0xf] }
 0x530   : > { %11465 = vmatpush.bf16.msra.mxu3 %v16974_v60  ;;  %v17951_v60 = vld [vmem:[%s28148_s5 + $0x834] sm:$0xf0]  ;;  %11451 = vmatpush.bf16.msra.mxu2 %v18314_v51  ;;  %v17566_v45 = vor.u32 %v19809_v55, %v17565_v54  ;;  %v19795_v47 = vld [vmem:[%s28148_s5 + $0x4b8] sm:$0xf0]  ;;  %v19749_v11 = vld [vmem:[%s28148_s5 + $0x34c] sm:$0xf] }
 0x531   : > { %11424 = vmatpush.bf16.msra.mxu0 %v17838_v42  ;;  %v17954_v39 = vor.u32 %v19903_v31, %v17951_v60  ;;  %v17702_v42 = vor.u32 %v19840_v6, %v17699_v23  ;;  %v20001_v31 = vld [vmem:[%s28148_s5 + $0xb2c] sm:$0xf]  ;;  %v18343_v60 = vld [vmem:[%s28148_s5 + $0xb44] sm:$0xf0]  ;;  %v17341_v57 = vld [vmem:[%s28148_s5 + $0x350] sm:$0xf] }
 0x532   : > { %11438 = vmatpush.bf16.msra.mxu1 %v18062_v14  ;;  %v17447_v14 = vld [vmem:[%s28148_s5 + $0x444] sm:$0xf0]  ;;  %v17279_v51 = vld [vmem:[%s28148_s5 + $0x2f4] sm:$0xf0]  ;;  %v19669_v54 = vld [vmem:[%s28148_s5 + $0xc8] sm:$0xf0] }
 0x533   : > { %v17450_v0 = vor.u32 %v19777_v59, %v17447_v14  ;;  %v18346_v59 = vor.u32 %v20001_v31, %v18343_v60  ;;  %v19994_v14 = vld [vmem:[%s28148_s5 + $0xaf4] sm:$0xf]  ;;  %v17033_v28 = vld [vmem:[%s28148_s5 + $0xe8] sm:$0xf]  ;;  %v4393_v31 = vperm.slane %v25604_v1, 6 }
 0x534   : > { %11466 = vmatpush.bf16.msra.mxu3 %v16946_v22  ;;  %v19833_v22 = vld [vmem:[%s28148_s5 + $0x5ec] sm:$0xf]  ;;  %v19746_v1 = vld [vmem:[%s28148_s5 + $0x330] sm:$0xf0] }
 0x535   : > { %11425 = vmatpush.bf16.msra.mxu0 %v17810_v52  ;;  %v17674_v62 = vor.u32 %v19833_v22, %v17671_v44  ;;  %v19763_v52 = vld [vmem:[%s28148_s5 + $0x3bc] sm:$0xf]  ;;  %v18315_v22 = vld [vmem:[%s28148_s5 + $0xb0c] sm:$0xf0]  ;;  %v18257_v44 = vld [vmem:[%s28148_s5 + $0xa80] sm:$0xf]  ;;  %v26158_v21 = vpop.f32.mrf.mxu0 }
 0x536   : > { %11439 = vmatpush.bf16.msra.mxu1 %v18034_v63  ;;  %v19819_v63 = vld [vmem:[%s28148_s5 + $0x57c] sm:$0xf]  ;;  %v17394_v33 = vor.u32 %v19763_v52, %v17391_v50  ;;  %v18318_v29 = vor.u32 %v19994_v14, %v18315_v22  ;;  %v17335_v52 = vld [vmem:[%s28148_s5 + $0x364] sm:$0xf0]  ;;  %v26186_v36 = vpop.f32.mrf.mxu1  ;;  %v19742_v50 = vld [vmem:[%s28148_s5 + $0x314] sm:$0xf] }
 0x537   : > { %v17338_v7 = vor.u32 %v19749_v11, %v17335_v52  ;;  %v17425_v14 = vld [vmem:[%s28148_s5 + $0x3f8] sm:$0xf]  ;;  %v19774_v22 = vld [vmem:[%s28148_s5 + $0x410] sm:$0xf0]  ;;  %v19767_v52 = vld [vmem:[%s28148_s5 + $0x3d8] sm:$0xf0] }
 0x538   : > { %11467 = vmatpush.bf16.msra.mxu3 %v16918_v3  ;;  %11426 = vmatmul.bf16.vlgmr.msra.gmra.mxu0 %v25983_v4  ;;  %v17615_v3 = vld [vmem:[%s28148_s5 + $0x594] sm:$0xf0] }
 0x539   : > { %11488 = vmatpush.bf16.msrb.mxu0 %v17562_v43  ;;  %11440 = vmatmul.bf16.vlgmr.msra.gmra.mxu1 %v25985_v53  ;;  %v19875_v43 = vld [vmem:[%s28148_s5 + $0x73c] sm:$0xf]  ;;  %v17618_v15 = vor.u32 %v19819_v63, %v17615_v3  ;;  %v17307_v63 = vld [vmem:[%s28148_s5 + $0x32c] sm:$0xf0]  ;;  %v17510_v3 = vor.u32 %v19795_v47, %v17509_v26  ;;  %v17426_v26 = vor.u32 %v19774_v22, %v17425_v14  ;;  %v16949_v47 = vld [vmem:[%s28148_s5 + $0x40] sm:$0xf] }
 0x53a   : > { %11502 = vmatpush.bf16.msrb.mxu1 %v17786_v24  ;;  %v17839_v24 = vld [vmem:[%s28148_s5 + $0x754] sm:$0xf0] }
 0x53b   : > { %11468 = vmatmul.bf16.vlgmr.msra.gmra.mxu3 %v25803_v19  ;;  %v17842_v17 = vor.u32 %v19875_v43, %v17839_v24  ;;  %v19676_v43 = vld [vmem:[%s28148_s5 + $0x100] sm:$0xf0]  ;;  %v17481_v24 = vld [vmem:[%s28148_s5 + $0x468] sm:$0xf] }
 0x53c   : > { %11516 = vmatpush.bf16.msrb.mxu3 %v18010_v35  ;;  %v19812_v35 = vld [vmem:[%s28148_s5 + $0x544] sm:$0xf] }
 0x53d   : > { %11489 = vmatpush.bf16.msrb.mxu0 %v17534_v5  ;;  %v19868_v5 = vld [vmem:[%s28148_s5 + $0x704] sm:$0xf]  ;;  %v26213_v20 = vpop.f32.mrf.mxu2  ;;  %v8876_v60 = vpop.f32.mrf.mxu0 }
 0x53e   : > { %11503 = vmatpush.bf16.msrb.mxu1 %v17758_v9  ;;  %v17811_v9 = vld [vmem:[%s28148_s5 + $0x71c] sm:$0xf0] }
 0x53f   : > { %v17814_v58 = vor.u32 %v19868_v5, %v17811_v9  ;;  %v17034_v5 = vor.u32 %v19676_v43, %v17033_v28  ;;  %v19735_v9 = vld [vmem:[%s28148_s5 + $0x2dc] sm:$0xf]  ;;  %v16921_v43 = vld [vmem:[%s28148_s5 + $0x8] sm:$0xf] }
 0x540   : > { %11517 = vmatpush.bf16.msrb.mxu3 %v17982_v18  ;;  %v17117_v18 = vld [vmem:[%s28148_s5 + $0x190] sm:$0xf] }
 0x541   : > { %11490 = vmatpush.bf16.msrb.mxu0 %v17506_v30  ;;  %v17366_v30 = vor.u32 %v19756_v40, %v17363_v48  ;;  %v17118_v6 = vor.u32 %v19697_v61, %v17117_v18  ;;  %v19788_v48 = vld [vmem:[%s28148_s5 + $0x480] sm:$0xf0]  ;;  %v17005_v61 = vld [vmem:[%s28148_s5 + $0xb0] sm:$0xf] }
 0x542   : > { %11504 = vmatpush.bf16.msrb.mxu1 %v17730_v16  ;;  %v17590_v16 = vor.u32 %v19812_v35, %v17587_v46  ;;  %v17310_v35 = vor.u32 %v19742_v50, %v17307_v63  ;;  %v26221_v46 = vpop.f32.mrf.mxu3  ;;  %v17482_v18 = vor.u32 %v19788_v48, %v17481_v24  ;;  %v17257_v50 = vld [vmem:[%s28148_s5 + $0x2a8] sm:$0xf]  ;;  %v8877_v63 = vadd.f32 %v8876_v60, %v4393_v31  ;;  %v19714_v24 = vld [vmem:[%s28148_s5 + $0x234] sm:$0xf] }
 0x544   : > { %11518 = vmatpush.bf16.msrb.mxu3 %v17954_v39  ;;  %v19990_v39 = vld [vmem:[%s28148_s5 + $0xad0] sm:$0xf0] }
 0x545   : > { %11491 = vmatpush.bf16.msrb.mxu0 %v17478_v2  ;;  %v18286_v23 = vor.u32 %v19990_v39, %v18285_v25  ;;  %v19690_v2 = vld [vmem:[%s28148_s5 + $0x170] sm:$0xf0]  ;;  %v17282_v39 = vor.u32 %v19735_v9, %v17279_v51  ;;  %v18349_v9 = vld [vmem:[%s28148_s5 + $0xb30] sm:$0xf] }
 0x546   : > { %11505 = vmatpush.bf16.msrb.mxu1 %v17702_v42  ;;  %v17537_v42 = vld [vmem:[%s28148_s5 + $0x4d8] sm:$0xf] }
 0x547   : > { %11452 = vmatpush.bf16.msra.mxu2 %v18286_v23  ;;  %v19728_v23 = vld [vmem:[%s28148_s5 + $0x2a4] sm:$0xf] }
 0x548   : > { %11519 = vmatpush.bf16.msrb.mxu3 %v17926_v34  ;;  %v19802_v34 = vld [vmem:[%s28148_s5 + $0x4f0] sm:$0xf0] }
 0x549   : > { %11492 = vmatpush.bf16.msrb.mxu0 %v17450_v0  ;;  %v17090_v0 = vor.u32 %v19690_v2, %v17089_v10  ;;  %v17538_v32 = vor.u32 %v19802_v34, %v17537_v42  ;;  %v8890_v10 = vpop.f32.mrf.mxu1  ;;  %v16977_v42 = vld [vmem:[%s28148_s5 + $0x78] sm:$0xf]  ;;  %v8875_v34 = vadd.f32 %v26158_v21, %v4393_v31  ;;  %v19739_v21 = vld [vmem:[%s28148_s5 + $0x2f8] sm:$0xf0] }
 0x54a   : > { %11506 = vmatpush.bf16.msrb.mxu1 %v17674_v62  ;;  %v17061_v62 = vld [vmem:[%s28148_s5 + $0x120] sm:$0xf]  ;;  %v8891_v31 = vadd.f32 %v8890_v10, %v8877_v63 }
 0x54b   : > { %v8889_v11 = vadd.f32 %v26186_v36, %v8875_v34  ;;  %v19732_v36 = vld [vmem:[%s28148_s5 + $0x2c0] sm:$0xf0] }
 0x54c   : > { %11520 = vmatpush.bf16.msrb.mxu3 %v17898_v49  ;;  %v18258_v49 = vor.u32 %v19983_v8, %v18257_v44  ;;  %v17258_v51 = vor.u32 %v19732_v36, %v17257_v50 }
 0x54d   : > { %11493 = vmatpush.bf16.msrb.mxu0 %v17422_v38  ;;  %v19987_v38 = vld [vmem:[%s28148_s5 + $0xabc] sm:$0xf] }
 0x54e   : > { %11507 = vmatpush.bf16.msrb.mxu1 %v17646_v13  ;;  %v18287_v13 = vld [vmem:[%s28148_s5 + $0xad4] sm:$0xf0]  ;;  %11453 = vmatpush.bf16.msra.mxu2 %v18258_v49  ;;  %v17223_v49 = vld [vmem:[%s28148_s5 + $0x284] sm:$0xf0] }
 0x54f   : > { %v18290_v40 = vor.u32 %v19987_v38, %v18287_v13  ;;  %v26286_v38 = vpop.f32.mrf.mxu3  ;;  %v17397_v13 = vld [vmem:[%s28148_s5 + $0x3c0] sm:$0xf] }
 0x550   : > { %11521 = vmatpush.bf16.msrb.mxu3 %v17870_v27  ;;  %v17062_v27 = vor.u32 %v19683_v12, %v17061_v62  ;;  %v19721_v12 = vld [vmem:[%s28148_s5 + $0x26c] sm:$0xf]  ;;  %v17398_v48 = vor.u32 %v19767_v52, %v17397_v13  ;;  %v19711_v13 = vld [vmem:[%s28148_s5 + $0x218] sm:$0xf0] }
 0x551   : > { %11494 = vmatpush.bf16.msrb.mxu0 %v17394_v33  ;;  %v19980_v33 = vld [vmem:[%s28148_s5 + $0xa84] sm:$0xf] }
 0x552   : > { %11508 = vmatpush.bf16.msrb.mxu1 %v17618_v15  ;;  %v18259_v15 = vld [vmem:[%s28148_s5 + $0xa9c] sm:$0xf0]  ;;  %11474 = vmatpush.bf16.msrb.mxu2 %v17338_v7 }
 0x553   : > { %v18262_v55 = vor.u32 %v19980_v33, %v18259_v15  ;;  %v19648_v33 = vld [vmem:[%s28148_s5 + $0x20] sm:$0xf0]  ;;  %v17369_v15 = vld [vmem:[%s28148_s5 + $0x388] sm:$0xf] }
 0x554   : > { %11522 = vmatpush.bf16.msrb.mxu3 %v17842_v17  ;;  %v19753_v17 = vld [vmem:[%s28148_s5 + $0x368] sm:$0xf0]  ;;  %v16922_v60 = vor.u32 %v19648_v33, %v16921_v43 }
 0x555   : > { %11495 = vmatpush.bf16.msrb.mxu0 %v17366_v30  ;;  %v17453_v30 = vld [vmem:[%s28148_s5 + $0x430] sm:$0xf]  ;;  %v17342_v25 = vor.u32 %v19753_v17, %v17341_v57  ;;  %v8903_v57 = vadd.f32 %v26213_v20, %v8889_v11  ;;  %v20005_v20 = vld [vmem:[%s28148_s5 + $0xb48] sm:$0xf0]  ;;  %v17173_v11 = vld [vmem:[%s28148_s5 + $0x200] sm:$0xf] }
 0x556   : > { %11509 = vmatpush.bf16.msrb.mxu1 %v17590_v16  ;;  %v19781_v16 = vld [vmem:[%s28148_s5 + $0x448] sm:$0xf0]  ;;  %11475 = vmatpush.bf16.msrb.mxu2 %v17310_v35  ;;  %v19760_v35 = vld [vmem:[%s28148_s5 + $0x3a0] sm:$0xf0]  ;;  %v18013_v17 = vld [vmem:[%s28148_s5 + $0x890] sm:$0xf]  ;;  %v17174_v43 = vor.u32 %v19711_v13, %v17173_v11 }
 0x557   : > { %v17454_v2 = vor.u32 %v19781_v16, %v17453_v30  ;;  %v19707_v30 = vld [vmem:[%s28148_s5 + $0x1fc] sm:$0xf]  ;;  %v17167_v16 = vld [vmem:[%s28148_s5 + $0x214] sm:$0xf0]  ;;  %v19806_v13 = vld [vmem:[%s28148_s5 + $0x514] sm:$0xf] }
 0x558   : > { %11523 = vmatpush.bf16.msrb.mxu3 %v17814_v58  ;;  %11496 = vmatmul.bf16.vlgmr.msrb.gmra.mxu0 %v25813_v56  ;;  %v17313_v58 = vld [vmem:[%s28148_s5 + $0x318] sm:$0xf]  ;;  %v17170_v34 = vor.u32 %v19707_v30, %v17167_v16 }
 0x559   : > { %11586 = vmatpush.bf16.msra.mxu0 %v17566_v45  ;;  %11510 = vmatmul.bf16.vlgmr.msrb.gmra.mxu1 %v25815_v37  ;;  %v17251_v45 = vld [vmem:[%s28148_s5 + $0x2bc] sm:$0xf0]  ;;  %v17314_v44 = vor.u32 %v19746_v1, %v17313_v58  ;;  %v8917_v58 = vadd.f32 %v26221_v46, %v8903_v57  ;;  %v18350_v1 = vor.u32 %v20005_v20, %v18349_v9  ;;  %v19998_v46 = vld [vmem:[%s28148_s5 + $0xb10] sm:$0xf0]  ;;  %v19893_v20 = vld [vmem:[%s28148_s5 + $0x7c8] sm:$0xf0] }
 0x55a   : > { %11558 = vmatpush.bf16.msra.mxu1 %v17118_v6  ;;  %v17006_v6 = vor.u32 %v19669_v54, %v17005_v61  ;;  %11476 = vmatpush.bf16.msrb.mxu2 %v17282_v39  ;;  %v17254_v8 = vor.u32 %v19728_v23, %v17251_v45  ;;  %v8944_v61 = vpop.f32.mrf.mxu1  ;;  %v17229_v54 = vld [vmem:[%s28148_s5 + $0x270] sm:$0xf]  ;;  %v19914_v23 = vld [vmem:[%s28148_s5 + $0x870] sm:$0xf0]  ;;  %v18321_v45 = vld [vmem:[%s28148_s5 + $0xaf8] sm:$0xf] }
 0x55b   : > { %11524 = vmatmul.bf16.vlgmr.msrb.gmra.mxu3 %v25983_v4  ;;  %v17315_v30 = vld [vmem:[%s28148_s5 + $0x334] sm:$0xf0] }
 0x55c   : > { %11548 = vmatpush.bf16.msra.mxu3 %v18346_v59  ;;  %v19662_v59 = vld [vmem:[%s28148_s5 + $0x90] sm:$0xf0] }
 0x55d   : > { %11587 = vmatpush.bf16.msra.mxu0 %v17538_v32  ;;  %v16978_v62 = vor.u32 %v19662_v59, %v16977_v42  ;;  %v8904_v32 = vpop.f32.mrf.mxu2  ;;  %v17201_v42 = vld [vmem:[%s28148_s5 + $0x238] sm:$0xf]  ;;  %v19718_v59 = vld [vmem:[%s28148_s5 + $0x250] sm:$0xf0] }
 0x55e   : > { %11559 = vmatpush.bf16.msra.mxu1 %v17090_v0  ;;  %v17285_v0 = vld [vmem:[%s28148_s5 + $0x2e0] sm:$0xf]  ;;  %11477 = vmatpush.bf16.msrb.mxu2 %v17254_v8  ;;  %v8905_v14 = vadd.f32 %v8904_v32, %v8891_v31  ;;  %v8972_v22 = vpop.f32.mrf.mxu3  ;;  %v19907_v32 = vld [vmem:[%s28148_s5 + $0x838] sm:$0xf0] }
 0x55f   : > { %v17286_v7 = vor.u32 %v19739_v21, %v17285_v0  ;;  %v17139_v8 = vld [vmem:[%s28148_s5 + $0x1dc] sm:$0xf0] }
 0x560   : > { %11549 = vmatpush.bf16.msra.mxu3 %v18318_v29  ;;  %v19655_v29 = vld [vmem:[%s28148_s5 + $0x58] sm:$0xf0] }
 0x561   : > { %11588 = vmatpush.bf16.msra.mxu0 %v17510_v3  ;;  %v8930_v3 = vpop.f32.mrf.mxu0  ;;  %v16950_v28 = vor.u32 %v19655_v29, %v16949_v47  ;;  %v17202_v47 = vor.u32 %v19718_v59, %v17201_v42  ;;  %v19991_v29 = vld [vmem:[%s28148_s5 + $0xad8] sm:$0xf0] }
 0x562   : > { %11560 = vmatpush.bf16.msra.mxu1 %v17062_v27  ;;  %v17226_v27 = vor.u32 %v19721_v12, %v17223_v49  ;;  %v8931_v21 = vadd.f32 %v8930_v3, %v8917_v58  ;;  %v18322_v12 = vor.u32 %v19998_v46, %v18321_v45  ;;  %v17957_v49 = vld [vmem:[%s28148_s5 + $0x820] sm:$0xf]  ;;  %v17929_v3 = vld [vmem:[%s28148_s5 + $0x7e8] sm:$0xf] }
 0x563   : > { %v17958_v50 = vor.u32 %v19907_v32, %v17957_v49 }
 0x564   : > { %11550 = vmatpush.bf16.msra.mxu3 %v18290_v40  ;;  %v17195_v40 = vld [vmem:[%s28148_s5 + $0x24c] sm:$0xf0]  ;;  %11478 = vmatpush.bf16.msrb.mxu2 %v17226_v27  ;;  %v8946_v27 = vpop.f32.mrf.mxu1  ;;  %v8945_v36 = vadd.f32 %v8944_v61, %v8931_v21 }
 0x565   : > { %11589 = vmatpush.bf16.msra.mxu0 %v17482_v18  ;;  %v17198_v18 = vor.u32 %v19714_v24, %v17195_v40  ;;  %v19984_v24 = vld [vmem:[%s28148_s5 + $0xaa0] sm:$0xf0]  ;;  %v17145_v40 = vld [vmem:[%s28148_s5 + $0x1c8] sm:$0xf]  ;;  %v17901_v61 = vld [vmem:[%s28148_s5 + $0x7b0] sm:$0xf] }
 0x566   : > { %11561 = vmatpush.bf16.msra.mxu1 %v17034_v5  ;;  %v19921_v5 = vld [vmem:[%s28148_s5 + $0x8a8] sm:$0xf0]  ;;  %v8974_v9 = vpop.f32.mrf.mxu3 }
 0x567   : > { %v18014_v39 = vor.u32 %v19921_v5, %v18013_v17 }
 0x568   : > { %11551 = vmatpush.bf16.msra.mxu3 %v18262_v55  ;;  %v19725_v55 = vld [vmem:[%s28148_s5 + $0x288] sm:$0xf0]  ;;  %11479 = vmatpush.bf16.msrb.mxu2 %v17198_v18 }
 0x569   : > { %11590 = vmatpush.bf16.msra.mxu0 %v17454_v2  ;;  %v17230_v10 = vor.u32 %v19725_v55, %v17229_v54  ;;  %v8958_v2 = vpop.f32.mrf.mxu2 }
 0x56a   : > { %11562 = vmatpush.bf16.msra.mxu1 %v17006_v6  ;;  %v17985_v6 = vld [vmem:[%s28148_s5 + $0x858] sm:$0xf]  ;;  %v8959_v5 = vadd.f32 %v8958_v2, %v8945_v36  ;;  %v17287_v2 = vld [vmem:[%s28148_s5 + $0x2fc] sm:$0xf0] }
 0x56b   : > { %v17986_v0 = vor.u32 %v19914_v23, %v17985_v6  ;;  %v19886_v6 = vld [vmem:[%s28148_s5 + $0x790] sm:$0xf0] }
 0x56c   : > { %11572 = vmatpush.bf16.msrb.mxu3 %v17342_v25  ;;  %v17370_v25 = vor.u32 %v19760_v35, %v17369_v15  ;;  %11480 = vmatpush.bf16.msrb.mxu2 %v17170_v34  ;;  %v19750_v15 = vld [vmem:[%s28148_s5 + $0x354] sm:$0xf]  ;;  %v17343_v35 = vld [vmem:[%s28148_s5 + $0x36c] sm:$0xf0] }
 0x56d   : > { %11591 = vmatpush.bf16.msra.mxu0 %v17426_v26  ;;  %v18293_v26 = vld [vmem:[%s28148_s5 + $0xac0] sm:$0xf]  ;;  %v17346_v55 = vor.u32 %v19750_v15, %v17343_v35  ;;  %v17203_v35 = vld [vmem:[%s28148_s5 + $0x254] sm:$0xf0] }
 0x56e   : > { %11563 = vmatpush.bf16.msra.mxu1 %v16978_v62  ;;  %v8932_v62 = vpop.f32.mrf.mxu0  ;;  %v18294_v63 = vor.u32 %v19991_v29, %v18293_v26  ;;  %v17817_v26 = vld [vmem:[%s28148_s5 + $0x708] sm:$0xf] }
 0x570   : > { %11573 = vmatpush.bf16.msrb.mxu3 %v17314_v44  ;;  %v19700_v44 = vld [vmem:[%s28148_s5 + $0x1c4] sm:$0xf] }
 0x571   : > { %11592 = vmatpush.bf16.msra.mxu0 %v17398_v48  ;;  %v17142_v52 = vor.u32 %v19700_v44, %v17139_v8  ;;  %v19704_v48 = vld [vmem:[%s28148_s5 + $0x1e0] sm:$0xf0]  ;;  %v8960_v57 = vpop.f32.mrf.mxu2  ;;  %v19879_v44 = vld [vmem:[%s28148_s5 + $0x758] sm:$0xf0] }
 0x572   : > { %11564 = vmatpush.bf16.msra.mxu1 %v16950_v28  ;;  %v19900_v28 = vld [vmem:[%s28148_s5 + $0x800] sm:$0xf0]  ;;  %v17146_v54 = vor.u32 %v19704_v48, %v17145_v40  ;;  %v19715_v40 = vld [vmem:[%s28148_s5 + $0x23c] sm:$0xf] }
 0x573   : > { %11481 = vmatpush.bf16.msrb.mxu2 %v17142_v52  ;;  %v17930_v17 = vor.u32 %v19900_v28, %v17929_v3  ;;  %v17567_v52 = vld [vmem:[%s28148_s5 + $0x52c] sm:$0xf0]  ;;  %v19799_v48 = vld [vmem:[%s28148_s5 + $0x4dc] sm:$0xf] }
 0x574   : > { %11574 = vmatpush.bf16.msrb.mxu3 %v17286_v7  ;;  %v8919_v7 = vadd.f32 %v26286_v38, %v8905_v14  ;;  %v18265_v38 = vld [vmem:[%s28148_s5 + $0xa88] sm:$0xf] }
 0x575   : > { %11593 = vmatpush.bf16.msra.mxu0 %v17370_v25  ;;  %v18266_v18 = vor.u32 %v19984_v24, %v18265_v38  ;;  %v17902_v25 = vor.u32 %v19893_v20, %v17901_v61  ;;  %v17570_v38 = vor.u32 %v19806_v13, %v17567_v52  ;;  %v19977_v61 = vld [vmem:[%s28148_s5 + $0xa68] sm:$0xf0]  ;;  %v17206_v20 = vor.u32 %v19715_v40, %v17203_v35  ;;  %v19952_v52 = vld [vmem:[%s28148_s5 + $0x9a4] sm:$0xf] }
 0x576   : > { %11565 = vmatpush.bf16.msra.mxu1 %v16922_v60  ;;  %v8933_v33 = vadd.f32 %v8932_v62, %v8919_v7  ;;  %v19743_v60 = vld [vmem:[%s28148_s5 + $0x31c] sm:$0xf]  ;;  %v9000_v16 = vpop.f32.mrf.mxu1  ;;  %v19729_v62 = vld [vmem:[%s28148_s5 + $0x2ac] sm:$0xf] }
 0x577   : > { %v17318_v23 = vor.u32 %v19743_v60, %v17315_v30  ;;  %v17511_v60 = vld [vmem:[%s28148_s5 + $0x4bc] sm:$0xf0]  ;;  %v19945_v35 = vld [vmem:[%s28148_s5 + $0x96c] sm:$0xf] }
 0x578   : > { %11575 = vmatpush.bf16.msrb.mxu3 %v17258_v51  ;;  %11594 = vmatmul.bf16.vlgmr.msra.gmra.mxu0 %v25813_v56  ;;  %v8986_v51 = vpop.f32.mrf.mxu0  ;;  %v8947_v31 = vadd.f32 %v8946_v27, %v8933_v33  ;;  %v19722_v27 = vld [vmem:[%s28148_s5 + $0x274] sm:$0xf]  ;;  %v17539_v33 = vld [vmem:[%s28148_s5 + $0x4f4] sm:$0xf0] }
 0x579   : > { %11646 = vmatpush.bf16.msrb.mxu0 %v18350_v1  ;;  %11566 = vmatmul.bf16.vlgmr.msra.gmra.mxu1 %v25803_v19  ;;  %v17873_v1 = vld [vmem:[%s28148_s5 + $0x778] sm:$0xf] }
 0x57a   : > { %11614 = vmatpush.bf16.msrb.mxu1 %v18014_v39  ;;  %v8973_v39 = vadd.f32 %v8972_v22, %v8959_v5  ;;  %v8961_v58 = vadd.f32 %v8960_v57, %v8947_v31  ;;  %v17874_v42 = vor.u32 %v19886_v6, %v17873_v1  ;;  %v17845_v22 = vld [vmem:[%s28148_s5 + $0x740] sm:$0xf]  ;;  %v19973_v57 = vld [vmem:[%s28148_s5 + $0xa4c] sm:$0xf]  ;;  %v19792_v31 = vld [vmem:[%s28148_s5 + $0x4a4] sm:$0xf] }
 0x57b   : > { %v17846_v49 = vor.u32 %v19879_v44, %v17845_v22  ;;  %v17514_v1 = vor.u32 %v19792_v31, %v17511_v60  ;;  %v18209_v6 = vld [vmem:[%s28148_s5 + $0xa18] sm:$0xf]  ;;  %v17399_v31 = vld [vmem:[%s28148_s5 + $0x3dc] sm:$0xf0] }
 0x57c   : > { %11576 = vmatpush.bf16.msrb.mxu3 %v17230_v10  ;;  %v8987_v45 = vadd.f32 %v8986_v51, %v8973_v39  ;;  %v19736_v10 = vld [vmem:[%s28148_s5 + $0x2e4] sm:$0xf]  ;;  %v8975_v59 = vadd.f32 %v8974_v9, %v8961_v58  ;;  %v17542_v51 = vor.u32 %v19799_v48, %v17539_v33  ;;  %v18203_v39 = vld [vmem:[%s28148_s5 + $0xa2c] sm:$0xf0]  ;;  %v18175_v22 = vld [vmem:[%s28148_s5 + $0x9f4] sm:$0xf0] }
 0x57d   : > { %11647 = vmatpush.bf16.msrb.mxu0 %v18322_v12  ;;  %v9014_v46 = vpop.f32.mrf.mxu2  ;;  %v17290_v8 = vor.u32 %v19736_v10, %v17287_v2  ;;  %v17259_v12 = vld [vmem:[%s28148_s5 + $0x2c4] sm:$0xf0]  ;;  %v19771_v48 = vld [vmem:[%s28148_s5 + $0x3fc] sm:$0xf]  ;;  %v17427_v33 = vld [vmem:[%s28148_s5 + $0x414] sm:$0xf0] }
 0x57e   : > { %11615 = vmatpush.bf16.msrb.mxu1 %v17986_v0  ;;  %v9028_v34 = vpop.f32.mrf.mxu3  ;;  %v9001_v0 = vadd.f32 %v9000_v16, %v8987_v45  ;;  %v9002_v29 = vpop.f32.mrf.mxu1  ;;  %v17262_v11 = vor.u32 %v19729_v62, %v17259_v12  ;;  %v17175_v16 = vld [vmem:[%s28148_s5 + $0x21c] sm:$0xf0] }
 0x57f   : > { %v26523_v45 = vld [vmem:[%s28149_s6] sm:$0x7f] }
 0x580   : > { %11577 = vmatpush.bf16.msrb.mxu3 %v17202_v47  ;;  %v8988_v14 = vpop.f32.mrf.mxu0  ;;  %v9015_v32 = vadd.f32 %v9014_v46, %v9001_v0  ;;  %v19872_v47 = vld [vmem:[%s28148_s5 + $0x720] sm:$0xf0]  ;;  %v19701_v46 = vld [vmem:[%s28148_s5 + $0x1cc] sm:$0xf]  ;;  %v19974_v0 = vld [vmem:[%s28148_s5 + $0xa54] sm:$0xf] }
 0x581   : > { %11648 = vmatpush.bf16.msrb.mxu0 %v18294_v63  ;;  %v8989_v21 = vadd.f32 %v8988_v14, %v8975_v59  ;;  %v17818_v63 = vor.u32 %v19872_v47, %v17817_v26  ;;  %v17483_v59 = vld [vmem:[%s28148_s5 + $0x484] sm:$0xf0]  ;;  %v19959_v14 = vld [vmem:[%s28148_s5 + $0x9dc] sm:$0xf]  ;;  %v18181_v12 = vld [vmem:[%s28148_s5 + $0x9e0] sm:$0xf] }
 0x582   : > { %11616 = vmatpush.bf16.msrb.mxu1 %v17958_v50  ;;  %v17231_v50 = vld [vmem:[%s28148_s5 + $0x28c] sm:$0xf0]  ;;  %v9029_v3 = vadd.f32 %v9028_v34, %v9015_v32  ;;  %v17147_v34 = vld [vmem:[%s28148_s5 + $0x1e4] sm:$0xf0]  ;;  %v18178_v26 = vor.u32 %v19959_v14, %v18175_v22  ;;  %v19778_v47 = vld [vmem:[%s28148_s5 + $0x434] sm:$0xf] }
 0x583   : > { %v9003_v7 = vadd.f32 %v9002_v29, %v8989_v21  ;;  %v17234_v24 = vor.u32 %v19722_v27, %v17231_v50  ;;  %v18239_v21 = vld [vmem:[%s28148_s5 + $0xa6c] sm:$0xf0]  ;;  %v17150_v32 = vor.u32 %v19701_v46, %v17147_v34  ;;  %v19953_v46 = vld [vmem:[%s28148_s5 + $0x9ac] sm:$0xf]  ;;  %v17371_v14 = vld [vmem:[%s28148_s5 + $0x3a4] sm:$0xf0] }
 0x584   : > { %11578 = vmatpush.bf16.msrb.mxu3 %v17174_v43  ;;  %v9039_v5 = vmax.f32 %v9029_v3, 0.0  ;;  %v17455_v29 = vld [vmem:[%s28148_s5 + $0x44c] sm:$0xf0]  ;;  %v18242_v13 = vor.u32 %v19974_v0, %v18239_v21  ;;  %v19757_v34 = vld [vmem:[%s28148_s5 + $0x38c] sm:$0xf] }
 0x585   : > { %11649 = vmatpush.bf16.msrb.mxu0 %v18266_v18  ;;  %v9016_v36 = vpop.f32.mrf.mxu2  ;;  %v18237_v18 = vld [vmem:[%s28148_s5 + $0xa50] sm:$0xf]  ;;  %v19931_v22 = vld [vmem:[%s28148_s5 + $0x8fc] sm:$0xf]  ;;  %v20002_v0 = vld [vmem:[%s28148_s5 + $0xb34] sm:$0xf] }
 0x586   : > { %11617 = vmatpush.bf16.msrb.mxu1 %v17930_v17  ;;  %v9017_v28 = vadd.f32 %v9016_v36, %v9003_v7  ;;  %v9030_v43 = vpop.f32.mrf.mxu3  ;;  %v18231_v17 = vld [vmem:[%s28148_s5 + $0xa64] sm:$0xf0]  ;;  %v18238_v58 = vor.u32 %v19977_v61, %v18237_v18  ;;  %v18147_v7 = vld [vmem:[%s28148_s5 + $0x9bc] sm:$0xf0]  ;;  %v19967_v36 = vld [vmem:[%s28148_s5 + $0xa1c] sm:$0xf] }
 0x587   : > { %v18150_v40 = vor.u32 %v19952_v52, %v18147_v7  ;;  %v19960_v18 = vld [vmem:[%s28148_s5 + $0x9e4] sm:$0xf]  ;;  %v18183_v61 = vld [vmem:[%s28148_s5 + $0x9fc] sm:$0xf0]  ;;  %v18351_v21 = vld [vmem:[%s28148_s5 + $0xb4c] sm:$0xf0] }
 0x588   : > { %11579 = vmatpush.bf16.msrb.mxu3 %v17146_v54  ;;  %v9031_v15 = vadd.f32 %v9030_v43, %v9017_v28  ;;  %v18234_v54 = vor.u32 %v19973_v57, %v18231_v17  ;;  %v17458_v28 = vor.u32 %v19778_v47, %v17455_v29  ;;  %v19956_v43 = vld [vmem:[%s28148_s5 + $0x9c0] sm:$0xf0]  ;;  %v18119_v57 = vld [vmem:[%s28148_s5 + $0x984] sm:$0xf0]  ;;  %v19946_v47 = vld [vmem:[%s28148_s5 + $0x974] sm:$0xf] }
 0x589   : > { %11670 = vmatpush.bf16.msra.mxu0 %v17346_v55  ;;  %v19708_v55 = vld [vmem:[%s28148_s5 + $0x204] sm:$0xf]  ;;  %v18127_v29 = vld [vmem:[%s28148_s5 + $0x98c] sm:$0xf0]  ;;  %v18035_v7 = vld [vmem:[%s28148_s5 + $0x8dc] sm:$0xf0] }
 0x58a   : > { %11618 = vmatpush.bf16.msrb.mxu1 %v17902_v25  ;;  %v9046_v9 = vmax.f32 %v9031_v15, 0.0  ;;  %v19966_v25 = vld [vmem:[%s28148_s5 + $0xa14] sm:$0xf]  ;;  %v17178_v10 = vor.u32 %v19708_v55, %v17175_v16  ;;  %v19764_v55 = vld [vmem:[%s28148_s5 + $0x3c4] sm:$0xf] }
 0x58b   : > { %v18206_v2 = vor.u32 %v19966_v25, %v18203_v39  ;;  %v19938_v16 = vld [vmem:[%s28148_s5 + $0x934] sm:$0xf]  ;;  %v18091_v25 = vld [vmem:[%s28148_s5 + $0x94c] sm:$0xf0]  ;;  %v19924_v52 = vld [vmem:[%s28148_s5 + $0x8c4] sm:$0xf] }
 0x58c   : > { %v26500_v30 = vpack.c.bf16 %v9046_v9, %v9039_v5  ;;  %v18125_v5 = vld [vmem:[%s28148_s5 + $0x970] sm:$0xf]  ;;  %v17430_v9 = vor.u32 %v19771_v48, %v17427_v33  ;;  %v18038_v48 = vor.u32 %v19924_v52, %v18035_v7 }
 0x58d   : > { %11671 = vmatpush.bf16.msra.mxu0 %v17318_v23  ;;  %v19970_v23 = vld [vmem:[%s28148_s5 + $0xa30] sm:$0xf0] }
 0x58e   : > { %11619 = vmatpush.bf16.msrb.mxu1 %v17874_v42  ;;  %18367 = vmatmul.msk.bf16.vlgmr.msra.gmra.mxu2 %vm11358_vm0, %v26500_v30  ;;  %v19785_v42 = vld [vmem:[%s28148_s5 + $0x46c] sm:$0xf]  ;;  %v18210_v44 = vor.u32 %v19970_v23, %v18209_v6  ;;  %v18097_v6 = vld [vmem:[%s28148_s5 + $0x938] sm:$0xf] }
 0x58f   : > { %11530 = vmatpush.bf16.msra.mxu2 %v18234_v54  ;;  %18368 = vmatmul.msk.bf16.vlgmr.msra.gmra.mxu3 %vm11358_vm0, %v26500_v30  ;;  %v17486_v62 = vor.u32 %v19785_v42, %v17483_v59  ;;  %v18122_v54 = vor.u32 %v19945_v35, %v18119_v57  ;;  %v18155_v42 = vld [vmem:[%s28148_s5 + $0x9c4] sm:$0xf0]  ;;  %v18094_v59 = vor.u32 %v19938_v16, %v18091_v25  ;;  %v17791_v35 = vld [vmem:[%s28148_s5 + $0x6ec] sm:$0xf0]  ;;  %v19855_v25 = vld [vmem:[%s28148_s5 + $0x69c] sm:$0xf] }
 0x590   : > { %18369 = vmatmul.msk.bf16.vlgmr.msrb.gmra.mxu0 %vm11358_vm0, %v26500_v30  ;;  %11628 = vmatpush.bf16.msra.mxu3 %v18238_v58 }
 0x591   : > { %11672 = vmatpush.bf16.msra.mxu0 %v17290_v8  ;;  %v9472_v8 = vperm.slane %v26523_v45, 0 }
 0x592   : > { %11620 = vmatpush.bf16.msrb.mxu1 %v17846_v49  ;;  %v19963_v49 = vld [vmem:[%s28148_s5 + $0x9f8] sm:$0xf0] }
 0x593   : > { %11531 = vmatpush.bf16.msra.mxu2 %v18206_v2  ;;  %v18182_v50 = vor.u32 %v19963_v49, %v18181_v12  ;;  %v19942_v2 = vld [vmem:[%s28148_s5 + $0x950] sm:$0xf0]  ;;  %v18158_v12 = vor.u32 %v19953_v46, %v18155_v42  ;;  %v18069_v49 = vld [vmem:[%s28148_s5 + $0x900] sm:$0xf]  ;;  %v19851_v46 = vld [vmem:[%s28148_s5 + $0x678] sm:$0xf0] }
 0x594   : > { %11629 = vmatpush.bf16.msra.mxu3 %v18210_v44  ;;  %v18063_v44 = vld [vmem:[%s28148_s5 + $0x914] sm:$0xf0] }
 0x595   : > { %11673 = vmatpush.bf16.msra.mxu0 %v17262_v11  ;;  %v11371_v11 = vpop.f32.mrf.mxu0  ;;  %v17349_v42 = vld [vmem:[%s28148_s5 + $0x358] sm:$0xf] }
 0x596   : > { %11621 = vmatpush.bf16.msrb.mxu1 %v17818_v63  ;;  %v11372_v27 = vadd.f32 %v11371_v11, %v9472_v8  ;;  %v18211_v63 = vld [vmem:[%s28148_s5 + $0xa34] sm:$0xf0]  ;;  %v11385_v3 = vpop.f32.mrf.mxu1  ;;  %v18066_v11 = vor.u32 %v19931_v22, %v18063_v44  ;;  %v18043_v22 = vld [vmem:[%s28148_s5 + $0x8e4] sm:$0xf0]  ;;  %v19848_v44 = vld [vmem:[%s28148_s5 + $0x664] sm:$0xf] }
 0x597   : > { %11532 = vmatpush.bf16.msra.mxu2 %v18178_v26  ;;  %v18214_v15 = vor.u32 %v19967_v36, %v18211_v63  ;;  %v19935_v26 = vld [vmem:[%s28148_s5 + $0x918] sm:$0xf0]  ;;  %v18130_v63 = vor.u32 %v19946_v47, %v18127_v29  ;;  %v17705_v29 = vld [vmem:[%s28148_s5 + $0x628] sm:$0xf] }
 0x598   : > { %11630 = vmatpush.bf16.msra.mxu3 %v18182_v50  ;;  %v18323_v50 = vld [vmem:[%s28148_s5 + $0xb14] sm:$0xf0]  ;;  %v18070_v36 = vor.u32 %v19935_v26, %v18069_v49 }
 0x599   : > { %11674 = vmatpush.bf16.msra.mxu0 %v17234_v24  ;;  %11622 = vmatmul.bf16.vlgmr.msrb.gmra.mxu1 %v25983_v4  ;;  %v11386_v24 = vadd.f32 %v11385_v3, %v11372_v27  ;;  %v19995_v27 = vld [vmem:[%s28148_s5 + $0xafc] sm:$0xf]  ;;  %v18041_v3 = vld [vmem:[%s28148_s5 + $0x8c8] sm:$0xf] }
 0x59a   : > { %11684 = vmatpush.bf16.msra.mxu1 %v17570_v38  ;;  %v18153_v38 = vld [vmem:[%s28148_s5 + $0x9a8] sm:$0xf]  ;;  %v18326_v33 = vor.u32 %v19995_v27, %v18323_v50  ;;  %v19841_v50 = vld [vmem:[%s28148_s5 + $0x62c] sm:$0xf] }
 0x59b   : > { %v18154_v17 = vor.u32 %v19956_v43, %v18153_v38  ;;  %11533 = vmatpush.bf16.msra.mxu2 %v18150_v40  ;;  %v19865_v38 = vld [vmem:[%s28148_s5 + $0x6e8] sm:$0xf0]  ;;  %v19928_v43 = vld [vmem:[%s28148_s5 + $0x8e0] sm:$0xf0]  ;;  %v18099_v40 = vld [vmem:[%s28148_s5 + $0x954] sm:$0xf0] }
 0x59d   : > { %11675 = vmatpush.bf16.msra.mxu0 %v17206_v20  ;;  %v11399_v20 = vpop.f32.mrf.mxu2  ;;  %11631 = vmatpush.bf16.msra.mxu3 %v18154_v17  ;;  %v19988_v17 = vld [vmem:[%s28148_s5 + $0xac4] sm:$0xf] }
 0x59e   : > { %11685 = vmatpush.bf16.msra.mxu1 %v17542_v51  ;;  %v19949_v51 = vld [vmem:[%s28148_s5 + $0x988] sm:$0xf0]  ;;  %v11400_v60 = vadd.f32 %v11399_v20, %v11386_v24  ;;  %v11413_v39 = vpop.f32.mrf.mxu3  ;;  %11482 = vmatmul.bf16.vlgmr.msrb.gmra.mxu2 %v25809_v41  ;;  %v19939_v24 = vld [vmem:[%s28148_s5 + $0x93c] sm:$0xf]  ;;  %v19858_v20 = vld [vmem:[%s28148_s5 + $0x6b0] sm:$0xf0] }
 0x59f   : > { %v18126_v58 = vor.u32 %v19949_v51, %v18125_v5  ;;  %11534 = vmatpush.bf16.msra.mxu2 %v18122_v54  ;;  %11580 = vmatmul.bf16.vlgmr.msrb.gmra.mxu3 %v25809_v41  ;;  %v18295_v5 = vld [vmem:[%s28148_s5 + $0xadc] sm:$0xf0]  ;;  %v18042_v51 = vor.u32 %v19928_v43, %v18041_v3  ;;  %v26719_v54 = vpop.f32.mrf.mxu1 }
 0x5a0   : > { %v26625_v23 = vadd.f32 %v11413_v39, %v11400_v60  ;;  %v18071_v60 = vld [vmem:[%s28148_s5 + $0x91c] sm:$0xf0]  ;;  %v18298_v16 = vor.u32 %v19988_v17, %v18295_v5  ;;  %v17763_v39 = vld [vmem:[%s28148_s5 + $0x6b4] sm:$0xf0]  ;;  %v19740_v17 = vld [vmem:[%s28148_s5 + $0x300] sm:$0xf0] }
 0x5a1   : > { %11676 = vmatpush.bf16.msra.mxu0 %v17178_v10  ;;  %v17402_v10 = vor.u32 %v19764_v55, %v17399_v31  ;;  %11632 = vmatpush.bf16.msra.mxu3 %v18126_v58  ;;  %v19932_v31 = vld [vmem:[%s28148_s5 + $0x904] sm:$0xf]  ;;  %v17769_v3 = vld [vmem:[%s28148_s5 + $0x6a0] sm:$0xf]  ;;  %v17679_v5 = vld [vmem:[%s28148_s5 + $0x60c] sm:$0xf0] }
 0x5a2   : > { %11686 = vmatpush.bf16.msra.mxu1 %v17514_v1  ;;  %v18186_v1 = vor.u32 %v19960_v18, %v18183_v61  ;;  %v18102_v18 = vor.u32 %v19939_v24, %v18099_v40  ;;  %v17761_v61 = vld [vmem:[%s28148_s5 + $0x698] sm:$0xf]  ;;  %v17677_v40 = vld [vmem:[%s28148_s5 + $0x5f0] sm:$0xf] }
 0x5a3   : > { %11535 = vmatpush.bf16.msra.mxu2 %v18094_v59  ;;  %v17762_v58 = vor.u32 %v19858_v20, %v17761_v61  ;;  %v19754_v59 = vld [vmem:[%s28148_s5 + $0x370] sm:$0xf0] }
 0x5a5   : > { %11677 = vmatpush.bf16.msra.mxu0 %v17150_v32  ;;  %v17374_v32 = vor.u32 %v19757_v34, %v17371_v14  ;;  %v17766_v34 = vor.u32 %v19855_v25, %v17763_v39  ;;  %v19925_v14 = vld [vmem:[%s28148_s5 + $0x8cc] sm:$0xf]  ;;  %v19827_v25 = vld [vmem:[%s28148_s5 + $0x5bc] sm:$0xf]  ;;  %v17265_v39 = vld [vmem:[%s28148_s5 + $0x2b0] sm:$0xf] }
 0x5a6   : > { %11687 = vmatpush.bf16.msra.mxu1 %v17486_v62  ;;  %v18098_v62 = vor.u32 %v19942_v2, %v18097_v6  ;;  %v18267_v6 = vld [vmem:[%s28148_s5 + $0xaa4] sm:$0xf0]  ;;  %v18074_v2 = vor.u32 %v19932_v31, %v18071_v60  ;;  %v18046_v47 = vor.u32 %v19925_v14, %v18043_v22  ;;  %v19830_v31 = vld [vmem:[%s28148_s5 + $0x5d0] sm:$0xf0]  ;;  %v19820_v22 = vld [vmem:[%s28148_s5 + $0x584] sm:$0xf] }
 0x5a7   : > { %11536 = vmatpush.bf16.msra.mxu2 %v18066_v11  ;;  %v19844_v11 = vld [vmem:[%s28148_s5 + $0x640] sm:$0xf0] }
 0x5a8   : > { %11678 = vmatmul.bf16.vlgmr.msra.gmra.mxu0 %v25809_v41  ;;  %11633 = vmatpush.bf16.msra.mxu3 %v18098_v62  ;;  %v17797_v62 = vld [vmem:[%s28148_s5 + $0x6d8] sm:$0xf]  ;;  %v17706_v43 = vor.u32 %v19844_v11, %v17705_v29  ;;  %v19813_v29 = vld [vmem:[%s28148_s5 + $0x54c] sm:$0xf]  ;;  %v17209_v11 = vld [vmem:[%s28148_s5 + $0x240] sm:$0xf] }
 0x5a9   : > { %11726 = vmatpush.bf16.msrb.mxu0 %v18242_v13  ;;  %v18354_v13 = vor.u32 %v20002_v0, %v18351_v21  ;;  %v17735_v21 = vld [vmem:[%s28148_s5 + $0x67c] sm:$0xf0] }
 0x5aa   : > { %11688 = vmatpush.bf16.msra.mxu1 %v17458_v28  ;;  %v17789_v28 = vld [vmem:[%s28148_s5 + $0x6d0] sm:$0xf]  ;;  %v17738_v52 = vor.u32 %v19848_v44, %v17735_v21  ;;  %v17237_v44 = vld [vmem:[%s28148_s5 + $0x278] sm:$0xf]  ;;  %v17623_v21 = vld [vmem:[%s28148_s5 + $0x59c] sm:$0xf0] }
 0x5ab   : > { %v17790_v57 = vor.u32 %v19865_v38, %v17789_v28  ;;  %11537 = vmatpush.bf16.msra.mxu2 %v18038_v48  ;;  %v19859_v28 = vld [vmem:[%s28148_s5 + $0x6b8] sm:$0xf0]  ;;  %v19837_v48 = vld [vmem:[%s28148_s5 + $0x608] sm:$0xf0] }
 0x5ac   : > { %11634 = vmatpush.bf16.msra.mxu3 %v18070_v36  ;;  %v17321_v36 = vld [vmem:[%s28148_s5 + $0x320] sm:$0xf]  ;;  %v17678_v61 = vor.u32 %v19837_v48, %v17677_v40 }
 0x5ad   : > { %11727 = vmatpush.bf16.msrb.mxu0 %v18214_v15  ;;  %v19862_v15 = vld [vmem:[%s28148_s5 + $0x6d4] sm:$0xf] }
 0x5ae   : > { %11689 = vmatpush.bf16.msra.mxu1 %v17430_v9  ;;  %v26711_v9 = vpop.f32.mrf.mxu0  ;;  %v17794_v55 = vor.u32 %v19862_v15, %v17791_v35  ;;  %11538 = vmatmul.bf16.vlgmr.msra.gmra.mxu2 %v25985_v53  ;;  %v17770_v15 = vor.u32 %v19859_v28, %v17769_v3  ;;  %v19834_v35 = vld [vmem:[%s28148_s5 + $0x5f4] sm:$0xf]  ;;  %v17125_v28 = vld [vmem:[%s28148_s5 + $0x198] sm:$0xf] }
 0x5af   : > { %11600 = vmatpush.bf16.msrb.mxu2 %v17790_v57  ;;  %v17293_v57 = vld [vmem:[%s28148_s5 + $0x2e8] sm:$0xf]  ;;  %v17682_v60 = vor.u32 %v19834_v35, %v17679_v5  ;;  %v19712_v35 = vld [vmem:[%s28148_s5 + $0x220] sm:$0xf0] }
 0x5b0   : > { %11635 = vmatpush.bf16.msra.mxu3 %v18042_v51  ;;  %v17741_v51 = vld [vmem:[%s28148_s5 + $0x668] sm:$0xf]  ;;  %v17294_v20 = vor.u32 %v19740_v17, %v17293_v57  ;;  %v19824_v5 = vld [vmem:[%s28148_s5 + $0x5a0] sm:$0xf0] }
 0x5b1   : > { %11728 = vmatpush.bf16.msrb.mxu0 %v18186_v1  ;;  %v19981_v1 = vld [vmem:[%s28148_s5 + $0xa8c] sm:$0xf]  ;;  %v17629_v57 = vld [vmem:[%s28148_s5 + $0x588] sm:$0xf] }
 0x5b2   : > { %11690 = vmatpush.bf16.msra.mxu1 %v17402_v10  ;;  %v17733_v10 = vld [vmem:[%s28148_s5 + $0x660] sm:$0xf]  ;;  %v18270_v0 = vor.u32 %v19981_v1, %v18267_v6  ;;  %v17651_v1 = vld [vmem:[%s28148_s5 + $0x5d4] sm:$0xf0]  ;;  %v17713_v6 = vld [vmem:[%s28148_s5 + $0x630] sm:$0xf] }
 0x5b3   : > { %11636 = vmatmul.bf16.vlgmr.msra.gmra.mxu3 %v25985_v53  ;;  %11601 = vmatpush.bf16.msrb.mxu2 %v17762_v58  ;;  %v17734_v49 = vor.u32 %v19851_v46, %v17733_v10  ;;  %v19733_v58 = vld [vmem:[%s28148_s5 + $0x2c8] sm:$0xf0] }
 0x5b4   : > { %11698 = vmatpush.bf16.msrb.mxu3 %v17794_v55  ;;  %v17649_v55 = vld [vmem:[%s28148_s5 + $0x5b8] sm:$0xf]  ;;  %v19845_v10 = vld [vmem:[%s28148_s5 + $0x648] sm:$0xf0]  ;;  %v17266_v46 = vor.u32 %v19733_v58, %v17265_v39  ;;  %v17601_v39 = vld [vmem:[%s28148_s5 + $0x550] sm:$0xf] }
 0x5b5   : > { %11729 = vmatpush.bf16.msrb.mxu0 %v18158_v12  ;;  %v19866_v12 = vld [vmem:[%s28148_s5 + $0x6f0] sm:$0xf0]  ;;  %v17714_v14 = vor.u32 %v19845_v10, %v17713_v6  ;;  %v19817_v58 = vld [vmem:[%s28148_s5 + $0x568] sm:$0xf0]  ;;  %v19680_v6 = vld [vmem:[%s28148_s5 + $0x124] sm:$0xf] }
 0x5b6   : > { %11691 = vmatpush.bf16.msra.mxu1 %v17374_v32  ;;  %v17350_v32 = vor.u32 %v19754_v59, %v17349_v42  ;;  %v11427_v26 = vpop.f32.mrf.mxu0  ;;  %v17798_v7 = vor.u32 %v19866_v12, %v17797_v62  ;;  %v11441_v27 = vpop.f32.mrf.mxu1  ;;  %v17621_v42 = vld [vmem:[%s28148_s5 + $0x580] sm:$0xf]  ;;  %v19823_v59 = vld [vmem:[%s28148_s5 + $0x598] sm:$0xf0]  ;;  %v17685_v62 = vld [vmem:[%s28148_s5 + $0x5f8] sm:$0xf] }
 0x5b7   : > { %11602 = vmatpush.bf16.msrb.mxu2 %v17734_v49  ;;  %v19838_v12 = vld [vmem:[%s28148_s5 + $0x610] sm:$0xf0]  ;;  %v17622_v49 = vor.u32 %v19823_v59, %v17621_v42  ;;  %v17063_v10 = vld [vmem:[%s28148_s5 + $0x13c] sm:$0xf0]  ;;  %v18245_v42 = vld [vmem:[%s28148_s5 + $0xa58] sm:$0xf] }
 0x5b8   : > { %11699 = vmatpush.bf16.msrb.mxu3 %v17766_v34  ;;  %v17654_v34 = vor.u32 %v19827_v25, %v17651_v1  ;;  %v19705_v25 = vld [vmem:[%s28148_s5 + $0x1e8] sm:$0xf0]  ;;  %v19978_v59 = vld [vmem:[%s28148_s5 + $0xa70] sm:$0xf0] }
 0x5b9   : > { %11730 = vmatpush.bf16.msrb.mxu0 %v18130_v63  ;;  %11692 = vmatmul.bf16.vlgmr.msra.gmra.mxu1 %v25813_v56  ;;  %v19747_v63 = vld [vmem:[%s28148_s5 + $0x338] sm:$0xf0] }
 0x5ba   : > { %11744 = vmatpush.bf16.msrb.mxu1 %v18354_v13  ;;  %v11428_v13 = vadd.f32 %v11427_v26, %v26625_v23  ;;  %v17707_v23 = vld [vmem:[%s28148_s5 + $0x644] sm:$0xf0]  ;;  %v17322_v24 = vor.u32 %v19747_v63, %v17321_v36  ;;  %v17657_v63 = vld [vmem:[%s28148_s5 + $0x5c0] sm:$0xf] }
 0x5bb   : > { %11603 = vmatpush.bf16.msrb.mxu2 %v17706_v43  ;;  %v17595_v36 = vld [vmem:[%s28148_s5 + $0x564] sm:$0xf0]  ;;  %v19698_v43 = vld [vmem:[%s28148_s5 + $0x1b0] sm:$0xf0] }
 0x5bc   : > { %v26797_v38 = vadd.f32 %v11441_v27, %v11428_v13  ;;  %11700 = vmatpush.bf16.msrb.mxu3 %v17738_v52  ;;  %v17626_v13 = vor.u32 %v19820_v22, %v17623_v21  ;;  %v17686_v52 = vor.u32 %v19838_v12, %v17685_v62  ;;  %v19694_v27 = vld [vmem:[%s28148_s5 + $0x194] sm:$0xf]  ;;  %v17598_v48 = vor.u32 %v19813_v29, %v17595_v36  ;;  %v17127_v22 = vld [vmem:[%s28148_s5 + $0x1b4] sm:$0xf0]  ;;  %v19673_v12 = vld [vmem:[%s28148_s5 + $0xec] sm:$0xf] }
 0x5bd   : > { %11731 = vmatpush.bf16.msrb.mxu0 %v18102_v18  ;;  %v19852_v18 = vld [vmem:[%s28148_s5 + $0x680] sm:$0xf0]  ;;  %v17126_v17 = vor.u32 %v19698_v43, %v17125_v28  ;;  %v18246_v62 = vor.u32 %v19978_v59, %v18245_v42  ;;  %v18217_v29 = vld [vmem:[%s28148_s5 + $0xa20] sm:$0xf]  ;;  %v19666_v36 = vld [vmem:[%s28148_s5 + $0xb4] sm:$0xf] }
 0x5be   : > { %11745 = vmatpush.bf16.msrb.mxu1 %v18326_v33  ;;  %v17710_v33 = vor.u32 %v19841_v50, %v17707_v23  ;;  %v17119_v50 = vld [vmem:[%s28148_s5 + $0x1ac] sm:$0xf0]  ;;  %v19831_v23 = vld [vmem:[%s28148_s5 + $0x5d8] sm:$0xf0]  ;;  %v19670_v28 = vld [vmem:[%s28148_s5 + $0xd0] sm:$0xf0] }
 0x5bf   : > { %11604 = vmatpush.bf16.msrb.mxu2 %v17678_v61  ;;  %v17122_v40 = vor.u32 %v19694_v27, %v17119_v50  ;;  %v17097_v61 = vld [vmem:[%s28148_s5 + $0x160] sm:$0xf]  ;;  %v18189_v43 = vld [vmem:[%s28148_s5 + $0x9e8] sm:$0xf]  ;;  %v19667_v42 = vld [vmem:[%s28148_s5 + $0xbc] sm:$0xf] }
 0x5c0   : > { %11701 = vmatpush.bf16.msrb.mxu3 %v17710_v33  ;;  %v17658_v33 = vor.u32 %v19831_v23, %v17657_v63  ;;  %v17007_v63 = vld [vmem:[%s28148_s5 + $0xcc] sm:$0xf0]  ;;  %v17013_v23 = vld [vmem:[%s28148_s5 + $0xb8] sm:$0xf] }
 0x5c1   : > { %11732 = vmatpush.bf16.msrb.mxu0 %v18074_v2  ;;  %v17650_v2 = vor.u32 %v19830_v31, %v17649_v55  ;;  %v17153_v31 = vld [vmem:[%s28148_s5 + $0x1d0] sm:$0xf]  ;;  %v17015_v59 = vld [vmem:[%s28148_s5 + $0xd4] sm:$0xf0] }
 0x5c2   : > { %11746 = vmatpush.bf16.msrb.mxu1 %v18298_v16  ;;  %v17742_v16 = vor.u32 %v19852_v18, %v17741_v51  ;;  %v19687_v51 = vld [vmem:[%s28148_s5 + $0x15c] sm:$0xf]  ;;  %v17091_v18 = vld [vmem:[%s28148_s5 + $0x174] sm:$0xf0] }
 0x5c3   : > { %11605 = vmatpush.bf16.msrb.mxu2 %v17650_v2  ;;  %v17069_v2 = vld [vmem:[%s28148_s5 + $0x128] sm:$0xf] }
 0x5c4   : > { %11702 = vmatpush.bf16.msrb.mxu3 %v17682_v60  ;;  %v17630_v60 = vor.u32 %v19824_v5, %v17629_v57  ;;  %v19659_v57 = vld [vmem:[%s28148_s5 + $0x7c] sm:$0xf]  ;;  %v16985_v5 = vld [vmem:[%s28148_s5 + $0x80] sm:$0xf] }
 0x5c5   : > { %11733 = vmatpush.bf16.msrb.mxu0 %v18046_v47  ;;  %v19816_v47 = vld [vmem:[%s28148_s5 + $0x560] sm:$0xf0] }
 0x5c6   : > { %11747 = vmatpush.bf16.msrb.mxu1 %v18270_v0  ;;  %v19726_v0 = vld [vmem:[%s28148_s5 + $0x290] sm:$0xf0] }
 0x5c7   : > { %v17238_v26 = vor.u32 %v19726_v0, %v17237_v44  ;;  %11606 = vmatpush.bf16.msrb.mxu2 %v17622_v49  ;;  %v17602_v44 = vor.u32 %v19817_v58, %v17601_v39  ;;  %v17066_v0 = vor.u32 %v19680_v6, %v17063_v10  ;;  %v17035_v49 = vld [vmem:[%s28148_s5 + $0x104] sm:$0xf0]  ;;  %v19652_v39 = vld [vmem:[%s28148_s5 + $0x44] sm:$0xf]  ;;  %v16951_v58 = vld [vmem:[%s28148_s5 + $0x5c] sm:$0xf0] }
 0x5c8   : > { %11734 = vmatmul.bf16.vlgmr.msrb.gmra.mxu0 %v25985_v53  ;;  %11703 = vmatpush.bf16.msrb.mxu3 %v17654_v34  ;;  %v17154_v34 = vor.u32 %v19705_v25, %v17153_v31  ;;  %v17043_v31 = vld [vmem:[%s28148_s5 + $0x10c] sm:$0xf0]  ;;  %v19656_v10 = vld [vmem:[%s28148_s5 + $0x60] sm:$0xf0] }
 0x5c9   : > { %11796 = vmatpush.bf16.msra.mxu0 %v17798_v7  ;;  %18370 = vmatmul.msk.bf16.vlgmr.msrb.gmra.mxu1 %vm11358_vm0, %v26500_v30  ;;  %v19719_v7 = vld [vmem:[%s28148_s5 + $0x258] sm:$0xf0] }
 0x5ca   : > { %11768 = vmatpush.bf16.msra.mxu1 %v17350_v32  ;;  %v17593_v32 = vld [vmem:[%s28148_s5 + $0x548] sm:$0xf] }
 0x5cb   : > { %v17594_v3 = vor.u32 %v19816_v47, %v17593_v32  ;;  %v17041_v32 = vld [vmem:[%s28148_s5 + $0xf0] sm:$0xf]  ;;  %v19677_v47 = vld [vmem:[%s28148_s5 + $0x108] sm:$0xf0] }
 0x5cc   : > { %11704 = vmatpush.bf16.msrb.mxu3 %v17626_v13  ;;  %v19688_v13 = vld [vmem:[%s28148_s5 + $0x164] sm:$0xf]  ;;  %v17042_v27 = vor.u32 %v19677_v47, %v17041_v32  ;;  %v19943_v32 = vld [vmem:[%s28148_s5 + $0x958] sm:$0xf0]  ;;  %v16987_v47 = vld [vmem:[%s28148_s5 + $0x9c] sm:$0xf0] }
 0x5cd   : > { %11797 = vmatpush.bf16.msra.mxu0 %v17770_v15  ;;  %v17181_v15 = vld [vmem:[%s28148_s5 + $0x208] sm:$0xf]  ;;  %11607 = vmatpush.bf16.msrb.mxu2 %v17594_v3 }
 0x5ce   : > { %11769 = vmatpush.bf16.msra.mxu1 %v17322_v24  ;;  %v17210_v24 = vor.u32 %v19719_v7, %v17209_v11  ;;  %v17182_v55 = vor.u32 %v19712_v35, %v17181_v15  ;;  %v19971_v11 = vld [vmem:[%s28148_s5 + $0xa38] sm:$0xf0]  ;;  %v17038_v7 = vor.u32 %v19673_v12, %v17035_v49  ;;  %v17014_v15 = vor.u32 %v19670_v28, %v17013_v23  ;;  %v18105_v49 = vld [vmem:[%s28148_s5 + $0x940] sm:$0xf]  ;;  %v18077_v23 = vld [vmem:[%s28148_s5 + $0x908] sm:$0xf] }
 0x5cf   : > { %v18218_v50 = vor.u32 %v19971_v11, %v18217_v29  ;;  %v17018_v12 = vor.u32 %v19667_v42, %v17015_v59  ;;  %v19918_v29 = vld [vmem:[%s28148_s5 + $0x894] sm:$0xf]  ;;  %v18015_v11 = vld [vmem:[%s28148_s5 + $0x8ac] sm:$0xf0]  ;;  %v19653_v28 = vld [vmem:[%s28148_s5 + $0x4c] sm:$0xf] }
 0x5d0   : > { %11705 = vmatpush.bf16.msrb.mxu3 %v17598_v48  ;;  %11608 = vmatmul.bf16.vlgmr.msrb.gmra.mxu2 %v25815_v37  ;;  %v17071_v48 = vld [vmem:[%s28148_s5 + $0x144] sm:$0xf0]  ;;  %v19897_v59 = vld [vmem:[%s28148_s5 + $0x7ec] sm:$0xf] }
 0x5d1   : > { %11798 = vmatpush.bf16.msra.mxu0 %v17742_v16  ;;  %11656 = vmatpush.bf16.msra.mxu2 %v17122_v40  ;;  %v17094_v16 = vor.u32 %v19687_v51, %v17091_v18  ;;  %v19681_v40 = vld [vmem:[%s28148_s5 + $0x12c] sm:$0xf]  ;;  %v19663_v18 = vld [vmem:[%s28148_s5 + $0x98] sm:$0xf0] }
 0x5d2   : > { %11770 = vmatpush.bf16.msra.mxu1 %v17294_v20  ;;  %v19691_v20 = vld [vmem:[%s28148_s5 + $0x178] sm:$0xf0]  ;;  %v17074_v51 = vor.u32 %v19681_v40, %v17071_v48  ;;  %v17987_v48 = vld [vmem:[%s28148_s5 + $0x874] sm:$0xf0] }
 0x5d3   : > { %v17098_v1 = vor.u32 %v19691_v20, %v17097_v61  ;;  %11706 = vmatmul.bf16.vlgmr.msrb.gmra.mxu3 %v25815_v37  ;;  %v18161_v61 = vld [vmem:[%s28148_s5 + $0x9b0] sm:$0xf]  ;;  %v19957_v20 = vld [vmem:[%s28148_s5 + $0x9c8] sm:$0xf0]  ;;  %v19911_v40 = vld [vmem:[%s28148_s5 + $0x85c] sm:$0xf] }
 0x5d4   : > { %11754 = vmatpush.bf16.msra.mxu3 %v17126_v17  ;;  %v16979_v17 = vld [vmem:[%s28148_s5 + $0x94] sm:$0xf0]  ;;  %v18162_v25 = vor.u32 %v19957_v20, %v18161_v61  ;;  %v16931_v61 = vld [vmem:[%s28148_s5 + $0x2c] sm:$0xf0] }
 0x5d5   : > { %11799 = vmatpush.bf16.msra.mxu0 %v17714_v14  ;;  %v19695_v14 = vld [vmem:[%s28148_s5 + $0x19c] sm:$0xf]  ;;  %11657 = vmatpush.bf16.msra.mxu2 %v17094_v16  ;;  %v16986_v16 = vor.u32 %v19663_v18, %v16985_v5  ;;  %v17990_v5 = vor.u32 %v19911_v40, %v17987_v48  ;;  %v19646_v18 = vld [vmem:[%s28148_s5 + $0x14] sm:$0xf] }
 0x5d6   : > { %11771 = vmatpush.bf16.msra.mxu1 %v17266_v46  ;;  %v19684_v46 = vld [vmem:[%s28148_s5 + $0x140] sm:$0xf0]  ;;  %v19887_v48 = vld [vmem:[%s28148_s5 + $0x798] sm:$0xf0] }
 0x5d7   : > { %v17070_v21 = vor.u32 %v19684_v46, %v17069_v2  ;;  %v18133_v2 = vld [vmem:[%s28148_s5 + $0x978] sm:$0xf]  ;;  %v19950_v46 = vld [vmem:[%s28148_s5 + $0x990] sm:$0xf0] }
 0x5d8   : > { %11755 = vmatpush.bf16.msra.mxu3 %v17098_v1  ;;  %v16957_v1 = vld [vmem:[%s28148_s5 + $0x48] sm:$0xf] }
 0x5d9   : > { %11800 = vmatpush.bf16.msra.mxu0 %v17686_v52  ;;  %v17099_v52 = vld [vmem:[%s28148_s5 + $0x17c] sm:$0xf0]  ;;  %11658 = vmatpush.bf16.msra.mxu2 %v17066_v0  ;;  %v16923_v0 = vld [vmem:[%s28148_s5 + $0x24] sm:$0xf0] }
 0x5da   : > { %11772 = vmatpush.bf16.msra.mxu1 %v17238_v26  ;;  %v17130_v26 = vor.u32 %v19695_v14, %v17127_v22  ;;  %v17102_v3 = vor.u32 %v19688_v13, %v17099_v52  ;;  %v19645_v14 = vld [vmem:[%s28148_s5 + $0xc] sm:$0xf]  ;;  %v16958_v22 = vor.u32 %v19656_v10, %v16957_v1  ;;  %v18021_v52 = vld [vmem:[%s28148_s5 + $0x898] sm:$0xf]  ;;  %v19919_v1 = vld [vmem:[%s28148_s5 + $0x89c] sm:$0xf]  ;;  %v16934_v10 = vor.u32 %v19646_v18, %v16931_v61 }
 0x5db   : > { %v16926_v13 = vor.u32 %v19645_v14, %v16923_v0  ;;  %v17937_v14 = vld [vmem:[%s28148_s5 + $0x7f0] sm:$0xf]  ;;  %v19856_v0 = vld [vmem:[%s28148_s5 + $0x6a4] sm:$0xf]  ;;  %v17847_v61 = vld [vmem:[%s28148_s5 + $0x75c] sm:$0xf0] }
 0x5dc   : > { %11756 = vmatpush.bf16.msra.mxu3 %v17070_v21  ;;  %v16929_v21 = vld [vmem:[%s28148_s5 + $0x10] sm:$0xf]  ;;  %v19876_v18 = vld [vmem:[%s28148_s5 + $0x744] sm:$0xf] }
 0x5dd   : > { %11801 = vmatpush.bf16.msra.mxu0 %v17658_v33  ;;  %11659 = vmatpush.bf16.msra.mxu2 %v17038_v7  ;;  %v17010_v33 = vor.u32 %v19666_v36, %v17007_v63  ;;  %v19922_v7 = vld [vmem:[%s28148_s5 + $0x8b0] sm:$0xf0]  ;;  %v18018_v63 = vor.u32 %v19918_v29, %v18015_v11  ;;  %v17903_v29 = vld [vmem:[%s28148_s5 + $0x7cc] sm:$0xf0]  ;;  %v17909_v11 = vld [vmem:[%s28148_s5 + $0x7b8] sm:$0xf] }
 0x5de   : > { %11773 = vmatpush.bf16.msra.mxu1 %v17210_v24  ;;  %v19964_v24 = vld [vmem:[%s28148_s5 + $0xa00] sm:$0xf0] }
 0x5df   : > { %v18190_v35 = vor.u32 %v19964_v24, %v18189_v43  ;;  %v18022_v43 = vor.u32 %v19922_v7, %v18021_v52  ;;  %v16959_v24 = vld [vmem:[%s28148_s5 + $0x64] sm:$0xf0]  ;;  %v19894_v52 = vld [vmem:[%s28148_s5 + $0x7d0] sm:$0xf0]  ;;  %v19849_v7 = vld [vmem:[%s28148_s5 + $0x66c] sm:$0xf] }
 0x5e0   : > { %11757 = vmatpush.bf16.msra.mxu3 %v17042_v27 }
 0x5e1   : > { %11802 = vmatpush.bf16.msra.mxu0 %v17630_v60  ;;  %11660 = vmatpush.bf16.msra.mxu2 %v17010_v33  ;;  %v16982_v60 = vor.u32 %v19659_v57, %v16979_v17  ;;  %v17993_v33 = vld [vmem:[%s28148_s5 + $0x860] sm:$0xf]  ;;  %v18049_v57 = vld [vmem:[%s28148_s5 + $0x8d0] sm:$0xf]  ;;  %v16962_v17 = vor.u32 %v19653_v28, %v16959_v24  ;;  %v19883_v28 = vld [vmem:[%s28148_s5 + $0x77c] sm:$0xf] }
 0x5e2   : > { %11774 = vmatpush.bf16.msra.mxu1 %v17182_v55  ;;  %v19674_v55 = vld [vmem:[%s28148_s5 + $0xf4] sm:$0xf]  ;;  %v17881_v24 = vld [vmem:[%s28148_s5 + $0x780] sm:$0xf] }
 0x5e3   : > { %v17046_v6 = vor.u32 %v19674_v55, %v17043_v31  ;;  %v19904_v55 = vld [vmem:[%s28148_s5 + $0x824] sm:$0xf]  ;;  %v17959_v31 = vld [vmem:[%s28148_s5 + $0x83c] sm:$0xf0] }
 0x5e4   : > { %11758 = vmatpush.bf16.msra.mxu3 %v17014_v15  ;;  %v19915_v15 = vld [vmem:[%s28148_s5 + $0x878] sm:$0xf0] }
 0x5e5   : > { %11803 = vmatpush.bf16.msra.mxu0 %v17602_v44  ;;  %11661 = vmatpush.bf16.msra.mxu2 %v16982_v60  ;;  %v18134_v44 = vor.u32 %v19950_v46, %v18133_v2  ;;  %v17994_v20 = vor.u32 %v19915_v15, %v17993_v33  ;;  %v17965_v60 = vld [vmem:[%s28148_s5 + $0x828] sm:$0xf]  ;;  %v17962_v2 = vor.u32 %v19904_v55, %v17959_v31  ;;  %v19842_v33 = vld [vmem:[%s28148_s5 + $0x634] sm:$0xf]  ;;  %v17715_v15 = vld [vmem:[%s28148_s5 + $0x64c] sm:$0xf0] }
 0x5e6   : > { %11775 = vmatpush.bf16.msra.mxu1 %v17154_v34  ;;  %v16954_v34 = vor.u32 %v19652_v39, %v16951_v58  ;;  %v17799_v39 = vld [vmem:[%s28148_s5 + $0x6f4] sm:$0xf0]  ;;  %v19880_v31 = vld [vmem:[%s28148_s5 + $0x760] sm:$0xf0] }
 0x5e8   : > { %11804 = vmatmul.bf16.vlgmr.msra.gmra.mxu0 %v25815_v37  ;;  %11759 = vmatpush.bf16.msra.mxu3 %v16986_v16  ;;  %v19908_v16 = vld [vmem:[%s28148_s5 + $0x840] sm:$0xf0] }
 0x5e9   : > { %11852 = vmatpush.bf16.msrb.mxu0 %v17130_v26  ;;  %11776 = vmatmul.bf16.vlgmr.msra.gmra.mxu1 %v25809_v41  ;;  %v19660_v26 = vld [vmem:[%s28148_s5 + $0x84] sm:$0xf]  ;;  %v17966_v46 = vor.u32 %v19908_v16, %v17965_v60  ;;  %v19835_v60 = vld [vmem:[%s28148_s5 + $0x5fc] sm:$0xf]  ;;  %v17687_v16 = vld [vmem:[%s28148_s5 + $0x614] sm:$0xf0] }
 0x5ea   : > { %11824 = vmatpush.bf16.msrb.mxu1 %v18246_v62  ;;  %v19649_v62 = vld [vmem:[%s28148_s5 + $0x28] sm:$0xf0]  ;;  %11662 = vmatpush.bf16.msra.mxu2 %v16954_v34  ;;  %v16990_v36 = vor.u32 %v19660_v26, %v16987_v47  ;;  %v17931_v34 = vld [vmem:[%s28148_s5 + $0x804] sm:$0xf0]  ;;  %v19890_v47 = vld [vmem:[%s28148_s5 + $0x7b4] sm:$0xf] }
 0x5eb   : > { %v16930_v27 = vor.u32 %v19649_v62, %v16929_v21  ;;  %v17771_v21 = vld [vmem:[%s28148_s5 + $0x6bc] sm:$0xf0]  ;;  %v19912_v62 = vld [vmem:[%s28148_s5 + $0x864] sm:$0xf] }
 0x5ec   : > { %11760 = vmatpush.bf16.msra.mxu3 %v16958_v22  ;;  %v17774_v26 = vor.u32 %v19856_v0, %v17771_v21  ;;  %v17883_v0 = vld [vmem:[%s28148_s5 + $0x79c] sm:$0xf0]  ;;  %v17573_v21 = vld [vmem:[%s28148_s5 + $0x518] sm:$0xf] }
 0x5ed   : > { %11853 = vmatpush.bf16.msrb.mxu0 %v17102_v3  ;;  %v19936_v3 = vld [vmem:[%s28148_s5 + $0x920] sm:$0xf0] }
 0x5ee   : > { %11825 = vmatpush.bf16.msrb.mxu1 %v18218_v50  ;;  %v18106_v50 = vor.u32 %v19943_v32, %v18105_v49  ;;  %11663 = vmatpush.bf16.msra.mxu2 %v16926_v13  ;;  %v17934_v49 = vor.u32 %v19897_v59, %v17931_v34  ;;  %v19873_v59 = vld [vmem:[%s28148_s5 + $0x728] sm:$0xf0] }
 0x5f0   : > { %11761 = vmatpush.bf16.msra.mxu3 %v16930_v27  ;;  %v17743_v27 = vld [vmem:[%s28148_s5 + $0x684] sm:$0xf0] }
 0x5f1   : > { %11854 = vmatpush.bf16.msrb.mxu0 %v17074_v51  ;;  %v19929_v51 = vld [vmem:[%s28148_s5 + $0x8e8] sm:$0xf0]  ;;  %11664 = vmatmul.bf16.vlgmr.msra.gmra.mxu2 %v25803_v19 }
 0x5f2   : > { %11826 = vmatpush.bf16.msrb.mxu1 %v18190_v35  ;;  %v18078_v35 = vor.u32 %v19936_v3, %v18077_v23  ;;  %11712 = vmatpush.bf16.msrb.mxu2 %v18018_v63  ;;  %v18050_v58 = vor.u32 %v19929_v51, %v18049_v57  ;;  %v17906_v63 = vor.u32 %v19890_v47, %v17903_v29  ;;  %v17939_v57 = vld [vmem:[%s28148_s5 + $0x80c] sm:$0xf0] }
 0x5f3   : > { %11762 = vmatmul.bf16.vlgmr.msra.gmra.mxu3 %v25803_v19  ;;  %v17910_v23 = vor.u32 %v19894_v52, %v17909_v11  ;;  %v17746_v3 = vor.u32 %v19849_v7, %v17743_v27  ;;  %v17718_v51 = vor.u32 %v19842_v33, %v17715_v15  ;;  %v17631_v52 = vld [vmem:[%s28148_s5 + $0x5a4] sm:$0xf0]  ;;  %v19877_v7 = vld [vmem:[%s28148_s5 + $0x74c] sm:$0xf]  ;;  %v17603_v33 = vld [vmem:[%s28148_s5 + $0x56c] sm:$0xf0] }
 0x5f4   : > { %11810 = vmatpush.bf16.msrb.mxu3 %v18022_v43  ;;  %v17875_v43 = vld [vmem:[%s28148_s5 + $0x794] sm:$0xf0]  ;;  %v19870_v15 = vld [vmem:[%s28148_s5 + $0x714] sm:$0xf] }
 0x5f5   : > { %11855 = vmatpush.bf16.msrb.mxu0 %v17046_v6  ;;  %v18023_v6 = vld [vmem:[%s28148_s5 + $0x8b4] sm:$0xf0] }
 0x5f6   : > { %11827 = vmatpush.bf16.msrb.mxu1 %v18162_v25  ;;  %v19863_v25 = vld [vmem:[%s28148_s5 + $0x6dc] sm:$0xf]  ;;  %11713 = vmatpush.bf16.msrb.mxu2 %v17990_v5  ;;  %v18026_v22 = vor.u32 %v19919_v1, %v18023_v6  ;;  %v17882_v5 = vor.u32 %v19887_v48, %v17881_v24  ;;  %v17850_v1 = vor.u32 %v19876_v18, %v17847_v61  ;;  %v19869_v6 = vld [vmem:[%s28148_s5 + $0x70c] sm:$0xf]  ;;  %v19814_v24 = vld [vmem:[%s28148_s5 + $0x554] sm:$0xf] }
 0x5f7   : > { %v17802_v42 = vor.u32 %v19863_v25, %v17799_v39  ;;  %v19891_v25 = vld [vmem:[%s28148_s5 + $0x7bc] sm:$0xf]  ;;  %v17911_v39 = vld [vmem:[%s28148_s5 + $0x7d4] sm:$0xf0]  ;;  %v17519_v18 = vld [vmem:[%s28148_s5 + $0x4c4] sm:$0xf0] }
 0x5f8   : > { %11811 = vmatpush.bf16.msrb.mxu3 %v17994_v20  ;;  %v17853_v20 = vld [vmem:[%s28148_s5 + $0x748] sm:$0xf]  ;;  %v17914_v34 = vor.u32 %v19891_v25, %v17911_v39  ;;  %v17133_v61 = vld [vmem:[%s28148_s5 + $0x1a0] sm:$0xf] }
 0x5f9   : > { %11856 = vmatpush.bf16.msrb.mxu0 %v17018_v12  ;;  %v17995_v12 = vld [vmem:[%s28148_s5 + $0x87c] sm:$0xf0] }
 0x5fa   : > { %11828 = vmatpush.bf16.msrb.mxu1 %v18134_v44  ;;  %v19901_v44 = vld [vmem:[%s28148_s5 + $0x808] sm:$0xf0]  ;;  %11714 = vmatpush.bf16.msrb.mxu2 %v17962_v2  ;;  %v17998_v13 = vor.u32 %v19912_v62, %v17995_v12  ;;  %v17690_v2 = vor.u32 %v19835_v60, %v17687_v16  ;;  %v19810_v62 = vld [vmem:[%s28148_s5 + $0x530] sm:$0xf0]  ;;  %v17581_v60 = vld [vmem:[%s28148_s5 + $0x520] sm:$0xf] }
 0x5fb   : > { %v17938_v32 = vor.u32 %v19901_v44, %v17937_v14  ;;  %v19828_v14 = vld [vmem:[%s28148_s5 + $0x5c4] sm:$0xf]  ;;  %v17574_v11 = vor.u32 %v19810_v62, %v17573_v21  ;;  %v19811_v16 = vld [vmem:[%s28148_s5 + $0x538] sm:$0xf0] }
 0x5fc   : > { %11812 = vmatpush.bf16.msrb.mxu3 %v17966_v46  ;;  %v17819_v46 = vld [vmem:[%s28148_s5 + $0x724] sm:$0xf0]  ;;  %v19884_v44 = vld [vmem:[%s28148_s5 + $0x784] sm:$0xf] }
 0x5fd   : > { %11857 = vmatpush.bf16.msrb.mxu0 %v16990_v36  ;;  %v17967_v36 = vld [vmem:[%s28148_s5 + $0x844] sm:$0xf0]  ;;  %v17822_v12 = vor.u32 %v19869_v6, %v17819_v46  ;;  %v17886_v29 = vor.u32 %v19884_v44, %v17883_v0  ;;  %v19786_v46 = vld [vmem:[%s28148_s5 + $0x474] sm:$0xf]  ;;  %v19804_v44 = vld [vmem:[%s28148_s5 + $0x500] sm:$0xf0] }
 0x5fe   : > { %11829 = vmatpush.bf16.msrb.mxu1 %v18106_v50  ;;  %v19905_v50 = vld [vmem:[%s28148_s5 + $0x82c] sm:$0xf]  ;;  %11715 = vmatpush.bf16.msrb.mxu2 %v17934_v49  ;;  %v19807_v49 = vld [vmem:[%s28148_s5 + $0x51c] sm:$0xf] }
 0x5ff   : > { %v17970_v40 = vor.u32 %v19905_v50, %v17967_v36  ;;  %v17855_v50 = vld [vmem:[%s28148_s5 + $0x764] sm:$0xf0]  ;;  %v17545_v36 = vld [vmem:[%s28148_s5 + $0x4e0] sm:$0xf] }
 0x600   : > { %11813 = vmatpush.bf16.msrb.mxu3 %v17938_v32  ;;  %v17575_v32 = vld [vmem:[%s28148_s5 + $0x534] sm:$0xf0] }
 0x601   : > { %11858 = vmatpush.bf16.msrb.mxu0 %v16962_v17  ;;  %v17878_v17 = vor.u32 %v19883_v28, %v17875_v43  ;;  %v17578_v27 = vor.u32 %v19807_v49, %v17575_v32  ;;  %v17547_v28 = vld [vmem:[%s28148_s5 + $0x4fc] sm:$0xf0]  ;;  %v17461_v49 = vld [vmem:[%s28148_s5 + $0x438] sm:$0xf]  ;;  %v19782_v32 = vld [vmem:[%s28148_s5 + $0x450] sm:$0xf0] }
 0x602   : > { %11830 = vmatpush.bf16.msrb.mxu1 %v18078_v35  ;;  %v19898_v35 = vld [vmem:[%s28148_s5 + $0x7f4] sm:$0xf]  ;;  %11716 = vmatpush.bf16.msrb.mxu2 %v17906_v63  ;;  %v19803_v63 = vld [vmem:[%s28148_s5 + $0x4f8] sm:$0xf0] }
 0x603   : > { %v17942_v55 = vor.u32 %v19898_v35, %v17939_v57  ;;  %v17546_v48 = vor.u32 %v19803_v63, %v17545_v36  ;;  %v17827_v35 = vld [vmem:[%s28148_s5 + $0x72c] sm:$0xf0]  ;;  %v17462_v36 = vor.u32 %v19782_v32, %v17461_v49  ;;  %v20006_v49 = vld [vmem:[%s28148_s5 + $0xb50] sm:$0xf0] }
 0x604   : > { %11814 = vmatpush.bf16.msrb.mxu3 %v17910_v23  ;;  %v17830_v25 = vor.u32 %v19870_v15, %v17827_v35  ;;  %v17497_v15 = vld [vmem:[%s28148_s5 + $0x478] sm:$0xf]  ;;  %v19790_v35 = vld [vmem:[%s28148_s5 + $0x490] sm:$0xf0] }
 0x605   : > { %11859 = vmatpush.bf16.msrb.mxu0 %v16934_v10  ;;  %v17854_v10 = vor.u32 %v19880_v31, %v17853_v20  ;;  %v19699_v20 = vld [vmem:[%s28148_s5 + $0x1b8] sm:$0xf0]  ;;  %v17606_v31 = vor.u32 %v19814_v24, %v17603_v33  ;;  %v19772_v24 = vld [vmem:[%s28148_s5 + $0x404] sm:$0xf]  ;;  %v19678_v33 = vld [vmem:[%s28148_s5 + $0x110] sm:$0xf0] }
 0x606   : > { %11831 = vmatpush.bf16.msrb.mxu1 %v18050_v58  ;;  %v27266_v58 = vpop.f32.mrf.mxu3  ;;  %11717 = vmatpush.bf16.msrb.mxu2 %v17878_v17  ;;  %v17517_v17 = vld [vmem:[%s28148_s5 + $0x4a8] sm:$0xf]  ;;  %v17134_v6 = vor.u32 %v19699_v20, %v17133_v61  ;;  %v19768_v61 = vld [vmem:[%s28148_s5 + $0x3e0] sm:$0xf0]  ;;  %v19765_v20 = vld [vmem:[%s28148_s5 + $0x3cc] sm:$0xf] }
 0x608   : > { %11860 = vmatmul.bf16.vlgmr.msrb.gmra.mxu0 %v25803_v19  ;;  %11815 = vmatpush.bf16.msrb.mxu3 %v17882_v5  ;;  %v19796_v5 = vld [vmem:[%s28148_s5 + $0x4c0] sm:$0xf0] }
 0x609   : > { %11908 = vmatpush.bf16.msra.mxu0 %v18026_v22  ;;  %11832 = vmatmul.bf16.vlgmr.msrb.gmra.mxu1 %v25985_v53  ;;  %v17659_v22 = vld [vmem:[%s28148_s5 + $0x5dc] sm:$0xf0]  ;;  %v17518_v39 = vor.u32 %v19796_v5, %v17517_v17 }
 0x60a   : > { %11894 = vmatpush.bf16.msra.mxu1 %v17802_v42  ;;  %v17825_v42 = vld [vmem:[%s28148_s5 + $0x710] sm:$0xf]  ;;  %11718 = vmatpush.bf16.msrb.mxu2 %v17850_v1  ;;  %v17662_v47 = vor.u32 %v19828_v14, %v17659_v22  ;;  %v19692_v14 = vld [vmem:[%s28148_s5 + $0x180] sm:$0xf0]  ;;  %v17553_v22 = vld [vmem:[%s28148_s5 + $0x4e8] sm:$0xf] }
 0x60c   : > { %11816 = vmatpush.bf16.msrb.mxu3 %v17854_v10  ;;  %v17489_v10 = vld [vmem:[%s28148_s5 + $0x470] sm:$0xf] }
 0x60d   : > { %11909 = vmatpush.bf16.msra.mxu0 %v17998_v13  ;;  %v19821_v13 = vld [vmem:[%s28148_s5 + $0x58c] sm:$0xf] }
 0x60e   : > { %11895 = vmatpush.bf16.msra.mxu1 %v17774_v26  ;;  %v17826_v26 = vor.u32 %v19873_v59, %v17825_v42  ;;  %v27322_v23 = vpop.f32.mrf.mxu3  ;;  %11719 = vmatpush.bf16.msrb.mxu2 %v17822_v12  ;;  %v17634_v43 = vor.u32 %v19821_v13, %v17631_v52  ;;  %v17582_v42 = vor.u32 %v19811_v16, %v17581_v60  ;;  %v17491_v59 = vld [vmem:[%s28148_s5 + $0x48c] sm:$0xf0]  ;;  %v19685_v13 = vld [vmem:[%s28148_s5 + $0x148] sm:$0xf0]  ;;  %v17407_v60 = vld [vmem:[%s28148_s5 + $0x3e4] sm:$0xf0] }
 0x60f   : > { %v17494_v62 = vor.u32 %v19786_v46, %v17491_v59  ;;  %v17021_v16 = vld [vmem:[%s28148_s5 + $0xc0] sm:$0xf]  ;;  %v19758_v59 = vld [vmem:[%s28148_s5 + $0x394] sm:$0xf] }
 0x610   : > { %11817 = vmatpush.bf16.msrb.mxu3 %v17826_v26  ;;  %v19779_v26 = vld [vmem:[%s28148_s5 + $0x43c] sm:$0xf] }
 0x611   : > { %11910 = vmatpush.bf16.msra.mxu0 %v17970_v40  ;;  %v17858_v40 = vor.u32 %v19877_v7, %v17855_v50  ;;  %11720 = vmatmul.bf16.vlgmr.msrb.gmra.mxu2 %v25983_v4  ;;  %v17525_v7 = vld [vmem:[%s28148_s5 + $0x4b0] sm:$0xf] }
 0x612   : > { %11896 = vmatpush.bf16.msra.mxu1 %v17746_v3  ;;  %v19800_v3 = vld [vmem:[%s28148_s5 + $0x4e4] sm:$0xf]  ;;  %11782 = vmatpush.bf16.msra.mxu2 %v17574_v11  ;;  %v17077_v11 = vld [vmem:[%s28148_s5 + $0x130] sm:$0xf] }
 0x613   : > { %v17550_v57 = vor.u32 %v19800_v3, %v17547_v28  ;;  %11818 = vmatmul.bf16.vlgmr.msrb.gmra.mxu3 %v25983_v4  ;;  %v17078_v3 = vor.u32 %v19685_v13, %v17077_v11  ;;  %v17433_v28 = vld [vmem:[%s28148_s5 + $0x400] sm:$0xf] }
 0x614   : > { %11880 = vmatpush.bf16.msra.mxu3 %v17578_v27  ;;  %v19797_v27 = vld [vmem:[%s28148_s5 + $0x4c8] sm:$0xf0] }
 0x615   : > { %11911 = vmatpush.bf16.msra.mxu0 %v17942_v55  ;;  %v27362_v55 = vpop.f32.mrf.mxu2 }
 0x616   : > { %11897 = vmatpush.bf16.msra.mxu1 %v17718_v51  ;;  %v19793_v51 = vld [vmem:[%s28148_s5 + $0x4ac] sm:$0xf]  ;;  %11783 = vmatpush.bf16.msra.mxu2 %v17546_v48  ;;  %v27394_v0 = vpop.f32.mrf.mxu3  ;;  %v17049_v48 = vld [vmem:[%s28148_s5 + $0xf8] sm:$0xf] }
 0x617   : > { %v17522_v1 = vor.u32 %v19793_v51, %v17519_v18  ;;  %v17050_v51 = vor.u32 %v19678_v33, %v17049_v48  ;;  %v17405_v18 = vld [vmem:[%s28148_s5 + $0x3c8] sm:$0xf]  ;;  %v19996_v48 = vld [vmem:[%s28148_s5 + $0xb04] sm:$0xf]  ;;  %v18331_v33 = vld [vmem:[%s28148_s5 + $0xb1c] sm:$0xf0] }
 0x618   : > { %11881 = vmatpush.bf16.msra.mxu3 %v17550_v57 }
 0x619   : > { %11912 = vmatpush.bf16.msra.mxu0 %v17914_v34  ;;  %v17105_v34 = vld [vmem:[%s28148_s5 + $0x168] sm:$0xf] }
 0x61a   : > { %11898 = vmatpush.bf16.msra.mxu1 %v17690_v2  ;;  %v19789_v2 = vld [vmem:[%s28148_s5 + $0x488] sm:$0xf0]  ;;  %11784 = vmatpush.bf16.msra.mxu2 %v17518_v39  ;;  %v17106_v12 = vor.u32 %v19692_v14, %v17105_v34  ;;  %v17469_v39 = vld [vmem:[%s28148_s5 + $0x440] sm:$0xf]  ;;  %v17379_v34 = vld [vmem:[%s28148_s5 + $0x3ac] sm:$0xf0] }
 0x61b   : > { %v17490_v21 = vor.u32 %v19789_v2, %v17489_v10  ;;  %v17377_v10 = vld [vmem:[%s28148_s5 + $0x390] sm:$0xf]  ;;  %v17410_v2 = vor.u32 %v19765_v20, %v17407_v60  ;;  %v17382_v11 = vor.u32 %v19758_v59, %v17379_v34  ;;  %v18334_v20 = vor.u32 %v19996_v48, %v18331_v33  ;;  %v19992_v60 = vld [vmem:[%s28148_s5 + $0xae0] sm:$0xf0] }
 0x61c   : > { %11882 = vmatpush.bf16.msra.mxu3 %v17522_v1  ;;  %v19783_v1 = vld [vmem:[%s28148_s5 + $0x458] sm:$0xf0] }
 0x61d   : > { %11913 = vmatpush.bf16.msra.mxu0 %v17886_v29  ;;  %v17463_v29 = vld [vmem:[%s28148_s5 + $0x454] sm:$0xf0]  ;;  %v11455_v52 = vpop.f32.mrf.mxu2  ;;  %v17470_v14 = vor.u32 %v19783_v1, %v17469_v39  ;;  %v18303_v39 = vld [vmem:[%s28148_s5 + $0xae4] sm:$0xf0]  ;;  %v18029_v1 = vld [vmem:[%s28148_s5 + $0x8a0] sm:$0xf] }
 0x61e   : > { %11899 = vmatpush.bf16.msra.mxu1 %v17662_v47  ;;  %v17554_v47 = vor.u32 %v19804_v44, %v17553_v22  ;;  %11785 = vmatpush.bf16.msra.mxu2 %v17490_v21  ;;  %v27423_v50 = vadd.f32 %v11455_v52, %v26797_v38  ;;  %v17466_v63 = vor.u32 %v19779_v26, %v17463_v29  ;;  %v27449_v57 = vpop.f32.mrf.mxu3  ;;  %v16993_v22 = vld [vmem:[%s28148_s5 + $0x88] sm:$0xf]  ;;  %v19664_v44 = vld [vmem:[%s28148_s5 + $0xa0] sm:$0xf0]  ;;  %v18359_v29 = vld [vmem:[%s28148_s5 + $0xb54] sm:$0xf0] }
 0x61f   : > { %v17526_v38 = vor.u32 %v19797_v27, %v17525_v7  ;;  %v17441_v21 = vld [vmem:[%s28148_s5 + $0x408] sm:$0xf]  ;;  %v16994_v13 = vor.u32 %v19664_v44, %v16993_v22  ;;  %v18273_v22 = vld [vmem:[%s28148_s5 + $0xa90] sm:$0xf] }
 0x620   : > { %11883 = vmatpush.bf16.msra.mxu3 %v17494_v62  ;;  %v19776_v62 = vld [vmem:[%s28148_s5 + $0x420] sm:$0xf0] }
 0x621   : > { %11914 = vmatpush.bf16.msra.mxu0 %v17858_v40  ;;  %v17435_v40 = vld [vmem:[%s28148_s5 + $0x41c] sm:$0xf0]  ;;  %v17442_v7 = vor.u32 %v19776_v62, %v17441_v21 }
 0x622   : > { %11900 = vmatpush.bf16.msra.mxu1 %v17634_v43  ;;  %v19775_v43 = vld [vmem:[%s28148_s5 + $0x418] sm:$0xf0]  ;;  %11786 = vmatpush.bf16.msra.mxu2 %v17462_v36  ;;  %v17438_v5 = vor.u32 %v19772_v24, %v17435_v40  ;;  %v16965_v36 = vld [vmem:[%s28148_s5 + $0x50] sm:$0xf]  ;;  %v19769_v24 = vld [vmem:[%s28148_s5 + $0x3e8] sm:$0xf0] }
 0x623   : > { %v17434_v17 = vor.u32 %v19775_v43, %v17433_v28  ;;  %v27524_v28 = vpop.f32.mrf.mxu1  ;;  %v19999_v40 = vld [vmem:[%s28148_s5 + $0xb18] sm:$0xf0] }
 0x624   : > { %11884 = vmatpush.bf16.msra.mxu3 %v17466_v63  ;;  %v19657_v63 = vld [vmem:[%s28148_s5 + $0x68] sm:$0xf0] }
 0x625   : > { %11915 = vmatpush.bf16.msra.mxu0 %v17830_v25  ;;  %v19671_v25 = vld [vmem:[%s28148_s5 + $0xd8] sm:$0xf0]  ;;  %v27505_v32 = vpop.f32.mrf.mxu2 }
 0x626   : > { %11901 = vmatpush.bf16.msra.mxu1 %v17606_v31  ;;  %v17498_v31 = vor.u32 %v19790_v35, %v17497_v15  ;;  %11787 = vmatpush.bf16.msra.mxu2 %v17434_v17  ;;  %v17022_v46 = vor.u32 %v19671_v25, %v17021_v16  ;;  %v27513_v52 = vpop.f32.mrf.mxu3  ;;  %v16966_v15 = vor.u32 %v19657_v63, %v16965_v36  ;;  %v16937_v35 = vld [vmem:[%s28148_s5 + $0x18] sm:$0xf]  ;;  %v19989_v16 = vld [vmem:[%s28148_s5 + $0xacc] sm:$0xf]  ;;  %v27563_v25 = vpop.f32.mrf.mxu0 }
 0x627   : > { %v18306_v21 = vor.u32 %v19989_v16, %v18303_v39  ;;  %v17351_v36 = vld [vmem:[%s28148_s5 + $0x374] sm:$0xf0] }
 0x628   : > { %11916 = vmatmul.bf16.vlgmr.msra.gmra.mxu0 %v25983_v4  ;;  %11885 = vmatpush.bf16.msra.mxu3 %v17438_v5 }
 0x629   : > { %11978 = vmatpush.bf16.msrb.mxu0 %v17582_v42  ;;  %11902 = vmatmul.bf16.vlgmr.msra.gmra.mxu1 %v25815_v37  ;;  %v19761_v42 = vld [vmem:[%s28148_s5 + $0x3a8] sm:$0xf0] }
 0x62a   : > { %11950 = vmatpush.bf16.msrb.mxu1 %v17134_v6  ;;  %v17406_v6 = vor.u32 %v19768_v61, %v17405_v18  ;;  %v17378_v26 = vor.u32 %v19761_v42, %v17377_v10  ;;  %v17385_v18 = vld [vmem:[%s28148_s5 + $0x398] sm:$0xf]  ;;  %v19762_v61 = vld [vmem:[%s28148_s5 + $0x3b0] sm:$0xf0] }
 0x62b   : > { %v17386_v34 = vor.u32 %v19762_v61, %v17385_v18  ;;  %v27588_v44 = vpop.f32.mrf.mxu1  ;;  %v17323_v18 = vld [vmem:[%s28148_s5 + $0x33c] sm:$0xf0]  ;;  %v17329_v61 = vld [vmem:[%s28148_s5 + $0x328] sm:$0xf] }
 0x62c   : > { %11788 = vmatpush.bf16.msra.mxu2 %v17406_v6  ;;  %11886 = vmatpush.bf16.msra.mxu3 %v17410_v2  ;;  %v19923_v6 = vld [vmem:[%s28148_s5 + $0x8b8] sm:$0xf0]  ;;  %v18365_v2 = vld [vmem:[%s28148_s5 + $0xb40] sm:$0xf] }
 0x62d   : > { %11979 = vmatpush.bf16.msrb.mxu0 %v17554_v47  ;;  %v20003_v47 = vld [vmem:[%s28148_s5 + $0xb3c] sm:$0xf]  ;;  %v27583_v59 = vpop.f32.mrf.mxu2  ;;  %v18030_v62 = vor.u32 %v19923_v6, %v18029_v1  ;;  %v17945_v1 = vld [vmem:[%s28148_s5 + $0x7f8] sm:$0xf]  ;;  %v19902_v6 = vld [vmem:[%s28148_s5 + $0x810] sm:$0xf0] }
 0x62e   : > { %11951 = vmatpush.bf16.msrb.mxu1 %v17106_v12  ;;  %v18357_v12 = vld [vmem:[%s28148_s5 + $0xb38] sm:$0xf]  ;;  %v18362_v43 = vor.u32 %v20003_v47, %v18359_v29  ;;  %v27581_v42 = vpop.f32.mrf.mxu3  ;;  %v18001_v29 = vld [vmem:[%s28148_s5 + $0x868] sm:$0xf] }
 0x62f   : > { %v18358_v27 = vor.u32 %v20006_v49, %v18357_v12  ;;  %v19985_v12 = vld [vmem:[%s28148_s5 + $0xaa8] sm:$0xf0]  ;;  %v19982_v49 = vld [vmem:[%s28148_s5 + $0xa94] sm:$0xf] }
 0x630   : > { %11789 = vmatpush.bf16.msra.mxu2 %v17378_v26  ;;  %11887 = vmatpush.bf16.msra.mxu3 %v17382_v11  ;;  %v18275_v26 = vld [vmem:[%s28148_s5 + $0xaac] sm:$0xf0]  ;;  %v19916_v11 = vld [vmem:[%s28148_s5 + $0x880] sm:$0xf0]  ;;  %v18274_v63 = vor.u32 %v19985_v12, %v18273_v22  ;;  %v17295_v22 = vld [vmem:[%s28148_s5 + $0x304] sm:$0xf0]  ;;  %v17946_v12 = vor.u32 %v19902_v6, %v17945_v1 }
 0x631   : > { %11980 = vmatpush.bf16.msrb.mxu0 %v17526_v38  ;;  %v18329_v38 = vld [vmem:[%s28148_s5 + $0xb00] sm:$0xf] }
 0x632   : > { %11952 = vmatpush.bf16.msrb.mxu1 %v17078_v3  ;;  %v17413_v3 = vld [vmem:[%s28148_s5 + $0x3d0] sm:$0xf]  ;;  %v18330_v5 = vor.u32 %v19999_v40, %v18329_v38  ;;  %v18002_v38 = vor.u32 %v19916_v11, %v18001_v29  ;;  %v27623_v40 = vpop.f32.mrf.mxu0  ;;  %v19895_v29 = vld [vmem:[%s28148_s5 + $0x7d8] sm:$0xf0] }
 0x633   : > { %v17414_v17 = vor.u32 %v19769_v24, %v17413_v3  ;;  %11790 = vmatmul.bf16.vlgmr.msra.gmra.mxu2 %v25813_v56  ;;  %11888 = vmatmul.bf16.vlgmr.msra.gmra.mxu3 %v25813_v56  ;;  %v17357_v3 = vld [vmem:[%s28148_s5 + $0x360] sm:$0xf]  ;;  %v18278_v24 = vor.u32 %v19982_v49, %v18275_v26 }
 0x634   : > { %11842 = vmatpush.bf16.msrb.mxu2 %v18358_v27  ;;  %11940 = vmatpush.bf16.msrb.mxu3 %v18362_v43  ;;  %v19751_v27 = vld [vmem:[%s28148_s5 + $0x35c] sm:$0xf] }
 0x635   : > { %11981 = vmatpush.bf16.msrb.mxu0 %v17498_v31  ;;  %v18301_v31 = vld [vmem:[%s28148_s5 + $0xac8] sm:$0xf]  ;;  %v19755_v43 = vld [vmem:[%s28148_s5 + $0x378] sm:$0xf0]  ;;  %v17354_v33 = vor.u32 %v19751_v27, %v17351_v36  ;;  %v17267_v27 = vld [vmem:[%s28148_s5 + $0x2cc] sm:$0xf0] }
 0x636   : > { %11953 = vmatpush.bf16.msrb.mxu1 %v17050_v51  ;;  %v19650_v51 = vld [vmem:[%s28148_s5 + $0x30] sm:$0xf0] }
 0x637   : > { %v16938_v10 = vor.u32 %v19650_v51, %v16937_v35  ;;  %v19909_v35 = vld [vmem:[%s28148_s5 + $0x848] sm:$0xf0]  ;;  %v19744_v51 = vld [vmem:[%s28148_s5 + $0x324] sm:$0xf] }
 0x638   : > { %11843 = vmatpush.bf16.msrb.mxu2 %v18330_v5  ;;  %11941 = vmatpush.bf16.msrb.mxu3 %v18334_v20  ;;  %v17358_v5 = vor.u32 %v19755_v43, %v17357_v3  ;;  %v17326_v39 = vor.u32 %v19744_v51, %v17323_v18  ;;  %v19734_v3 = vld [vmem:[%s28148_s5 + $0x2d0] sm:$0xf0]  ;;  %v17239_v51 = vld [vmem:[%s28148_s5 + $0x294] sm:$0xf0] }
 0x639   : > { %11982 = vmatpush.bf16.msrb.mxu0 %v17470_v14  ;;  %v18302_v14 = vor.u32 %v19992_v60, %v18301_v31  ;;  %v27651_v31 = vpop.f32.mrf.mxu3  ;;  %v11485_v60 = vpop.f32.mrf.mxu2 }
 0x63a   : > { %11954 = vmatpush.bf16.msrb.mxu1 %v17022_v46  ;;  %v20007_v46 = vld [vmem:[%s28148_s5 + $0xb58] sm:$0xf0]  ;;  %v11499_v36 = vpop.f32.mrf.mxu0 }
 0x63b   : > { %v18366_v47 = vor.u32 %v20007_v46, %v18365_v2  ;;  %v27662_v2 = vpop.f32.mrf.mxu1 }
 0x63c   : > { %11844 = vmatpush.bf16.msrb.mxu2 %v18302_v14  ;;  %11942 = vmatpush.bf16.msrb.mxu3 %v18306_v21  ;;  %v19737_v14 = vld [vmem:[%s28148_s5 + $0x2ec] sm:$0xf]  ;;  %v17301_v21 = vld [vmem:[%s28148_s5 + $0x2f0] sm:$0xf] }
 0x63d   : > { %11983 = vmatpush.bf16.msrb.mxu0 %v17442_v7  ;;  %v20000_v7 = vld [vmem:[%s28148_s5 + $0xb20] sm:$0xf0]  ;;  %v17298_v26 = vor.u32 %v19737_v14, %v17295_v22  ;;  %v20021_v14 = vld [vmem:[%s28150_s7 + $0x68] sm:$0xff] }
 0x63e   : > { %11955 = vmatpush.bf16.msrb.mxu1 %v16994_v13  ;;  %v18337_v13 = vld [vmem:[%s28148_s5 + $0xb08] sm:$0xf] }
 0x63f   : > { %v18338_v48 = vor.u32 %v20000_v7, %v18337_v13  ;;  %v20023_v13 = vld [vmem:[%s28150_s7 + $0x78] sm:$0xff]  ;;  %v19730_v7 = vld [vmem:[%s28148_s5 + $0x2b4] sm:$0xf] }
 0x640   : > { %11845 = vmatpush.bf16.msrb.mxu2 %v18274_v63  ;;  %11943 = vmatpush.bf16.msrb.mxu3 %v18278_v24  ;;  %v17273_v63 = vld [vmem:[%s28148_s5 + $0x2b8] sm:$0xf]  ;;  %v27707_v24 = vld [vmem:[%s28149_s6] sm:$0x7f] }
 0x641   : > { %11984 = vmatpush.bf16.msrb.mxu0 %v17414_v17  ;;  %v18309_v17 = vld [vmem:[%s28148_s5 + $0xad0] sm:$0xf] }
 0x642   : > { %11956 = vmatpush.bf16.msrb.mxu1 %v16966_v15  ;;  %v17973_v15 = vld [vmem:[%s28148_s5 + $0x830] sm:$0xf]  ;;  %v27754_v22 = vpop.f32.mrf.mxu0 }
 0x643   : > { %v17974_v20 = vor.u32 %v19909_v35, %v17973_v15  ;;  %18371 = vmatmul.msk.bf16.vlgmr.msrb.gmra.mxu2 %vm11358_vm0, %v26500_v30  ;;  %18372 = vmatmul.msk.bf16.vlgmr.msrb.gmra.mxu3 %vm11358_vm0, %v26500_v30  ;;  %v19888_v15 = vld [vmem:[%s28148_s5 + $0x7a0] sm:$0xf0]  ;;  %v27716_v35 = vpop.f32.mrf.mxu1 }
 0x644   : > { %11866 = vmatpush.bf16.msra.mxu2 %v17354_v33  ;;  %11964 = vmatpush.bf16.msra.mxu3 %v17358_v5  ;;  %v17889_v33 = vld [vmem:[%s28148_s5 + $0x788] sm:$0xf]  ;;  %v20022_v5 = vld [vmem:[%s28150_s7 + $0x70] sm:$0xff] }
 0x645   : > { %11985 = vmatpush.bf16.msrb.mxu0 %v17386_v34  ;;  %v19986_v34 = vld [vmem:[%s28148_s5 + $0xab0] sm:$0xf0] }
 0x646   : > { %11957 = vmatpush.bf16.msrb.mxu1 %v16938_v10  ;;  %v18281_v10 = vld [vmem:[%s28148_s5 + $0xa98] sm:$0xf] }
 0x647   : > { %v18282_v49 = vor.u32 %v19986_v34, %v18281_v10 }
 0x648   : > { %11986 = vmatmul.bf16.vlgmr.msrb.gmra.mxu0 %v25813_v56  ;;  %v19748_v56 = vld [vmem:[%s28148_s5 + $0x340] sm:$0xf0]  ;;  %11867 = vmatpush.bf16.msra.mxu2 %v17326_v39  ;;  %v17890_v39 = vor.u32 %v19888_v15, %v17889_v33 }
 0x649   : > { %12038 = vmatpush.bf16.msra.mxu0 %v18366_v47  ;;  %11958 = vmatmul.bf16.vlgmr.msrb.gmra.mxu1 %v25803_v19  ;;  %v19993_v19 = vld [vmem:[%s28148_s5 + $0xae8] sm:$0xf0]  ;;  %v17330_v46 = vor.u32 %v19748_v56, %v17329_v61  ;;  %v17917_v47 = vld [vmem:[%s28148_s5 + $0x7c0] sm:$0xf]  ;;  %v27728_v61 = vpop.f32.mrf.mxu3  ;;  %v27730_v56 = vpop.f32.mrf.mxu2 }
 0x64a   : > { %12006 = vmatpush.bf16.msra.mxu1 %v18030_v62  ;;  %v18310_v16 = vor.u32 %v19993_v19, %v18309_v17  ;;  %v19741_v62 = vld [vmem:[%s28148_s5 + $0x308] sm:$0xf0]  ;;  %v17918_v43 = vor.u32 %v19895_v29, %v17917_v47  ;;  %v17274_v17 = vor.u32 %v19734_v3, %v17273_v63  ;;  %v19723_v19 = vld [vmem:[%s28148_s5 + $0x27c] sm:$0xf] }
 0x64b   : > { %11965 = vmatpush.bf16.msra.mxu3 %v17330_v46  ;;  %v17302_v11 = vor.u32 %v19741_v62, %v17301_v21  ;;  %v17242_v10 = vor.u32 %v19723_v19, %v17239_v51  ;;  %v19881_v46 = vld [vmem:[%s28148_s5 + $0x768] sm:$0xf0]  ;;  %v17217_v62 = vld [vmem:[%s28148_s5 + $0x248] sm:$0xf]  ;;  %v11569_v3 = vpop.f32.mrf.mxu1  ;;  %v20019_v19 = vld [vmem:[%s28150_s7 + $0x58] sm:$0xff] }
 0x64c   : > { %11868 = vmatpush.bf16.msra.mxu2 %v17298_v26  ;;  %v19713_v63 = vld [vmem:[%s28148_s5 + $0x228] sm:$0xf0]  ;;  %v17155_v51 = vld [vmem:[%s28148_s5 + $0x1ec] sm:$0xf0] }
 0x64d   : > { %12039 = vmatpush.bf16.msra.mxu0 %v18338_v48  ;;  %v17270_v48 = vor.u32 %v19730_v7, %v17267_v27  ;;  %v17183_v7 = vld [vmem:[%s28148_s5 + $0x224] sm:$0xf0] }
 0x64e   : > { %12007 = vmatpush.bf16.msra.mxu1 %v18002_v38  ;;  %v9473_v38 = vperm.slane %v27707_v24, 1 }
 0x64f   : > { %11966 = vmatpush.bf16.msra.mxu3 %v17302_v11  ;;  %v20020_v11 = vld [vmem:[%s28150_s7 + $0x60] sm:$0xff] }
 0x650   : > { %v11472_v18 = vadd.f32 %v27394_v0, %v9473_v38  ;;  %v11470_v1 = vadd.f32 %v27322_v23, %v9473_v38  ;;  %11869 = vmatpush.bf16.msra.mxu2 %v17270_v48  ;;  %v17861_v0 = vld [vmem:[%s28148_s5 + $0x750] sm:$0xf]  ;;  %v19716_v23 = vld [vmem:[%s28148_s5 + $0x244] sm:$0xf] }
 0x651   : > { %12040 = vmatpush.bf16.msra.mxu0 %v18310_v16  ;;  %v19727_v16 = vld [vmem:[%s28148_s5 + $0x298] sm:$0xf0]  ;;  %v11583_v38 = vpop.f32.mrf.mxu3  ;;  %v11541_v33 = vpop.f32.mrf.mxu2 }
 0x652   : > { %12008 = vmatpush.bf16.msra.mxu1 %v17974_v20  ;;  %v17245_v20 = vld [vmem:[%s28148_s5 + $0x280] sm:$0xf]  ;;  %v11486_v6 = vadd.f32 %v11485_v60, %v11472_v18  ;;  %v11484_v21 = vadd.f32 %v27583_v59, %v11470_v1  ;;  %v17833_v59 = vld [vmem:[%s28148_s5 + $0x718] sm:$0xf] }
 0x653   : > { %11967 = vmatpush.bf16.msra.mxu3 %v17274_v17  ;;  %v17246_v34 = vor.u32 %v19727_v16, %v17245_v20  ;;  %v17211_v60 = vld [vmem:[%s28148_s5 + $0x25c] sm:$0xf0]  ;;  %v9474_v17 = vperm.slane %v27707_v24, 2  ;;  %v17161_v20 = vld [vmem:[%s28148_s5 + $0x1d8] sm:$0xf] }
 0x654   : > { %v11500_v26 = vadd.f32 %v11499_v36, %v11486_v6  ;;  %11870 = vmatpush.bf16.msra.mxu2 %v17242_v10  ;;  %v17214_v47 = vor.u32 %v19716_v23, %v17211_v60  ;;  %v11498_v27 = vadd.f32 %v27623_v40, %v11484_v21  ;;  %v17189_v36 = vld [vmem:[%s28148_s5 + $0x210] sm:$0xf]  ;;  %v20031_v40 = vld [vmem:[%s28150_s7 + $0xb8] sm:$0xff]  ;;  %v19706_v16 = vld [vmem:[%s28148_s5 + $0x1f0] sm:$0xf0]  ;;  %v11597_v10 = vpop.f32.mrf.mxu0 }
 0x655   : > { %12041 = vmatpush.bf16.msra.mxu0 %v18282_v49  ;;  %v17862_v49 = vor.u32 %v19881_v46, %v17861_v0  ;;  %v18247_v1 = vld [vmem:[%s28148_s5 + $0xa74] sm:$0xf0]  ;;  %v19979_v6 = vld [vmem:[%s28148_s5 + $0xa78] sm:$0xf0]  ;;  %v17162_v23 = vor.u32 %v19706_v16, %v17161_v20  ;;  %v20018_v60 = vld [vmem:[%s28150_s7 + $0x50] sm:$0xff] }
 0x656   : > { %12009 = vmatpush.bf16.msra.mxu1 %v17946_v12  ;;  %v19720_v12 = vld [vmem:[%s28148_s5 + $0x260] sm:$0xf0]  ;;  %v11514_v48 = vadd.f32 %v27662_v2, %v11500_v26  ;;  %v19702_v2 = vld [vmem:[%s28148_s5 + $0x1d4] sm:$0xf]  ;;  %v11512_v18 = vadd.f32 %v27588_v44, %v11498_v27  ;;  %v18253_v44 = vld [vmem:[%s28148_s5 + $0xa60] sm:$0xf] }
 0x657   : > { %11968 = vmatpush.bf16.msra.mxu3 %v17246_v34  ;;  %v17218_v29 = vor.u32 %v19720_v12, %v17217_v62  ;;  %v17158_v46 = vor.u32 %v19702_v2, %v17155_v51  ;;  %v20030_v34 = vld [vmem:[%s28150_s7 + $0xb0] sm:$0xff]  ;;  %v18254_v12 = vor.u32 %v19979_v6, %v18253_v44  ;;  %v18219_v26 = vld [vmem:[%s28148_s5 + $0xa3c] sm:$0xf0]  ;;  %v18169_v51 = vld [vmem:[%s28148_s5 + $0x9b8] sm:$0xf] }
 0x658   : > { %18373 = vmatmul.msk.bf16.vlgmr.msra.gmra.mxu0 %vm11358_vm0, %v26500_v30  ;;  %v19874_v30 = vld [vmem:[%s28148_s5 + $0x730] sm:$0xf0]  ;;  %11871 = vmatpush.bf16.msra.mxu2 %v17214_v47  ;;  %v11528_v0 = vadd.f32 %v27513_v52, %v11514_v48  ;;  %v11526_v21 = vadd.f32 %v27449_v57, %v11512_v18  ;;  %v18225_v47 = vld [vmem:[%s28148_s5 + $0xa28] sm:$0xf]  ;;  %v11623_v57 = vpop.f32.mrf.mxu1  ;;  %v19965_v48 = vld [vmem:[%s28148_s5 + $0xa08] sm:$0xf0] }
 0x659   : > { %12506 = vmatpush.bf16.msrb.mxu0 %v20023_v13  ;;  %v19709_v13 = vld [vmem:[%s28148_s5 + $0x20c] sm:$0xf]  ;;  %v18163_v2 = vld [vmem:[%s28148_s5 + $0x9cc] sm:$0xf0]  ;;  %v19958_v18 = vld [vmem:[%s28148_s5 + $0x9d0] sm:$0xf0] }
 0x65a   : > { %12010 = vmatpush.bf16.msra.mxu1 %v17918_v43  ;;  %v17834_v43 = vor.u32 %v19874_v30, %v17833_v59  ;;  %v17186_v15 = vor.u32 %v19709_v13, %v17183_v7  ;;  %v11542_v62 = vadd.f32 %v11541_v33, %v11528_v0  ;;  %v11540_v59 = vadd.f32 %v27730_v56, %v11526_v21  ;;  %v11609_v30 = vpop.f32.mrf.mxu2  ;;  %v11637_v13 = vpop.f32.mrf.mxu3  ;;  %v20027_v16 = vld [vmem:[%s28150_s7 + $0x98] sm:$0xff] }
 0x65b   : > { %11969 = vmatpush.bf16.msra.mxu3 %v17218_v29  ;;  %v11570_v29 = vadd.f32 %v11569_v3, %v9474_v17  ;;  %v19951_v21 = vld [vmem:[%s28148_s5 + $0x998] sm:$0xf0] }
 0x65c   : > { %11872 = vmatpush.bf16.msra.mxu2 %v17186_v15  ;;  %v11556_v7 = vadd.f32 %v27651_v31, %v11542_v62  ;;  %v18197_v31 = vld [vmem:[%s28148_s5 + $0x9f0] sm:$0xf]  ;;  %v11651_v33 = vpop.f32.mrf.mxu0  ;;  %v11554_v15 = vadd.f32 %v27581_v42, %v11540_v59  ;;  %v18107_v59 = vld [vmem:[%s28148_s5 + $0x95c] sm:$0xf0] }
 0x65d   : > { %12507 = vmatpush.bf16.msrb.mxu0 %v20022_v5  ;;  %v17190_v5 = vor.u32 %v19713_v63, %v17189_v36  ;;  %v19961_v36 = vld [vmem:[%s28148_s5 + $0x9ec] sm:$0xf]  ;;  %v11584_v63 = vadd.f32 %v11583_v38, %v11570_v29 }
 0x65e   : > { %12011 = vmatpush.bf16.msra.mxu1 %v17890_v39  ;;  %v19975_v39 = vld [vmem:[%s28148_s5 + $0xa5c] sm:$0xf]  ;;  %v12049_v20 = vmax.f32 %v11554_v15, 0.0  ;;  %v20025_v29 = vld [vmem:[%s28150_s7 + $0x88] sm:$0xff]  ;;  %v19926_v15 = vld [vmem:[%s28148_s5 + $0x8d4] sm:$0xf] }
 0x65f   : > { %11970 = vmatpush.bf16.msra.mxu3 %v17190_v5  ;;  %v18250_v52 = vor.u32 %v19975_v39, %v18247_v1  ;;  %v11598_v42 = vadd.f32 %v11597_v10, %v11584_v63  ;;  %v18085_v63 = vld [vmem:[%s28148_s5 + $0x910] sm:$0xf] }
 0x660   : > { %11873 = vmatpush.bf16.msra.mxu2 %v17158_v46  ;;  %v11625_v6 = vpop.f32.mrf.mxu1  ;;  %v18170_v46 = vor.u32 %v19958_v18, %v18169_v51  ;;  %v20039_v51 = vld [vmem:[%s28150_s7 + $0xf8] sm:$0xff]  ;;  %v17777_v18 = vld [vmem:[%s28148_s5 + $0x6a8] sm:$0xf] }
 0x661   : > { %12508 = vmatpush.bf16.msrb.mxu0 %v20021_v14  ;;  %v11568_v14 = vadd.f32 %v27716_v35, %v9474_v17  ;;  %v12056_v17 = vmax.f32 %v11556_v7, 0.0 }
 0x662   : > { %12012 = vmatpush.bf16.msra.mxu1 %v17862_v49  ;;  %v19968_v49 = vld [vmem:[%s28148_s5 + $0xa24] sm:$0xf]  ;;  %v11611_v39 = vpop.f32.mrf.mxu2  ;;  %v11639_v62 = vpop.f32.mrf.mxu3 }
 0x663   : > { %v11582_v35 = vadd.f32 %v27728_v61, %v11568_v14  ;;  %v20029_v61 = vld [vmem:[%s28150_s7 + $0xa8] sm:$0xff]  ;;  %11971 = vmatpush.bf16.msra.mxu3 %v17162_v23  ;;  %v18222_v56 = vor.u32 %v19968_v49, %v18219_v26  ;;  %11874 = vmatmul.bf16.vlgmr.msra.gmra.mxu2 %v25809_v41  ;;  %v11612_v44 = vadd.f32 %v11611_v39, %v11598_v42  ;;  %v18135_v23 = vld [vmem:[%s28148_s5 + $0x994] sm:$0xf0]  ;;  %v20038_v39 = vld [vmem:[%s28150_s7 + $0xf0] sm:$0xff] }
 0x664   : > { %11922 = vmatpush.bf16.msrb.mxu2 %v18250_v52  ;;  %v12063_v10 = vpack.c.bf16 %v12056_v17, %v12049_v20  ;;  %v20026_v52 = vld [vmem:[%s28150_s7 + $0x90] sm:$0xff]  ;;  %v19860_v20 = vld [vmem:[%s28148_s5 + $0x6c0] sm:$0xf0] }
 0x665   : > { %12509 = vmatpush.bf16.msrb.mxu0 %v20020_v11  ;;  %v20017_v11 = vld [vmem:[%s28150_s7 + $0x48] sm:$0xff]  ;;  %v11596_v3 = vadd.f32 %v27754_v22, %v11582_v35  ;;  %v20028_v22 = vld [vmem:[%s28150_s7 + $0xa0] sm:$0xff]  ;;  %v11626_v14 = vadd.f32 %v11625_v6, %v11612_v44  ;;  %v11653_v35 = vpop.f32.mrf.mxu0  ;;  %v19930_v17 = vld [vmem:[%s28148_s5 + $0x8f0] sm:$0xf0] }
 0x666   : > { %12013 = vmatpush.bf16.msra.mxu1 %v17834_v43  ;;  %v18191_v43 = vld [vmem:[%s28148_s5 + $0xa04] sm:$0xf0]  ;;  %11972 = vmatmul.bf16.vlgmr.msra.gmra.mxu3 %v25809_v41  ;;  %v19954_v41 = vld [vmem:[%s28148_s5 + $0x9b4] sm:$0xf]  ;;  %v19853_v44 = vld [vmem:[%s28148_s5 + $0x688] sm:$0xf0] }
 0x667   : > { %12020 = vmatpush.bf16.msrb.mxu3 %v18254_v12  ;;  %v11610_v38 = vadd.f32 %v11609_v30, %v11596_v3  ;;  %v18194_v5 = vor.u32 %v19961_v36, %v18191_v43  ;;  %v18166_v0 = vor.u32 %v19954_v41, %v18163_v2  ;;  %v11640_v49 = vadd.f32 %v11639_v62, %v11626_v14  ;;  %v19944_v30 = vld [vmem:[%s28148_s5 + $0x960] sm:$0xf0]  ;;  %v19937_v3 = vld [vmem:[%s28148_s5 + $0x928] sm:$0xf0]  ;;  %v17693_v14 = vld [vmem:[%s28148_s5 + $0x600] sm:$0xf] }
 0x668   : > { %11923 = vmatpush.bf16.msrb.mxu2 %v18222_v56  ;;  %v19933_v56 = vld [vmem:[%s28148_s5 + $0x90c] sm:$0xf]  ;;  %v20024_v43 = vld [vmem:[%s28150_s7 + $0x80] sm:$0xff] }
 0x669   : > { %12510 = vmatpush.bf16.msrb.mxu0 %v20019_v19  ;;  %12014 = vmatmul.bf16.vlgmr.msra.gmra.mxu1 %v25983_v4  ;;  %v19972_v4 = vld [vmem:[%s28148_s5 + $0xa40] sm:$0xf0]  ;;  %v18198_v19 = vor.u32 %v19965_v48, %v18197_v31  ;;  %v11624_v1 = vadd.f32 %v11623_v57, %v11610_v38  ;;  %v11654_v57 = vadd.f32 %v11653_v35, %v11640_v49  ;;  %v18051_v38 = vld [vmem:[%s28148_s5 + $0x8ec] sm:$0xf0]  ;;  %v17665_v49 = vld [vmem:[%s28148_s5 + $0x5c8] sm:$0xf] }
 0x66a   : > { %12520 = vmatpush.bf16.msrb.mxu1 %v20031_v40  ;;  %v18226_v27 = vor.u32 %v19972_v4, %v18225_v47  ;;  %v20016_v40 = vld [vmem:[%s28150_s7 + $0x40] sm:$0xff]  ;;  %v18054_v41 = vor.u32 %v19926_v15, %v18051_v38 }
 0x66b   : > { %v11638_v12 = vadd.f32 %v11637_v13, %v11624_v1  ;;  %v19940_v4 = vld [vmem:[%s28148_s5 + $0x944] sm:$0xf]  ;;  %v12057_v36 = vmax.f32 %v11654_v57, 0.0  ;;  %v17749_v1 = vld [vmem:[%s28148_s5 + $0x670] sm:$0xf] }
 0x66c   : > { %12021 = vmatpush.bf16.msrb.mxu3 %v18226_v27  ;;  %11924 = vmatpush.bf16.msrb.mxu2 %v18194_v5  ;;  %v18110_v13 = vor.u32 %v19940_v4, %v18107_v59  ;;  %v18079_v27 = vld [vmem:[%s28148_s5 + $0x924] sm:$0xf0]  ;;  %v17805_v5 = vld [vmem:[%s28148_s5 + $0x6e0] sm:$0xf]  ;;  %v17750_v6 = vor.u32 %v19853_v44, %v17749_v1  ;;  %v19832_v35 = vld [vmem:[%s28148_s5 + $0x5e0] sm:$0xf0] }
 0x66d   : > { %12511 = vmatpush.bf16.msrb.mxu0 %v20018_v60  ;;  %v18141_v60 = vld [vmem:[%s28148_s5 + $0x980] sm:$0xf]  ;;  %v18082_v48 = vor.u32 %v19933_v56, %v18079_v27  ;;  %v20034_v4 = vld [vmem:[%s28150_s7 + $0xd0] sm:$0xff]  ;;  %v19825_v59 = vld [vmem:[%s28148_s5 + $0x5a8] sm:$0xf0] }
 0x66e   : > { %12521 = vmatpush.bf16.msrb.mxu1 %v20030_v34  ;;  %v19947_v34 = vld [vmem:[%s28148_s5 + $0x97c] sm:$0xf]  ;;  %v18142_v47 = vor.u32 %v19951_v21, %v18141_v60  ;;  %v11679_v60 = vpop.f32.mrf.mxu0  ;;  %v11693_v21 = vpop.f32.mrf.mxu1  ;;  %v17637_v57 = vld [vmem:[%s28148_s5 + $0x590] sm:$0xf]  ;;  %v17609_v56 = vld [vmem:[%s28148_s5 + $0x558] sm:$0xf] }
 0x66f   : > { %v18138_v26 = vor.u32 %v19947_v34, %v18135_v23  ;;  %v19839_v23 = vld [vmem:[%s28148_s5 + $0x618] sm:$0xf0]  ;;  %v19818_v27 = vld [vmem:[%s28148_s5 + $0x570] sm:$0xf0] }
 0x670   : > { %12022 = vmatpush.bf16.msrb.mxu3 %v18198_v19  ;;  %11925 = vmatpush.bf16.msrb.mxu2 %v18166_v0  ;;  %v19867_v19 = vld [vmem:[%s28148_s5 + $0x6f8] sm:$0xf0]  ;;  %v17721_v0 = vld [vmem:[%s28148_s5 + $0x638] sm:$0xf] }
 0x671   : > { %12512 = vmatpush.bf16.msrb.mxu0 %v20017_v11  ;;  %v11652_v11 = vadd.f32 %v11651_v33, %v11638_v12  ;;  %v18086_v33 = vor.u32 %v19937_v3, %v18085_v63  ;;  %v17806_v2 = vor.u32 %v19867_v19, %v17805_v5  ;;  %v20035_v12 = vld [vmem:[%s28150_s7 + $0xd8] sm:$0xff]  ;;  %v17610_v3 = vor.u32 %v19818_v27, %v17609_v56 }
 0x672   : > { %12522 = vmatpush.bf16.msrb.mxu1 %v20029_v61  ;;  %v18113_v61 = vld [vmem:[%s28148_s5 + $0x948] sm:$0xf]  ;;  %v11374_v19 = vadd.f32 %v26711_v9, %v9472_v8 }
 0x673   : > { %v18114_v7 = vor.u32 %v19944_v30, %v18113_v61  ;;  %v12050_v31 = vmax.f32 %v11652_v11, 0.0  ;;  %v20033_v11 = vld [vmem:[%s28150_s7 + $0xc8] sm:$0xff] }
 0x674   : > { %12023 = vmatpush.bf16.msrb.mxu3 %v18170_v46  ;;  %11926 = vmatpush.bf16.msrb.mxu2 %v18138_v26  ;;  %v19846_v46 = vld [vmem:[%s28148_s5 + $0x650] sm:$0xf0]  ;;  %v11665_v62 = vpop.f32.mrf.mxu2  ;;  %v9475_v26 = vperm.slane %v27707_v24, 3 }
 0x675   : > { %12513 = vmatpush.bf16.msrb.mxu0 %v20016_v40  ;;  %v18057_v40 = vld [vmem:[%s28148_s5 + $0x8d8] sm:$0xf]  ;;  %v17722_v34 = vor.u32 %v19846_v46, %v17721_v0 }
 0x676   : > { %12523 = vmatpush.bf16.msrb.mxu1 %v20028_v22  ;;  %v12064_v22 = vpack.c.bf16 %v12057_v36, %v12050_v31  ;;  %v18058_v42 = vor.u32 %v19930_v17, %v18057_v40  ;;  %v11666_v61 = vadd.f32 %v11665_v62, %v9475_v26  ;;  %v11681_v30 = vpop.f32.mrf.mxu0  ;;  %v11707_v31 = vpop.f32.mrf.mxu3  ;;  %v20014_v40 = vld [vmem:[%s28150_s7 + $0x30] sm:$0xff]  ;;  %v20008_v62 = vld [vmem:[%s28150_s7] sm:$0xff] }
 0x678   : > { %12514 = vmatmul.bf16.vlgmr.msrb.gmra.mxu0 %v12063_v10  ;;  %12024 = vmatpush.bf16.msrb.mxu3 %v18142_v47  ;;  %v20037_v10 = vld [vmem:[%s28150_s7 + $0xe8] sm:$0xff]  ;;  %v17666_v47 = vor.u32 %v19832_v35, %v17665_v49  ;;  %v11680_v36 = vadd.f32 %v11679_v60, %v11666_v61  ;;  %v9476_v35 = vperm.slane %v27707_v24, 4 }
 0x679   : > { %11927 = vmatpush.bf16.msrb.mxu2 %v18110_v13  ;;  %v11695_v13 = vpop.f32.mrf.mxu1 }
 0x67a   : > { %12524 = vmatpush.bf16.msrb.mxu1 %v20027_v16  ;;  %v17778_v16 = vor.u32 %v19860_v20, %v17777_v18  ;;  %v11388_v18 = vadd.f32 %v26719_v54, %v11374_v19  ;;  %v20011_v54 = vld [vmem:[%s28150_s7 + $0x18] sm:$0xff] }
 0x67c   : > { %12025 = vmatpush.bf16.msrb.mxu3 %v18114_v7  ;;  %v11667_v7 = vpop.f32.mrf.mxu2  ;;  %v11402_v45 = vadd.f32 %v27362_v55, %v11388_v18  ;;  %v20010_v55 = vld [vmem:[%s28150_s7 + $0x10] sm:$0xff] }
 0x67d   : > { %11928 = vmatpush.bf16.msrb.mxu2 %v18082_v48  ;;  %v11668_v63 = vadd.f32 %v11667_v7, %v9475_v26  ;;  %v20015_v48 = vld [vmem:[%s28150_s7 + $0x38] sm:$0xff] }
 0x67e   : > { %12525 = vmatpush.bf16.msrb.mxu1 %v20026_v52  ;;  %v17694_v52 = vor.u32 %v19839_v23, %v17693_v14 }
 0x67f   : > { %v11682_v15 = vadd.f32 %v11681_v30, %v11668_v63 }
 0x680   : > { %12026 = vmatpush.bf16.msrb.mxu3 %v18086_v33  ;;  %v11694_v33 = vadd.f32 %v11693_v21, %v11680_v36  ;;  %v20043_v36 = vld [vmem:[%s28150_s7 + $0x118] sm:$0xff] }
 0x681   : > { %11929 = vmatpush.bf16.msrb.mxu2 %v18054_v41  ;;  %v11749_v5 = vpop.f32.mrf.mxu1 }
 0x682   : > { %12526 = vmatpush.bf16.msrb.mxu1 %v20025_v29  ;;  %v17638_v29 = vor.u32 %v19825_v59, %v17637_v57  ;;  %v11708_v17 = vadd.f32 %v11707_v31, %v11694_v33  ;;  %v20045_v57 = vld [vmem:[%s28150_s7 + $0x128] sm:$0xff] }
 0x684   : > { %12027 = vmatpush.bf16.msrb.mxu3 %v18058_v42  ;;  %11930 = vmatmul.bf16.vlgmr.msrb.gmra.mxu2 %v25985_v53  ;;  %v11696_v42 = vadd.f32 %v11695_v13, %v11682_v15 }
 0x685   : > { %11992 = vmatpush.bf16.msra.mxu2 %v17806_v2  ;;  %v20013_v2 = vld [vmem:[%s28150_s7 + $0x28] sm:$0xff] }
 0x686   : > { %12527 = vmatpush.bf16.msrb.mxu1 %v20024_v43  ;;  %v20032_v43 = vld [vmem:[%s28150_s7 + $0xc0] sm:$0xff] }
 0x687   : > { %12028 = vmatmul.bf16.vlgmr.msrb.gmra.mxu3 %v25985_v53  ;;  %v20036_v53 = vld [vmem:[%s28150_s7 + $0xe0] sm:$0xff] }
 0x688   : > { %12534 = vmatpush.bf16.msra.mxu3 %v20039_v51  ;;  %v11709_v51 = vpop.f32.mrf.mxu3 }
 0x689   : > { %12528 = vmatmul.bf16.vlgmr.msrb.gmra.mxu1 %v12064_v22  ;;  %11993 = vmatpush.bf16.msra.mxu2 %v17778_v16  ;;  %v11735_v22 = vpop.f32.mrf.mxu0  ;;  %v11710_v16 = vadd.f32 %v11709_v51, %v11696_v42  ;;  %v20040_v42 = vld [vmem:[%s28150_s7 + $0x100] sm:$0xff] }
 0x68c   : > { %12535 = vmatpush.bf16.msra.mxu3 %v20038_v39 }
 0x68d   : > { %11994 = vmatpush.bf16.msra.mxu2 %v17750_v6  ;;  %v11751_v6 = vpop.f32.mrf.mxu1 }
 0x690   : > { %12536 = vmatpush.bf16.msra.mxu3 %v20037_v10  ;;  %v11416_v10 = vadd.f32 %v27266_v58, %v11402_v45  ;;  %v11763_v60 = vpop.f32.mrf.mxu3  ;;  %v20009_v58 = vld [vmem:[%s28150_s7 + $0x8] sm:$0xff] }
 0x691   : > { %11995 = vmatpush.bf16.msra.mxu2 %v17722_v34  ;;  %v11737_v9 = vpop.f32.mrf.mxu0  ;;  %v20053_v45 = vld [vmem:[%s28150_s7 + $0x168] sm:$0xff] }
 0x692   : > { %v11430_v46 = vadd.f32 %v27563_v25, %v11416_v10  ;;  %v20048_v10 = vld [vmem:[%s28150_s7 + $0x140] sm:$0xff] }
 0x694   : > { %12537 = vmatpush.bf16.msra.mxu3 %v20036_v53  ;;  %v11721_v38 = vpop.f32.mrf.mxu2  ;;  %v11444_v23 = vadd.f32 %v27524_v28, %v11430_v46  ;;  %v20047_v28 = vld [vmem:[%s28150_s7 + $0x138] sm:$0xff]  ;;  %v9477_v46 = vperm.slane %v27707_v24, 5 }
 0x695   : > { %11996 = vmatpush.bf16.msra.mxu2 %v17694_v52  ;;  %v11722_v41 = vadd.f32 %v11721_v38, %v11708_v17  ;;  %v11777_v25 = vpop.f32.mrf.mxu1 }
 0x696   : > { %v11458_v21 = vadd.f32 %v27505_v32, %v11444_v23  ;;  %v20046_v32 = vld [vmem:[%s28150_s7 + $0x130] sm:$0xff] }
 0x697   : > { %v11736_v20 = vadd.f32 %v11735_v22, %v11722_v41 }
 0x698   : > { %12538 = vmatpush.bf16.msra.mxu3 %v20035_v12  ;;  %v12055_v52 = vmax.f32 %v11458_v21, 0.0  ;;  %v12048_v12 = vmax.f32 %v27423_v50, 0.0  ;;  %v11765_v26 = vpop.f32.mrf.mxu3 }
 0x699   : > { %11997 = vmatpush.bf16.msra.mxu2 %v17666_v47  ;;  %v11750_v1 = vadd.f32 %v11749_v5, %v11736_v20  ;;  %v11805_v59 = vpop.f32.mrf.mxu0  ;;  %v11766_v61 = vadd.f32 %v11765_v26, %v9476_v35 }
 0x69a   : > { %v12062_v49 = vpack.c.bf16 %v12055_v52, %v12048_v12 }
 0x69b   : > { %v12051_v34 = vmax.f32 %v11750_v1, 0.0  ;;  %v20050_v1 = vld [vmem:[%s28150_s7 + $0x150] sm:$0xff] }
 0x69c   : > { %12539 = vmatpush.bf16.msra.mxu3 %v20034_v4  ;;  %v11723_v39 = vpop.f32.mrf.mxu2  ;;  %v11764_v4 = vadd.f32 %v11763_v60, %v9476_v35  ;;  %v20059_v35 = vld [vmem:[%s28150_s7 + $0x198] sm:$0xff] }
 0x69d   : > { %11998 = vmatpush.bf16.msra.mxu2 %v17638_v29  ;;  %v11724_v8 = vadd.f32 %v11723_v39, %v11710_v16  ;;  %v11779_v50 = vpop.f32.mrf.mxu1  ;;  %v20044_v29 = vld [vmem:[%s28150_s7 + $0x120] sm:$0xff]  ;;  %12580 = vmatpush.bf16.msra.mxu1 %v20059_v35 }
 0x69e   : > { %v11778_v30 = vadd.f32 %v11777_v25, %v11764_v4  ;;  %v11780_v56 = vadd.f32 %v11779_v50, %v11766_v61  ;;  %v20058_v50 = vld [vmem:[%s28150_s7 + $0x190] sm:$0xff] }
 0x69f   : > { %v11738_v44 = vadd.f32 %v11737_v9, %v11724_v8  ;;  %v20052_v8 = vld [vmem:[%s28150_s7 + $0x160] sm:$0xff]  ;;  %v20051_v9 = vld [vmem:[%s28150_s7 + $0x158] sm:$0xff] }
 0x6a0   : > { %12540 = vmatpush.bf16.msra.mxu3 %v20033_v11  ;;  %v11819_v11 = vpop.f32.mrf.mxu3 }
 0x6a1   : > { %11999 = vmatpush.bf16.msra.mxu2 %v17610_v3  ;;  %v11752_v0 = vadd.f32 %v11751_v6, %v11738_v44  ;;  %v20049_v6 = vld [vmem:[%s28150_s7 + $0x148] sm:$0xff]  ;;  %12581 = vmatpush.bf16.msra.mxu1 %v20058_v50 }
 0x6a3   : > { %v12058_v53 = vmax.f32 %v11752_v0, 0.0 }
 0x6a4   : > { %12541 = vmatpush.bf16.msra.mxu3 %v20032_v43  ;;  %12000 = vmatmul.bf16.vlgmr.msra.gmra.mxu2 %v25815_v37  ;;  %v20012_v37 = vld [vmem:[%s28150_s7 + $0x20] sm:$0xff]  ;;  %v11807_v43 = vpop.f32.mrf.mxu0 }
 0x6a5   : > { %12492 = vmatpush.bf16.msrb.mxu2 %v20015_v48  ;;  %v12065_v14 = vpack.c.bf16 %v12058_v53, %v12051_v34  ;;  %v11833_v63 = vpop.f32.mrf.mxu1  ;;  %v20042_v48 = vld [vmem:[%s28150_s7 + $0x110] sm:$0xff] }
 0x6a7   : > { %12542 = vmatmul.bf16.vlgmr.msra.gmra.mxu3 %v12065_v14 }
 0x6a8   : > { %v11821_v22 = vpop.f32.mrf.mxu3 }
 0x6a9   : > { %12493 = vmatpush.bf16.msrb.mxu2 %v20014_v40  ;;  %v20041_v40 = vld [vmem:[%s28150_s7 + $0x108] sm:$0xff] }
 0x6ad   : > { %12494 = vmatpush.bf16.msrb.mxu2 %v20013_v2  ;;  %v11835_v5 = vpop.f32.mrf.mxu1  ;;  %v20055_v2 = vld [vmem:[%s28150_s7 + $0x178] sm:$0xff] }
 0x6ae   : > { %12562 = vmatpush.bf16.msra.mxu0 %v20055_v2 }
 0x6b1   : > { %12495 = vmatpush.bf16.msrb.mxu2 %v20012_v37  ;;  %v20054_v37 = vld [vmem:[%s28150_s7 + $0x170] sm:$0xff] }
 0x6b2   : > { %12563 = vmatpush.bf16.msra.mxu0 %v20054_v37 }
 0x6b5   : > { %12496 = vmatpush.bf16.msrb.mxu2 %v20011_v54  ;;  %v11861_v54 = vpop.f32.mrf.mxu0  ;;  %v11903_v23 = vpop.f32.mrf.mxu1 }
 0x6b6   : > { %v11791_v47 = vpop.f32.mrf.mxu2  ;;  %12564 = vmatpush.bf16.msra.mxu0 %v20053_v45  ;;  %v11889_v44 = vpop.f32.mrf.mxu3 }
 0x6b7   : > { %v11792_v7 = vadd.f32 %v11791_v47, %v11778_v30 }
 0x6b9   : > { %12497 = vmatpush.bf16.msrb.mxu2 %v20010_v55  ;;  %v11806_v3 = vadd.f32 %v11805_v59, %v11792_v7  ;;  %v11862_v55 = vadd.f32 %v11861_v54, %v9477_v46 }
 0x6ba   : > { %12565 = vmatpush.bf16.msra.mxu0 %v20052_v8 }
 0x6bb   : > { %v11820_v15 = vadd.f32 %v11819_v11, %v11806_v3 }
 0x6bd   : > { %12498 = vmatpush.bf16.msrb.mxu2 %v20009_v58  ;;  %v11834_v17 = vadd.f32 %v11833_v63, %v11820_v15  ;;  %v11863_v53 = vpop.f32.mrf.mxu0 }
 0x6be   : > { %v11793_v13 = vpop.f32.mrf.mxu2  ;;  %12566 = vmatpush.bf16.msra.mxu0 %v20051_v9  ;;  %v11891_v34 = vpop.f32.mrf.mxu3  ;;  %v11864_v58 = vadd.f32 %v11863_v53, %v9477_v46 }
 0x6bf   : > { %v11794_v27 = vadd.f32 %v11793_v13, %v11780_v56  ;;  %v20057_v13 = vld [vmem:[%s28150_s7 + $0x188] sm:$0xff] }
 0x6c0   : > { %12582 = vmatpush.bf16.msra.mxu1 %v20057_v13 }
 0x6c1   : > { %12499 = vmatpush.bf16.msrb.mxu2 %v20008_v62  ;;  %v11808_v31 = vadd.f32 %v11807_v43, %v11794_v27  ;;  %v20056_v43 = vld [vmem:[%s28150_s7 + $0x180] sm:$0xff] }
 0x6c2   : > { %12567 = vmatpush.bf16.msra.mxu0 %v20050_v1 }
 0x6c3   : > { %v11822_v38 = vadd.f32 %v11821_v22, %v11808_v31 }
 0x6c4   : > { %12500 = vmatmul.bf16.vlgmr.msrb.gmra.mxu2 %v12062_v49  ;;  %12583 = vmatpush.bf16.msra.mxu1 %v20056_v43 }
 0x6c5   : > { %12548 = vmatpush.bf16.msra.mxu2 %v20047_v28  ;;  %v11836_v41 = vadd.f32 %v11835_v5, %v11822_v38  ;;  %v11917_v21 = vpop.f32.mrf.mxu0 }
 0x6c6   : > { %v11847_v33 = vpop.f32.mrf.mxu2  ;;  %12568 = vmatpush.bf16.msra.mxu0 %v20049_v6  ;;  %v11945_v25 = vpop.f32.mrf.mxu3 }
 0x6c7   : > { %v11848_v19 = vadd.f32 %v11847_v33, %v11834_v17 }
 0x6c9   : > { %12549 = vmatpush.bf16.msra.mxu2 %v20046_v32  ;;  %v12052_v20 = vmax.f32 %v11848_v19, 0.0  ;;  %v11905_v32 = vpop.f32.mrf.mxu1 }
 0x6ca   : > { %12569 = vmatpush.bf16.msra.mxu0 %v20048_v10 }
 0x6cd   : > { %12550 = vmatpush.bf16.msra.mxu2 %v20045_v57  ;;  %v11919_v4 = vpop.f32.mrf.mxu0 }
 0x6ce   : > { %v11849_v51 = vpop.f32.mrf.mxu2  ;;  %v11947_v57 = vpop.f32.mrf.mxu3 }
 0x6cf   : > { %v11850_v18 = vadd.f32 %v11849_v51, %v11836_v41 }
 0x6d1   : > { %12551 = vmatpush.bf16.msra.mxu2 %v20044_v29  ;;  %v12059_v16 = vmax.f32 %v11850_v18, 0.0  ;;  %v11959_v7 = vpop.f32.mrf.mxu1 }
 0x6d3   : > { %v12066_v39 = vpack.c.bf16 %v12059_v16, %v12052_v20 }
 0x6d5   : > { %12552 = vmatpush.bf16.msra.mxu2 %v20043_v36  ;;  %v11987_v27 = vpop.f32.mrf.mxu0 }
 0x6d9   : > { %12553 = vmatpush.bf16.msra.mxu2 %v20042_v48  ;;  %v9478_v48 = vperm.slane %v27707_v24, 6  ;;  %v11961_v33 = vpop.f32.mrf.mxu1 }
 0x6db   : > { %v11960_v15 = vadd.f32 %v11959_v7, %v9478_v48  ;;  %v11962_v41 = vadd.f32 %v11961_v33, %v9478_v48 }
 0x6dd   : > { %12554 = vmatpush.bf16.msra.mxu2 %v20041_v40  ;;  %v11989_v22 = vpop.f32.mrf.mxu0 }
 0x6e1   : > { %12555 = vmatpush.bf16.msra.mxu2 %v20040_v42 }
 0x6e4   : > { %12556 = vmatmul.bf16.vlgmr.msra.gmra.mxu2 %v12066_v39 }
 0x6e5   : > { %v12043_v18 = vpop.f32.mrf.mxu0 }
 0x6e6   : > { %v11875_v0 = vpop.f32.mrf.mxu2  ;;  %v12015_v5 = vpop.f32.mrf.mxu1 }
 0x6e7   : > { %v11876_v14 = vadd.f32 %v11875_v0, %v11862_v55  ;;  %v20102_v55 = vld [vmem:[%s28151_s8] ss:$0 sm:$0xff] }
 0x6e9   : > { %v11890_v62 = vadd.f32 %v11889_v44, %v11876_v14  ;;  %v11973_v36 = vpop.f32.mrf.mxu3 }
 0x6ea   : > { %v11974_v40 = vadd.f32 %v11973_v36, %v11960_v15 }
 0x6eb   : > { %v11904_v12 = vadd.f32 %v11903_v23, %v11890_v62 }
 0x6ec   : > { %v11988_v17 = vadd.f32 %v11987_v27, %v11974_v40 }
 0x6ed   : > { %v11918_v26 = vadd.f32 %v11917_v21, %v11904_v12  ;;  %v12045_v6 = vpop.f32.mrf.mxu0 }
 0x6ee   : > { %v11877_v60 = vpop.f32.mrf.mxu2  ;;  %v12017_v8 = vpop.f32.mrf.mxu1 }
 0x6ef   : > { %v11878_v52 = vadd.f32 %v11877_v60, %v11864_v58 }
 0x6f1   : > { %v11892_v28 = vadd.f32 %v11891_v34, %v11878_v52  ;;  %v11975_v38 = vpop.f32.mrf.mxu3 }
 0x6f2   : > { %v11976_v51 = vadd.f32 %v11975_v38, %v11962_v41 }
 0x6f3   : > { %v11906_v47 = vadd.f32 %v11905_v32, %v11892_v28 }
 0x6f4   : > { %v11990_v16 = vadd.f32 %v11989_v22, %v11976_v51 }
 0x6f5   : > { %v11920_v61 = vadd.f32 %v11919_v4, %v11906_v47  ;;  %v12515_v53 = vpop.f32.mrf.mxu0 }
 0x6fd   : > { %v12517_v58 = vpop.f32.mrf.mxu0 }
 0x706   : > { %v12529_v14 = vpop.f32.mrf.mxu1 }
 0x707   : > { %v11931_v49 = vpop.f32.mrf.mxu2 }
 0x708   : > { %v11932_v59 = vadd.f32 %v11931_v49, %v11918_v26 }
 0x70a   : > { %v11946_v29 = vadd.f32 %v11945_v25, %v11932_v59  ;;  %v12029_v2 = vpop.f32.mrf.mxu3 }
 0x70c   : > { %v12053_v63 = vmax.f32 %v11946_v29, 0.0 }
 0x70e   : > { %v12531_v25 = vpop.f32.mrf.mxu1 }
 0x70f   : > { %v11933_v30 = vpop.f32.mrf.mxu2 }
 0x710   : > { %v11934_v11 = vadd.f32 %v11933_v30, %v11920_v61 }
 0x712   : > { %v11948_v56 = vadd.f32 %v11947_v57, %v11934_v11  ;;  %v12031_v9 = vpop.f32.mrf.mxu3 }
 0x714   : > { %v12060_v3 = vmax.f32 %v11948_v56, 0.0 }
 0x716   : > { %v12067_v31 = vpack.c.bf16 %v12060_v3, %v12053_v63 }
 0x718   : > { %12570 = vmatmul.bf16.vlgmr.msra.gmra.mxu0 %v12067_v31 }
 0x727   : > { %v12001_v19 = vpop.f32.mrf.mxu2 }
 0x728   : > { %v12002_v42 = vadd.f32 %v12001_v19, %v11988_v17 }
 0x72a   : > { %v12016_v20 = vadd.f32 %v12015_v5, %v12002_v42  ;;  %v12543_v28 = vpop.f32.mrf.mxu3 }
 0x72c   : > { %v12030_v37 = vadd.f32 %v12029_v2, %v12016_v20 }
 0x72e   : > { %v12044_v1 = vadd.f32 %v12043_v18, %v12030_v37 }
 0x72f   : > { %v12003_v39 = vpop.f32.mrf.mxu2 }
 0x730   : > { %v12004_v45 = vadd.f32 %v12003_v39, %v11990_v16  ;;  %v12054_v10 = vmax.f32 %v12044_v1, 0.0 }
 0x732   : > { %v12018_v24 = vadd.f32 %v12017_v8, %v12004_v45  ;;  %v12545_v50 = vpop.f32.mrf.mxu3 }
 0x734   : > { %v12032_v44 = vadd.f32 %v12031_v9, %v12018_v24 }
 0x736   : > { %v12046_v54 = vadd.f32 %v12045_v6, %v12032_v44 }
 0x738   : > { %v12061_v0 = vmax.f32 %v12046_v54, 0.0 }
 0x73a   : > { %v12068_v46 = vpack.c.bf16 %v12061_v0, %v12054_v10 }
 0x73c   : > { %18582 = vmatmul.msk.bf16.vlgmr.msra.gmra.mxu1 %vm11358_vm0, %v12068_v46 }
 0x747   : > { %v12501_v34 = vpop.f32.mrf.mxu2 }
 0x748   : > { %v12502_v23 = vadd.f32 %v20102_v55, %v12501_v34 }
 0x74a   : > { %v12516_v21 = vadd.f32 %v12515_v53, %v12502_v23 }
 0x74c   : > { %v12530_v52 = vadd.f32 %v12529_v14, %v12516_v21 }
 0x74e   : > { %v12544_v32 = vadd.f32 %v12543_v28, %v12530_v52 }
 0x74f   : > { %v12503_v60 = vpop.f32.mrf.mxu2 }
 0x750   : > { %v12504_v62 = vadd.f32 %v20102_v55, %v12503_v60 }
 0x752   : > { %v12518_v35 = vadd.f32 %v12517_v58, %v12504_v62 }
 0x754   : > { %v12532_v47 = vadd.f32 %v12531_v25, %v12518_v35 }
 0x756   : > { %v12546_v30 = vadd.f32 %v12545_v50, %v12532_v47 }
 0x767   : > { %v12557_v12 = vpop.f32.mrf.mxu2 }
 0x768   : > { %v12558_v26 = vadd.f32 %v12557_v12, %v12544_v32 }
 0x76f   : > { %v12559_v61 = vpop.f32.mrf.mxu2 }
 0x770   : > { %v12560_v11 = vadd.f32 %v12559_v61, %v12546_v30 }
 0x795   : > { %v12571_v49 = vpop.f32.mrf.mxu0 }
 0x796   : > { %v12572_v4 = vadd.f32 %v12571_v49, %v12558_v26 }
 0x79d   : > { %v12573_v29 = vpop.f32.mrf.mxu0 }
 0x79e   : > { %v12574_v13 = vadd.f32 %v12573_v29, %v12560_v11 }
 0x7b9   : > { %v12585_v57 = vpop.f32.mrf.mxu1 }
 0x7ba   : > { %v12586_v59 = vadd.f32 %v12585_v57, %v12572_v4 }
 0x7bc   : > { %12590 = vst [vmem:[%s28152_s9] sm:$0xff] %v12586_v59 }
 0x7c1   : > { %v12587_v7 = vpop.f32.mrf.mxu1 }
 0x7c2   : > { %v12588_v56 = vadd.f32 %v12587_v7, %v12574_v13 }
 0x7c4   : > { %12591 = vst [vmem:[%s28152_s9 + $0x8] sm:$0xff] %v12588_v56 }
 0x7c5 PF: > { %s19_s13 = sadd.s32 1, %s20145_s13   ;;  %s28227_s30 = smov %s20133_s10 }
 0x7c6   : > { %p16_p12 = scmp.ge.s32.totalorder %s19_s13, 4   ;;  %s28228_s10 = smov %s20233_s17 }
 0x7c7   : > { %s28229_s11 = smov %s20141_s12  ;;  %s28230_s12 = smov %s28232_s14 }
 0x7c8   :  { %18 = sbr.rel (!%p16_p12) target bundleno = 3 (0x3), region = 125 }

</bundles_post_ra>
